<compile_context>
chip_gen: v7x
topology: tpu7x:2x2x1
jax: 0.10.0
libtpu: 0.0.40
codegen_flags: <defaults>
</compile_context>

<pallas_src>
import functools

import jax
import jax.numpy as jnp
from jax.experimental import pallas as pl
from jax.experimental.pallas import tpu as pltpu


def _vmem_limit_bytes():
    # Generation-aware VMEM budget: ~70% of physical (128 MiB on v5e/v6e,
    # 64 MiB on v7x), falling back to a conservative value if the query fails.
    try:
        cap = int(pltpu.get_tpu_info().vmem_capacity_bytes)
        return max(32 * 1024 * 1024, int(cap * 0.70))
    except Exception:
        return 44 * 1024 * 1024


# ----------------------------------------------------------------------------
# Fused kernel: all bi-LSTM layers + start/end heads + masked_fill
# ----------------------------------------------------------------------------
def answer_decoder_kernel(*refs, H, nlayers):
    bf16 = jnp.bfloat16
    f32 = jnp.float32

    len_ref, e_ref, s_ref = refs[0], refs[1], refs[2]
    idx = 3
    layer_refs = []
    for _ in range(nlayers):
        layer_refs.append(refs[idx:idx + 4])      # (wa, wb, b, whh)
        idx += 4
    head_w_ref, head_b_ref = refs[idx], refs[idx + 1]
    out_ref = refs[idx + 2]
    xp_scr, fwd_scr, bwd_scr = refs[idx + 3], refs[idx + 4], refs[idx + 5]

    L, B, E = e_ref.shape
    G = 4 * H                                     # gates per direction

    lens = len_ref[...]                           # (B, 1) int32, vreg-resident

    def lstm_cell(gates, c_prev):
        # PyTorch gate order: i, f, g, o
        i_g = jax.nn.sigmoid(gates[:, 0:H])
        f_g = jax.nn.sigmoid(gates[:, H:2 * H])
        g_g = jnp.tanh(gates[:, 2 * H:3 * H])
        o_g = jax.nn.sigmoid(gates[:, 3 * H:4 * H])
        c_new = f_g * c_prev + i_g * g_g
        h_new = o_g * jnp.tanh(c_new)
        return h_new, c_new

    unroll = True if L <= 64 else 8               # partial unroll for long L

    for li in range(nlayers):
        wa_ref, wb_ref, b_ref, whh_ref = layer_refs[li]

        # ------------------------------------------------------------------
        # 1) Hoisted input projection: one lane-dense GEMM over all L*B rows,
        #    both directions at once -> (L, B, 8H) bf16 scratch.
        # ------------------------------------------------------------------
        if li == 0:
            e = e_ref[...]                        # (L, B, E) f32
            s = s_ref[...]                        # (B, E)    f32
            s3 = s[None, :, :]
            # [e, e*s, |e-s|] folded into one stacked (3E, 8H) weight (single
            # long-K GEMM); the timestep-invariant s-term is computed once.
            x0 = jnp.concatenate([e, e * s3, jnp.abs(e - s3)], axis=-1)
            x0 = x0.reshape(L * B, 3 * E).astype(bf16)
            xp = jnp.dot(x0, wa_ref[...], preferred_element_type=f32)
            xp_s = jnp.dot(s.astype(bf16), wb_ref[...],
                           preferred_element_type=f32)            # (B, 8H)
            xp = xp.reshape(L, B, 2 * G) + xp_s[None, :, :] + b_ref[...][None, :, :]
        else:
            # previous layer's fwd/bwd halves projected through a pre-split
            # weight -> no (L, B, 2H) concat copy.
            fwd2 = fwd_scr[...].reshape(L * B, H)                  # bf16
            bwd2 = bwd_scr[...].reshape(L * B, H)
            xp = jnp.dot(fwd2, wa_ref[...], preferred_element_type=f32)
            xp = xp + jnp.dot(bwd2, wb_ref[...], preferred_element_type=f32)
            xp = xp.reshape(L, B, 2 * G) + b_ref[...][None, :, :]
        xp_scr[...] = xp.astype(bf16)

        # ------------------------------------------------------------------
        # 2) Sequential recurrence.  One block-diagonal h-matmul per step for
        #    BOTH directions; h/c live in the fori_loop carry (vregs); only
        #    the per-step h outputs are written to VMEM (bf16).
        #    Packed-sequence semantics: state frozen and outputs zeroed at
        #    pad (t >= length) steps; backward starts from zero state through
        #    the trailing pads.
        # ------------------------------------------------------------------
        whh = whh_ref[...]                        # (2H, 8H) bf16, resident

        def step(it, carry):
            h_f, c_f, h_b, c_b = carry
            t_f = it
            t_b = L - 1 - it
            keep_f = t_f < lens                   # (B, 1) register compare
            keep_b = t_b < lens

            h_cat = jnp.concatenate([h_f, h_b], axis=-1).astype(bf16)   # (B, 2H)
            g_all = jnp.dot(h_cat, whh, preferred_element_type=f32)     # (B, 8H)

            # forward direction, t = it
            gates_f = xp_scr[t_f, :, 0:G].astype(f32) + g_all[:, 0:G]
            h_nf, c_nf = lstm_cell(gates_f, c_f)
            h_f = jnp.where(keep_f, h_nf, h_f)
            c_f = jnp.where(keep_f, c_nf, c_f)
            fwd_scr[t_f] = jnp.where(keep_f, h_nf, 0.0).astype(bf16)

            # backward direction, t = L - 1 - it
            gates_b = xp_scr[t_b, :, G:2 * G].astype(f32) + g_all[:, G:2 * G]
            h_nb, c_nb = lstm_cell(gates_b, c_b)
            h_b = jnp.where(keep_b, h_nb, h_b)
            c_b = jnp.where(keep_b, c_nb, c_b)
            bwd_scr[t_b] = jnp.where(keep_b, h_nb, 0.0).astype(bf16)
            return (h_f, c_f, h_b, c_b)

        zero = jnp.zeros((B, H), f32)
        jax.lax.fori_loop(0, L, step, (zero, zero, zero, zero), unroll=unroll)

    # ----------------------------------------------------------------------
    # 3) Head epilogue fused into the last layer: start/end linears as VPU
    #    multiply + lane reduce (no N=2 MXU pass), masked_fill(-10000) at
    #    pad positions, one lane-dense (2, B, L) output block.
    # ----------------------------------------------------------------------
    fwd = fwd_scr[...].astype(f32)                # (L, B, H)
    bwd = bwd_scr[...].astype(f32)
    hw = head_w_ref[...]                          # (2, 2H) f32
    hb = head_b_ref[...]                          # (1, 2)  f32
    start_lb = (jnp.sum(fwd * hw[0:1, 0:H][None, :, :], axis=-1)
                + jnp.sum(bwd * hw[0:1, H:2 * H][None, :, :], axis=-1)
                + hb[0:1, 0:1])                   # (L, B)
    end_lb = (jnp.sum(fwd * hw[1:2, 0:H][None, :, :], axis=-1)
              + jnp.sum(bwd * hw[1:2, H:2 * H][None, :, :], axis=-1)
              + hb[0:1, 1:2])
    pos = jax.lax.broadcasted_iota(jnp.int32, (B, L), 1)
    valid = pos < lens                            # (B, L)
    out_ref[0] = jnp.where(valid, jnp.transpose(start_lb), -10000.0)
    out_ref[1] = jnp.where(valid, jnp.transpose(end_lb), -10000.0)


# ----------------------------------------------------------------------------
# pallas_call wrapper (whole decoder, one call)
# ----------------------------------------------------------------------------
def lstm_stack_call(lengths_b1, e, init_s, params, *, H, nlayers):
    L, B, E = e.shape

    # Full-batch tile on one grid step (fills the MXU rows of the recurrent
    # matmul).  Only split the batch when it is large enough that a second
    # TensorCore (v7x) can be fed without starving the MXU.
    if B >= 512 and B % 2 == 0 and (B // 2) % 8 == 0:
        nbt = 2
    else:
        nbt = 1
    Bt = B // nbt

    def full(a):
        zeros = (0,) * a.ndim

        def imap(b):
            return zeros
        return pl.BlockSpec(a.shape, imap)

    in_arrays = [lengths_b1, e, init_s]
    in_specs = [
        pl.BlockSpec((Bt, 1), lambda b: (b, 0)),
        pl.BlockSpec((L, Bt, E), lambda b: (0, b, 0)),
        pl.BlockSpec((Bt, E), lambda b: (b, 0)),
    ]
    for lp in params["lstm"]:
        if "w_eam" in lp:
            layer_arrays = [lp["w_eam"], lp["w_s"], lp["b"], lp["whh"]]
        else:
            layer_arrays = [lp["wih_top"], lp["wih_bot"], lp["b"], lp["whh"]]
        in_arrays += layer_arrays
        in_specs += [full(a) for a in layer_arrays]
    in_arrays += [params["head_w"], params["head_b"]]
    in_specs += [full(params["head_w"]), full(params["head_b"])]

    out_shape = jax.ShapeDtypeStruct((2, B, L), jnp.float32)
    out_specs = pl.BlockSpec((2, Bt, L), lambda b: (0, b, 0))

    scratch_shapes = [
        pltpu.VMEM((L, Bt, 8 * H), jnp.bfloat16),   # hoisted input projections
        pltpu.VMEM((L, Bt, H), jnp.bfloat16),       # forward hidden outputs
        pltpu.VMEM((L, Bt, H), jnp.bfloat16),       # backward hidden outputs
    ]

    kernel = functools.partial(answer_decoder_kernel, H=H, nlayers=nlayers)
    return pl.pallas_call(
        kernel,
        out_shape=out_shape,
        grid=(nbt,),
        in_specs=in_specs,
        out_specs=out_specs,
        scratch_shapes=scratch_shapes,
        compiler_params=pltpu.CompilerParams(
            dimension_semantics=("parallel",),
            vmem_limit_bytes=_vmem_limit_bytes(),
        ),
    )(*in_arrays)


# ----------------------------------------------------------------------------
# AnswerDecoder forward (JAX glue around the fused kernel)
# ----------------------------------------------------------------------------
def answer_decoder_forward(params, init_state, c_ids):
    # return_mask_lengths
    c_mask = (c_ids != 0)
    lengths = jnp.sum(c_mask.astype(jnp.int32), axis=1, keepdims=True)   # (B, 1)
    # TODO(synk): the original `embedding` is a contextualized (BERT-style)
    # module; a plain word-embedding lookup stands in for it here (JAX glue).
    c_emb = jnp.take(params["emb_table"], c_ids, axis=0)                 # (B, L, E)
    c_emb = c_emb * c_mask[:, :, None].astype(jnp.float32)

    e = jnp.transpose(c_emb, (1, 0, 2))                                  # (L, B, E)

    H = params["lstm"][0]["whh"].shape[0] // 2
    nlayers = len(params["lstm"])
    logits = lstm_stack_call(lengths, e, init_state, params, H=H, nlayers=nlayers)
    return logits[0], logits[1]                                          # (B, L) each


# ----------------------------------------------------------------------------
# Parameters
# ----------------------------------------------------------------------------
def make_params(key, vocab, emsize, nhidden, nlayers):
    H = nhidden
    ks = jax.random.split(key, 3 + 8 * nlayers)

    def rnd(k, shape, dtype=jnp.float32):
        return (0.1 * jax.random.normal(k, shape, jnp.float32)).astype(dtype)

    def block_diag(a, b):
        z = jnp.zeros_like(a)
        top = jnp.concatenate([a, z], axis=1)
        bot = jnp.concatenate([z, b], axis=1)
        return jnp.concatenate([top, bot], axis=0)          # (2H, 8H)

    params = {
        "emb_table": rnd(ks[0], (vocab, emsize)),
        # start_linear / end_linear fused: row 0 = start, row 1 = end
        "head_w": rnd(ks[1], (2, 2 * H)),
        "head_b": rnd(ks[2], (1, 2)),
        "lstm": [],
    }
    kidx = 3
    for layer_idx in range(nlayers):
        kk = ks[kidx:kidx + 8]
        kidx += 8
        whh_f = rnd(kk[5], (H, 4 * H))
        whh_b = rnd(kk[6], (H, 4 * H))
        whh = block_diag(whh_f, whh_b).astype(jnp.bfloat16)   # fused fwd/bwd h-weight
        if layer_idx == 0:
            # [e, e*s, |e-s|] stacked along K into one (3E, 8H) weight; the
            # timestep-invariant init_state block kept separate.  Columns are
            # [fwd 4H | bwd 4H], gate order i,f,g,o per direction.
            layer = {
                "w_eam": rnd(kk[0], (3 * emsize, 8 * H), jnp.bfloat16),
                "w_s": rnd(kk[1], (emsize, 8 * H), jnp.bfloat16),
                "b": rnd(kk[2], (1, 8 * H)),
                "whh": whh,
            }
        else:
            # (2H, 8H) input weight pre-split into fwd-half / bwd-half rows so
            # the kernel never concatenates the previous layer's outputs.
            layer = {
                "wih_top": rnd(kk[0], (H, 8 * H), jnp.bfloat16),
                "wih_bot": rnd(kk[1], (H, 8 * H), jnp.bfloat16),
                "b": rnd(kk[2], (1, 8 * H)),
                "whh": whh,
            }
        params["lstm"].append(layer)
    return params


if __name__ == "__main__":
    B, L = 2, 8
    vocab, emsize, nhidden, nlayers = 64, 32, 32, 2

    key = jax.random.PRNGKey(0)
    k_param, k_ids, k_state = jax.random.split(key, 3)

    params = make_params(k_param, vocab, emsize, nhidden, nlayers)

    c_ids = jax.random.randint(k_ids, (B, L), 1, vocab, dtype=jnp.int32)
    # pad tails with 0 so mask / packed-sequence semantics are exercised
    c_ids = c_ids.at[0, 6:].set(0)
    c_ids = c_ids.at[1, 5:].set(0)

    init_state = jax.random.normal(k_state, (B, emsize), jnp.float32)

    start_logits, end_logits = answer_decoder_forward(params, init_state, c_ids)
    jax.block_until_ready((start_logits, end_logits))

    assert start_logits.shape == (B, L) and end_logits.shape == (B, L)
    # padded positions must carry the masked_fill sentinel
    assert float(start_logits[0, 7]) == -10000.0
    assert float(end_logits[1, 6]) == -10000.0
    print("KERNEL_OK")
</pallas_src>

<mosaic_0001>
module attributes {stable_mosaic.version = 11 : i64} {
  func.func @answer_decoder_kernel(%arg0: i32, %arg1: memref<2x1xi32, #tpu.memory_space<vmem>>, %arg2: memref<8x2x32xf32, #tpu.memory_space<vmem>>, %arg3: memref<2x32xf32, #tpu.memory_space<vmem>>, %arg4: memref<96x256xbf16, #tpu.memory_space<vmem>>, %arg5: memref<32x256xbf16, #tpu.memory_space<vmem>>, %arg6: memref<1x256xf32, #tpu.memory_space<vmem>>, %arg7: memref<64x256xbf16, #tpu.memory_space<vmem>>, %arg8: memref<32x256xbf16, #tpu.memory_space<vmem>>, %arg9: memref<32x256xbf16, #tpu.memory_space<vmem>>, %arg10: memref<1x256xf32, #tpu.memory_space<vmem>>, %arg11: memref<64x256xbf16, #tpu.memory_space<vmem>>, %arg12: memref<2x64xf32, #tpu.memory_space<vmem>>, %arg13: memref<1x2xf32, #tpu.memory_space<vmem>>, %arg14: memref<2x2x8xf32, #tpu.memory_space<vmem>>, %arg15: memref<8x2x256xbf16, #tpu.memory_space<vmem>>, %arg16: memref<8x2x32xbf16, #tpu.memory_space<vmem>>, %arg17: memref<8x2x32xbf16, #tpu.memory_space<vmem>>) attributes {dimension_semantics = [#tpu.dimension_semantics<parallel>], iteration_bounds = array<i64: 1>, scalar_prefetch = 0 : i64, scratch_operands = 3 : i64, tpu.core_type = #tpu.core_type<tc>, window_params = [{transform_indices = @transform_0, window_bounds = array<i64: 2, 1>}, {transform_indices = @transform_1, window_bounds = array<i64: 8, 2, 32>}, {transform_indices = @transform_2, window_bounds = array<i64: 2, 32>}, {pipeline_mode = #tpu.pipeline_mode<synchronous>, transform_indices = @transform_3, window_bounds = array<i64: 96, 256>}, {pipeline_mode = #tpu.pipeline_mode<synchronous>, transform_indices = @transform_4, window_bounds = array<i64: 32, 256>}, {pipeline_mode = #tpu.pipeline_mode<synchronous>, transform_indices = @transform_5, window_bounds = array<i64: 1, 256>}, {pipeline_mode = #tpu.pipeline_mode<synchronous>, transform_indices = @transform_6, window_bounds = array<i64: 64, 256>}, {pipeline_mode = #tpu.pipeline_mode<synchronous>, transform_indices = @transform_7, window_bounds = array<i64: 32, 256>}, {pipeline_mode = #tpu.pipeline_mode<synchronous>, transform_indices = @transform_8, window_bounds = array<i64: 32, 256>}, {pipeline_mode = #tpu.pipeline_mode<synchronous>, transform_indices = @transform_9, window_bounds = array<i64: 1, 256>}, {pipeline_mode = #tpu.pipeline_mode<synchronous>, transform_indices = @transform_10, window_bounds = array<i64: 64, 256>}, {pipeline_mode = #tpu.pipeline_mode<synchronous>, transform_indices = @transform_11, window_bounds = array<i64: 2, 64>}, {pipeline_mode = #tpu.pipeline_mode<synchronous>, transform_indices = @transform_12, window_bounds = array<i64: 1, 2>}, {transform_indices = @transform_13, window_bounds = array<i64: 2, 2, 8>}]} {
    %c0 = arith.constant 0 : index
    %c0_0 = arith.constant 0 : index
    %0 = vector.load %arg1[%c0, %c0_0] : memref<2x1xi32, #tpu.memory_space<vmem>>, vector<2x1xi32>
    %c0_1 = arith.constant 0 : index
    %c0_2 = arith.constant 0 : index
    %c0_3 = arith.constant 0 : index
    %1 = vector.load %arg2[%c0_1, %c0_2, %c0_3] : memref<8x2x32xf32, #tpu.memory_space<vmem>>, vector<8x2x32xf32>
    %c0_4 = arith.constant 0 : index
    %c0_5 = arith.constant 0 : index
    %2 = vector.load %arg3[%c0_4, %c0_5] : memref<2x32xf32, #tpu.memory_space<vmem>>, vector<2x32xf32>
    %3 = vector.shape_cast %2 : vector<2x32xf32> to vector<1x2x32xf32>
    %4 = vector.broadcast %3 : vector<1x2x32xf32> to vector<8x2x32xf32>
    %5 = arith.mulf %1, %4 : vector<8x2x32xf32>
    %6 = vector.broadcast %3 : vector<1x2x32xf32> to vector<8x2x32xf32>
    %7 = arith.subf %1, %6 : vector<8x2x32xf32>
    %8 = math.absf %7 : vector<8x2x32xf32>
    %9 = tpu.concatenate %1, %5, %8 in 2 : vector<8x2x32xf32>, vector<8x2x32xf32>, vector<8x2x32xf32> -> vector<8x2x96xf32>
    %10 = vector.shape_cast %9 : vector<8x2x96xf32> to vector<16x96xf32>
    %11 = arith.truncf %10 : vector<16x96xf32> to vector<16x96xbf16>
    %c0_6 = arith.constant 0 : index
    %c0_7 = arith.constant 0 : index
    %12 = vector.load %arg4[%c0_6, %c0_7] : memref<96x256xbf16, #tpu.memory_space<vmem>>, vector<96x256xbf16>
    %cst = arith.constant dense<0.000000e+00> : vector<16x256xf32>
    %13 = tpu.matmul %11, %12, %cst {dimension_numbers = #tpu.dot_dimension_numbers<[1], [0], [0], [1], [0, 0, 1, 1], [], []>} : vector<16x96xbf16>, vector<96x256xbf16>, vector<16x256xf32> -> vector<16x256xf32>
    %14 = arith.truncf %2 : vector<2x32xf32> to vector<2x32xbf16>
    %c0_8 = arith.constant 0 : index
    %c0_9 = arith.constant 0 : index
    %15 = vector.load %arg5[%c0_8, %c0_9] : memref<32x256xbf16, #tpu.memory_space<vmem>>, vector<32x256xbf16>
    %cst_10 = arith.constant dense<0.000000e+00> : vector<2x256xf32>
    %16 = tpu.matmul %14, %15, %cst_10 {dimension_numbers = #tpu.dot_dimension_numbers<[1], [0], [0], [1], [0, 0, 1, 1], [], []>} : vector<2x32xbf16>, vector<32x256xbf16>, vector<2x256xf32> -> vector<2x256xf32>
    %17 = vector.shape_cast %13 : vector<16x256xf32> to vector<8x2x256xf32>
    %18 = vector.shape_cast %16 : vector<2x256xf32> to vector<1x2x256xf32>
    %19 = vector.broadcast %18 : vector<1x2x256xf32> to vector<8x2x256xf32>
    %20 = arith.addf %17, %19 : vector<8x2x256xf32>
    %c0_11 = arith.constant 0 : index
    %c0_12 = arith.constant 0 : index
    %21 = vector.load %arg6[%c0_11, %c0_12] : memref<1x256xf32, #tpu.memory_space<vmem>>, vector<1x256xf32>
    %22 = vector.shape_cast %21 : vector<1x256xf32> to vector<1x1x256xf32>
    %23 = vector.broadcast %22 : vector<1x1x256xf32> to vector<8x2x256xf32>
    %24 = arith.addf %20, %23 : vector<8x2x256xf32>
    %25 = arith.truncf %24 : vector<8x2x256xf32> to vector<8x2x256xbf16>
    %c0_13 = arith.constant 0 : index
    %c0_14 = arith.constant 0 : index
    %c0_15 = arith.constant 0 : index
    %26 = vector.load %arg15[%c0_13, %c0_14, %c0_15] : memref<8x2x256xbf16, #tpu.memory_space<vmem>>, vector<8x2x256xbf16>
    tpu.vector_store %arg15[%c0_13, %c0_14, %c0_15], %25 {strides = array<i32>} : memref<8x2x256xbf16, #tpu.memory_space<vmem>>, vector<8x2x256xbf16>,
    %c0_16 = arith.constant 0 : index
    %c0_17 = arith.constant 0 : index
    %27 = vector.load %arg7[%c0_16, %c0_17] : memref<64x256xbf16, #tpu.memory_space<vmem>>, vector<64x256xbf16>
    %cst_18 = arith.constant 0.000000e+00 : f32
    %28 = vector.broadcast %cst_18 : f32 to vector<2x32xf32>
    %c0_i32 = arith.constant 0 : i32
    %c7_i32 = arith.constant 7 : i32
    %29 = arith.subi %c7_i32, %c0_i32 : i32
    %30 = vector.broadcast %c0_i32 : i32 to vector<2x1xi32>
    %31 = arith.cmpi slt, %30, %0 : vector<2x1xi32>
    %32 = vector.broadcast %29 : i32 to vector<2x1xi32>
    %33 = arith.cmpi slt, %32, %0 : vector<2x1xi32>
    %34 = tpu.concatenate %28, %28 in 1 : vector<2x32xf32>, vector<2x32xf32> -> vector<2x64xf32>
    %35 = arith.truncf %34 : vector<2x64xf32> to vector<2x64xbf16>
    %cst_19 = arith.constant dense<0.000000e+00> : vector<2x256xf32>
    %36 = tpu.matmul %35, %27, %cst_19 {dimension_numbers = #tpu.dot_dimension_numbers<[1], [0], [0], [1], [0, 0, 1, 1], [], []>} : vector<2x64xbf16>, vector<64x256xbf16>, vector<2x256xf32> -> vector<2x256xf32>
    %37 = arith.index_cast %c0_i32 : i32 to index
    %c0_20 = arith.constant 0 : index
    %c0_21 = arith.constant 0 : index
    %38 = vector.load %arg15[%37, %c0_20, %c0_21] : memref<8x2x256xbf16, #tpu.memory_space<vmem>>, vector<1x2x128xbf16>
    %39 = vector.shape_cast %38 : vector<1x2x128xbf16> to vector<2x128xbf16>
    %40 = arith.extf %39 : vector<2x128xbf16> to vector<2x128xf32>
    %41 = vector.extract_strided_slice %36 {offsets = [0, 0], sizes = [2, 128], strides = [1, 1]} : vector<2x256xf32> to vector<2x128xf32>
    %42 = arith.addf %40, %41 : vector<2x128xf32>
    %43 = vector.extract_strided_slice %42 {offsets = [0, 0], sizes = [2, 32], strides = [1, 1]} : vector<2x128xf32> to vector<2x32xf32>
    %44 = arith.negf %43 : vector<2x32xf32>
    %45 = math.exp %44 : vector<2x32xf32>
    %cst_22 = arith.constant 1.000000e+00 : f32
    %46 = vector.broadcast %cst_22 : f32 to vector<2x32xf32>
    %47 = arith.addf %46, %45 : vector<2x32xf32>
    %48 = arith.divf %46, %47 : vector<2x32xf32>
    %49 = vector.extract_strided_slice %42 {offsets = [0, 32], sizes = [2, 32], strides = [1, 1]} : vector<2x128xf32> to vector<2x32xf32>
    %50 = arith.negf %49 : vector<2x32xf32>
    %51 = math.exp %50 : vector<2x32xf32>
    %cst_23 = arith.constant 1.000000e+00 : f32
    %52 = vector.broadcast %cst_23 : f32 to vector<2x32xf32>
    %53 = arith.addf %52, %51 : vector<2x32xf32>
    %54 = arith.divf %52, %53 : vector<2x32xf32>
    %55 = vector.extract_strided_slice %42 {offsets = [0, 64], sizes = [2, 32], strides = [1, 1]} : vector<2x128xf32> to vector<2x32xf32>
    %56 = math.tanh %55 : vector<2x32xf32>
    %57 = vector.extract_strided_slice %42 {offsets = [0, 96], sizes = [2, 32], strides = [1, 1]} : vector<2x128xf32> to vector<2x32xf32>
    %58 = arith.negf %57 : vector<2x32xf32>
    %59 = math.exp %58 : vector<2x32xf32>
    %cst_24 = arith.constant 1.000000e+00 : f32
    %60 = vector.broadcast %cst_24 : f32 to vector<2x32xf32>
    %61 = arith.addf %60, %59 : vector<2x32xf32>
    %62 = arith.divf %60, %61 : vector<2x32xf32>
    %63 = arith.mulf %54, %28 : vector<2x32xf32>
    %64 = arith.mulf %48, %56 : vector<2x32xf32>
    %65 = arith.addf %63, %64 : vector<2x32xf32>
    %66 = math.tanh %65 : vector<2x32xf32>
    %67 = arith.mulf %62, %66 : vector<2x32xf32>
    %68 = vector.shape_cast %31 : vector<2x1xi1> to vector<2x1xi1>
    %69 = vector.broadcast %68 : vector<2x1xi1> to vector<2x32xi1>
    %70 = arith.select %69, %67, %28 : vector<2x32xi1>, vector<2x32xf32>
    %71 = vector.shape_cast %31 : vector<2x1xi1> to vector<2x1xi1>
    %72 = vector.broadcast %71 : vector<2x1xi1> to vector<2x32xi1>
    %73 = arith.select %72, %65, %28 : vector<2x32xi1>, vector<2x32xf32>
    %cst_25 = arith.constant 0.000000e+00 : f32
    %74 = vector.shape_cast %31 : vector<2x1xi1> to vector<2x1xi1>
    %75 = vector.broadcast %74 : vector<2x1xi1> to vector<2x32xi1>
    %76 = vector.broadcast %cst_25 : f32 to vector<2x32xf32>
    %77 = arith.select %75, %67, %76 : vector<2x32xi1>, vector<2x32xf32>
    %78 = arith.truncf %77 : vector<2x32xf32> to vector<2x32xbf16>
    %79 = arith.index_cast %c0_i32 : i32 to index
    %c0_26 = arith.constant 0 : index
    %c0_27 = arith.constant 0 : index
    %80 = vector.load %arg16[%79, %c0_26, %c0_27] : memref<8x2x32xbf16, #tpu.memory_space<vmem>>, vector<1x2x32xbf16>
    %81 = vector.shape_cast %80 : vector<1x2x32xbf16> to vector<2x32xbf16>
    %82 = vector.shape_cast %78 : vector<2x32xbf16> to vector<1x2x32xbf16>
    tpu.vector_store %arg16[%79, %c0_26, %c0_27], %82 {strides = array<i32>} : memref<8x2x32xbf16, #tpu.memory_space<vmem>>, vector<1x2x32xbf16>,
    %83 = arith.index_cast %29 : i32 to index
    %c0_28 = arith.constant 0 : index
    %c128 = arith.constant 128 : index
    %84 = vector.load %arg15[%83, %c0_28, %c128] : memref<8x2x256xbf16, #tpu.memory_space<vmem>>, vector<1x2x128xbf16>
    %85 = vector.shape_cast %84 : vector<1x2x128xbf16> to vector<2x128xbf16>
    %86 = arith.extf %85 : vector<2x128xbf16> to vector<2x128xf32>
    %87 = vector.extract_strided_slice %36 {offsets = [0, 128], sizes = [2, 128], strides = [1, 1]} : vector<2x256xf32> to vector<2x128xf32>
    %88 = arith.addf %86, %87 : vector<2x128xf32>
    %89 = vector.extract_strided_slice %88 {offsets = [0, 0], sizes = [2, 32], strides = [1, 1]} : vector<2x128xf32> to vector<2x32xf32>
    %90 = arith.negf %89 : vector<2x32xf32>
    %91 = math.exp %90 : vector<2x32xf32>
    %cst_29 = arith.constant 1.000000e+00 : f32
    %92 = vector.broadcast %cst_29 : f32 to vector<2x32xf32>
    %93 = arith.addf %92, %91 : vector<2x32xf32>
    %94 = arith.divf %92, %93 : vector<2x32xf32>
    %95 = vector.extract_strided_slice %88 {offsets = [0, 32], sizes = [2, 32], strides = [1, 1]} : vector<2x128xf32> to vector<2x32xf32>
    %96 = arith.negf %95 : vector<2x32xf32>
    %97 = math.exp %96 : vector<2x32xf32>
    %cst_30 = arith.constant 1.000000e+00 : f32
    %98 = vector.broadcast %cst_30 : f32 to vector<2x32xf32>
    %99 = arith.addf %98, %97 : vector<2x32xf32>
    %100 = arith.divf %98, %99 : vector<2x32xf32>
    %101 = vector.extract_strided_slice %88 {offsets = [0, 64], sizes = [2, 32], strides = [1, 1]} : vector<2x128xf32> to vector<2x32xf32>
    %102 = math.tanh %101 : vector<2x32xf32>
    %103 = vector.extract_strided_slice %88 {offsets = [0, 96], sizes = [2, 32], strides = [1, 1]} : vector<2x128xf32> to vector<2x32xf32>
    %104 = arith.negf %103 : vector<2x32xf32>
    %105 = math.exp %104 : vector<2x32xf32>
    %cst_31 = arith.constant 1.000000e+00 : f32
    %106 = vector.broadcast %cst_31 : f32 to vector<2x32xf32>
    %107 = arith.addf %106, %105 : vector<2x32xf32>
    %108 = arith.divf %106, %107 : vector<2x32xf32>
    %109 = arith.mulf %100, %28 : vector<2x32xf32>
    %110 = arith.mulf %94, %102 : vector<2x32xf32>
    %111 = arith.addf %109, %110 : vector<2x32xf32>
    %112 = math.tanh %111 : vector<2x32xf32>
    %113 = arith.mulf %108, %112 : vector<2x32xf32>
    %114 = vector.shape_cast %33 : vector<2x1xi1> to vector<2x1xi1>
    %115 = vector.broadcast %114 : vector<2x1xi1> to vector<2x32xi1>
    %116 = arith.select %115, %113, %28 : vector<2x32xi1>, vector<2x32xf32>
    %117 = vector.shape_cast %33 : vector<2x1xi1> to vector<2x1xi1>
    %118 = vector.broadcast %117 : vector<2x1xi1> to vector<2x32xi1>
    %119 = arith.select %118, %111, %28 : vector<2x32xi1>, vector<2x32xf32>
    %cst_32 = arith.constant 0.000000e+00 : f32
    %120 = vector.shape_cast %33 : vector<2x1xi1> to vector<2x1xi1>
    %121 = vector.broadcast %120 : vector<2x1xi1> to vector<2x32xi1>
    %122 = vector.broadcast %cst_32 : f32 to vector<2x32xf32>
    %123 = arith.select %121, %113, %122 : vector<2x32xi1>, vector<2x32xf32>
    %124 = arith.truncf %123 : vector<2x32xf32> to vector<2x32xbf16>
    %125 = arith.index_cast %29 : i32 to index
    %c0_33 = arith.constant 0 : index
    %c0_34 = arith.constant 0 : index
    %126 = vector.load %arg17[%125, %c0_33, %c0_34] : memref<8x2x32xbf16, #tpu.memory_space<vmem>>, vector<1x2x32xbf16>
    %127 = vector.shape_cast %126 : vector<1x2x32xbf16> to vector<2x32xbf16>
    %128 = vector.shape_cast %124 : vector<2x32xbf16> to vector<1x2x32xbf16>
    tpu.vector_store %arg17[%125, %c0_33, %c0_34], %128 {strides = array<i32>} : memref<8x2x32xbf16, #tpu.memory_space<vmem>>, vector<1x2x32xbf16>,
    %c1_i32 = arith.constant 1 : i32
    %c7_i32_35 = arith.constant 7 : i32
    %129 = arith.subi %c7_i32_35, %c1_i32 : i32
    %130 = vector.broadcast %c1_i32 : i32 to vector<2x1xi32>
    %131 = arith.cmpi slt, %130, %0 : vector<2x1xi32>
    %132 = vector.broadcast %129 : i32 to vector<2x1xi32>
    %133 = arith.cmpi slt, %132, %0 : vector<2x1xi32>
    %134 = tpu.concatenate %70, %116 in 1 : vector<2x32xf32>, vector<2x32xf32> -> vector<2x64xf32>
    %135 = arith.truncf %134 : vector<2x64xf32> to vector<2x64xbf16>
    %cst_36 = arith.constant dense<0.000000e+00> : vector<2x256xf32>
    %136 = tpu.matmul %135, %27, %cst_36 {dimension_numbers = #tpu.dot_dimension_numbers<[1], [0], [0], [1], [0, 0, 1, 1], [], []>} : vector<2x64xbf16>, vector<64x256xbf16>, vector<2x256xf32> -> vector<2x256xf32>
    %137 = arith.index_cast %c1_i32 : i32 to index
    %c0_37 = arith.constant 0 : index
    %c0_38 = arith.constant 0 : index
    %138 = vector.load %arg15[%137, %c0_37, %c0_38] : memref<8x2x256xbf16, #tpu.memory_space<vmem>>, vector<1x2x128xbf16>
    %139 = vector.shape_cast %138 : vector<1x2x128xbf16> to vector<2x128xbf16>
    %140 = arith.extf %139 : vector<2x128xbf16> to vector<2x128xf32>
    %141 = vector.extract_strided_slice %136 {offsets = [0, 0], sizes = [2, 128], strides = [1, 1]} : vector<2x256xf32> to vector<2x128xf32>
    %142 = arith.addf %140, %141 : vector<2x128xf32>
    %143 = vector.extract_strided_slice %142 {offsets = [0, 0], sizes = [2, 32], strides = [1, 1]} : vector<2x128xf32> to vector<2x32xf32>
    %144 = arith.negf %143 : vector<2x32xf32>
    %145 = math.exp %144 : vector<2x32xf32>
    %cst_39 = arith.constant 1.000000e+00 : f32
    %146 = vector.broadcast %cst_39 : f32 to vector<2x32xf32>
    %147 = arith.addf %146, %145 : vector<2x32xf32>
    %148 = arith.divf %146, %147 : vector<2x32xf32>
    %149 = vector.extract_strided_slice %142 {offsets = [0, 32], sizes = [2, 32], strides = [1, 1]} : vector<2x128xf32> to vector<2x32xf32>
    %150 = arith.negf %149 : vector<2x32xf32>
    %151 = math.exp %150 : vector<2x32xf32>
    %cst_40 = arith.constant 1.000000e+00 : f32
    %152 = vector.broadcast %cst_40 : f32 to vector<2x32xf32>
    %153 = arith.addf %152, %151 : vector<2x32xf32>
    %154 = arith.divf %152, %153 : vector<2x32xf32>
    %155 = vector.extract_strided_slice %142 {offsets = [0, 64], sizes = [2, 32], strides = [1, 1]} : vector<2x128xf32> to vector<2x32xf32>
    %156 = math.tanh %155 : vector<2x32xf32>
    %157 = vector.extract_strided_slice %142 {offsets = [0, 96], sizes = [2, 32], strides = [1, 1]} : vector<2x128xf32> to vector<2x32xf32>
    %158 = arith.negf %157 : vector<2x32xf32>
    %159 = math.exp %158 : vector<2x32xf32>
    %cst_41 = arith.constant 1.000000e+00 : f32
    %160 = vector.broadcast %cst_41 : f32 to vector<2x32xf32>
    %161 = arith.addf %160, %159 : vector<2x32xf32>
    %162 = arith.divf %160, %161 : vector<2x32xf32>
    %163 = arith.mulf %154, %73 : vector<2x32xf32>
    %164 = arith.mulf %148, %156 : vector<2x32xf32>
    %165 = arith.addf %163, %164 : vector<2x32xf32>
    %166 = math.tanh %165 : vector<2x32xf32>
    %167 = arith.mulf %162, %166 : vector<2x32xf32>
    %168 = vector.shape_cast %131 : vector<2x1xi1> to vector<2x1xi1>
    %169 = vector.broadcast %168 : vector<2x1xi1> to vector<2x32xi1>
    %170 = arith.select %169, %167, %70 : vector<2x32xi1>, vector<2x32xf32>
    %171 = vector.shape_cast %131 : vector<2x1xi1> to vector<2x1xi1>
    %172 = vector.broadcast %171 : vector<2x1xi1> to vector<2x32xi1>
    %173 = arith.select %172, %165, %73 : vector<2x32xi1>, vector<2x32xf32>
    %cst_42 = arith.constant 0.000000e+00 : f32
    %174 = vector.shape_cast %131 : vector<2x1xi1> to vector<2x1xi1>
    %175 = vector.broadcast %174 : vector<2x1xi1> to vector<2x32xi1>
    %176 = vector.broadcast %cst_42 : f32 to vector<2x32xf32>
    %177 = arith.select %175, %167, %176 : vector<2x32xi1>, vector<2x32xf32>
    %178 = arith.truncf %177 : vector<2x32xf32> to vector<2x32xbf16>
    %179 = arith.index_cast %c1_i32 : i32 to index
    %c0_43 = arith.constant 0 : index
    %c0_44 = arith.constant 0 : index
    %180 = vector.load %arg16[%179, %c0_43, %c0_44] : memref<8x2x32xbf16, #tpu.memory_space<vmem>>, vector<1x2x32xbf16>
    %181 = vector.shape_cast %180 : vector<1x2x32xbf16> to vector<2x32xbf16>
    %182 = vector.shape_cast %178 : vector<2x32xbf16> to vector<1x2x32xbf16>
    tpu.vector_store %arg16[%179, %c0_43, %c0_44], %182 {strides = array<i32>} : memref<8x2x32xbf16, #tpu.memory_space<vmem>>, vector<1x2x32xbf16>,
    %183 = arith.index_cast %129 : i32 to index
    %c0_45 = arith.constant 0 : index
    %c128_46 = arith.constant 128 : index
    %184 = vector.load %arg15[%183, %c0_45, %c128_46] : memref<8x2x256xbf16, #tpu.memory_space<vmem>>, vector<1x2x128xbf16>
    %185 = vector.shape_cast %184 : vector<1x2x128xbf16> to vector<2x128xbf16>
    %186 = arith.extf %185 : vector<2x128xbf16> to vector<2x128xf32>
    %187 = vector.extract_strided_slice %136 {offsets = [0, 128], sizes = [2, 128], strides = [1, 1]} : vector<2x256xf32> to vector<2x128xf32>
    %188 = arith.addf %186, %187 : vector<2x128xf32>
    %189 = vector.extract_strided_slice %188 {offsets = [0, 0], sizes = [2, 32], strides = [1, 1]} : vector<2x128xf32> to vector<2x32xf32>
    %190 = arith.negf %189 : vector<2x32xf32>
    %191 = math.exp %190 : vector<2x32xf32>
    %cst_47 = arith.constant 1.000000e+00 : f32
    %192 = vector.broadcast %cst_47 : f32 to vector<2x32xf32>
    %193 = arith.addf %192, %191 : vector<2x32xf32>
    %194 = arith.divf %192, %193 : vector<2x32xf32>
    %195 = vector.extract_strided_slice %188 {offsets = [0, 32], sizes = [2, 32], strides = [1, 1]} : vector<2x128xf32> to vector<2x32xf32>
    %196 = arith.negf %195 : vector<2x32xf32>
    %197 = math.exp %196 : vector<2x32xf32>
    %cst_48 = arith.constant 1.000000e+00 : f32
    %198 = vector.broadcast %cst_48 : f32 to vector<2x32xf32>
    %199 = arith.addf %198, %197 : vector<2x32xf32>
    %200 = arith.divf %198, %199 : vector<2x32xf32>
    %201 = vector.extract_strided_slice %188 {offsets = [0, 64], sizes = [2, 32], strides = [1, 1]} : vector<2x128xf32> to vector<2x32xf32>
    %202 = math.tanh %201 : vector<2x32xf32>
    %203 = vector.extract_strided_slice %188 {offsets = [0, 96], sizes = [2, 32], strides = [1, 1]} : vector<2x128xf32> to vector<2x32xf32>
    %204 = arith.negf %203 : vector<2x32xf32>
    %205 = math.exp %204 : vector<2x32xf32>
    %cst_49 = arith.constant 1.000000e+00 : f32
    %206 = vector.broadcast %cst_49 : f32 to vector<2x32xf32>
    %207 = arith.addf %206, %205 : vector<2x32xf32>
    %208 = arith.divf %206, %207 : vector<2x32xf32>
    %209 = arith.mulf %200, %119 : vector<2x32xf32>
    %210 = arith.mulf %194, %202 : vector<2x32xf32>
    %211 = arith.addf %209, %210 : vector<2x32xf32>
    %212 = math.tanh %211 : vector<2x32xf32>
    %213 = arith.mulf %208, %212 : vector<2x32xf32>
    %214 = vector.shape_cast %133 : vector<2x1xi1> to vector<2x1xi1>
    %215 = vector.broadcast %214 : vector<2x1xi1> to vector<2x32xi1>
    %216 = arith.select %215, %213, %116 : vector<2x32xi1>, vector<2x32xf32>
    %217 = vector.shape_cast %133 : vector<2x1xi1> to vector<2x1xi1>
    %218 = vector.broadcast %217 : vector<2x1xi1> to vector<2x32xi1>
    %219 = arith.select %218, %211, %119 : vector<2x32xi1>, vector<2x32xf32>
    %cst_50 = arith.constant 0.000000e+00 : f32
    %220 = vector.shape_cast %133 : vector<2x1xi1> to vector<2x1xi1>
    %221 = vector.broadcast %220 : vector<2x1xi1> to vector<2x32xi1>
    %222 = vector.broadcast %cst_50 : f32 to vector<2x32xf32>
    %223 = arith.select %221, %213, %222 : vector<2x32xi1>, vector<2x32xf32>
    %224 = arith.truncf %223 : vector<2x32xf32> to vector<2x32xbf16>
    %225 = arith.index_cast %129 : i32 to index
    %c0_51 = arith.constant 0 : index
    %c0_52 = arith.constant 0 : index
    %226 = vector.load %arg17[%225, %c0_51, %c0_52] : memref<8x2x32xbf16, #tpu.memory_space<vmem>>, vector<1x2x32xbf16>
    %227 = vector.shape_cast %226 : vector<1x2x32xbf16> to vector<2x32xbf16>
    %228 = vector.shape_cast %224 : vector<2x32xbf16> to vector<1x2x32xbf16>
    tpu.vector_store %arg17[%225, %c0_51, %c0_52], %228 {strides = array<i32>} : memref<8x2x32xbf16, #tpu.memory_space<vmem>>, vector<1x2x32xbf16>,
    %c2_i32 = arith.constant 2 : i32
    %c7_i32_53 = arith.constant 7 : i32
    %229 = arith.subi %c7_i32_53, %c2_i32 : i32
    %230 = vector.broadcast %c2_i32 : i32 to vector<2x1xi32>
    %231 = arith.cmpi slt, %230, %0 : vector<2x1xi32>
    %232 = vector.broadcast %229 : i32 to vector<2x1xi32>
    %233 = arith.cmpi slt, %232, %0 : vector<2x1xi32>
    %234 = tpu.concatenate %170, %216 in 1 : vector<2x32xf32>, vector<2x32xf32> -> vector<2x64xf32>
    %235 = arith.truncf %234 : vector<2x64xf32> to vector<2x64xbf16>
    %cst_54 = arith.constant dense<0.000000e+00> : vector<2x256xf32>
    %236 = tpu.matmul %235, %27, %cst_54 {dimension_numbers = #tpu.dot_dimension_numbers<[1], [0], [0], [1], [0, 0, 1, 1], [], []>} : vector<2x64xbf16>, vector<64x256xbf16>, vector<2x256xf32> -> vector<2x256xf32>
    %237 = arith.index_cast %c2_i32 : i32 to index
    %c0_55 = arith.constant 0 : index
    %c0_56 = arith.constant 0 : index
    %238 = vector.load %arg15[%237, %c0_55, %c0_56] : memref<8x2x256xbf16, #tpu.memory_space<vmem>>, vector<1x2x128xbf16>
    %239 = vector.shape_cast %238 : vector<1x2x128xbf16> to vector<2x128xbf16>
    %240 = arith.extf %239 : vector<2x128xbf16> to vector<2x128xf32>
    %241 = vector.extract_strided_slice %236 {offsets = [0, 0], sizes = [2, 128], strides = [1, 1]} : vector<2x256xf32> to vector<2x128xf32>
    %242 = arith.addf %240, %241 : vector<2x128xf32>
    %243 = vector.extract_strided_slice %242 {offsets = [0, 0], sizes = [2, 32], strides = [1, 1]} : vector<2x128xf32> to vector<2x32xf32>
    %244 = arith.negf %243 : vector<2x32xf32>
    %245 = math.exp %244 : vector<2x32xf32>
    %cst_57 = arith.constant 1.000000e+00 : f32
    %246 = vector.broadcast %cst_57 : f32 to vector<2x32xf32>
    %247 = arith.addf %246, %245 : vector<2x32xf32>
    %248 = arith.divf %246, %247 : vector<2x32xf32>
    %249 = vector.extract_strided_slice %242 {offsets = [0, 32], sizes = [2, 32], strides = [1, 1]} : vector<2x128xf32> to vector<2x32xf32>
    %250 = arith.negf %249 : vector<2x32xf32>
    %251 = math.exp %250 : vector<2x32xf32>
    %cst_58 = arith.constant 1.000000e+00 : f32
    %252 = vector.broadcast %cst_58 : f32 to vector<2x32xf32>
    %253 = arith.addf %252, %251 : vector<2x32xf32>
    %254 = arith.divf %252, %253 : vector<2x32xf32>
    %255 = vector.extract_strided_slice %242 {offsets = [0, 64], sizes = [2, 32], strides = [1, 1]} : vector<2x128xf32> to vector<2x32xf32>
    %256 = math.tanh %255 : vector<2x32xf32>
    %257 = vector.extract_strided_slice %242 {offsets = [0, 96], sizes = [2, 32], strides = [1, 1]} : vector<2x128xf32> to vector<2x32xf32>
    %258 = arith.negf %257 : vector<2x32xf32>
    %259 = math.exp %258 : vector<2x32xf32>
    %cst_59 = arith.constant 1.000000e+00 : f32
    %260 = vector.broadcast %cst_59 : f32 to vector<2x32xf32>
    %261 = arith.addf %260, %259 : vector<2x32xf32>
    %262 = arith.divf %260, %261 : vector<2x32xf32>
    %263 = arith.mulf %254, %173 : vector<2x32xf32>
    %264 = arith.mulf %248, %256 : vector<2x32xf32>
    %265 = arith.addf %263, %264 : vector<2x32xf32>
    %266 = math.tanh %265 : vector<2x32xf32>
    %267 = arith.mulf %262, %266 : vector<2x32xf32>
    %268 = vector.shape_cast %231 : vector<2x1xi1> to vector<2x1xi1>
    %269 = vector.broadcast %268 : vector<2x1xi1> to vector<2x32xi1>
    %270 = arith.select %269, %267, %170 : vector<2x32xi1>, vector<2x32xf32>
    %271 = vector.shape_cast %231 : vector<2x1xi1> to vector<2x1xi1>
    %272 = vector.broadcast %271 : vector<2x1xi1> to vector<2x32xi1>
    %273 = arith.select %272, %265, %173 : vector<2x32xi1>, vector<2x32xf32>
    %cst_60 = arith.constant 0.000000e+00 : f32
    %274 = vector.shape_cast %231 : vector<2x1xi1> to vector<2x1xi1>
    %275 = vector.broadcast %274 : vector<2x1xi1> to vector<2x32xi1>
    %276 = vector.broadcast %cst_60 : f32 to vector<2x32xf32>
    %277 = arith.select %275, %267, %276 : vector<2x32xi1>, vector<2x32xf32>
    %278 = arith.truncf %277 : vector<2x32xf32> to vector<2x32xbf16>
    %279 = arith.index_cast %c2_i32 : i32 to index
    %c0_61 = arith.constant 0 : index
    %c0_62 = arith.constant 0 : index
    %280 = vector.load %arg16[%279, %c0_61, %c0_62] : memref<8x2x32xbf16, #tpu.memory_space<vmem>>, vector<1x2x32xbf16>
    %281 = vector.shape_cast %280 : vector<1x2x32xbf16> to vector<2x32xbf16>
    %282 = vector.shape_cast %278 : vector<2x32xbf16> to vector<1x2x32xbf16>
    tpu.vector_store %arg16[%279, %c0_61, %c0_62], %282 {strides = array<i32>} : memref<8x2x32xbf16, #tpu.memory_space<vmem>>, vector<1x2x32xbf16>,
    %283 = arith.index_cast %229 : i32 to index
    %c0_63 = arith.constant 0 : index
    %c128_64 = arith.constant 128 : index
    %284 = vector.load %arg15[%283, %c0_63, %c128_64] : memref<8x2x256xbf16, #tpu.memory_space<vmem>>, vector<1x2x128xbf16>
    %285 = vector.shape_cast %284 : vector<1x2x128xbf16> to vector<2x128xbf16>
    %286 = arith.extf %285 : vector<2x128xbf16> to vector<2x128xf32>
    %287 = vector.extract_strided_slice %236 {offsets = [0, 128], sizes = [2, 128], strides = [1, 1]} : vector<2x256xf32> to vector<2x128xf32>
    %288 = arith.addf %286, %287 : vector<2x128xf32>
    %289 = vector.extract_strided_slice %288 {offsets = [0, 0], sizes = [2, 32], strides = [1, 1]} : vector<2x128xf32> to vector<2x32xf32>
    %290 = arith.negf %289 : vector<2x32xf32>
    %291 = math.exp %290 : vector<2x32xf32>
    %cst_65 = arith.constant 1.000000e+00 : f32
    %292 = vector.broadcast %cst_65 : f32 to vector<2x32xf32>
    %293 = arith.addf %292, %291 : vector<2x32xf32>
    %294 = arith.divf %292, %293 : vector<2x32xf32>
    %295 = vector.extract_strided_slice %288 {offsets = [0, 32], sizes = [2, 32], strides = [1, 1]} : vector<2x128xf32> to vector<2x32xf32>
    %296 = arith.negf %295 : vector<2x32xf32>
    %297 = math.exp %296 : vector<2x32xf32>
    %cst_66 = arith.constant 1.000000e+00 : f32
    %298 = vector.broadcast %cst_66 : f32 to vector<2x32xf32>
    %299 = arith.addf %298, %297 : vector<2x32xf32>
    %300 = arith.divf %298, %299 : vector<2x32xf32>
    %301 = vector.extract_strided_slice %288 {offsets = [0, 64], sizes = [2, 32], strides = [1, 1]} : vector<2x128xf32> to vector<2x32xf32>
    %302 = math.tanh %301 : vector<2x32xf32>
    %303 = vector.extract_strided_slice %288 {offsets = [0, 96], sizes = [2, 32], strides = [1, 1]} : vector<2x128xf32> to vector<2x32xf32>
    %304 = arith.negf %303 : vector<2x32xf32>
    %305 = math.exp %304 : vector<2x32xf32>
    %cst_67 = arith.constant 1.000000e+00 : f32
    %306 = vector.broadcast %cst_67 : f32 to vector<2x32xf32>
    %307 = arith.addf %306, %305 : vector<2x32xf32>
    %308 = arith.divf %306, %307 : vector<2x32xf32>
    %309 = arith.mulf %300, %219 : vector<2x32xf32>
    %310 = arith.mulf %294, %302 : vector<2x32xf32>
    %311 = arith.addf %309, %310 : vector<2x32xf32>
    %312 = math.tanh %311 : vector<2x32xf32>
    %313 = arith.mulf %308, %312 : vector<2x32xf32>
    %314 = vector.shape_cast %233 : vector<2x1xi1> to vector<2x1xi1>
    %315 = vector.broadcast %314 : vector<2x1xi1> to vector<2x32xi1>
    %316 = arith.select %315, %313, %216 : vector<2x32xi1>, vector<2x32xf32>
    %317 = vector.shape_cast %233 : vector<2x1xi1> to vector<2x1xi1>
    %318 = vector.broadcast %317 : vector<2x1xi1> to vector<2x32xi1>
    %319 = arith.select %318, %311, %219 : vector<2x32xi1>, vector<2x32xf32>
    %cst_68 = arith.constant 0.000000e+00 : f32
    %320 = vector.shape_cast %233 : vector<2x1xi1> to vector<2x1xi1>
    %321 = vector.broadcast %320 : vector<2x1xi1> to vector<2x32xi1>
    %322 = vector.broadcast %cst_68 : f32 to vector<2x32xf32>
    %323 = arith.select %321, %313, %322 : vector<2x32xi1>, vector<2x32xf32>
    %324 = arith.truncf %323 : vector<2x32xf32> to vector<2x32xbf16>
    %325 = arith.index_cast %229 : i32 to index
    %c0_69 = arith.constant 0 : index
    %c0_70 = arith.constant 0 : index
    %326 = vector.load %arg17[%325, %c0_69, %c0_70] : memref<8x2x32xbf16, #tpu.memory_space<vmem>>, vector<1x2x32xbf16>
    %327 = vector.shape_cast %326 : vector<1x2x32xbf16> to vector<2x32xbf16>
    %328 = vector.shape_cast %324 : vector<2x32xbf16> to vector<1x2x32xbf16>
    tpu.vector_store %arg17[%325, %c0_69, %c0_70], %328 {strides = array<i32>} : memref<8x2x32xbf16, #tpu.memory_space<vmem>>, vector<1x2x32xbf16>,
    %c3_i32 = arith.constant 3 : i32
    %c7_i32_71 = arith.constant 7 : i32
    %329 = arith.subi %c7_i32_71, %c3_i32 : i32
    %330 = vector.broadcast %c3_i32 : i32 to vector<2x1xi32>
    %331 = arith.cmpi slt, %330, %0 : vector<2x1xi32>
    %332 = vector.broadcast %329 : i32 to vector<2x1xi32>
    %333 = arith.cmpi slt, %332, %0 : vector<2x1xi32>
    %334 = tpu.concatenate %270, %316 in 1 : vector<2x32xf32>, vector<2x32xf32> -> vector<2x64xf32>
    %335 = arith.truncf %334 : vector<2x64xf32> to vector<2x64xbf16>
    %cst_72 = arith.constant dense<0.000000e+00> : vector<2x256xf32>
    %336 = tpu.matmul %335, %27, %cst_72 {dimension_numbers = #tpu.dot_dimension_numbers<[1], [0], [0], [1], [0, 0, 1, 1], [], []>} : vector<2x64xbf16>, vector<64x256xbf16>, vector<2x256xf32> -> vector<2x256xf32>
    %337 = arith.index_cast %c3_i32 : i32 to index
    %c0_73 = arith.constant 0 : index
    %c0_74 = arith.constant 0 : index
    %338 = vector.load %arg15[%337, %c0_73, %c0_74] : memref<8x2x256xbf16, #tpu.memory_space<vmem>>, vector<1x2x128xbf16>
    %339 = vector.shape_cast %338 : vector<1x2x128xbf16> to vector<2x128xbf16>
    %340 = arith.extf %339 : vector<2x128xbf16> to vector<2x128xf32>
    %341 = vector.extract_strided_slice %336 {offsets = [0, 0], sizes = [2, 128], strides = [1, 1]} : vector<2x256xf32> to vector<2x128xf32>
    %342 = arith.addf %340, %341 : vector<2x128xf32>
    %343 = vector.extract_strided_slice %342 {offsets = [0, 0], sizes = [2, 32], strides = [1, 1]} : vector<2x128xf32> to vector<2x32xf32>
    %344 = arith.negf %343 : vector<2x32xf32>
    %345 = math.exp %344 : vector<2x32xf32>
    %cst_75 = arith.constant 1.000000e+00 : f32
    %346 = vector.broadcast %cst_75 : f32 to vector<2x32xf32>
    %347 = arith.addf %346, %345 : vector<2x32xf32>
    %348 = arith.divf %346, %347 : vector<2x32xf32>
    %349 = vector.extract_strided_slice %342 {offsets = [0, 32], sizes = [2, 32], strides = [1, 1]} : vector<2x128xf32> to vector<2x32xf32>
    %350 = arith.negf %349 : vector<2x32xf32>
    %351 = math.exp %350 : vector<2x32xf32>
    %cst_76 = arith.constant 1.000000e+00 : f32
    %352 = vector.broadcast %cst_76 : f32 to vector<2x32xf32>
    %353 = arith.addf %352, %351 : vector<2x32xf32>
    %354 = arith.divf %352, %353 : vector<2x32xf32>
    %355 = vector.extract_strided_slice %342 {offsets = [0, 64], sizes = [2, 32], strides = [1, 1]} : vector<2x128xf32> to vector<2x32xf32>
    %356 = math.tanh %355 : vector<2x32xf32>
    %357 = vector.extract_strided_slice %342 {offsets = [0, 96], sizes = [2, 32], strides = [1, 1]} : vector<2x128xf32> to vector<2x32xf32>
    %358 = arith.negf %357 : vector<2x32xf32>
    %359 = math.exp %358 : vector<2x32xf32>
    %cst_77 = arith.constant 1.000000e+00 : f32
    %360 = vector.broadcast %cst_77 : f32 to vector<2x32xf32>
    %361 = arith.addf %360, %359 : vector<2x32xf32>
    %362 = arith.divf %360, %361 : vector<2x32xf32>
    %363 = arith.mulf %354, %273 : vector<2x32xf32>
    %364 = arith.mulf %348, %356 : vector<2x32xf32>
    %365 = arith.addf %363, %364 : vector<2x32xf32>
    %366 = math.tanh %365 : vector<2x32xf32>
    %367 = arith.mulf %362, %366 : vector<2x32xf32>
    %368 = vector.shape_cast %331 : vector<2x1xi1> to vector<2x1xi1>
    %369 = vector.broadcast %368 : vector<2x1xi1> to vector<2x32xi1>
    %370 = arith.select %369, %367, %270 : vector<2x32xi1>, vector<2x32xf32>
    %371 = vector.shape_cast %331 : vector<2x1xi1> to vector<2x1xi1>
    %372 = vector.broadcast %371 : vector<2x1xi1> to vector<2x32xi1>
    %373 = arith.select %372, %365, %273 : vector<2x32xi1>, vector<2x32xf32>
    %cst_78 = arith.constant 0.000000e+00 : f32
    %374 = vector.shape_cast %331 : vector<2x1xi1> to vector<2x1xi1>
    %375 = vector.broadcast %374 : vector<2x1xi1> to vector<2x32xi1>
    %376 = vector.broadcast %cst_78 : f32 to vector<2x32xf32>
    %377 = arith.select %375, %367, %376 : vector<2x32xi1>, vector<2x32xf32>
    %378 = arith.truncf %377 : vector<2x32xf32> to vector<2x32xbf16>
    %379 = arith.index_cast %c3_i32 : i32 to index
    %c0_79 = arith.constant 0 : index
    %c0_80 = arith.constant 0 : index
    %380 = vector.load %arg16[%379, %c0_79, %c0_80] : memref<8x2x32xbf16, #tpu.memory_space<vmem>>, vector<1x2x32xbf16>
    %381 = vector.shape_cast %380 : vector<1x2x32xbf16> to vector<2x32xbf16>
    %382 = vector.shape_cast %378 : vector<2x32xbf16> to vector<1x2x32xbf16>
    tpu.vector_store %arg16[%379, %c0_79, %c0_80], %382 {strides = array<i32>} : memref<8x2x32xbf16, #tpu.memory_space<vmem>>, vector<1x2x32xbf16>,
    %383 = arith.index_cast %329 : i32 to index
    %c0_81 = arith.constant 0 : index
    %c128_82 = arith.constant 128 : index
    %384 = vector.load %arg15[%383, %c0_81, %c128_82] : memref<8x2x256xbf16, #tpu.memory_space<vmem>>, vector<1x2x128xbf16>
    %385 = vector.shape_cast %384 : vector<1x2x128xbf16> to vector<2x128xbf16>
    %386 = arith.extf %385 : vector<2x128xbf16> to vector<2x128xf32>
    %387 = vector.extract_strided_slice %336 {offsets = [0, 128], sizes = [2, 128], strides = [1, 1]} : vector<2x256xf32> to vector<2x128xf32>
    %388 = arith.addf %386, %387 : vector<2x128xf32>
    %389 = vector.extract_strided_slice %388 {offsets = [0, 0], sizes = [2, 32], strides = [1, 1]} : vector<2x128xf32> to vector<2x32xf32>
    %390 = arith.negf %389 : vector<2x32xf32>
    %391 = math.exp %390 : vector<2x32xf32>
    %cst_83 = arith.constant 1.000000e+00 : f32
    %392 = vector.broadcast %cst_83 : f32 to vector<2x32xf32>
    %393 = arith.addf %392, %391 : vector<2x32xf32>
    %394 = arith.divf %392, %393 : vector<2x32xf32>
    %395 = vector.extract_strided_slice %388 {offsets = [0, 32], sizes = [2, 32], strides = [1, 1]} : vector<2x128xf32> to vector<2x32xf32>
    %396 = arith.negf %395 : vector<2x32xf32>
    %397 = math.exp %396 : vector<2x32xf32>
    %cst_84 = arith.constant 1.000000e+00 : f32
    %398 = vector.broadcast %cst_84 : f32 to vector<2x32xf32>
    %399 = arith.addf %398, %397 : vector<2x32xf32>
    %400 = arith.divf %398, %399 : vector<2x32xf32>
    %401 = vector.extract_strided_slice %388 {offsets = [0, 64], sizes = [2, 32], strides = [1, 1]} : vector<2x128xf32> to vector<2x32xf32>
    %402 = math.tanh %401 : vector<2x32xf32>
    %403 = vector.extract_strided_slice %388 {offsets = [0, 96], sizes = [2, 32], strides = [1, 1]} : vector<2x128xf32> to vector<2x32xf32>
    %404 = arith.negf %403 : vector<2x32xf32>
    %405 = math.exp %404 : vector<2x32xf32>
    %cst_85 = arith.constant 1.000000e+00 : f32
    %406 = vector.broadcast %cst_85 : f32 to vector<2x32xf32>
    %407 = arith.addf %406, %405 : vector<2x32xf32>
    %408 = arith.divf %406, %407 : vector<2x32xf32>
    %409 = arith.mulf %400, %319 : vector<2x32xf32>
    %410 = arith.mulf %394, %402 : vector<2x32xf32>
    %411 = arith.addf %409, %410 : vector<2x32xf32>
    %412 = math.tanh %411 : vector<2x32xf32>
    %413 = arith.mulf %408, %412 : vector<2x32xf32>
    %414 = vector.shape_cast %333 : vector<2x1xi1> to vector<2x1xi1>
    %415 = vector.broadcast %414 : vector<2x1xi1> to vector<2x32xi1>
    %416 = arith.select %415, %413, %316 : vector<2x32xi1>, vector<2x32xf32>
    %417 = vector.shape_cast %333 : vector<2x1xi1> to vector<2x1xi1>
    %418 = vector.broadcast %417 : vector<2x1xi1> to vector<2x32xi1>
    %419 = arith.select %418, %411, %319 : vector<2x32xi1>, vector<2x32xf32>
    %cst_86 = arith.constant 0.000000e+00 : f32
    %420 = vector.shape_cast %333 : vector<2x1xi1> to vector<2x1xi1>
    %421 = vector.broadcast %420 : vector<2x1xi1> to vector<2x32xi1>
    %422 = vector.broadcast %cst_86 : f32 to vector<2x32xf32>
    %423 = arith.select %421, %413, %422 : vector<2x32xi1>, vector<2x32xf32>
    %424 = arith.truncf %423 : vector<2x32xf32> to vector<2x32xbf16>
    %425 = arith.index_cast %329 : i32 to index
    %c0_87 = arith.constant 0 : index
    %c0_88 = arith.constant 0 : index
    %426 = vector.load %arg17[%425, %c0_87, %c0_88] : memref<8x2x32xbf16, #tpu.memory_space<vmem>>, vector<1x2x32xbf16>
    %427 = vector.shape_cast %426 : vector<1x2x32xbf16> to vector<2x32xbf16>
    %428 = vector.shape_cast %424 : vector<2x32xbf16> to vector<1x2x32xbf16>
    tpu.vector_store %arg17[%425, %c0_87, %c0_88], %428 {strides = array<i32>} : memref<8x2x32xbf16, #tpu.memory_space<vmem>>, vector<1x2x32xbf16>,
    %c4_i32 = arith.constant 4 : i32
    %c7_i32_89 = arith.constant 7 : i32
    %429 = arith.subi %c7_i32_89, %c4_i32 : i32
    %430 = vector.broadcast %c4_i32 : i32 to vector<2x1xi32>
    %431 = arith.cmpi slt, %430, %0 : vector<2x1xi32>
    %432 = vector.broadcast %429 : i32 to vector<2x1xi32>
    %433 = arith.cmpi slt, %432, %0 : vector<2x1xi32>
    %434 = tpu.concatenate %370, %416 in 1 : vector<2x32xf32>, vector<2x32xf32> -> vector<2x64xf32>
    %435 = arith.truncf %434 : vector<2x64xf32> to vector<2x64xbf16>
    %cst_90 = arith.constant dense<0.000000e+00> : vector<2x256xf32>
    %436 = tpu.matmul %435, %27, %cst_90 {dimension_numbers = #tpu.dot_dimension_numbers<[1], [0], [0], [1], [0, 0, 1, 1], [], []>} : vector<2x64xbf16>, vector<64x256xbf16>, vector<2x256xf32> -> vector<2x256xf32>
    %437 = arith.index_cast %c4_i32 : i32 to index
    %c0_91 = arith.constant 0 : index
    %c0_92 = arith.constant 0 : index
    %438 = vector.load %arg15[%437, %c0_91, %c0_92] : memref<8x2x256xbf16, #tpu.memory_space<vmem>>, vector<1x2x128xbf16>
    %439 = vector.shape_cast %438 : vector<1x2x128xbf16> to vector<2x128xbf16>
    %440 = arith.extf %439 : vector<2x128xbf16> to vector<2x128xf32>
    %441 = vector.extract_strided_slice %436 {offsets = [0, 0], sizes = [2, 128], strides = [1, 1]} : vector<2x256xf32> to vector<2x128xf32>
    %442 = arith.addf %440, %441 : vector<2x128xf32>
    %443 = vector.extract_strided_slice %442 {offsets = [0, 0], sizes = [2, 32], strides = [1, 1]} : vector<2x128xf32> to vector<2x32xf32>
    %444 = arith.negf %443 : vector<2x32xf32>
    %445 = math.exp %444 : vector<2x32xf32>
    %cst_93 = arith.constant 1.000000e+00 : f32
    %446 = vector.broadcast %cst_93 : f32 to vector<2x32xf32>
    %447 = arith.addf %446, %445 : vector<2x32xf32>
    %448 = arith.divf %446, %447 : vector<2x32xf32>
    %449 = vector.extract_strided_slice %442 {offsets = [0, 32], sizes = [2, 32], strides = [1, 1]} : vector<2x128xf32> to vector<2x32xf32>
    %450 = arith.negf %449 : vector<2x32xf32>
    %451 = math.exp %450 : vector<2x32xf32>
    %cst_94 = arith.constant 1.000000e+00 : f32
    %452 = vector.broadcast %cst_94 : f32 to vector<2x32xf32>
    %453 = arith.addf %452, %451 : vector<2x32xf32>
    %454 = arith.divf %452, %453 : vector<2x32xf32>
    %455 = vector.extract_strided_slice %442 {offsets = [0, 64], sizes = [2, 32], strides = [1, 1]} : vector<2x128xf32> to vector<2x32xf32>
    %456 = math.tanh %455 : vector<2x32xf32>
    %457 = vector.extract_strided_slice %442 {offsets = [0, 96], sizes = [2, 32], strides = [1, 1]} : vector<2x128xf32> to vector<2x32xf32>
    %458 = arith.negf %457 : vector<2x32xf32>
    %459 = math.exp %458 : vector<2x32xf32>
    %cst_95 = arith.constant 1.000000e+00 : f32
    %460 = vector.broadcast %cst_95 : f32 to vector<2x32xf32>
    %461 = arith.addf %460, %459 : vector<2x32xf32>
    %462 = arith.divf %460, %461 : vector<2x32xf32>
    %463 = arith.mulf %454, %373 : vector<2x32xf32>
    %464 = arith.mulf %448, %456 : vector<2x32xf32>
    %465 = arith.addf %463, %464 : vector<2x32xf32>
    %466 = math.tanh %465 : vector<2x32xf32>
    %467 = arith.mulf %462, %466 : vector<2x32xf32>
    %468 = vector.shape_cast %431 : vector<2x1xi1> to vector<2x1xi1>
    %469 = vector.broadcast %468 : vector<2x1xi1> to vector<2x32xi1>
    %470 = arith.select %469, %467, %370 : vector<2x32xi1>, vector<2x32xf32>
    %471 = vector.shape_cast %431 : vector<2x1xi1> to vector<2x1xi1>
    %472 = vector.broadcast %471 : vector<2x1xi1> to vector<2x32xi1>
    %473 = arith.select %472, %465, %373 : vector<2x32xi1>, vector<2x32xf32>
    %cst_96 = arith.constant 0.000000e+00 : f32
    %474 = vector.shape_cast %431 : vector<2x1xi1> to vector<2x1xi1>
    %475 = vector.broadcast %474 : vector<2x1xi1> to vector<2x32xi1>
    %476 = vector.broadcast %cst_96 : f32 to vector<2x32xf32>
    %477 = arith.select %475, %467, %476 : vector<2x32xi1>, vector<2x32xf32>
    %478 = arith.truncf %477 : vector<2x32xf32> to vector<2x32xbf16>
    %479 = arith.index_cast %c4_i32 : i32 to index
    %c0_97 = arith.constant 0 : index
    %c0_98 = arith.constant 0 : index
    %480 = vector.load %arg16[%479, %c0_97, %c0_98] : memref<8x2x32xbf16, #tpu.memory_space<vmem>>, vector<1x2x32xbf16>
    %481 = vector.shape_cast %480 : vector<1x2x32xbf16> to vector<2x32xbf16>
    %482 = vector.shape_cast %478 : vector<2x32xbf16> to vector<1x2x32xbf16>
    tpu.vector_store %arg16[%479, %c0_97, %c0_98], %482 {strides = array<i32>} : memref<8x2x32xbf16, #tpu.memory_space<vmem>>, vector<1x2x32xbf16>,
    %483 = arith.index_cast %429 : i32 to index
    %c0_99 = arith.constant 0 : index
    %c128_100 = arith.constant 128 : index
    %484 = vector.load %arg15[%483, %c0_99, %c128_100] : memref<8x2x256xbf16, #tpu.memory_space<vmem>>, vector<1x2x128xbf16>
    %485 = vector.shape_cast %484 : vector<1x2x128xbf16> to vector<2x128xbf16>
    %486 = arith.extf %485 : vector<2x128xbf16> to vector<2x128xf32>
    %487 = vector.extract_strided_slice %436 {offsets = [0, 128], sizes = [2, 128], strides = [1, 1]} : vector<2x256xf32> to vector<2x128xf32>
    %488 = arith.addf %486, %487 : vector<2x128xf32>
    %489 = vector.extract_strided_slice %488 {offsets = [0, 0], sizes = [2, 32], strides = [1, 1]} : vector<2x128xf32> to vector<2x32xf32>
    %490 = arith.negf %489 : vector<2x32xf32>
    %491 = math.exp %490 : vector<2x32xf32>
    %cst_101 = arith.constant 1.000000e+00 : f32
    %492 = vector.broadcast %cst_101 : f32 to vector<2x32xf32>
    %493 = arith.addf %492, %491 : vector<2x32xf32>
    %494 = arith.divf %492, %493 : vector<2x32xf32>
    %495 = vector.extract_strided_slice %488 {offsets = [0, 32], sizes = [2, 32], strides = [1, 1]} : vector<2x128xf32> to vector<2x32xf32>
    %496 = arith.negf %495 : vector<2x32xf32>
    %497 = math.exp %496 : vector<2x32xf32>
    %cst_102 = arith.constant 1.000000e+00 : f32
    %498 = vector.broadcast %cst_102 : f32 to vector<2x32xf32>
    %499 = arith.addf %498, %497 : vector<2x32xf32>
    %500 = arith.divf %498, %499 : vector<2x32xf32>
    %501 = vector.extract_strided_slice %488 {offsets = [0, 64], sizes = [2, 32], strides = [1, 1]} : vector<2x128xf32> to vector<2x32xf32>
    %502 = math.tanh %501 : vector<2x32xf32>
    %503 = vector.extract_strided_slice %488 {offsets = [0, 96], sizes = [2, 32], strides = [1, 1]} : vector<2x128xf32> to vector<2x32xf32>
    %504 = arith.negf %503 : vector<2x32xf32>
    %505 = math.exp %504 : vector<2x32xf32>
    %cst_103 = arith.constant 1.000000e+00 : f32
    %506 = vector.broadcast %cst_103 : f32 to vector<2x32xf32>
    %507 = arith.addf %506, %505 : vector<2x32xf32>
    %508 = arith.divf %506, %507 : vector<2x32xf32>
    %509 = arith.mulf %500, %419 : vector<2x32xf32>
    %510 = arith.mulf %494, %502 : vector<2x32xf32>
    %511 = arith.addf %509, %510 : vector<2x32xf32>
    %512 = math.tanh %511 : vector<2x32xf32>
    %513 = arith.mulf %508, %512 : vector<2x32xf32>
    %514 = vector.shape_cast %433 : vector<2x1xi1> to vector<2x1xi1>
    %515 = vector.broadcast %514 : vector<2x1xi1> to vector<2x32xi1>
    %516 = arith.select %515, %513, %416 : vector<2x32xi1>, vector<2x32xf32>
    %517 = vector.shape_cast %433 : vector<2x1xi1> to vector<2x1xi1>
    %518 = vector.broadcast %517 : vector<2x1xi1> to vector<2x32xi1>
    %519 = arith.select %518, %511, %419 : vector<2x32xi1>, vector<2x32xf32>
    %cst_104 = arith.constant 0.000000e+00 : f32
    %520 = vector.shape_cast %433 : vector<2x1xi1> to vector<2x1xi1>
    %521 = vector.broadcast %520 : vector<2x1xi1> to vector<2x32xi1>
    %522 = vector.broadcast %cst_104 : f32 to vector<2x32xf32>
    %523 = arith.select %521, %513, %522 : vector<2x32xi1>, vector<2x32xf32>
    %524 = arith.truncf %523 : vector<2x32xf32> to vector<2x32xbf16>
    %525 = arith.index_cast %429 : i32 to index
    %c0_105 = arith.constant 0 : index
    %c0_106 = arith.constant 0 : index
    %526 = vector.load %arg17[%525, %c0_105, %c0_106] : memref<8x2x32xbf16, #tpu.memory_space<vmem>>, vector<1x2x32xbf16>
    %527 = vector.shape_cast %526 : vector<1x2x32xbf16> to vector<2x32xbf16>
    %528 = vector.shape_cast %524 : vector<2x32xbf16> to vector<1x2x32xbf16>
    tpu.vector_store %arg17[%525, %c0_105, %c0_106], %528 {strides = array<i32>} : memref<8x2x32xbf16, #tpu.memory_space<vmem>>, vector<1x2x32xbf16>,
    %c5_i32 = arith.constant 5 : i32
    %c7_i32_107 = arith.constant 7 : i32
    %529 = arith.subi %c7_i32_107, %c5_i32 : i32
    %530 = vector.broadcast %c5_i32 : i32 to vector<2x1xi32>
    %531 = arith.cmpi slt, %530, %0 : vector<2x1xi32>
    %532 = vector.broadcast %529 : i32 to vector<2x1xi32>
    %533 = arith.cmpi slt, %532, %0 : vector<2x1xi32>
    %534 = tpu.concatenate %470, %516 in 1 : vector<2x32xf32>, vector<2x32xf32> -> vector<2x64xf32>
    %535 = arith.truncf %534 : vector<2x64xf32> to vector<2x64xbf16>
    %cst_108 = arith.constant dense<0.000000e+00> : vector<2x256xf32>
    %536 = tpu.matmul %535, %27, %cst_108 {dimension_numbers = #tpu.dot_dimension_numbers<[1], [0], [0], [1], [0, 0, 1, 1], [], []>} : vector<2x64xbf16>, vector<64x256xbf16>, vector<2x256xf32> -> vector<2x256xf32>
    %537 = arith.index_cast %c5_i32 : i32 to index
    %c0_109 = arith.constant 0 : index
    %c0_110 = arith.constant 0 : index
    %538 = vector.load %arg15[%537, %c0_109, %c0_110] : memref<8x2x256xbf16, #tpu.memory_space<vmem>>, vector<1x2x128xbf16>
    %539 = vector.shape_cast %538 : vector<1x2x128xbf16> to vector<2x128xbf16>
    %540 = arith.extf %539 : vector<2x128xbf16> to vector<2x128xf32>
    %541 = vector.extract_strided_slice %536 {offsets = [0, 0], sizes = [2, 128], strides = [1, 1]} : vector<2x256xf32> to vector<2x128xf32>
    %542 = arith.addf %540, %541 : vector<2x128xf32>
    %543 = vector.extract_strided_slice %542 {offsets = [0, 0], sizes = [2, 32], strides = [1, 1]} : vector<2x128xf32> to vector<2x32xf32>
    %544 = arith.negf %543 : vector<2x32xf32>
    %545 = math.exp %544 : vector<2x32xf32>
    %cst_111 = arith.constant 1.000000e+00 : f32
    %546 = vector.broadcast %cst_111 : f32 to vector<2x32xf32>
    %547 = arith.addf %546, %545 : vector<2x32xf32>
    %548 = arith.divf %546, %547 : vector<2x32xf32>
    %549 = vector.extract_strided_slice %542 {offsets = [0, 32], sizes = [2, 32], strides = [1, 1]} : vector<2x128xf32> to vector<2x32xf32>
    %550 = arith.negf %549 : vector<2x32xf32>
    %551 = math.exp %550 : vector<2x32xf32>
    %cst_112 = arith.constant 1.000000e+00 : f32
    %552 = vector.broadcast %cst_112 : f32 to vector<2x32xf32>
    %553 = arith.addf %552, %551 : vector<2x32xf32>
    %554 = arith.divf %552, %553 : vector<2x32xf32>
    %555 = vector.extract_strided_slice %542 {offsets = [0, 64], sizes = [2, 32], strides = [1, 1]} : vector<2x128xf32> to vector<2x32xf32>
    %556 = math.tanh %555 : vector<2x32xf32>
    %557 = vector.extract_strided_slice %542 {offsets = [0, 96], sizes = [2, 32], strides = [1, 1]} : vector<2x128xf32> to vector<2x32xf32>
    %558 = arith.negf %557 : vector<2x32xf32>
    %559 = math.exp %558 : vector<2x32xf32>
    %cst_113 = arith.constant 1.000000e+00 : f32
    %560 = vector.broadcast %cst_113 : f32 to vector<2x32xf32>
    %561 = arith.addf %560, %559 : vector<2x32xf32>
    %562 = arith.divf %560, %561 : vector<2x32xf32>
    %563 = arith.mulf %554, %473 : vector<2x32xf32>
    %564 = arith.mulf %548, %556 : vector<2x32xf32>
    %565 = arith.addf %563, %564 : vector<2x32xf32>
    %566 = math.tanh %565 : vector<2x32xf32>
    %567 = arith.mulf %562, %566 : vector<2x32xf32>
    %568 = vector.shape_cast %531 : vector<2x1xi1> to vector<2x1xi1>
    %569 = vector.broadcast %568 : vector<2x1xi1> to vector<2x32xi1>
    %570 = arith.select %569, %567, %470 : vector<2x32xi1>, vector<2x32xf32>
    %571 = vector.shape_cast %531 : vector<2x1xi1> to vector<2x1xi1>
    %572 = vector.broadcast %571 : vector<2x1xi1> to vector<2x32xi1>
    %573 = arith.select %572, %565, %473 : vector<2x32xi1>, vector<2x32xf32>
    %cst_114 = arith.constant 0.000000e+00 : f32
    %574 = vector.shape_cast %531 : vector<2x1xi1> to vector<2x1xi1>
    %575 = vector.broadcast %574 : vector<2x1xi1> to vector<2x32xi1>
    %576 = vector.broadcast %cst_114 : f32 to vector<2x32xf32>
    %577 = arith.select %575, %567, %576 : vector<2x32xi1>, vector<2x32xf32>
    %578 = arith.truncf %577 : vector<2x32xf32> to vector<2x32xbf16>
    %579 = arith.index_cast %c5_i32 : i32 to index
    %c0_115 = arith.constant 0 : index
    %c0_116 = arith.constant 0 : index
    %580 = vector.load %arg16[%579, %c0_115, %c0_116] : memref<8x2x32xbf16, #tpu.memory_space<vmem>>, vector<1x2x32xbf16>
    %581 = vector.shape_cast %580 : vector<1x2x32xbf16> to vector<2x32xbf16>
    %582 = vector.shape_cast %578 : vector<2x32xbf16> to vector<1x2x32xbf16>
    tpu.vector_store %arg16[%579, %c0_115, %c0_116], %582 {strides = array<i32>} : memref<8x2x32xbf16, #tpu.memory_space<vmem>>, vector<1x2x32xbf16>,
    %583 = arith.index_cast %529 : i32 to index
    %c0_117 = arith.constant 0 : index
    %c128_118 = arith.constant 128 : index
    %584 = vector.load %arg15[%583, %c0_117, %c128_118] : memref<8x2x256xbf16, #tpu.memory_space<vmem>>, vector<1x2x128xbf16>
    %585 = vector.shape_cast %584 : vector<1x2x128xbf16> to vector<2x128xbf16>
    %586 = arith.extf %585 : vector<2x128xbf16> to vector<2x128xf32>
    %587 = vector.extract_strided_slice %536 {offsets = [0, 128], sizes = [2, 128], strides = [1, 1]} : vector<2x256xf32> to vector<2x128xf32>
    %588 = arith.addf %586, %587 : vector<2x128xf32>
    %589 = vector.extract_strided_slice %588 {offsets = [0, 0], sizes = [2, 32], strides = [1, 1]} : vector<2x128xf32> to vector<2x32xf32>
    %590 = arith.negf %589 : vector<2x32xf32>
    %591 = math.exp %590 : vector<2x32xf32>
    %cst_119 = arith.constant 1.000000e+00 : f32
    %592 = vector.broadcast %cst_119 : f32 to vector<2x32xf32>
    %593 = arith.addf %592, %591 : vector<2x32xf32>
    %594 = arith.divf %592, %593 : vector<2x32xf32>
    %595 = vector.extract_strided_slice %588 {offsets = [0, 32], sizes = [2, 32], strides = [1, 1]} : vector<2x128xf32> to vector<2x32xf32>
    %596 = arith.negf %595 : vector<2x32xf32>
    %597 = math.exp %596 : vector<2x32xf32>
    %cst_120 = arith.constant 1.000000e+00 : f32
    %598 = vector.broadcast %cst_120 : f32 to vector<2x32xf32>
    %599 = arith.addf %598, %597 : vector<2x32xf32>
    %600 = arith.divf %598, %599 : vector<2x32xf32>
    %601 = vector.extract_strided_slice %588 {offsets = [0, 64], sizes = [2, 32], strides = [1, 1]} : vector<2x128xf32> to vector<2x32xf32>
    %602 = math.tanh %601 : vector<2x32xf32>
    %603 = vector.extract_strided_slice %588 {offsets = [0, 96], sizes = [2, 32], strides = [1, 1]} : vector<2x128xf32> to vector<2x32xf32>
    %604 = arith.negf %603 : vector<2x32xf32>
    %605 = math.exp %604 : vector<2x32xf32>
    %cst_121 = arith.constant 1.000000e+00 : f32
    %606 = vector.broadcast %cst_121 : f32 to vector<2x32xf32>
    %607 = arith.addf %606, %605 : vector<2x32xf32>
    %608 = arith.divf %606, %607 : vector<2x32xf32>
    %609 = arith.mulf %600, %519 : vector<2x32xf32>
    %610 = arith.mulf %594, %602 : vector<2x32xf32>
    %611 = arith.addf %609, %610 : vector<2x32xf32>
    %612 = math.tanh %611 : vector<2x32xf32>
    %613 = arith.mulf %608, %612 : vector<2x32xf32>
    %614 = vector.shape_cast %533 : vector<2x1xi1> to vector<2x1xi1>
    %615 = vector.broadcast %614 : vector<2x1xi1> to vector<2x32xi1>
    %616 = arith.select %615, %613, %516 : vector<2x32xi1>, vector<2x32xf32>
    %617 = vector.shape_cast %533 : vector<2x1xi1> to vector<2x1xi1>
    %618 = vector.broadcast %617 : vector<2x1xi1> to vector<2x32xi1>
    %619 = arith.select %618, %611, %519 : vector<2x32xi1>, vector<2x32xf32>
    %cst_122 = arith.constant 0.000000e+00 : f32
    %620 = vector.shape_cast %533 : vector<2x1xi1> to vector<2x1xi1>
    %621 = vector.broadcast %620 : vector<2x1xi1> to vector<2x32xi1>
    %622 = vector.broadcast %cst_122 : f32 to vector<2x32xf32>
    %623 = arith.select %621, %613, %622 : vector<2x32xi1>, vector<2x32xf32>
    %624 = arith.truncf %623 : vector<2x32xf32> to vector<2x32xbf16>
    %625 = arith.index_cast %529 : i32 to index
    %c0_123 = arith.constant 0 : index
    %c0_124 = arith.constant 0 : index
    %626 = vector.load %arg17[%625, %c0_123, %c0_124] : memref<8x2x32xbf16, #tpu.memory_space<vmem>>, vector<1x2x32xbf16>
    %627 = vector.shape_cast %626 : vector<1x2x32xbf16> to vector<2x32xbf16>
    %628 = vector.shape_cast %624 : vector<2x32xbf16> to vector<1x2x32xbf16>
    tpu.vector_store %arg17[%625, %c0_123, %c0_124], %628 {strides = array<i32>} : memref<8x2x32xbf16, #tpu.memory_space<vmem>>, vector<1x2x32xbf16>,
    %c6_i32 = arith.constant 6 : i32
    %c7_i32_125 = arith.constant 7 : i32
    %629 = arith.subi %c7_i32_125, %c6_i32 : i32
    %630 = vector.broadcast %c6_i32 : i32 to vector<2x1xi32>
    %631 = arith.cmpi slt, %630, %0 : vector<2x1xi32>
    %632 = vector.broadcast %629 : i32 to vector<2x1xi32>
    %633 = arith.cmpi slt, %632, %0 : vector<2x1xi32>
    %634 = tpu.concatenate %570, %616 in 1 : vector<2x32xf32>, vector<2x32xf32> -> vector<2x64xf32>
    %635 = arith.truncf %634 : vector<2x64xf32> to vector<2x64xbf16>
    %cst_126 = arith.constant dense<0.000000e+00> : vector<2x256xf32>
    %636 = tpu.matmul %635, %27, %cst_126 {dimension_numbers = #tpu.dot_dimension_numbers<[1], [0], [0], [1], [0, 0, 1, 1], [], []>} : vector<2x64xbf16>, vector<64x256xbf16>, vector<2x256xf32> -> vector<2x256xf32>
    %637 = arith.index_cast %c6_i32 : i32 to index
    %c0_127 = arith.constant 0 : index
    %c0_128 = arith.constant 0 : index
    %638 = vector.load %arg15[%637, %c0_127, %c0_128] : memref<8x2x256xbf16, #tpu.memory_space<vmem>>, vector<1x2x128xbf16>
    %639 = vector.shape_cast %638 : vector<1x2x128xbf16> to vector<2x128xbf16>
    %640 = arith.extf %639 : vector<2x128xbf16> to vector<2x128xf32>
    %641 = vector.extract_strided_slice %636 {offsets = [0, 0], sizes = [2, 128], strides = [1, 1]} : vector<2x256xf32> to vector<2x128xf32>
    %642 = arith.addf %640, %641 : vector<2x128xf32>
    %643 = vector.extract_strided_slice %642 {offsets = [0, 0], sizes = [2, 32], strides = [1, 1]} : vector<2x128xf32> to vector<2x32xf32>
    %644 = arith.negf %643 : vector<2x32xf32>
    %645 = math.exp %644 : vector<2x32xf32>
    %cst_129 = arith.constant 1.000000e+00 : f32
    %646 = vector.broadcast %cst_129 : f32 to vector<2x32xf32>
    %647 = arith.addf %646, %645 : vector<2x32xf32>
    %648 = arith.divf %646, %647 : vector<2x32xf32>
    %649 = vector.extract_strided_slice %642 {offsets = [0, 32], sizes = [2, 32], strides = [1, 1]} : vector<2x128xf32> to vector<2x32xf32>
    %650 = arith.negf %649 : vector<2x32xf32>
    %651 = math.exp %650 : vector<2x32xf32>
    %cst_130 = arith.constant 1.000000e+00 : f32
    %652 = vector.broadcast %cst_130 : f32 to vector<2x32xf32>
    %653 = arith.addf %652, %651 : vector<2x32xf32>
    %654 = arith.divf %652, %653 : vector<2x32xf32>
    %655 = vector.extract_strided_slice %642 {offsets = [0, 64], sizes = [2, 32], strides = [1, 1]} : vector<2x128xf32> to vector<2x32xf32>
    %656 = math.tanh %655 : vector<2x32xf32>
    %657 = vector.extract_strided_slice %642 {offsets = [0, 96], sizes = [2, 32], strides = [1, 1]} : vector<2x128xf32> to vector<2x32xf32>
    %658 = arith.negf %657 : vector<2x32xf32>
    %659 = math.exp %658 : vector<2x32xf32>
    %cst_131 = arith.constant 1.000000e+00 : f32
    %660 = vector.broadcast %cst_131 : f32 to vector<2x32xf32>
    %661 = arith.addf %660, %659 : vector<2x32xf32>
    %662 = arith.divf %660, %661 : vector<2x32xf32>
    %663 = arith.mulf %654, %573 : vector<2x32xf32>
    %664 = arith.mulf %648, %656 : vector<2x32xf32>
    %665 = arith.addf %663, %664 : vector<2x32xf32>
    %666 = math.tanh %665 : vector<2x32xf32>
    %667 = arith.mulf %662, %666 : vector<2x32xf32>
    %668 = vector.shape_cast %631 : vector<2x1xi1> to vector<2x1xi1>
    %669 = vector.broadcast %668 : vector<2x1xi1> to vector<2x32xi1>
    %670 = arith.select %669, %667, %570 : vector<2x32xi1>, vector<2x32xf32>
    %671 = vector.shape_cast %631 : vector<2x1xi1> to vector<2x1xi1>
    %672 = vector.broadcast %671 : vector<2x1xi1> to vector<2x32xi1>
    %673 = arith.select %672, %665, %573 : vector<2x32xi1>, vector<2x32xf32>
    %cst_132 = arith.constant 0.000000e+00 : f32
    %674 = vector.shape_cast %631 : vector<2x1xi1> to vector<2x1xi1>
    %675 = vector.broadcast %674 : vector<2x1xi1> to vector<2x32xi1>
    %676 = vector.broadcast %cst_132 : f32 to vector<2x32xf32>
    %677 = arith.select %675, %667, %676 : vector<2x32xi1>, vector<2x32xf32>
    %678 = arith.truncf %677 : vector<2x32xf32> to vector<2x32xbf16>
    %679 = arith.index_cast %c6_i32 : i32 to index
    %c0_133 = arith.constant 0 : index
    %c0_134 = arith.constant 0 : index
    %680 = vector.load %arg16[%679, %c0_133, %c0_134] : memref<8x2x32xbf16, #tpu.memory_space<vmem>>, vector<1x2x32xbf16>
    %681 = vector.shape_cast %680 : vector<1x2x32xbf16> to vector<2x32xbf16>
    %682 = vector.shape_cast %678 : vector<2x32xbf16> to vector<1x2x32xbf16>
    tpu.vector_store %arg16[%679, %c0_133, %c0_134], %682 {strides = array<i32>} : memref<8x2x32xbf16, #tpu.memory_space<vmem>>, vector<1x2x32xbf16>,
    %683 = arith.index_cast %629 : i32 to index
    %c0_135 = arith.constant 0 : index
    %c128_136 = arith.constant 128 : index
    %684 = vector.load %arg15[%683, %c0_135, %c128_136] : memref<8x2x256xbf16, #tpu.memory_space<vmem>>, vector<1x2x128xbf16>
    %685 = vector.shape_cast %684 : vector<1x2x128xbf16> to vector<2x128xbf16>
    %686 = arith.extf %685 : vector<2x128xbf16> to vector<2x128xf32>
    %687 = vector.extract_strided_slice %636 {offsets = [0, 128], sizes = [2, 128], strides = [1, 1]} : vector<2x256xf32> to vector<2x128xf32>
    %688 = arith.addf %686, %687 : vector<2x128xf32>
    %689 = vector.extract_strided_slice %688 {offsets = [0, 0], sizes = [2, 32], strides = [1, 1]} : vector<2x128xf32> to vector<2x32xf32>
    %690 = arith.negf %689 : vector<2x32xf32>
    %691 = math.exp %690 : vector<2x32xf32>
    %cst_137 = arith.constant 1.000000e+00 : f32
    %692 = vector.broadcast %cst_137 : f32 to vector<2x32xf32>
    %693 = arith.addf %692, %691 : vector<2x32xf32>
    %694 = arith.divf %692, %693 : vector<2x32xf32>
    %695 = vector.extract_strided_slice %688 {offsets = [0, 32], sizes = [2, 32], strides = [1, 1]} : vector<2x128xf32> to vector<2x32xf32>
    %696 = arith.negf %695 : vector<2x32xf32>
    %697 = math.exp %696 : vector<2x32xf32>
    %cst_138 = arith.constant 1.000000e+00 : f32
    %698 = vector.broadcast %cst_138 : f32 to vector<2x32xf32>
    %699 = arith.addf %698, %697 : vector<2x32xf32>
    %700 = arith.divf %698, %699 : vector<2x32xf32>
    %701 = vector.extract_strided_slice %688 {offsets = [0, 64], sizes = [2, 32], strides = [1, 1]} : vector<2x128xf32> to vector<2x32xf32>
    %702 = math.tanh %701 : vector<2x32xf32>
    %703 = vector.extract_strided_slice %688 {offsets = [0, 96], sizes = [2, 32], strides = [1, 1]} : vector<2x128xf32> to vector<2x32xf32>
    %704 = arith.negf %703 : vector<2x32xf32>
    %705 = math.exp %704 : vector<2x32xf32>
    %cst_139 = arith.constant 1.000000e+00 : f32
    %706 = vector.broadcast %cst_139 : f32 to vector<2x32xf32>
    %707 = arith.addf %706, %705 : vector<2x32xf32>
    %708 = arith.divf %706, %707 : vector<2x32xf32>
    %709 = arith.mulf %700, %619 : vector<2x32xf32>
    %710 = arith.mulf %694, %702 : vector<2x32xf32>
    %711 = arith.addf %709, %710 : vector<2x32xf32>
    %712 = math.tanh %711 : vector<2x32xf32>
    %713 = arith.mulf %708, %712 : vector<2x32xf32>
    %714 = vector.shape_cast %633 : vector<2x1xi1> to vector<2x1xi1>
    %715 = vector.broadcast %714 : vector<2x1xi1> to vector<2x32xi1>
    %716 = arith.select %715, %713, %616 : vector<2x32xi1>, vector<2x32xf32>
    %717 = vector.shape_cast %633 : vector<2x1xi1> to vector<2x1xi1>
    %718 = vector.broadcast %717 : vector<2x1xi1> to vector<2x32xi1>
    %719 = arith.select %718, %711, %619 : vector<2x32xi1>, vector<2x32xf32>
    %cst_140 = arith.constant 0.000000e+00 : f32
    %720 = vector.shape_cast %633 : vector<2x1xi1> to vector<2x1xi1>
    %721 = vector.broadcast %720 : vector<2x1xi1> to vector<2x32xi1>
    %722 = vector.broadcast %cst_140 : f32 to vector<2x32xf32>
    %723 = arith.select %721, %713, %722 : vector<2x32xi1>, vector<2x32xf32>
    %724 = arith.truncf %723 : vector<2x32xf32> to vector<2x32xbf16>
    %725 = arith.index_cast %629 : i32 to index
    %c0_141 = arith.constant 0 : index
    %c0_142 = arith.constant 0 : index
    %726 = vector.load %arg17[%725, %c0_141, %c0_142] : memref<8x2x32xbf16, #tpu.memory_space<vmem>>, vector<1x2x32xbf16>
    %727 = vector.shape_cast %726 : vector<1x2x32xbf16> to vector<2x32xbf16>
    %728 = vector.shape_cast %724 : vector<2x32xbf16> to vector<1x2x32xbf16>
    tpu.vector_store %arg17[%725, %c0_141, %c0_142], %728 {strides = array<i32>} : memref<8x2x32xbf16, #tpu.memory_space<vmem>>, vector<1x2x32xbf16>,
    %c7_i32_143 = arith.constant 7 : i32
    %c7_i32_144 = arith.constant 7 : i32
    %729 = arith.subi %c7_i32_144, %c7_i32_143 : i32
    %730 = vector.broadcast %c7_i32_143 : i32 to vector<2x1xi32>
    %731 = arith.cmpi slt, %730, %0 : vector<2x1xi32>
    %732 = vector.broadcast %729 : i32 to vector<2x1xi32>
    %733 = arith.cmpi slt, %732, %0 : vector<2x1xi32>
    %734 = tpu.concatenate %670, %716 in 1 : vector<2x32xf32>, vector<2x32xf32> -> vector<2x64xf32>
    %735 = arith.truncf %734 : vector<2x64xf32> to vector<2x64xbf16>
    %cst_145 = arith.constant dense<0.000000e+00> : vector<2x256xf32>
    %736 = tpu.matmul %735, %27, %cst_145 {dimension_numbers = #tpu.dot_dimension_numbers<[1], [0], [0], [1], [0, 0, 1, 1], [], []>} : vector<2x64xbf16>, vector<64x256xbf16>, vector<2x256xf32> -> vector<2x256xf32>
    %737 = arith.index_cast %c7_i32_143 : i32 to index
    %c0_146 = arith.constant 0 : index
    %c0_147 = arith.constant 0 : index
    %738 = vector.load %arg15[%737, %c0_146, %c0_147] : memref<8x2x256xbf16, #tpu.memory_space<vmem>>, vector<1x2x128xbf16>
    %739 = vector.shape_cast %738 : vector<1x2x128xbf16> to vector<2x128xbf16>
    %740 = arith.extf %739 : vector<2x128xbf16> to vector<2x128xf32>
    %741 = vector.extract_strided_slice %736 {offsets = [0, 0], sizes = [2, 128], strides = [1, 1]} : vector<2x256xf32> to vector<2x128xf32>
    %742 = arith.addf %740, %741 : vector<2x128xf32>
    %743 = vector.extract_strided_slice %742 {offsets = [0, 0], sizes = [2, 32], strides = [1, 1]} : vector<2x128xf32> to vector<2x32xf32>
    %744 = arith.negf %743 : vector<2x32xf32>
    %745 = math.exp %744 : vector<2x32xf32>
    %cst_148 = arith.constant 1.000000e+00 : f32
    %746 = vector.broadcast %cst_148 : f32 to vector<2x32xf32>
    %747 = arith.addf %746, %745 : vector<2x32xf32>
    %748 = arith.divf %746, %747 : vector<2x32xf32>
    %749 = vector.extract_strided_slice %742 {offsets = [0, 32], sizes = [2, 32], strides = [1, 1]} : vector<2x128xf32> to vector<2x32xf32>
    %750 = arith.negf %749 : vector<2x32xf32>
    %751 = math.exp %750 : vector<2x32xf32>
    %cst_149 = arith.constant 1.000000e+00 : f32
    %752 = vector.broadcast %cst_149 : f32 to vector<2x32xf32>
    %753 = arith.addf %752, %751 : vector<2x32xf32>
    %754 = arith.divf %752, %753 : vector<2x32xf32>
    %755 = vector.extract_strided_slice %742 {offsets = [0, 64], sizes = [2, 32], strides = [1, 1]} : vector<2x128xf32> to vector<2x32xf32>
    %756 = math.tanh %755 : vector<2x32xf32>
    %757 = vector.extract_strided_slice %742 {offsets = [0, 96], sizes = [2, 32], strides = [1, 1]} : vector<2x128xf32> to vector<2x32xf32>
    %758 = arith.negf %757 : vector<2x32xf32>
    %759 = math.exp %758 : vector<2x32xf32>
    %cst_150 = arith.constant 1.000000e+00 : f32
    %760 = vector.broadcast %cst_150 : f32 to vector<2x32xf32>
    %761 = arith.addf %760, %759 : vector<2x32xf32>
    %762 = arith.divf %760, %761 : vector<2x32xf32>
    %763 = arith.mulf %754, %673 : vector<2x32xf32>
    %764 = arith.mulf %748, %756 : vector<2x32xf32>
    %765 = arith.addf %763, %764 : vector<2x32xf32>
    %766 = math.tanh %765 : vector<2x32xf32>
    %767 = arith.mulf %762, %766 : vector<2x32xf32>
    %768 = vector.shape_cast %731 : vector<2x1xi1> to vector<2x1xi1>
    %769 = vector.broadcast %768 : vector<2x1xi1> to vector<2x32xi1>
    %770 = arith.select %769, %767, %670 : vector<2x32xi1>, vector<2x32xf32>
    %771 = vector.shape_cast %731 : vector<2x1xi1> to vector<2x1xi1>
    %772 = vector.broadcast %771 : vector<2x1xi1> to vector<2x32xi1>
    %773 = arith.select %772, %765, %673 : vector<2x32xi1>, vector<2x32xf32>
    %cst_151 = arith.constant 0.000000e+00 : f32
    %774 = vector.shape_cast %731 : vector<2x1xi1> to vector<2x1xi1>
    %775 = vector.broadcast %774 : vector<2x1xi1> to vector<2x32xi1>
    %776 = vector.broadcast %cst_151 : f32 to vector<2x32xf32>
    %777 = arith.select %775, %767, %776 : vector<2x32xi1>, vector<2x32xf32>
    %778 = arith.truncf %777 : vector<2x32xf32> to vector<2x32xbf16>
    %779 = arith.index_cast %c7_i32_143 : i32 to index
    %c0_152 = arith.constant 0 : index
    %c0_153 = arith.constant 0 : index
    %780 = vector.load %arg16[%779, %c0_152, %c0_153] : memref<8x2x32xbf16, #tpu.memory_space<vmem>>, vector<1x2x32xbf16>
    %781 = vector.shape_cast %780 : vector<1x2x32xbf16> to vector<2x32xbf16>
    %782 = vector.shape_cast %778 : vector<2x32xbf16> to vector<1x2x32xbf16>
    tpu.vector_store %arg16[%779, %c0_152, %c0_153], %782 {strides = array<i32>} : memref<8x2x32xbf16, #tpu.memory_space<vmem>>, vector<1x2x32xbf16>,
    %783 = arith.index_cast %729 : i32 to index
    %c0_154 = arith.constant 0 : index
    %c128_155 = arith.constant 128 : index
    %784 = vector.load %arg15[%783, %c0_154, %c128_155] : memref<8x2x256xbf16, #tpu.memory_space<vmem>>, vector<1x2x128xbf16>
    %785 = vector.shape_cast %784 : vector<1x2x128xbf16> to vector<2x128xbf16>
    %786 = arith.extf %785 : vector<2x128xbf16> to vector<2x128xf32>
    %787 = vector.extract_strided_slice %736 {offsets = [0, 128], sizes = [2, 128], strides = [1, 1]} : vector<2x256xf32> to vector<2x128xf32>
    %788 = arith.addf %786, %787 : vector<2x128xf32>
    %789 = vector.extract_strided_slice %788 {offsets = [0, 0], sizes = [2, 32], strides = [1, 1]} : vector<2x128xf32> to vector<2x32xf32>
    %790 = arith.negf %789 : vector<2x32xf32>
    %791 = math.exp %790 : vector<2x32xf32>
    %cst_156 = arith.constant 1.000000e+00 : f32
    %792 = vector.broadcast %cst_156 : f32 to vector<2x32xf32>
    %793 = arith.addf %792, %791 : vector<2x32xf32>
    %794 = arith.divf %792, %793 : vector<2x32xf32>
    %795 = vector.extract_strided_slice %788 {offsets = [0, 32], sizes = [2, 32], strides = [1, 1]} : vector<2x128xf32> to vector<2x32xf32>
    %796 = arith.negf %795 : vector<2x32xf32>
    %797 = math.exp %796 : vector<2x32xf32>
    %cst_157 = arith.constant 1.000000e+00 : f32
    %798 = vector.broadcast %cst_157 : f32 to vector<2x32xf32>
    %799 = arith.addf %798, %797 : vector<2x32xf32>
    %800 = arith.divf %798, %799 : vector<2x32xf32>
    %801 = vector.extract_strided_slice %788 {offsets = [0, 64], sizes = [2, 32], strides = [1, 1]} : vector<2x128xf32> to vector<2x32xf32>
    %802 = math.tanh %801 : vector<2x32xf32>
    %803 = vector.extract_strided_slice %788 {offsets = [0, 96], sizes = [2, 32], strides = [1, 1]} : vector<2x128xf32> to vector<2x32xf32>
    %804 = arith.negf %803 : vector<2x32xf32>
    %805 = math.exp %804 : vector<2x32xf32>
    %cst_158 = arith.constant 1.000000e+00 : f32
    %806 = vector.broadcast %cst_158 : f32 to vector<2x32xf32>
    %807 = arith.addf %806, %805 : vector<2x32xf32>
    %808 = arith.divf %806, %807 : vector<2x32xf32>
    %809 = arith.mulf %800, %719 : vector<2x32xf32>
    %810 = arith.mulf %794, %802 : vector<2x32xf32>
    %811 = arith.addf %809, %810 : vector<2x32xf32>
    %812 = math.tanh %811 : vector<2x32xf32>
    %813 = arith.mulf %808, %812 : vector<2x32xf32>
    %814 = vector.shape_cast %733 : vector<2x1xi1> to vector<2x1xi1>
    %815 = vector.broadcast %814 : vector<2x1xi1> to vector<2x32xi1>
    %816 = arith.select %815, %813, %716 : vector<2x32xi1>, vector<2x32xf32>
    %817 = vector.shape_cast %733 : vector<2x1xi1> to vector<2x1xi1>
    %818 = vector.broadcast %817 : vector<2x1xi1> to vector<2x32xi1>
    %819 = arith.select %818, %811, %719 : vector<2x32xi1>, vector<2x32xf32>
    %cst_159 = arith.constant 0.000000e+00 : f32
    %820 = vector.shape_cast %733 : vector<2x1xi1> to vector<2x1xi1>
    %821 = vector.broadcast %820 : vector<2x1xi1> to vector<2x32xi1>
    %822 = vector.broadcast %cst_159 : f32 to vector<2x32xf32>
    %823 = arith.select %821, %813, %822 : vector<2x32xi1>, vector<2x32xf32>
    %824 = arith.truncf %823 : vector<2x32xf32> to vector<2x32xbf16>
    %825 = arith.index_cast %729 : i32 to index
    %c0_160 = arith.constant 0 : index
    %c0_161 = arith.constant 0 : index
    %826 = vector.load %arg17[%825, %c0_160, %c0_161] : memref<8x2x32xbf16, #tpu.memory_space<vmem>>, vector<1x2x32xbf16>
    %827 = vector.shape_cast %826 : vector<1x2x32xbf16> to vector<2x32xbf16>
    %828 = vector.shape_cast %824 : vector<2x32xbf16> to vector<1x2x32xbf16>
    tpu.vector_store %arg17[%825, %c0_160, %c0_161], %828 {strides = array<i32>} : memref<8x2x32xbf16, #tpu.memory_space<vmem>>, vector<1x2x32xbf16>,
    %c8_i32 = arith.constant 8 : i32
    %c0_162 = arith.constant 0 : index
    %c0_163 = arith.constant 0 : index
    %c0_164 = arith.constant 0 : index
    %829 = vector.load %arg16[%c0_162, %c0_163, %c0_164] : memref<8x2x32xbf16, #tpu.memory_space<vmem>>, vector<8x2x32xbf16>
    %830 = vector.shape_cast %829 : vector<8x2x32xbf16> to vector<16x32xbf16>
    %c0_165 = arith.constant 0 : index
    %c0_166 = arith.constant 0 : index
    %c0_167 = arith.constant 0 : index
    %831 = vector.load %arg17[%c0_165, %c0_166, %c0_167] : memref<8x2x32xbf16, #tpu.memory_space<vmem>>, vector<8x2x32xbf16>
    %832 = vector.shape_cast %831 : vector<8x2x32xbf16> to vector<16x32xbf16>
    %c0_168 = arith.constant 0 : index
    %c0_169 = arith.constant 0 : index
    %833 = vector.load %arg8[%c0_168, %c0_169] : memref<32x256xbf16, #tpu.memory_space<vmem>>, vector<32x256xbf16>
    %cst_170 = arith.constant dense<0.000000e+00> : vector<16x256xf32>
    %834 = tpu.matmul %830, %833, %cst_170 {dimension_numbers = #tpu.dot_dimension_numbers<[1], [0], [0], [1], [0, 0, 1, 1], [], []>} : vector<16x32xbf16>, vector<32x256xbf16>, vector<16x256xf32> -> vector<16x256xf32>
    %c0_171 = arith.constant 0 : index
    %c0_172 = arith.constant 0 : index
    %835 = vector.load %arg9[%c0_171, %c0_172] : memref<32x256xbf16, #tpu.memory_space<vmem>>, vector<32x256xbf16>
    %cst_173 = arith.constant dense<0.000000e+00> : vector<16x256xf32>
    %836 = tpu.matmul %832, %835, %cst_173 {dimension_numbers = #tpu.dot_dimension_numbers<[1], [0], [0], [1], [0, 0, 1, 1], [], []>} : vector<16x32xbf16>, vector<32x256xbf16>, vector<16x256xf32> -> vector<16x256xf32>
    %837 = arith.addf %834, %836 : vector<16x256xf32>
    %838 = vector.shape_cast %837 : vector<16x256xf32> to vector<8x2x256xf32>
    %c0_174 = arith.constant 0 : index
    %c0_175 = arith.constant 0 : index
    %839 = vector.load %arg10[%c0_174, %c0_175] : memref<1x256xf32, #tpu.memory_space<vmem>>, vector<1x256xf32>
    %840 = vector.shape_cast %839 : vector<1x256xf32> to vector<1x1x256xf32>
    %841 = vector.broadcast %840 : vector<1x1x256xf32> to vector<8x2x256xf32>
    %842 = arith.addf %838, %841 : vector<8x2x256xf32>
    %843 = arith.truncf %842 : vector<8x2x256xf32> to vector<8x2x256xbf16>
    %c0_176 = arith.constant 0 : index
    %c0_177 = arith.constant 0 : index
    %c0_178 = arith.constant 0 : index
    %844 = vector.load %arg15[%c0_176, %c0_177, %c0_178] : memref<8x2x256xbf16, #tpu.memory_space<vmem>>, vector<8x2x256xbf16>
    tpu.vector_store %arg15[%c0_176, %c0_177, %c0_178], %843 {strides = array<i32>} : memref<8x2x256xbf16, #tpu.memory_space<vmem>>, vector<8x2x256xbf16>,
    %c0_179 = arith.constant 0 : index
    %c0_180 = arith.constant 0 : index
    %845 = vector.load %arg11[%c0_179, %c0_180] : memref<64x256xbf16, #tpu.memory_space<vmem>>, vector<64x256xbf16>
    %cst_181 = arith.constant 0.000000e+00 : f32
    %846 = vector.broadcast %cst_181 : f32 to vector<2x32xf32>
    %c0_i32_182 = arith.constant 0 : i32
    %c7_i32_183 = arith.constant 7 : i32
    %847 = arith.subi %c7_i32_183, %c0_i32_182 : i32
    %848 = vector.broadcast %c0_i32_182 : i32 to vector<2x1xi32>
    %849 = arith.cmpi slt, %848, %0 : vector<2x1xi32>
    %850 = vector.broadcast %847 : i32 to vector<2x1xi32>
    %851 = arith.cmpi slt, %850, %0 : vector<2x1xi32>
    %852 = tpu.concatenate %846, %846 in 1 : vector<2x32xf32>, vector<2x32xf32> -> vector<2x64xf32>
    %853 = arith.truncf %852 : vector<2x64xf32> to vector<2x64xbf16>
    %cst_184 = arith.constant dense<0.000000e+00> : vector<2x256xf32>
    %854 = tpu.matmul %853, %845, %cst_184 {dimension_numbers = #tpu.dot_dimension_numbers<[1], [0], [0], [1], [0, 0, 1, 1], [], []>} : vector<2x64xbf16>, vector<64x256xbf16>, vector<2x256xf32> -> vector<2x256xf32>
    %855 = arith.index_cast %c0_i32_182 : i32 to index
    %c0_185 = arith.constant 0 : index
    %c0_186 = arith.constant 0 : index
    %856 = vector.load %arg15[%855, %c0_185, %c0_186] : memref<8x2x256xbf16, #tpu.memory_space<vmem>>, vector<1x2x128xbf16>
    %857 = vector.shape_cast %856 : vector<1x2x128xbf16> to vector<2x128xbf16>
    %858 = arith.extf %857 : vector<2x128xbf16> to vector<2x128xf32>
    %859 = vector.extract_strided_slice %854 {offsets = [0, 0], sizes = [2, 128], strides = [1, 1]} : vector<2x256xf32> to vector<2x128xf32>
    %860 = arith.addf %858, %859 : vector<2x128xf32>
    %861 = vector.extract_strided_slice %860 {offsets = [0, 0], sizes = [2, 32], strides = [1, 1]} : vector<2x128xf32> to vector<2x32xf32>
    %862 = arith.negf %861 : vector<2x32xf32>
    %863 = math.exp %862 : vector<2x32xf32>
    %cst_187 = arith.constant 1.000000e+00 : f32
    %864 = vector.broadcast %cst_187 : f32 to vector<2x32xf32>
    %865 = arith.addf %864, %863 : vector<2x32xf32>
    %866 = arith.divf %864, %865 : vector<2x32xf32>
    %867 = vector.extract_strided_slice %860 {offsets = [0, 32], sizes = [2, 32], strides = [1, 1]} : vector<2x128xf32> to vector<2x32xf32>
    %868 = arith.negf %867 : vector<2x32xf32>
    %869 = math.exp %868 : vector<2x32xf32>
    %cst_188 = arith.constant 1.000000e+00 : f32
    %870 = vector.broadcast %cst_188 : f32 to vector<2x32xf32>
    %871 = arith.addf %870, %869 : vector<2x32xf32>
    %872 = arith.divf %870, %871 : vector<2x32xf32>
    %873 = vector.extract_strided_slice %860 {offsets = [0, 64], sizes = [2, 32], strides = [1, 1]} : vector<2x128xf32> to vector<2x32xf32>
    %874 = math.tanh %873 : vector<2x32xf32>
    %875 = vector.extract_strided_slice %860 {offsets = [0, 96], sizes = [2, 32], strides = [1, 1]} : vector<2x128xf32> to vector<2x32xf32>
    %876 = arith.negf %875 : vector<2x32xf32>
    %877 = math.exp %876 : vector<2x32xf32>
    %cst_189 = arith.constant 1.000000e+00 : f32
    %878 = vector.broadcast %cst_189 : f32 to vector<2x32xf32>
    %879 = arith.addf %878, %877 : vector<2x32xf32>
    %880 = arith.divf %878, %879 : vector<2x32xf32>
    %881 = arith.mulf %872, %846 : vector<2x32xf32>
    %882 = arith.mulf %866, %874 : vector<2x32xf32>
    %883 = arith.addf %881, %882 : vector<2x32xf32>
    %884 = math.tanh %883 : vector<2x32xf32>
    %885 = arith.mulf %880, %884 : vector<2x32xf32>
    %886 = vector.shape_cast %849 : vector<2x1xi1> to vector<2x1xi1>
    %887 = vector.broadcast %886 : vector<2x1xi1> to vector<2x32xi1>
    %888 = arith.select %887, %885, %846 : vector<2x32xi1>, vector<2x32xf32>
    %889 = vector.shape_cast %849 : vector<2x1xi1> to vector<2x1xi1>
    %890 = vector.broadcast %889 : vector<2x1xi1> to vector<2x32xi1>
    %891 = arith.select %890, %883, %846 : vector<2x32xi1>, vector<2x32xf32>
    %cst_190 = arith.constant 0.000000e+00 : f32
    %892 = vector.shape_cast %849 : vector<2x1xi1> to vector<2x1xi1>
    %893 = vector.broadcast %892 : vector<2x1xi1> to vector<2x32xi1>
    %894 = vector.broadcast %cst_190 : f32 to vector<2x32xf32>
    %895 = arith.select %893, %885, %894 : vector<2x32xi1>, vector<2x32xf32>
    %896 = arith.truncf %895 : vector<2x32xf32> to vector<2x32xbf16>
    %897 = arith.index_cast %c0_i32_182 : i32 to index
    %c0_191 = arith.constant 0 : index
    %c0_192 = arith.constant 0 : index
    %898 = vector.load %arg16[%897, %c0_191, %c0_192] : memref<8x2x32xbf16, #tpu.memory_space<vmem>>, vector<1x2x32xbf16>
    %899 = vector.shape_cast %898 : vector<1x2x32xbf16> to vector<2x32xbf16>
    %900 = vector.shape_cast %896 : vector<2x32xbf16> to vector<1x2x32xbf16>
    tpu.vector_store %arg16[%897, %c0_191, %c0_192], %900 {strides = array<i32>} : memref<8x2x32xbf16, #tpu.memory_space<vmem>>, vector<1x2x32xbf16>,
    %901 = arith.index_cast %847 : i32 to index
    %c0_193 = arith.constant 0 : index
    %c128_194 = arith.constant 128 : index
    %902 = vector.load %arg15[%901, %c0_193, %c128_194] : memref<8x2x256xbf16, #tpu.memory_space<vmem>>, vector<1x2x128xbf16>
    %903 = vector.shape_cast %902 : vector<1x2x128xbf16> to vector<2x128xbf16>
    %904 = arith.extf %903 : vector<2x128xbf16> to vector<2x128xf32>
    %905 = vector.extract_strided_slice %854 {offsets = [0, 128], sizes = [2, 128], strides = [1, 1]} : vector<2x256xf32> to vector<2x128xf32>
    %906 = arith.addf %904, %905 : vector<2x128xf32>
    %907 = vector.extract_strided_slice %906 {offsets = [0, 0], sizes = [2, 32], strides = [1, 1]} : vector<2x128xf32> to vector<2x32xf32>
    %908 = arith.negf %907 : vector<2x32xf32>
    %909 = math.exp %908 : vector<2x32xf32>
    %cst_195 = arith.constant 1.000000e+00 : f32
    %910 = vector.broadcast %cst_195 : f32 to vector<2x32xf32>
    %911 = arith.addf %910, %909 : vector<2x32xf32>
    %912 = arith.divf %910, %911 : vector<2x32xf32>
    %913 = vector.extract_strided_slice %906 {offsets = [0, 32], sizes = [2, 32], strides = [1, 1]} : vector<2x128xf32> to vector<2x32xf32>
    %914 = arith.negf %913 : vector<2x32xf32>
    %915 = math.exp %914 : vector<2x32xf32>
    %cst_196 = arith.constant 1.000000e+00 : f32
    %916 = vector.broadcast %cst_196 : f32 to vector<2x32xf32>
    %917 = arith.addf %916, %915 : vector<2x32xf32>
    %918 = arith.divf %916, %917 : vector<2x32xf32>
    %919 = vector.extract_strided_slice %906 {offsets = [0, 64], sizes = [2, 32], strides = [1, 1]} : vector<2x128xf32> to vector<2x32xf32>
    %920 = math.tanh %919 : vector<2x32xf32>
    %921 = vector.extract_strided_slice %906 {offsets = [0, 96], sizes = [2, 32], strides = [1, 1]} : vector<2x128xf32> to vector<2x32xf32>
    %922 = arith.negf %921 : vector<2x32xf32>
    %923 = math.exp %922 : vector<2x32xf32>
    %cst_197 = arith.constant 1.000000e+00 : f32
    %924 = vector.broadcast %cst_197 : f32 to vector<2x32xf32>
    %925 = arith.addf %924, %923 : vector<2x32xf32>
    %926 = arith.divf %924, %925 : vector<2x32xf32>
    %927 = arith.mulf %918, %846 : vector<2x32xf32>
    %928 = arith.mulf %912, %920 : vector<2x32xf32>
    %929 = arith.addf %927, %928 : vector<2x32xf32>
    %930 = math.tanh %929 : vector<2x32xf32>
    %931 = arith.mulf %926, %930 : vector<2x32xf32>
    %932 = vector.shape_cast %851 : vector<2x1xi1> to vector<2x1xi1>
    %933 = vector.broadcast %932 : vector<2x1xi1> to vector<2x32xi1>
    %934 = arith.select %933, %931, %846 : vector<2x32xi1>, vector<2x32xf32>
    %935 = vector.shape_cast %851 : vector<2x1xi1> to vector<2x1xi1>
    %936 = vector.broadcast %935 : vector<2x1xi1> to vector<2x32xi1>
    %937 = arith.select %936, %929, %846 : vector<2x32xi1>, vector<2x32xf32>
    %cst_198 = arith.constant 0.000000e+00 : f32
    %938 = vector.shape_cast %851 : vector<2x1xi1> to vector<2x1xi1>
    %939 = vector.broadcast %938 : vector<2x1xi1> to vector<2x32xi1>
    %940 = vector.broadcast %cst_198 : f32 to vector<2x32xf32>
    %941 = arith.select %939, %931, %940 : vector<2x32xi1>, vector<2x32xf32>
    %942 = arith.truncf %941 : vector<2x32xf32> to vector<2x32xbf16>
    %943 = arith.index_cast %847 : i32 to index
    %c0_199 = arith.constant 0 : index
    %c0_200 = arith.constant 0 : index
    %944 = vector.load %arg17[%943, %c0_199, %c0_200] : memref<8x2x32xbf16, #tpu.memory_space<vmem>>, vector<1x2x32xbf16>
    %945 = vector.shape_cast %944 : vector<1x2x32xbf16> to vector<2x32xbf16>
    %946 = vector.shape_cast %942 : vector<2x32xbf16> to vector<1x2x32xbf16>
    tpu.vector_store %arg17[%943, %c0_199, %c0_200], %946 {strides = array<i32>} : memref<8x2x32xbf16, #tpu.memory_space<vmem>>, vector<1x2x32xbf16>,
    %c1_i32_201 = arith.constant 1 : i32
    %c7_i32_202 = arith.constant 7 : i32
    %947 = arith.subi %c7_i32_202, %c1_i32_201 : i32
    %948 = vector.broadcast %c1_i32_201 : i32 to vector<2x1xi32>
    %949 = arith.cmpi slt, %948, %0 : vector<2x1xi32>
    %950 = vector.broadcast %947 : i32 to vector<2x1xi32>
    %951 = arith.cmpi slt, %950, %0 : vector<2x1xi32>
    %952 = tpu.concatenate %888, %934 in 1 : vector<2x32xf32>, vector<2x32xf32> -> vector<2x64xf32>
    %953 = arith.truncf %952 : vector<2x64xf32> to vector<2x64xbf16>
    %cst_203 = arith.constant dense<0.000000e+00> : vector<2x256xf32>
    %954 = tpu.matmul %953, %845, %cst_203 {dimension_numbers = #tpu.dot_dimension_numbers<[1], [0], [0], [1], [0, 0, 1, 1], [], []>} : vector<2x64xbf16>, vector<64x256xbf16>, vector<2x256xf32> -> vector<2x256xf32>
    %955 = arith.index_cast %c1_i32_201 : i32 to index
    %c0_204 = arith.constant 0 : index
    %c0_205 = arith.constant 0 : index
    %956 = vector.load %arg15[%955, %c0_204, %c0_205] : memref<8x2x256xbf16, #tpu.memory_space<vmem>>, vector<1x2x128xbf16>
    %957 = vector.shape_cast %956 : vector<1x2x128xbf16> to vector<2x128xbf16>
    %958 = arith.extf %957 : vector<2x128xbf16> to vector<2x128xf32>
    %959 = vector.extract_strided_slice %954 {offsets = [0, 0], sizes = [2, 128], strides = [1, 1]} : vector<2x256xf32> to vector<2x128xf32>
    %960 = arith.addf %958, %959 : vector<2x128xf32>
    %961 = vector.extract_strided_slice %960 {offsets = [0, 0], sizes = [2, 32], strides = [1, 1]} : vector<2x128xf32> to vector<2x32xf32>
    %962 = arith.negf %961 : vector<2x32xf32>
    %963 = math.exp %962 : vector<2x32xf32>
    %cst_206 = arith.constant 1.000000e+00 : f32
    %964 = vector.broadcast %cst_206 : f32 to vector<2x32xf32>
    %965 = arith.addf %964, %963 : vector<2x32xf32>
    %966 = arith.divf %964, %965 : vector<2x32xf32>
    %967 = vector.extract_strided_slice %960 {offsets = [0, 32], sizes = [2, 32], strides = [1, 1]} : vector<2x128xf32> to vector<2x32xf32>
    %968 = arith.negf %967 : vector<2x32xf32>
    %969 = math.exp %968 : vector<2x32xf32>
    %cst_207 = arith.constant 1.000000e+00 : f32
    %970 = vector.broadcast %cst_207 : f32 to vector<2x32xf32>
    %971 = arith.addf %970, %969 : vector<2x32xf32>
    %972 = arith.divf %970, %971 : vector<2x32xf32>
    %973 = vector.extract_strided_slice %960 {offsets = [0, 64], sizes = [2, 32], strides = [1, 1]} : vector<2x128xf32> to vector<2x32xf32>
    %974 = math.tanh %973 : vector<2x32xf32>
    %975 = vector.extract_strided_slice %960 {offsets = [0, 96], sizes = [2, 32], strides = [1, 1]} : vector<2x128xf32> to vector<2x32xf32>
    %976 = arith.negf %975 : vector<2x32xf32>
    %977 = math.exp %976 : vector<2x32xf32>
    %cst_208 = arith.constant 1.000000e+00 : f32
    %978 = vector.broadcast %cst_208 : f32 to vector<2x32xf32>
    %979 = arith.addf %978, %977 : vector<2x32xf32>
    %980 = arith.divf %978, %979 : vector<2x32xf32>
    %981 = arith.mulf %972, %891 : vector<2x32xf32>
    %982 = arith.mulf %966, %974 : vector<2x32xf32>
    %983 = arith.addf %981, %982 : vector<2x32xf32>
    %984 = math.tanh %983 : vector<2x32xf32>
    %985 = arith.mulf %980, %984 : vector<2x32xf32>
    %986 = vector.shape_cast %949 : vector<2x1xi1> to vector<2x1xi1>
    %987 = vector.broadcast %986 : vector<2x1xi1> to vector<2x32xi1>
    %988 = arith.select %987, %985, %888 : vector<2x32xi1>, vector<2x32xf32>
    %989 = vector.shape_cast %949 : vector<2x1xi1> to vector<2x1xi1>
    %990 = vector.broadcast %989 : vector<2x1xi1> to vector<2x32xi1>
    %991 = arith.select %990, %983, %891 : vector<2x32xi1>, vector<2x32xf32>
    %cst_209 = arith.constant 0.000000e+00 : f32
    %992 = vector.shape_cast %949 : vector<2x1xi1> to vector<2x1xi1>
    %993 = vector.broadcast %992 : vector<2x1xi1> to vector<2x32xi1>
    %994 = vector.broadcast %cst_209 : f32 to vector<2x32xf32>
    %995 = arith.select %993, %985, %994 : vector<2x32xi1>, vector<2x32xf32>
    %996 = arith.truncf %995 : vector<2x32xf32> to vector<2x32xbf16>
    %997 = arith.index_cast %c1_i32_201 : i32 to index
    %c0_210 = arith.constant 0 : index
    %c0_211 = arith.constant 0 : index
    %998 = vector.load %arg16[%997, %c0_210, %c0_211] : memref<8x2x32xbf16, #tpu.memory_space<vmem>>, vector<1x2x32xbf16>
    %999 = vector.shape_cast %998 : vector<1x2x32xbf16> to vector<2x32xbf16>
    %1000 = vector.shape_cast %996 : vector<2x32xbf16> to vector<1x2x32xbf16>
    tpu.vector_store %arg16[%997, %c0_210, %c0_211], %1000 {strides = array<i32>} : memref<8x2x32xbf16, #tpu.memory_space<vmem>>, vector<1x2x32xbf16>,
    %1001 = arith.index_cast %947 : i32 to index
    %c0_212 = arith.constant 0 : index
    %c128_213 = arith.constant 128 : index
    %1002 = vector.load %arg15[%1001, %c0_212, %c128_213] : memref<8x2x256xbf16, #tpu.memory_space<vmem>>, vector<1x2x128xbf16>
    %1003 = vector.shape_cast %1002 : vector<1x2x128xbf16> to vector<2x128xbf16>
    %1004 = arith.extf %1003 : vector<2x128xbf16> to vector<2x128xf32>
    %1005 = vector.extract_strided_slice %954 {offsets = [0, 128], sizes = [2, 128], strides = [1, 1]} : vector<2x256xf32> to vector<2x128xf32>
    %1006 = arith.addf %1004, %1005 : vector<2x128xf32>
    %1007 = vector.extract_strided_slice %1006 {offsets = [0, 0], sizes = [2, 32], strides = [1, 1]} : vector<2x128xf32> to vector<2x32xf32>
    %1008 = arith.negf %1007 : vector<2x32xf32>
    %1009 = math.exp %1008 : vector<2x32xf32>
    %cst_214 = arith.constant 1.000000e+00 : f32
    %1010 = vector.broadcast %cst_214 : f32 to vector<2x32xf32>
    %1011 = arith.addf %1010, %1009 : vector<2x32xf32>
    %1012 = arith.divf %1010, %1011 : vector<2x32xf32>
    %1013 = vector.extract_strided_slice %1006 {offsets = [0, 32], sizes = [2, 32], strides = [1, 1]} : vector<2x128xf32> to vector<2x32xf32>
    %1014 = arith.negf %1013 : vector<2x32xf32>
    %1015 = math.exp %1014 : vector<2x32xf32>
    %cst_215 = arith.constant 1.000000e+00 : f32
    %1016 = vector.broadcast %cst_215 : f32 to vector<2x32xf32>
    %1017 = arith.addf %1016, %1015 : vector<2x32xf32>
    %1018 = arith.divf %1016, %1017 : vector<2x32xf32>
    %1019 = vector.extract_strided_slice %1006 {offsets = [0, 64], sizes = [2, 32], strides = [1, 1]} : vector<2x128xf32> to vector<2x32xf32>
    %1020 = math.tanh %1019 : vector<2x32xf32>
    %1021 = vector.extract_strided_slice %1006 {offsets = [0, 96], sizes = [2, 32], strides = [1, 1]} : vector<2x128xf32> to vector<2x32xf32>
    %1022 = arith.negf %1021 : vector<2x32xf32>
    %1023 = math.exp %1022 : vector<2x32xf32>
    %cst_216 = arith.constant 1.000000e+00 : f32
    %1024 = vector.broadcast %cst_216 : f32 to vector<2x32xf32>
    %1025 = arith.addf %1024, %1023 : vector<2x32xf32>
    %1026 = arith.divf %1024, %1025 : vector<2x32xf32>
    %1027 = arith.mulf %1018, %937 : vector<2x32xf32>
    %1028 = arith.mulf %1012, %1020 : vector<2x32xf32>
    %1029 = arith.addf %1027, %1028 : vector<2x32xf32>
    %1030 = math.tanh %1029 : vector<2x32xf32>
    %1031 = arith.mulf %1026, %1030 : vector<2x32xf32>
    %1032 = vector.shape_cast %951 : vector<2x1xi1> to vector<2x1xi1>
    %1033 = vector.broadcast %1032 : vector<2x1xi1> to vector<2x32xi1>
    %1034 = arith.select %1033, %1031, %934 : vector<2x32xi1>, vector<2x32xf32>
    %1035 = vector.shape_cast %951 : vector<2x1xi1> to vector<2x1xi1>
    %1036 = vector.broadcast %1035 : vector<2x1xi1> to vector<2x32xi1>
    %1037 = arith.select %1036, %1029, %937 : vector<2x32xi1>, vector<2x32xf32>
    %cst_217 = arith.constant 0.000000e+00 : f32
    %1038 = vector.shape_cast %951 : vector<2x1xi1> to vector<2x1xi1>
    %1039 = vector.broadcast %1038 : vector<2x1xi1> to vector<2x32xi1>
    %1040 = vector.broadcast %cst_217 : f32 to vector<2x32xf32>
    %1041 = arith.select %1039, %1031, %1040 : vector<2x32xi1>, vector<2x32xf32>
    %1042 = arith.truncf %1041 : vector<2x32xf32> to vector<2x32xbf16>
    %1043 = arith.index_cast %947 : i32 to index
    %c0_218 = arith.constant 0 : index
    %c0_219 = arith.constant 0 : index
    %1044 = vector.load %arg17[%1043, %c0_218, %c0_219] : memref<8x2x32xbf16, #tpu.memory_space<vmem>>, vector<1x2x32xbf16>
    %1045 = vector.shape_cast %1044 : vector<1x2x32xbf16> to vector<2x32xbf16>
    %1046 = vector.shape_cast %1042 : vector<2x32xbf16> to vector<1x2x32xbf16>
    tpu.vector_store %arg17[%1043, %c0_218, %c0_219], %1046 {strides = array<i32>} : memref<8x2x32xbf16, #tpu.memory_space<vmem>>, vector<1x2x32xbf16>,
    %c2_i32_220 = arith.constant 2 : i32
    %c7_i32_221 = arith.constant 7 : i32
    %1047 = arith.subi %c7_i32_221, %c2_i32_220 : i32
    %1048 = vector.broadcast %c2_i32_220 : i32 to vector<2x1xi32>
    %1049 = arith.cmpi slt, %1048, %0 : vector<2x1xi32>
    %1050 = vector.broadcast %1047 : i32 to vector<2x1xi32>
    %1051 = arith.cmpi slt, %1050, %0 : vector<2x1xi32>
    %1052 = tpu.concatenate %988, %1034 in 1 : vector<2x32xf32>, vector<2x32xf32> -> vector<2x64xf32>
    %1053 = arith.truncf %1052 : vector<2x64xf32> to vector<2x64xbf16>
    %cst_222 = arith.constant dense<0.000000e+00> : vector<2x256xf32>
    %1054 = tpu.matmul %1053, %845, %cst_222 {dimension_numbers = #tpu.dot_dimension_numbers<[1], [0], [0], [1], [0, 0, 1, 1], [], []>} : vector<2x64xbf16>, vector<64x256xbf16>, vector<2x256xf32> -> vector<2x256xf32>
    %1055 = arith.index_cast %c2_i32_220 : i32 to index
    %c0_223 = arith.constant 0 : index
    %c0_224 = arith.constant 0 : index
    %1056 = vector.load %arg15[%1055, %c0_223, %c0_224] : memref<8x2x256xbf16, #tpu.memory_space<vmem>>, vector<1x2x128xbf16>
    %1057 = vector.shape_cast %1056 : vector<1x2x128xbf16> to vector<2x128xbf16>
    %1058 = arith.extf %1057 : vector<2x128xbf16> to vector<2x128xf32>
    %1059 = vector.extract_strided_slice %1054 {offsets = [0, 0], sizes = [2, 128], strides = [1, 1]} : vector<2x256xf32> to vector<2x128xf32>
    %1060 = arith.addf %1058, %1059 : vector<2x128xf32>
    %1061 = vector.extract_strided_slice %1060 {offsets = [0, 0], sizes = [2, 32], strides = [1, 1]} : vector<2x128xf32> to vector<2x32xf32>
    %1062 = arith.negf %1061 : vector<2x32xf32>
    %1063 = math.exp %1062 : vector<2x32xf32>
    %cst_225 = arith.constant 1.000000e+00 : f32
    %1064 = vector.broadcast %cst_225 : f32 to vector<2x32xf32>
    %1065 = arith.addf %1064, %1063 : vector<2x32xf32>
    %1066 = arith.divf %1064, %1065 : vector<2x32xf32>
    %1067 = vector.extract_strided_slice %1060 {offsets = [0, 32], sizes = [2, 32], strides = [1, 1]} : vector<2x128xf32> to vector<2x32xf32>
    %1068 = arith.negf %1067 : vector<2x32xf32>
    %1069 = math.exp %1068 : vector<2x32xf32>
    %cst_226 = arith.constant 1.000000e+00 : f32
    %1070 = vector.broadcast %cst_226 : f32 to vector<2x32xf32>
    %1071 = arith.addf %1070, %1069 : vector<2x32xf32>
    %1072 = arith.divf %1070, %1071 : vector<2x32xf32>
    %1073 = vector.extract_strided_slice %1060 {offsets = [0, 64], sizes = [2, 32], strides = [1, 1]} : vector<2x128xf32> to vector<2x32xf32>
    %1074 = math.tanh %1073 : vector<2x32xf32>
    %1075 = vector.extract_strided_slice %1060 {offsets = [0, 96], sizes = [2, 32], strides = [1, 1]} : vector<2x128xf32> to vector<2x32xf32>
    %1076 = arith.negf %1075 : vector<2x32xf32>
    %1077 = math.exp %1076 : vector<2x32xf32>
    %cst_227 = arith.constant 1.000000e+00 : f32
    %1078 = vector.broadcast %cst_227 : f32 to vector<2x32xf32>
    %1079 = arith.addf %1078, %1077 : vector<2x32xf32>
    %1080 = arith.divf %1078, %1079 : vector<2x32xf32>
    %1081 = arith.mulf %1072, %991 : vector<2x32xf32>
    %1082 = arith.mulf %1066, %1074 : vector<2x32xf32>
    %1083 = arith.addf %1081, %1082 : vector<2x32xf32>
    %1084 = math.tanh %1083 : vector<2x32xf32>
    %1085 = arith.mulf %1080, %1084 : vector<2x32xf32>
    %1086 = vector.shape_cast %1049 : vector<2x1xi1> to vector<2x1xi1>
    %1087 = vector.broadcast %1086 : vector<2x1xi1> to vector<2x32xi1>
    %1088 = arith.select %1087, %1085, %988 : vector<2x32xi1>, vector<2x32xf32>
    %1089 = vector.shape_cast %1049 : vector<2x1xi1> to vector<2x1xi1>
    %1090 = vector.broadcast %1089 : vector<2x1xi1> to vector<2x32xi1>
    %1091 = arith.select %1090, %1083, %991 : vector<2x32xi1>, vector<2x32xf32>
    %cst_228 = arith.constant 0.000000e+00 : f32
    %1092 = vector.shape_cast %1049 : vector<2x1xi1> to vector<2x1xi1>
    %1093 = vector.broadcast %1092 : vector<2x1xi1> to vector<2x32xi1>
    %1094 = vector.broadcast %cst_228 : f32 to vector<2x32xf32>
    %1095 = arith.select %1093, %1085, %1094 : vector<2x32xi1>, vector<2x32xf32>
    %1096 = arith.truncf %1095 : vector<2x32xf32> to vector<2x32xbf16>
    %1097 = arith.index_cast %c2_i32_220 : i32 to index
    %c0_229 = arith.constant 0 : index
    %c0_230 = arith.constant 0 : index
    %1098 = vector.load %arg16[%1097, %c0_229, %c0_230] : memref<8x2x32xbf16, #tpu.memory_space<vmem>>, vector<1x2x32xbf16>
    %1099 = vector.shape_cast %1098 : vector<1x2x32xbf16> to vector<2x32xbf16>
    %1100 = vector.shape_cast %1096 : vector<2x32xbf16> to vector<1x2x32xbf16>
    tpu.vector_store %arg16[%1097, %c0_229, %c0_230], %1100 {strides = array<i32>} : memref<8x2x32xbf16, #tpu.memory_space<vmem>>, vector<1x2x32xbf16>,
    %1101 = arith.index_cast %1047 : i32 to index
    %c0_231 = arith.constant 0 : index
    %c128_232 = arith.constant 128 : index
    %1102 = vector.load %arg15[%1101, %c0_231, %c128_232] : memref<8x2x256xbf16, #tpu.memory_space<vmem>>, vector<1x2x128xbf16>
    %1103 = vector.shape_cast %1102 : vector<1x2x128xbf16> to vector<2x128xbf16>
    %1104 = arith.extf %1103 : vector<2x128xbf16> to vector<2x128xf32>
    %1105 = vector.extract_strided_slice %1054 {offsets = [0, 128], sizes = [2, 128], strides = [1, 1]} : vector<2x256xf32> to vector<2x128xf32>
    %1106 = arith.addf %1104, %1105 : vector<2x128xf32>
    %1107 = vector.extract_strided_slice %1106 {offsets = [0, 0], sizes = [2, 32], strides = [1, 1]} : vector<2x128xf32> to vector<2x32xf32>
    %1108 = arith.negf %1107 : vector<2x32xf32>
    %1109 = math.exp %1108 : vector<2x32xf32>
    %cst_233 = arith.constant 1.000000e+00 : f32
    %1110 = vector.broadcast %cst_233 : f32 to vector<2x32xf32>
    %1111 = arith.addf %1110, %1109 : vector<2x32xf32>
    %1112 = arith.divf %1110, %1111 : vector<2x32xf32>
    %1113 = vector.extract_strided_slice %1106 {offsets = [0, 32], sizes = [2, 32], strides = [1, 1]} : vector<2x128xf32> to vector<2x32xf32>
    %1114 = arith.negf %1113 : vector<2x32xf32>
    %1115 = math.exp %1114 : vector<2x32xf32>
    %cst_234 = arith.constant 1.000000e+00 : f32
    %1116 = vector.broadcast %cst_234 : f32 to vector<2x32xf32>
    %1117 = arith.addf %1116, %1115 : vector<2x32xf32>
    %1118 = arith.divf %1116, %1117 : vector<2x32xf32>
    %1119 = vector.extract_strided_slice %1106 {offsets = [0, 64], sizes = [2, 32], strides = [1, 1]} : vector<2x128xf32> to vector<2x32xf32>
    %1120 = math.tanh %1119 : vector<2x32xf32>
    %1121 = vector.extract_strided_slice %1106 {offsets = [0, 96], sizes = [2, 32], strides = [1, 1]} : vector<2x128xf32> to vector<2x32xf32>
    %1122 = arith.negf %1121 : vector<2x32xf32>
    %1123 = math.exp %1122 : vector<2x32xf32>
    %cst_235 = arith.constant 1.000000e+00 : f32
    %1124 = vector.broadcast %cst_235 : f32 to vector<2x32xf32>
    %1125 = arith.addf %1124, %1123 : vector<2x32xf32>
    %1126 = arith.divf %1124, %1125 : vector<2x32xf32>
    %1127 = arith.mulf %1118, %1037 : vector<2x32xf32>
    %1128 = arith.mulf %1112, %1120 : vector<2x32xf32>
    %1129 = arith.addf %1127, %1128 : vector<2x32xf32>
    %1130 = math.tanh %1129 : vector<2x32xf32>
    %1131 = arith.mulf %1126, %1130 : vector<2x32xf32>
    %1132 = vector.shape_cast %1051 : vector<2x1xi1> to vector<2x1xi1>
    %1133 = vector.broadcast %1132 : vector<2x1xi1> to vector<2x32xi1>
    %1134 = arith.select %1133, %1131, %1034 : vector<2x32xi1>, vector<2x32xf32>
    %1135 = vector.shape_cast %1051 : vector<2x1xi1> to vector<2x1xi1>
    %1136 = vector.broadcast %1135 : vector<2x1xi1> to vector<2x32xi1>
    %1137 = arith.select %1136, %1129, %1037 : vector<2x32xi1>, vector<2x32xf32>
    %cst_236 = arith.constant 0.000000e+00 : f32
    %1138 = vector.shape_cast %1051 : vector<2x1xi1> to vector<2x1xi1>
    %1139 = vector.broadcast %1138 : vector<2x1xi1> to vector<2x32xi1>
    %1140 = vector.broadcast %cst_236 : f32 to vector<2x32xf32>
    %1141 = arith.select %1139, %1131, %1140 : vector<2x32xi1>, vector<2x32xf32>
    %1142 = arith.truncf %1141 : vector<2x32xf32> to vector<2x32xbf16>
    %1143 = arith.index_cast %1047 : i32 to index
    %c0_237 = arith.constant 0 : index
    %c0_238 = arith.constant 0 : index
    %1144 = vector.load %arg17[%1143, %c0_237, %c0_238] : memref<8x2x32xbf16, #tpu.memory_space<vmem>>, vector<1x2x32xbf16>
    %1145 = vector.shape_cast %1144 : vector<1x2x32xbf16> to vector<2x32xbf16>
    %1146 = vector.shape_cast %1142 : vector<2x32xbf16> to vector<1x2x32xbf16>
    tpu.vector_store %arg17[%1143, %c0_237, %c0_238], %1146 {strides = array<i32>} : memref<8x2x32xbf16, #tpu.memory_space<vmem>>, vector<1x2x32xbf16>,
    %c3_i32_239 = arith.constant 3 : i32
    %c7_i32_240 = arith.constant 7 : i32
    %1147 = arith.subi %c7_i32_240, %c3_i32_239 : i32
    %1148 = vector.broadcast %c3_i32_239 : i32 to vector<2x1xi32>
    %1149 = arith.cmpi slt, %1148, %0 : vector<2x1xi32>
    %1150 = vector.broadcast %1147 : i32 to vector<2x1xi32>
    %1151 = arith.cmpi slt, %1150, %0 : vector<2x1xi32>
    %1152 = tpu.concatenate %1088, %1134 in 1 : vector<2x32xf32>, vector<2x32xf32> -> vector<2x64xf32>
    %1153 = arith.truncf %1152 : vector<2x64xf32> to vector<2x64xbf16>
    %cst_241 = arith.constant dense<0.000000e+00> : vector<2x256xf32>
    %1154 = tpu.matmul %1153, %845, %cst_241 {dimension_numbers = #tpu.dot_dimension_numbers<[1], [0], [0], [1], [0, 0, 1, 1], [], []>} : vector<2x64xbf16>, vector<64x256xbf16>, vector<2x256xf32> -> vector<2x256xf32>
    %1155 = arith.index_cast %c3_i32_239 : i32 to index
    %c0_242 = arith.constant 0 : index
    %c0_243 = arith.constant 0 : index
    %1156 = vector.load %arg15[%1155, %c0_242, %c0_243] : memref<8x2x256xbf16, #tpu.memory_space<vmem>>, vector<1x2x128xbf16>
    %1157 = vector.shape_cast %1156 : vector<1x2x128xbf16> to vector<2x128xbf16>
    %1158 = arith.extf %1157 : vector<2x128xbf16> to vector<2x128xf32>
    %1159 = vector.extract_strided_slice %1154 {offsets = [0, 0], sizes = [2, 128], strides = [1, 1]} : vector<2x256xf32> to vector<2x128xf32>
    %1160 = arith.addf %1158, %1159 : vector<2x128xf32>
    %1161 = vector.extract_strided_slice %1160 {offsets = [0, 0], sizes = [2, 32], strides = [1, 1]} : vector<2x128xf32> to vector<2x32xf32>
    %1162 = arith.negf %1161 : vector<2x32xf32>
    %1163 = math.exp %1162 : vector<2x32xf32>
    %cst_244 = arith.constant 1.000000e+00 : f32
    %1164 = vector.broadcast %cst_244 : f32 to vector<2x32xf32>
    %1165 = arith.addf %1164, %1163 : vector<2x32xf32>
    %1166 = arith.divf %1164, %1165 : vector<2x32xf32>
    %1167 = vector.extract_strided_slice %1160 {offsets = [0, 32], sizes = [2, 32], strides = [1, 1]} : vector<2x128xf32> to vector<2x32xf32>
    %1168 = arith.negf %1167 : vector<2x32xf32>
    %1169 = math.exp %1168 : vector<2x32xf32>
    %cst_245 = arith.constant 1.000000e+00 : f32
    %1170 = vector.broadcast %cst_245 : f32 to vector<2x32xf32>
    %1171 = arith.addf %1170, %1169 : vector<2x32xf32>
    %1172 = arith.divf %1170, %1171 : vector<2x32xf32>
    %1173 = vector.extract_strided_slice %1160 {offsets = [0, 64], sizes = [2, 32], strides = [1, 1]} : vector<2x128xf32> to vector<2x32xf32>
    %1174 = math.tanh %1173 : vector<2x32xf32>
    %1175 = vector.extract_strided_slice %1160 {offsets = [0, 96], sizes = [2, 32], strides = [1, 1]} : vector<2x128xf32> to vector<2x32xf32>
    %1176 = arith.negf %1175 : vector<2x32xf32>
    %1177 = math.exp %1176 : vector<2x32xf32>
    %cst_246 = arith.constant 1.000000e+00 : f32
    %1178 = vector.broadcast %cst_246 : f32 to vector<2x32xf32>
    %1179 = arith.addf %1178, %1177 : vector<2x32xf32>
    %1180 = arith.divf %1178, %1179 : vector<2x32xf32>
    %1181 = arith.mulf %1172, %1091 : vector<2x32xf32>
    %1182 = arith.mulf %1166, %1174 : vector<2x32xf32>
    %1183 = arith.addf %1181, %1182 : vector<2x32xf32>
    %1184 = math.tanh %1183 : vector<2x32xf32>
    %1185 = arith.mulf %1180, %1184 : vector<2x32xf32>
    %1186 = vector.shape_cast %1149 : vector<2x1xi1> to vector<2x1xi1>
    %1187 = vector.broadcast %1186 : vector<2x1xi1> to vector<2x32xi1>
    %1188 = arith.select %1187, %1185, %1088 : vector<2x32xi1>, vector<2x32xf32>
    %1189 = vector.shape_cast %1149 : vector<2x1xi1> to vector<2x1xi1>
    %1190 = vector.broadcast %1189 : vector<2x1xi1> to vector<2x32xi1>
    %1191 = arith.select %1190, %1183, %1091 : vector<2x32xi1>, vector<2x32xf32>
    %cst_247 = arith.constant 0.000000e+00 : f32
    %1192 = vector.shape_cast %1149 : vector<2x1xi1> to vector<2x1xi1>
    %1193 = vector.broadcast %1192 : vector<2x1xi1> to vector<2x32xi1>
    %1194 = vector.broadcast %cst_247 : f32 to vector<2x32xf32>
    %1195 = arith.select %1193, %1185, %1194 : vector<2x32xi1>, vector<2x32xf32>
    %1196 = arith.truncf %1195 : vector<2x32xf32> to vector<2x32xbf16>
    %1197 = arith.index_cast %c3_i32_239 : i32 to index
    %c0_248 = arith.constant 0 : index
    %c0_249 = arith.constant 0 : index
    %1198 = vector.load %arg16[%1197, %c0_248, %c0_249] : memref<8x2x32xbf16, #tpu.memory_space<vmem>>, vector<1x2x32xbf16>
    %1199 = vector.shape_cast %1198 : vector<1x2x32xbf16> to vector<2x32xbf16>
    %1200 = vector.shape_cast %1196 : vector<2x32xbf16> to vector<1x2x32xbf16>
    tpu.vector_store %arg16[%1197, %c0_248, %c0_249], %1200 {strides = array<i32>} : memref<8x2x32xbf16, #tpu.memory_space<vmem>>, vector<1x2x32xbf16>,
    %1201 = arith.index_cast %1147 : i32 to index
    %c0_250 = arith.constant 0 : index
    %c128_251 = arith.constant 128 : index
    %1202 = vector.load %arg15[%1201, %c0_250, %c128_251] : memref<8x2x256xbf16, #tpu.memory_space<vmem>>, vector<1x2x128xbf16>
    %1203 = vector.shape_cast %1202 : vector<1x2x128xbf16> to vector<2x128xbf16>
    %1204 = arith.extf %1203 : vector<2x128xbf16> to vector<2x128xf32>
    %1205 = vector.extract_strided_slice %1154 {offsets = [0, 128], sizes = [2, 128], strides = [1, 1]} : vector<2x256xf32> to vector<2x128xf32>
    %1206 = arith.addf %1204, %1205 : vector<2x128xf32>
    %1207 = vector.extract_strided_slice %1206 {offsets = [0, 0], sizes = [2, 32], strides = [1, 1]} : vector<2x128xf32> to vector<2x32xf32>
    %1208 = arith.negf %1207 : vector<2x32xf32>
    %1209 = math.exp %1208 : vector<2x32xf32>
    %cst_252 = arith.constant 1.000000e+00 : f32
    %1210 = vector.broadcast %cst_252 : f32 to vector<2x32xf32>
    %1211 = arith.addf %1210, %1209 : vector<2x32xf32>
    %1212 = arith.divf %1210, %1211 : vector<2x32xf32>
    %1213 = vector.extract_strided_slice %1206 {offsets = [0, 32], sizes = [2, 32], strides = [1, 1]} : vector<2x128xf32> to vector<2x32xf32>
    %1214 = arith.negf %1213 : vector<2x32xf32>
    %1215 = math.exp %1214 : vector<2x32xf32>
    %cst_253 = arith.constant 1.000000e+00 : f32
    %1216 = vector.broadcast %cst_253 : f32 to vector<2x32xf32>
    %1217 = arith.addf %1216, %1215 : vector<2x32xf32>
    %1218 = arith.divf %1216, %1217 : vector<2x32xf32>
    %1219 = vector.extract_strided_slice %1206 {offsets = [0, 64], sizes = [2, 32], strides = [1, 1]} : vector<2x128xf32> to vector<2x32xf32>
    %1220 = math.tanh %1219 : vector<2x32xf32>
    %1221 = vector.extract_strided_slice %1206 {offsets = [0, 96], sizes = [2, 32], strides = [1, 1]} : vector<2x128xf32> to vector<2x32xf32>
    %1222 = arith.negf %1221 : vector<2x32xf32>
    %1223 = math.exp %1222 : vector<2x32xf32>
    %cst_254 = arith.constant 1.000000e+00 : f32
    %1224 = vector.broadcast %cst_254 : f32 to vector<2x32xf32>
    %1225 = arith.addf %1224, %1223 : vector<2x32xf32>
    %1226 = arith.divf %1224, %1225 : vector<2x32xf32>
    %1227 = arith.mulf %1218, %1137 : vector<2x32xf32>
    %1228 = arith.mulf %1212, %1220 : vector<2x32xf32>
    %1229 = arith.addf %1227, %1228 : vector<2x32xf32>
    %1230 = math.tanh %1229 : vector<2x32xf32>
    %1231 = arith.mulf %1226, %1230 : vector<2x32xf32>
    %1232 = vector.shape_cast %1151 : vector<2x1xi1> to vector<2x1xi1>
    %1233 = vector.broadcast %1232 : vector<2x1xi1> to vector<2x32xi1>
    %1234 = arith.select %1233, %1231, %1134 : vector<2x32xi1>, vector<2x32xf32>
    %1235 = vector.shape_cast %1151 : vector<2x1xi1> to vector<2x1xi1>
    %1236 = vector.broadcast %1235 : vector<2x1xi1> to vector<2x32xi1>
    %1237 = arith.select %1236, %1229, %1137 : vector<2x32xi1>, vector<2x32xf32>
    %cst_255 = arith.constant 0.000000e+00 : f32
    %1238 = vector.shape_cast %1151 : vector<2x1xi1> to vector<2x1xi1>
    %1239 = vector.broadcast %1238 : vector<2x1xi1> to vector<2x32xi1>
    %1240 = vector.broadcast %cst_255 : f32 to vector<2x32xf32>
    %1241 = arith.select %1239, %1231, %1240 : vector<2x32xi1>, vector<2x32xf32>
    %1242 = arith.truncf %1241 : vector<2x32xf32> to vector<2x32xbf16>
    %1243 = arith.index_cast %1147 : i32 to index
    %c0_256 = arith.constant 0 : index
    %c0_257 = arith.constant 0 : index
    %1244 = vector.load %arg17[%1243, %c0_256, %c0_257] : memref<8x2x32xbf16, #tpu.memory_space<vmem>>, vector<1x2x32xbf16>
    %1245 = vector.shape_cast %1244 : vector<1x2x32xbf16> to vector<2x32xbf16>
    %1246 = vector.shape_cast %1242 : vector<2x32xbf16> to vector<1x2x32xbf16>
    tpu.vector_store %arg17[%1243, %c0_256, %c0_257], %1246 {strides = array<i32>} : memref<8x2x32xbf16, #tpu.memory_space<vmem>>, vector<1x2x32xbf16>,
    %c4_i32_258 = arith.constant 4 : i32
    %c7_i32_259 = arith.constant 7 : i32
    %1247 = arith.subi %c7_i32_259, %c4_i32_258 : i32
    %1248 = vector.broadcast %c4_i32_258 : i32 to vector<2x1xi32>
    %1249 = arith.cmpi slt, %1248, %0 : vector<2x1xi32>
    %1250 = vector.broadcast %1247 : i32 to vector<2x1xi32>
    %1251 = arith.cmpi slt, %1250, %0 : vector<2x1xi32>
    %1252 = tpu.concatenate %1188, %1234 in 1 : vector<2x32xf32>, vector<2x32xf32> -> vector<2x64xf32>
    %1253 = arith.truncf %1252 : vector<2x64xf32> to vector<2x64xbf16>
    %cst_260 = arith.constant dense<0.000000e+00> : vector<2x256xf32>
    %1254 = tpu.matmul %1253, %845, %cst_260 {dimension_numbers = #tpu.dot_dimension_numbers<[1], [0], [0], [1], [0, 0, 1, 1], [], []>} : vector<2x64xbf16>, vector<64x256xbf16>, vector<2x256xf32> -> vector<2x256xf32>
    %1255 = arith.index_cast %c4_i32_258 : i32 to index
    %c0_261 = arith.constant 0 : index
    %c0_262 = arith.constant 0 : index
    %1256 = vector.load %arg15[%1255, %c0_261, %c0_262] : memref<8x2x256xbf16, #tpu.memory_space<vmem>>, vector<1x2x128xbf16>
    %1257 = vector.shape_cast %1256 : vector<1x2x128xbf16> to vector<2x128xbf16>
    %1258 = arith.extf %1257 : vector<2x128xbf16> to vector<2x128xf32>
    %1259 = vector.extract_strided_slice %1254 {offsets = [0, 0], sizes = [2, 128], strides = [1, 1]} : vector<2x256xf32> to vector<2x128xf32>
    %1260 = arith.addf %1258, %1259 : vector<2x128xf32>
    %1261 = vector.extract_strided_slice %1260 {offsets = [0, 0], sizes = [2, 32], strides = [1, 1]} : vector<2x128xf32> to vector<2x32xf32>
    %1262 = arith.negf %1261 : vector<2x32xf32>
    %1263 = math.exp %1262 : vector<2x32xf32>
    %cst_263 = arith.constant 1.000000e+00 : f32
    %1264 = vector.broadcast %cst_263 : f32 to vector<2x32xf32>
    %1265 = arith.addf %1264, %1263 : vector<2x32xf32>
    %1266 = arith.divf %1264, %1265 : vector<2x32xf32>
    %1267 = vector.extract_strided_slice %1260 {offsets = [0, 32], sizes = [2, 32], strides = [1, 1]} : vector<2x128xf32> to vector<2x32xf32>
    %1268 = arith.negf %1267 : vector<2x32xf32>
    %1269 = math.exp %1268 : vector<2x32xf32>
    %cst_264 = arith.constant 1.000000e+00 : f32
    %1270 = vector.broadcast %cst_264 : f32 to vector<2x32xf32>
    %1271 = arith.addf %1270, %1269 : vector<2x32xf32>
    %1272 = arith.divf %1270, %1271 : vector<2x32xf32>
    %1273 = vector.extract_strided_slice %1260 {offsets = [0, 64], sizes = [2, 32], strides = [1, 1]} : vector<2x128xf32> to vector<2x32xf32>
    %1274 = math.tanh %1273 : vector<2x32xf32>
    %1275 = vector.extract_strided_slice %1260 {offsets = [0, 96], sizes = [2, 32], strides = [1, 1]} : vector<2x128xf32> to vector<2x32xf32>
    %1276 = arith.negf %1275 : vector<2x32xf32>
    %1277 = math.exp %1276 : vector<2x32xf32>
    %cst_265 = arith.constant 1.000000e+00 : f32
    %1278 = vector.broadcast %cst_265 : f32 to vector<2x32xf32>
    %1279 = arith.addf %1278, %1277 : vector<2x32xf32>
    %1280 = arith.divf %1278, %1279 : vector<2x32xf32>
    %1281 = arith.mulf %1272, %1191 : vector<2x32xf32>
    %1282 = arith.mulf %1266, %1274 : vector<2x32xf32>
    %1283 = arith.addf %1281, %1282 : vector<2x32xf32>
    %1284 = math.tanh %1283 : vector<2x32xf32>
    %1285 = arith.mulf %1280, %1284 : vector<2x32xf32>
    %1286 = vector.shape_cast %1249 : vector<2x1xi1> to vector<2x1xi1>
    %1287 = vector.broadcast %1286 : vector<2x1xi1> to vector<2x32xi1>
    %1288 = arith.select %1287, %1285, %1188 : vector<2x32xi1>, vector<2x32xf32>
    %1289 = vector.shape_cast %1249 : vector<2x1xi1> to vector<2x1xi1>
    %1290 = vector.broadcast %1289 : vector<2x1xi1> to vector<2x32xi1>
    %1291 = arith.select %1290, %1283, %1191 : vector<2x32xi1>, vector<2x32xf32>
    %cst_266 = arith.constant 0.000000e+00 : f32
    %1292 = vector.shape_cast %1249 : vector<2x1xi1> to vector<2x1xi1>
    %1293 = vector.broadcast %1292 : vector<2x1xi1> to vector<2x32xi1>
    %1294 = vector.broadcast %cst_266 : f32 to vector<2x32xf32>
    %1295 = arith.select %1293, %1285, %1294 : vector<2x32xi1>, vector<2x32xf32>
    %1296 = arith.truncf %1295 : vector<2x32xf32> to vector<2x32xbf16>
    %1297 = arith.index_cast %c4_i32_258 : i32 to index
    %c0_267 = arith.constant 0 : index
    %c0_268 = arith.constant 0 : index
    %1298 = vector.load %arg16[%1297, %c0_267, %c0_268] : memref<8x2x32xbf16, #tpu.memory_space<vmem>>, vector<1x2x32xbf16>
    %1299 = vector.shape_cast %1298 : vector<1x2x32xbf16> to vector<2x32xbf16>
    %1300 = vector.shape_cast %1296 : vector<2x32xbf16> to vector<1x2x32xbf16>
    tpu.vector_store %arg16[%1297, %c0_267, %c0_268], %1300 {strides = array<i32>} : memref<8x2x32xbf16, #tpu.memory_space<vmem>>, vector<1x2x32xbf16>,
    %1301 = arith.index_cast %1247 : i32 to index
    %c0_269 = arith.constant 0 : index
    %c128_270 = arith.constant 128 : index
    %1302 = vector.load %arg15[%1301, %c0_269, %c128_270] : memref<8x2x256xbf16, #tpu.memory_space<vmem>>, vector<1x2x128xbf16>
    %1303 = vector.shape_cast %1302 : vector<1x2x128xbf16> to vector<2x128xbf16>
    %1304 = arith.extf %1303 : vector<2x128xbf16> to vector<2x128xf32>
    %1305 = vector.extract_strided_slice %1254 {offsets = [0, 128], sizes = [2, 128], strides = [1, 1]} : vector<2x256xf32> to vector<2x128xf32>
    %1306 = arith.addf %1304, %1305 : vector<2x128xf32>
    %1307 = vector.extract_strided_slice %1306 {offsets = [0, 0], sizes = [2, 32], strides = [1, 1]} : vector<2x128xf32> to vector<2x32xf32>
    %1308 = arith.negf %1307 : vector<2x32xf32>
    %1309 = math.exp %1308 : vector<2x32xf32>
    %cst_271 = arith.constant 1.000000e+00 : f32
    %1310 = vector.broadcast %cst_271 : f32 to vector<2x32xf32>
    %1311 = arith.addf %1310, %1309 : vector<2x32xf32>
    %1312 = arith.divf %1310, %1311 : vector<2x32xf32>
    %1313 = vector.extract_strided_slice %1306 {offsets = [0, 32], sizes = [2, 32], strides = [1, 1]} : vector<2x128xf32> to vector<2x32xf32>
    %1314 = arith.negf %1313 : vector<2x32xf32>
    %1315 = math.exp %1314 : vector<2x32xf32>
    %cst_272 = arith.constant 1.000000e+00 : f32
    %1316 = vector.broadcast %cst_272 : f32 to vector<2x32xf32>
    %1317 = arith.addf %1316, %1315 : vector<2x32xf32>
    %1318 = arith.divf %1316, %1317 : vector<2x32xf32>
    %1319 = vector.extract_strided_slice %1306 {offsets = [0, 64], sizes = [2, 32], strides = [1, 1]} : vector<2x128xf32> to vector<2x32xf32>
    %1320 = math.tanh %1319 : vector<2x32xf32>
    %1321 = vector.extract_strided_slice %1306 {offsets = [0, 96], sizes = [2, 32], strides = [1, 1]} : vector<2x128xf32> to vector<2x32xf32>
    %1322 = arith.negf %1321 : vector<2x32xf32>
    %1323 = math.exp %1322 : vector<2x32xf32>
    %cst_273 = arith.constant 1.000000e+00 : f32
    %1324 = vector.broadcast %cst_273 : f32 to vector<2x32xf32>
    %1325 = arith.addf %1324, %1323 : vector<2x32xf32>
    %1326 = arith.divf %1324, %1325 : vector<2x32xf32>
    %1327 = arith.mulf %1318, %1237 : vector<2x32xf32>
    %1328 = arith.mulf %1312, %1320 : vector<2x32xf32>
    %1329 = arith.addf %1327, %1328 : vector<2x32xf32>
    %1330 = math.tanh %1329 : vector<2x32xf32>
    %1331 = arith.mulf %1326, %1330 : vector<2x32xf32>
    %1332 = vector.shape_cast %1251 : vector<2x1xi1> to vector<2x1xi1>
    %1333 = vector.broadcast %1332 : vector<2x1xi1> to vector<2x32xi1>
    %1334 = arith.select %1333, %1331, %1234 : vector<2x32xi1>, vector<2x32xf32>
    %1335 = vector.shape_cast %1251 : vector<2x1xi1> to vector<2x1xi1>
    %1336 = vector.broadcast %1335 : vector<2x1xi1> to vector<2x32xi1>
    %1337 = arith.select %1336, %1329, %1237 : vector<2x32xi1>, vector<2x32xf32>
    %cst_274 = arith.constant 0.000000e+00 : f32
    %1338 = vector.shape_cast %1251 : vector<2x1xi1> to vector<2x1xi1>
    %1339 = vector.broadcast %1338 : vector<2x1xi1> to vector<2x32xi1>
    %1340 = vector.broadcast %cst_274 : f32 to vector<2x32xf32>
    %1341 = arith.select %1339, %1331, %1340 : vector<2x32xi1>, vector<2x32xf32>
    %1342 = arith.truncf %1341 : vector<2x32xf32> to vector<2x32xbf16>
    %1343 = arith.index_cast %1247 : i32 to index
    %c0_275 = arith.constant 0 : index
    %c0_276 = arith.constant 0 : index
    %1344 = vector.load %arg17[%1343, %c0_275, %c0_276] : memref<8x2x32xbf16, #tpu.memory_space<vmem>>, vector<1x2x32xbf16>
    %1345 = vector.shape_cast %1344 : vector<1x2x32xbf16> to vector<2x32xbf16>
    %1346 = vector.shape_cast %1342 : vector<2x32xbf16> to vector<1x2x32xbf16>
    tpu.vector_store %arg17[%1343, %c0_275, %c0_276], %1346 {strides = array<i32>} : memref<8x2x32xbf16, #tpu.memory_space<vmem>>, vector<1x2x32xbf16>,
    %c5_i32_277 = arith.constant 5 : i32
    %c7_i32_278 = arith.constant 7 : i32
    %1347 = arith.subi %c7_i32_278, %c5_i32_277 : i32
    %1348 = vector.broadcast %c5_i32_277 : i32 to vector<2x1xi32>
    %1349 = arith.cmpi slt, %1348, %0 : vector<2x1xi32>
    %1350 = vector.broadcast %1347 : i32 to vector<2x1xi32>
    %1351 = arith.cmpi slt, %1350, %0 : vector<2x1xi32>
    %1352 = tpu.concatenate %1288, %1334 in 1 : vector<2x32xf32>, vector<2x32xf32> -> vector<2x64xf32>
    %1353 = arith.truncf %1352 : vector<2x64xf32> to vector<2x64xbf16>
    %cst_279 = arith.constant dense<0.000000e+00> : vector<2x256xf32>
    %1354 = tpu.matmul %1353, %845, %cst_279 {dimension_numbers = #tpu.dot_dimension_numbers<[1], [0], [0], [1], [0, 0, 1, 1], [], []>} : vector<2x64xbf16>, vector<64x256xbf16>, vector<2x256xf32> -> vector<2x256xf32>
    %1355 = arith.index_cast %c5_i32_277 : i32 to index
    %c0_280 = arith.constant 0 : index
    %c0_281 = arith.constant 0 : index
    %1356 = vector.load %arg15[%1355, %c0_280, %c0_281] : memref<8x2x256xbf16, #tpu.memory_space<vmem>>, vector<1x2x128xbf16>
    %1357 = vector.shape_cast %1356 : vector<1x2x128xbf16> to vector<2x128xbf16>
    %1358 = arith.extf %1357 : vector<2x128xbf16> to vector<2x128xf32>
    %1359 = vector.extract_strided_slice %1354 {offsets = [0, 0], sizes = [2, 128], strides = [1, 1]} : vector<2x256xf32> to vector<2x128xf32>
    %1360 = arith.addf %1358, %1359 : vector<2x128xf32>
    %1361 = vector.extract_strided_slice %1360 {offsets = [0, 0], sizes = [2, 32], strides = [1, 1]} : vector<2x128xf32> to vector<2x32xf32>
    %1362 = arith.negf %1361 : vector<2x32xf32>
    %1363 = math.exp %1362 : vector<2x32xf32>
    %cst_282 = arith.constant 1.000000e+00 : f32
    %1364 = vector.broadcast %cst_282 : f32 to vector<2x32xf32>
    %1365 = arith.addf %1364, %1363 : vector<2x32xf32>
    %1366 = arith.divf %1364, %1365 : vector<2x32xf32>
    %1367 = vector.extract_strided_slice %1360 {offsets = [0, 32], sizes = [2, 32], strides = [1, 1]} : vector<2x128xf32> to vector<2x32xf32>
    %1368 = arith.negf %1367 : vector<2x32xf32>
    %1369 = math.exp %1368 : vector<2x32xf32>
    %cst_283 = arith.constant 1.000000e+00 : f32
    %1370 = vector.broadcast %cst_283 : f32 to vector<2x32xf32>
    %1371 = arith.addf %1370, %1369 : vector<2x32xf32>
    %1372 = arith.divf %1370, %1371 : vector<2x32xf32>
    %1373 = vector.extract_strided_slice %1360 {offsets = [0, 64], sizes = [2, 32], strides = [1, 1]} : vector<2x128xf32> to vector<2x32xf32>
    %1374 = math.tanh %1373 : vector<2x32xf32>
    %1375 = vector.extract_strided_slice %1360 {offsets = [0, 96], sizes = [2, 32], strides = [1, 1]} : vector<2x128xf32> to vector<2x32xf32>
    %1376 = arith.negf %1375 : vector<2x32xf32>
    %1377 = math.exp %1376 : vector<2x32xf32>
    %cst_284 = arith.constant 1.000000e+00 : f32
    %1378 = vector.broadcast %cst_284 : f32 to vector<2x32xf32>
    %1379 = arith.addf %1378, %1377 : vector<2x32xf32>
    %1380 = arith.divf %1378, %1379 : vector<2x32xf32>
    %1381 = arith.mulf %1372, %1291 : vector<2x32xf32>
    %1382 = arith.mulf %1366, %1374 : vector<2x32xf32>
    %1383 = arith.addf %1381, %1382 : vector<2x32xf32>
    %1384 = math.tanh %1383 : vector<2x32xf32>
    %1385 = arith.mulf %1380, %1384 : vector<2x32xf32>
    %1386 = vector.shape_cast %1349 : vector<2x1xi1> to vector<2x1xi1>
    %1387 = vector.broadcast %1386 : vector<2x1xi1> to vector<2x32xi1>
    %1388 = arith.select %1387, %1385, %1288 : vector<2x32xi1>, vector<2x32xf32>
    %1389 = vector.shape_cast %1349 : vector<2x1xi1> to vector<2x1xi1>
    %1390 = vector.broadcast %1389 : vector<2x1xi1> to vector<2x32xi1>
    %1391 = arith.select %1390, %1383, %1291 : vector<2x32xi1>, vector<2x32xf32>
    %cst_285 = arith.constant 0.000000e+00 : f32
    %1392 = vector.shape_cast %1349 : vector<2x1xi1> to vector<2x1xi1>
    %1393 = vector.broadcast %1392 : vector<2x1xi1> to vector<2x32xi1>
    %1394 = vector.broadcast %cst_285 : f32 to vector<2x32xf32>
    %1395 = arith.select %1393, %1385, %1394 : vector<2x32xi1>, vector<2x32xf32>
    %1396 = arith.truncf %1395 : vector<2x32xf32> to vector<2x32xbf16>
    %1397 = arith.index_cast %c5_i32_277 : i32 to index
    %c0_286 = arith.constant 0 : index
    %c0_287 = arith.constant 0 : index
    %1398 = vector.load %arg16[%1397, %c0_286, %c0_287] : memref<8x2x32xbf16, #tpu.memory_space<vmem>>, vector<1x2x32xbf16>
    %1399 = vector.shape_cast %1398 : vector<1x2x32xbf16> to vector<2x32xbf16>
    %1400 = vector.shape_cast %1396 : vector<2x32xbf16> to vector<1x2x32xbf16>
    tpu.vector_store %arg16[%1397, %c0_286, %c0_287], %1400 {strides = array<i32>} : memref<8x2x32xbf16, #tpu.memory_space<vmem>>, vector<1x2x32xbf16>,
    %1401 = arith.index_cast %1347 : i32 to index
    %c0_288 = arith.constant 0 : index
    %c128_289 = arith.constant 128 : index
    %1402 = vector.load %arg15[%1401, %c0_288, %c128_289] : memref<8x2x256xbf16, #tpu.memory_space<vmem>>, vector<1x2x128xbf16>
    %1403 = vector.shape_cast %1402 : vector<1x2x128xbf16> to vector<2x128xbf16>
    %1404 = arith.extf %1403 : vector<2x128xbf16> to vector<2x128xf32>
    %1405 = vector.extract_strided_slice %1354 {offsets = [0, 128], sizes = [2, 128], strides = [1, 1]} : vector<2x256xf32> to vector<2x128xf32>
    %1406 = arith.addf %1404, %1405 : vector<2x128xf32>
    %1407 = vector.extract_strided_slice %1406 {offsets = [0, 0], sizes = [2, 32], strides = [1, 1]} : vector<2x128xf32> to vector<2x32xf32>
    %1408 = arith.negf %1407 : vector<2x32xf32>
    %1409 = math.exp %1408 : vector<2x32xf32>
    %cst_290 = arith.constant 1.000000e+00 : f32
    %1410 = vector.broadcast %cst_290 : f32 to vector<2x32xf32>
    %1411 = arith.addf %1410, %1409 : vector<2x32xf32>
    %1412 = arith.divf %1410, %1411 : vector<2x32xf32>
    %1413 = vector.extract_strided_slice %1406 {offsets = [0, 32], sizes = [2, 32], strides = [1, 1]} : vector<2x128xf32> to vector<2x32xf32>
    %1414 = arith.negf %1413 : vector<2x32xf32>
    %1415 = math.exp %1414 : vector<2x32xf32>
    %cst_291 = arith.constant 1.000000e+00 : f32
    %1416 = vector.broadcast %cst_291 : f32 to vector<2x32xf32>
    %1417 = arith.addf %1416, %1415 : vector<2x32xf32>
    %1418 = arith.divf %1416, %1417 : vector<2x32xf32>
    %1419 = vector.extract_strided_slice %1406 {offsets = [0, 64], sizes = [2, 32], strides = [1, 1]} : vector<2x128xf32> to vector<2x32xf32>
    %1420 = math.tanh %1419 : vector<2x32xf32>
    %1421 = vector.extract_strided_slice %1406 {offsets = [0, 96], sizes = [2, 32], strides = [1, 1]} : vector<2x128xf32> to vector<2x32xf32>
    %1422 = arith.negf %1421 : vector<2x32xf32>
    %1423 = math.exp %1422 : vector<2x32xf32>
    %cst_292 = arith.constant 1.000000e+00 : f32
    %1424 = vector.broadcast %cst_292 : f32 to vector<2x32xf32>
    %1425 = arith.addf %1424, %1423 : vector<2x32xf32>
    %1426 = arith.divf %1424, %1425 : vector<2x32xf32>
    %1427 = arith.mulf %1418, %1337 : vector<2x32xf32>
    %1428 = arith.mulf %1412, %1420 : vector<2x32xf32>
    %1429 = arith.addf %1427, %1428 : vector<2x32xf32>
    %1430 = math.tanh %1429 : vector<2x32xf32>
    %1431 = arith.mulf %1426, %1430 : vector<2x32xf32>
    %1432 = vector.shape_cast %1351 : vector<2x1xi1> to vector<2x1xi1>
    %1433 = vector.broadcast %1432 : vector<2x1xi1> to vector<2x32xi1>
    %1434 = arith.select %1433, %1431, %1334 : vector<2x32xi1>, vector<2x32xf32>
    %1435 = vector.shape_cast %1351 : vector<2x1xi1> to vector<2x1xi1>
    %1436 = vector.broadcast %1435 : vector<2x1xi1> to vector<2x32xi1>
    %1437 = arith.select %1436, %1429, %1337 : vector<2x32xi1>, vector<2x32xf32>
    %cst_293 = arith.constant 0.000000e+00 : f32
    %1438 = vector.shape_cast %1351 : vector<2x1xi1> to vector<2x1xi1>
    %1439 = vector.broadcast %1438 : vector<2x1xi1> to vector<2x32xi1>
    %1440 = vector.broadcast %cst_293 : f32 to vector<2x32xf32>
    %1441 = arith.select %1439, %1431, %1440 : vector<2x32xi1>, vector<2x32xf32>
    %1442 = arith.truncf %1441 : vector<2x32xf32> to vector<2x32xbf16>
    %1443 = arith.index_cast %1347 : i32 to index
    %c0_294 = arith.constant 0 : index
    %c0_295 = arith.constant 0 : index
    %1444 = vector.load %arg17[%1443, %c0_294, %c0_295] : memref<8x2x32xbf16, #tpu.memory_space<vmem>>, vector<1x2x32xbf16>
    %1445 = vector.shape_cast %1444 : vector<1x2x32xbf16> to vector<2x32xbf16>
    %1446 = vector.shape_cast %1442 : vector<2x32xbf16> to vector<1x2x32xbf16>
    tpu.vector_store %arg17[%1443, %c0_294, %c0_295], %1446 {strides = array<i32>} : memref<8x2x32xbf16, #tpu.memory_space<vmem>>, vector<1x2x32xbf16>,
    %c6_i32_296 = arith.constant 6 : i32
    %c7_i32_297 = arith.constant 7 : i32
    %1447 = arith.subi %c7_i32_297, %c6_i32_296 : i32
    %1448 = vector.broadcast %c6_i32_296 : i32 to vector<2x1xi32>
    %1449 = arith.cmpi slt, %1448, %0 : vector<2x1xi32>
    %1450 = vector.broadcast %1447 : i32 to vector<2x1xi32>
    %1451 = arith.cmpi slt, %1450, %0 : vector<2x1xi32>
    %1452 = tpu.concatenate %1388, %1434 in 1 : vector<2x32xf32>, vector<2x32xf32> -> vector<2x64xf32>
    %1453 = arith.truncf %1452 : vector<2x64xf32> to vector<2x64xbf16>
    %cst_298 = arith.constant dense<0.000000e+00> : vector<2x256xf32>
    %1454 = tpu.matmul %1453, %845, %cst_298 {dimension_numbers = #tpu.dot_dimension_numbers<[1], [0], [0], [1], [0, 0, 1, 1], [], []>} : vector<2x64xbf16>, vector<64x256xbf16>, vector<2x256xf32> -> vector<2x256xf32>
    %1455 = arith.index_cast %c6_i32_296 : i32 to index
    %c0_299 = arith.constant 0 : index
    %c0_300 = arith.constant 0 : index
    %1456 = vector.load %arg15[%1455, %c0_299, %c0_300] : memref<8x2x256xbf16, #tpu.memory_space<vmem>>, vector<1x2x128xbf16>
    %1457 = vector.shape_cast %1456 : vector<1x2x128xbf16> to vector<2x128xbf16>
    %1458 = arith.extf %1457 : vector<2x128xbf16> to vector<2x128xf32>
    %1459 = vector.extract_strided_slice %1454 {offsets = [0, 0], sizes = [2, 128], strides = [1, 1]} : vector<2x256xf32> to vector<2x128xf32>
    %1460 = arith.addf %1458, %1459 : vector<2x128xf32>
    %1461 = vector.extract_strided_slice %1460 {offsets = [0, 0], sizes = [2, 32], strides = [1, 1]} : vector<2x128xf32> to vector<2x32xf32>
    %1462 = arith.negf %1461 : vector<2x32xf32>
    %1463 = math.exp %1462 : vector<2x32xf32>
    %cst_301 = arith.constant 1.000000e+00 : f32
    %1464 = vector.broadcast %cst_301 : f32 to vector<2x32xf32>
    %1465 = arith.addf %1464, %1463 : vector<2x32xf32>
    %1466 = arith.divf %1464, %1465 : vector<2x32xf32>
    %1467 = vector.extract_strided_slice %1460 {offsets = [0, 32], sizes = [2, 32], strides = [1, 1]} : vector<2x128xf32> to vector<2x32xf32>
    %1468 = arith.negf %1467 : vector<2x32xf32>
    %1469 = math.exp %1468 : vector<2x32xf32>
    %cst_302 = arith.constant 1.000000e+00 : f32
    %1470 = vector.broadcast %cst_302 : f32 to vector<2x32xf32>
    %1471 = arith.addf %1470, %1469 : vector<2x32xf32>
    %1472 = arith.divf %1470, %1471 : vector<2x32xf32>
    %1473 = vector.extract_strided_slice %1460 {offsets = [0, 64], sizes = [2, 32], strides = [1, 1]} : vector<2x128xf32> to vector<2x32xf32>
    %1474 = math.tanh %1473 : vector<2x32xf32>
    %1475 = vector.extract_strided_slice %1460 {offsets = [0, 96], sizes = [2, 32], strides = [1, 1]} : vector<2x128xf32> to vector<2x32xf32>
    %1476 = arith.negf %1475 : vector<2x32xf32>
    %1477 = math.exp %1476 : vector<2x32xf32>
    %cst_303 = arith.constant 1.000000e+00 : f32
    %1478 = vector.broadcast %cst_303 : f32 to vector<2x32xf32>
    %1479 = arith.addf %1478, %1477 : vector<2x32xf32>
    %1480 = arith.divf %1478, %1479 : vector<2x32xf32>
    %1481 = arith.mulf %1472, %1391 : vector<2x32xf32>
    %1482 = arith.mulf %1466, %1474 : vector<2x32xf32>
    %1483 = arith.addf %1481, %1482 : vector<2x32xf32>
    %1484 = math.tanh %1483 : vector<2x32xf32>
    %1485 = arith.mulf %1480, %1484 : vector<2x32xf32>
    %1486 = vector.shape_cast %1449 : vector<2x1xi1> to vector<2x1xi1>
    %1487 = vector.broadcast %1486 : vector<2x1xi1> to vector<2x32xi1>
    %1488 = arith.select %1487, %1485, %1388 : vector<2x32xi1>, vector<2x32xf32>
    %1489 = vector.shape_cast %1449 : vector<2x1xi1> to vector<2x1xi1>
    %1490 = vector.broadcast %1489 : vector<2x1xi1> to vector<2x32xi1>
    %1491 = arith.select %1490, %1483, %1391 : vector<2x32xi1>, vector<2x32xf32>
    %cst_304 = arith.constant 0.000000e+00 : f32
    %1492 = vector.shape_cast %1449 : vector<2x1xi1> to vector<2x1xi1>
    %1493 = vector.broadcast %1492 : vector<2x1xi1> to vector<2x32xi1>
    %1494 = vector.broadcast %cst_304 : f32 to vector<2x32xf32>
    %1495 = arith.select %1493, %1485, %1494 : vector<2x32xi1>, vector<2x32xf32>
    %1496 = arith.truncf %1495 : vector<2x32xf32> to vector<2x32xbf16>
    %1497 = arith.index_cast %c6_i32_296 : i32 to index
    %c0_305 = arith.constant 0 : index
    %c0_306 = arith.constant 0 : index
    %1498 = vector.load %arg16[%1497, %c0_305, %c0_306] : memref<8x2x32xbf16, #tpu.memory_space<vmem>>, vector<1x2x32xbf16>
    %1499 = vector.shape_cast %1498 : vector<1x2x32xbf16> to vector<2x32xbf16>
    %1500 = vector.shape_cast %1496 : vector<2x32xbf16> to vector<1x2x32xbf16>
    tpu.vector_store %arg16[%1497, %c0_305, %c0_306], %1500 {strides = array<i32>} : memref<8x2x32xbf16, #tpu.memory_space<vmem>>, vector<1x2x32xbf16>,
    %1501 = arith.index_cast %1447 : i32 to index
    %c0_307 = arith.constant 0 : index
    %c128_308 = arith.constant 128 : index
    %1502 = vector.load %arg15[%1501, %c0_307, %c128_308] : memref<8x2x256xbf16, #tpu.memory_space<vmem>>, vector<1x2x128xbf16>
    %1503 = vector.shape_cast %1502 : vector<1x2x128xbf16> to vector<2x128xbf16>
    %1504 = arith.extf %1503 : vector<2x128xbf16> to vector<2x128xf32>
    %1505 = vector.extract_strided_slice %1454 {offsets = [0, 128], sizes = [2, 128], strides = [1, 1]} : vector<2x256xf32> to vector<2x128xf32>
    %1506 = arith.addf %1504, %1505 : vector<2x128xf32>
    %1507 = vector.extract_strided_slice %1506 {offsets = [0, 0], sizes = [2, 32], strides = [1, 1]} : vector<2x128xf32> to vector<2x32xf32>
    %1508 = arith.negf %1507 : vector<2x32xf32>
    %1509 = math.exp %1508 : vector<2x32xf32>
    %cst_309 = arith.constant 1.000000e+00 : f32
    %1510 = vector.broadcast %cst_309 : f32 to vector<2x32xf32>
    %1511 = arith.addf %1510, %1509 : vector<2x32xf32>
    %1512 = arith.divf %1510, %1511 : vector<2x32xf32>
    %1513 = vector.extract_strided_slice %1506 {offsets = [0, 32], sizes = [2, 32], strides = [1, 1]} : vector<2x128xf32> to vector<2x32xf32>
    %1514 = arith.negf %1513 : vector<2x32xf32>
    %1515 = math.exp %1514 : vector<2x32xf32>
    %cst_310 = arith.constant 1.000000e+00 : f32
    %1516 = vector.broadcast %cst_310 : f32 to vector<2x32xf32>
    %1517 = arith.addf %1516, %1515 : vector<2x32xf32>
    %1518 = arith.divf %1516, %1517 : vector<2x32xf32>
    %1519 = vector.extract_strided_slice %1506 {offsets = [0, 64], sizes = [2, 32], strides = [1, 1]} : vector<2x128xf32> to vector<2x32xf32>
    %1520 = math.tanh %1519 : vector<2x32xf32>
    %1521 = vector.extract_strided_slice %1506 {offsets = [0, 96], sizes = [2, 32], strides = [1, 1]} : vector<2x128xf32> to vector<2x32xf32>
    %1522 = arith.negf %1521 : vector<2x32xf32>
    %1523 = math.exp %1522 : vector<2x32xf32>
    %cst_311 = arith.constant 1.000000e+00 : f32
    %1524 = vector.broadcast %cst_311 : f32 to vector<2x32xf32>
    %1525 = arith.addf %1524, %1523 : vector<2x32xf32>
    %1526 = arith.divf %1524, %1525 : vector<2x32xf32>
    %1527 = arith.mulf %1518, %1437 : vector<2x32xf32>
    %1528 = arith.mulf %1512, %1520 : vector<2x32xf32>
    %1529 = arith.addf %1527, %1528 : vector<2x32xf32>
    %1530 = math.tanh %1529 : vector<2x32xf32>
    %1531 = arith.mulf %1526, %1530 : vector<2x32xf32>
    %1532 = vector.shape_cast %1451 : vector<2x1xi1> to vector<2x1xi1>
    %1533 = vector.broadcast %1532 : vector<2x1xi1> to vector<2x32xi1>
    %1534 = arith.select %1533, %1531, %1434 : vector<2x32xi1>, vector<2x32xf32>
    %1535 = vector.shape_cast %1451 : vector<2x1xi1> to vector<2x1xi1>
    %1536 = vector.broadcast %1535 : vector<2x1xi1> to vector<2x32xi1>
    %1537 = arith.select %1536, %1529, %1437 : vector<2x32xi1>, vector<2x32xf32>
    %cst_312 = arith.constant 0.000000e+00 : f32
    %1538 = vector.shape_cast %1451 : vector<2x1xi1> to vector<2x1xi1>
    %1539 = vector.broadcast %1538 : vector<2x1xi1> to vector<2x32xi1>
    %1540 = vector.broadcast %cst_312 : f32 to vector<2x32xf32>
    %1541 = arith.select %1539, %1531, %1540 : vector<2x32xi1>, vector<2x32xf32>
    %1542 = arith.truncf %1541 : vector<2x32xf32> to vector<2x32xbf16>
    %1543 = arith.index_cast %1447 : i32 to index
    %c0_313 = arith.constant 0 : index
    %c0_314 = arith.constant 0 : index
    %1544 = vector.load %arg17[%1543, %c0_313, %c0_314] : memref<8x2x32xbf16, #tpu.memory_space<vmem>>, vector<1x2x32xbf16>
    %1545 = vector.shape_cast %1544 : vector<1x2x32xbf16> to vector<2x32xbf16>
    %1546 = vector.shape_cast %1542 : vector<2x32xbf16> to vector<1x2x32xbf16>
    tpu.vector_store %arg17[%1543, %c0_313, %c0_314], %1546 {strides = array<i32>} : memref<8x2x32xbf16, #tpu.memory_space<vmem>>, vector<1x2x32xbf16>,
    %c7_i32_315 = arith.constant 7 : i32
    %c7_i32_316 = arith.constant 7 : i32
    %1547 = arith.subi %c7_i32_316, %c7_i32_315 : i32
    %1548 = vector.broadcast %c7_i32_315 : i32 to vector<2x1xi32>
    %1549 = arith.cmpi slt, %1548, %0 : vector<2x1xi32>
    %1550 = vector.broadcast %1547 : i32 to vector<2x1xi32>
    %1551 = arith.cmpi slt, %1550, %0 : vector<2x1xi32>
    %1552 = tpu.concatenate %1488, %1534 in 1 : vector<2x32xf32>, vector<2x32xf32> -> vector<2x64xf32>
    %1553 = arith.truncf %1552 : vector<2x64xf32> to vector<2x64xbf16>
    %cst_317 = arith.constant dense<0.000000e+00> : vector<2x256xf32>
    %1554 = tpu.matmul %1553, %845, %cst_317 {dimension_numbers = #tpu.dot_dimension_numbers<[1], [0], [0], [1], [0, 0, 1, 1], [], []>} : vector<2x64xbf16>, vector<64x256xbf16>, vector<2x256xf32> -> vector<2x256xf32>
    %1555 = arith.index_cast %c7_i32_315 : i32 to index
    %c0_318 = arith.constant 0 : index
    %c0_319 = arith.constant 0 : index
    %1556 = vector.load %arg15[%1555, %c0_318, %c0_319] : memref<8x2x256xbf16, #tpu.memory_space<vmem>>, vector<1x2x128xbf16>
    %1557 = vector.shape_cast %1556 : vector<1x2x128xbf16> to vector<2x128xbf16>
    %1558 = arith.extf %1557 : vector<2x128xbf16> to vector<2x128xf32>
    %1559 = vector.extract_strided_slice %1554 {offsets = [0, 0], sizes = [2, 128], strides = [1, 1]} : vector<2x256xf32> to vector<2x128xf32>
    %1560 = arith.addf %1558, %1559 : vector<2x128xf32>
    %1561 = vector.extract_strided_slice %1560 {offsets = [0, 0], sizes = [2, 32], strides = [1, 1]} : vector<2x128xf32> to vector<2x32xf32>
    %1562 = arith.negf %1561 : vector<2x32xf32>
    %1563 = math.exp %1562 : vector<2x32xf32>
    %cst_320 = arith.constant 1.000000e+00 : f32
    %1564 = vector.broadcast %cst_320 : f32 to vector<2x32xf32>
    %1565 = arith.addf %1564, %1563 : vector<2x32xf32>
    %1566 = arith.divf %1564, %1565 : vector<2x32xf32>
    %1567 = vector.extract_strided_slice %1560 {offsets = [0, 32], sizes = [2, 32], strides = [1, 1]} : vector<2x128xf32> to vector<2x32xf32>
    %1568 = arith.negf %1567 : vector<2x32xf32>
    %1569 = math.exp %1568 : vector<2x32xf32>
    %cst_321 = arith.constant 1.000000e+00 : f32
    %1570 = vector.broadcast %cst_321 : f32 to vector<2x32xf32>
    %1571 = arith.addf %1570, %1569 : vector<2x32xf32>
    %1572 = arith.divf %1570, %1571 : vector<2x32xf32>
    %1573 = vector.extract_strided_slice %1560 {offsets = [0, 64], sizes = [2, 32], strides = [1, 1]} : vector<2x128xf32> to vector<2x32xf32>
    %1574 = math.tanh %1573 : vector<2x32xf32>
    %1575 = vector.extract_strided_slice %1560 {offsets = [0, 96], sizes = [2, 32], strides = [1, 1]} : vector<2x128xf32> to vector<2x32xf32>
    %1576 = arith.negf %1575 : vector<2x32xf32>
    %1577 = math.exp %1576 : vector<2x32xf32>
    %cst_322 = arith.constant 1.000000e+00 : f32
    %1578 = vector.broadcast %cst_322 : f32 to vector<2x32xf32>
    %1579 = arith.addf %1578, %1577 : vector<2x32xf32>
    %1580 = arith.divf %1578, %1579 : vector<2x32xf32>
    %1581 = arith.mulf %1572, %1491 : vector<2x32xf32>
    %1582 = arith.mulf %1566, %1574 : vector<2x32xf32>
    %1583 = arith.addf %1581, %1582 : vector<2x32xf32>
    %1584 = math.tanh %1583 : vector<2x32xf32>
    %1585 = arith.mulf %1580, %1584 : vector<2x32xf32>
    %1586 = vector.shape_cast %1549 : vector<2x1xi1> to vector<2x1xi1>
    %1587 = vector.broadcast %1586 : vector<2x1xi1> to vector<2x32xi1>
    %1588 = arith.select %1587, %1585, %1488 : vector<2x32xi1>, vector<2x32xf32>
    %1589 = vector.shape_cast %1549 : vector<2x1xi1> to vector<2x1xi1>
    %1590 = vector.broadcast %1589 : vector<2x1xi1> to vector<2x32xi1>
    %1591 = arith.select %1590, %1583, %1491 : vector<2x32xi1>, vector<2x32xf32>
    %cst_323 = arith.constant 0.000000e+00 : f32
    %1592 = vector.shape_cast %1549 : vector<2x1xi1> to vector<2x1xi1>
    %1593 = vector.broadcast %1592 : vector<2x1xi1> to vector<2x32xi1>
    %1594 = vector.broadcast %cst_323 : f32 to vector<2x32xf32>
    %1595 = arith.select %1593, %1585, %1594 : vector<2x32xi1>, vector<2x32xf32>
    %1596 = arith.truncf %1595 : vector<2x32xf32> to vector<2x32xbf16>
    %1597 = arith.index_cast %c7_i32_315 : i32 to index
    %c0_324 = arith.constant 0 : index
    %c0_325 = arith.constant 0 : index
    %1598 = vector.load %arg16[%1597, %c0_324, %c0_325] : memref<8x2x32xbf16, #tpu.memory_space<vmem>>, vector<1x2x32xbf16>
    %1599 = vector.shape_cast %1598 : vector<1x2x32xbf16> to vector<2x32xbf16>
    %1600 = vector.shape_cast %1596 : vector<2x32xbf16> to vector<1x2x32xbf16>
    tpu.vector_store %arg16[%1597, %c0_324, %c0_325], %1600 {strides = array<i32>} : memref<8x2x32xbf16, #tpu.memory_space<vmem>>, vector<1x2x32xbf16>,
    %1601 = arith.index_cast %1547 : i32 to index
    %c0_326 = arith.constant 0 : index
    %c128_327 = arith.constant 128 : index
    %1602 = vector.load %arg15[%1601, %c0_326, %c128_327] : memref<8x2x256xbf16, #tpu.memory_space<vmem>>, vector<1x2x128xbf16>
    %1603 = vector.shape_cast %1602 : vector<1x2x128xbf16> to vector<2x128xbf16>
    %1604 = arith.extf %1603 : vector<2x128xbf16> to vector<2x128xf32>
    %1605 = vector.extract_strided_slice %1554 {offsets = [0, 128], sizes = [2, 128], strides = [1, 1]} : vector<2x256xf32> to vector<2x128xf32>
    %1606 = arith.addf %1604, %1605 : vector<2x128xf32>
    %1607 = vector.extract_strided_slice %1606 {offsets = [0, 0], sizes = [2, 32], strides = [1, 1]} : vector<2x128xf32> to vector<2x32xf32>
    %1608 = arith.negf %1607 : vector<2x32xf32>
    %1609 = math.exp %1608 : vector<2x32xf32>
    %cst_328 = arith.constant 1.000000e+00 : f32
    %1610 = vector.broadcast %cst_328 : f32 to vector<2x32xf32>
    %1611 = arith.addf %1610, %1609 : vector<2x32xf32>
    %1612 = arith.divf %1610, %1611 : vector<2x32xf32>
    %1613 = vector.extract_strided_slice %1606 {offsets = [0, 32], sizes = [2, 32], strides = [1, 1]} : vector<2x128xf32> to vector<2x32xf32>
    %1614 = arith.negf %1613 : vector<2x32xf32>
    %1615 = math.exp %1614 : vector<2x32xf32>
    %cst_329 = arith.constant 1.000000e+00 : f32
    %1616 = vector.broadcast %cst_329 : f32 to vector<2x32xf32>
    %1617 = arith.addf %1616, %1615 : vector<2x32xf32>
    %1618 = arith.divf %1616, %1617 : vector<2x32xf32>
    %1619 = vector.extract_strided_slice %1606 {offsets = [0, 64], sizes = [2, 32], strides = [1, 1]} : vector<2x128xf32> to vector<2x32xf32>
    %1620 = math.tanh %1619 : vector<2x32xf32>
    %1621 = vector.extract_strided_slice %1606 {offsets = [0, 96], sizes = [2, 32], strides = [1, 1]} : vector<2x128xf32> to vector<2x32xf32>
    %1622 = arith.negf %1621 : vector<2x32xf32>
    %1623 = math.exp %1622 : vector<2x32xf32>
    %cst_330 = arith.constant 1.000000e+00 : f32
    %1624 = vector.broadcast %cst_330 : f32 to vector<2x32xf32>
    %1625 = arith.addf %1624, %1623 : vector<2x32xf32>
    %1626 = arith.divf %1624, %1625 : vector<2x32xf32>
    %1627 = arith.mulf %1618, %1537 : vector<2x32xf32>
    %1628 = arith.mulf %1612, %1620 : vector<2x32xf32>
    %1629 = arith.addf %1627, %1628 : vector<2x32xf32>
    %1630 = math.tanh %1629 : vector<2x32xf32>
    %1631 = arith.mulf %1626, %1630 : vector<2x32xf32>
    %1632 = vector.shape_cast %1551 : vector<2x1xi1> to vector<2x1xi1>
    %1633 = vector.broadcast %1632 : vector<2x1xi1> to vector<2x32xi1>
    %1634 = arith.select %1633, %1631, %1534 : vector<2x32xi1>, vector<2x32xf32>
    %1635 = vector.shape_cast %1551 : vector<2x1xi1> to vector<2x1xi1>
    %1636 = vector.broadcast %1635 : vector<2x1xi1> to vector<2x32xi1>
    %1637 = arith.select %1636, %1629, %1537 : vector<2x32xi1>, vector<2x32xf32>
    %cst_331 = arith.constant 0.000000e+00 : f32
    %1638 = vector.shape_cast %1551 : vector<2x1xi1> to vector<2x1xi1>
    %1639 = vector.broadcast %1638 : vector<2x1xi1> to vector<2x32xi1>
    %1640 = vector.broadcast %cst_331 : f32 to vector<2x32xf32>
    %1641 = arith.select %1639, %1631, %1640 : vector<2x32xi1>, vector<2x32xf32>
    %1642 = arith.truncf %1641 : vector<2x32xf32> to vector<2x32xbf16>
    %1643 = arith.index_cast %1547 : i32 to index
    %c0_332 = arith.constant 0 : index
    %c0_333 = arith.constant 0 : index
    %1644 = vector.load %arg17[%1643, %c0_332, %c0_333] : memref<8x2x32xbf16, #tpu.memory_space<vmem>>, vector<1x2x32xbf16>
    %1645 = vector.shape_cast %1644 : vector<1x2x32xbf16> to vector<2x32xbf16>
    %1646 = vector.shape_cast %1642 : vector<2x32xbf16> to vector<1x2x32xbf16>
    tpu.vector_store %arg17[%1643, %c0_332, %c0_333], %1646 {strides = array<i32>} : memref<8x2x32xbf16, #tpu.memory_space<vmem>>, vector<1x2x32xbf16>,
    %c8_i32_334 = arith.constant 8 : i32
    %c0_335 = arith.constant 0 : index
    %c0_336 = arith.constant 0 : index
    %c0_337 = arith.constant 0 : index
    %1647 = vector.load %arg16[%c0_335, %c0_336, %c0_337] : memref<8x2x32xbf16, #tpu.memory_space<vmem>>, vector<8x2x32xbf16>
    %1648 = arith.extf %1647 : vector<8x2x32xbf16> to vector<8x2x32xf32>
    %c0_338 = arith.constant 0 : index
    %c0_339 = arith.constant 0 : index
    %c0_340 = arith.constant 0 : index
    %1649 = vector.load %arg17[%c0_338, %c0_339, %c0_340] : memref<8x2x32xbf16, #tpu.memory_space<vmem>>, vector<8x2x32xbf16>
    %1650 = arith.extf %1649 : vector<8x2x32xbf16> to vector<8x2x32xf32>
    %c0_341 = arith.constant 0 : index
    %c0_342 = arith.constant 0 : index
    %1651 = vector.load %arg12[%c0_341, %c0_342] : memref<2x64xf32, #tpu.memory_space<vmem>>, vector<2x64xf32>
    %c0_343 = arith.constant 0 : index
    %c0_344 = arith.constant 0 : index
    %1652 = vector.load %arg13[%c0_343, %c0_344] : memref<1x2xf32, #tpu.memory_space<vmem>>, vector<1x2xf32>
    %1653 = vector.extract_strided_slice %1651 {offsets = [0, 0], sizes = [1, 32], strides = [1, 1]} : vector<2x64xf32> to vector<1x32xf32>
    %1654 = vector.shape_cast %1653 : vector<1x32xf32> to vector<1x1x32xf32>
    %1655 = vector.broadcast %1654 : vector<1x1x32xf32> to vector<8x2x32xf32>
    %1656 = arith.mulf %1648, %1655 : vector<8x2x32xf32>
    %cst_345 = arith.constant dense<0.000000e+00> : vector<8x2xf32>
    %1657 = vector.multi_reduction <add>, %1656, %cst_345 [2] : vector<8x2x32xf32> to vector<8x2xf32>
    %1658 = vector.extract_strided_slice %1651 {offsets = [0, 32], sizes = [1, 32], strides = [1, 1]} : vector<2x64xf32> to vector<1x32xf32>
    %1659 = vector.shape_cast %1658 : vector<1x32xf32> to vector<1x1x32xf32>
    %1660 = vector.broadcast %1659 : vector<1x1x32xf32> to vector<8x2x32xf32>
    %1661 = arith.mulf %1650, %1660 : vector<8x2x32xf32>
    %cst_346 = arith.constant dense<0.000000e+00> : vector<8x2xf32>
    %1662 = vector.multi_reduction <add>, %1661, %cst_346 [2] : vector<8x2x32xf32> to vector<8x2xf32>
    %1663 = arith.addf %1657, %1662 : vector<8x2xf32>
    %1664 = vector.extract_strided_slice %1652 {offsets = [0, 0], sizes = [1, 1], strides = [1, 1]} : vector<1x2xf32> to vector<1x1xf32>
    %1665 = vector.broadcast %1664 : vector<1x1xf32> to vector<8x2xf32>
    %1666 = arith.addf %1663, %1665 : vector<8x2xf32>
    %1667 = vector.extract_strided_slice %1651 {offsets = [1, 0], sizes = [1, 32], strides = [1, 1]} : vector<2x64xf32> to vector<1x32xf32>
    %1668 = vector.shape_cast %1667 : vector<1x32xf32> to vector<1x1x32xf32>
    %1669 = vector.broadcast %1668 : vector<1x1x32xf32> to vector<8x2x32xf32>
    %1670 = arith.mulf %1648, %1669 : vector<8x2x32xf32>
    %cst_347 = arith.constant dense<0.000000e+00> : vector<8x2xf32>
    %1671 = vector.multi_reduction <add>, %1670, %cst_347 [2] : vector<8x2x32xf32> to vector<8x2xf32>
    %1672 = vector.extract_strided_slice %1651 {offsets = [1, 32], sizes = [1, 32], strides = [1, 1]} : vector<2x64xf32> to vector<1x32xf32>
    %1673 = vector.shape_cast %1672 : vector<1x32xf32> to vector<1x1x32xf32>
    %1674 = vector.broadcast %1673 : vector<1x1x32xf32> to vector<8x2x32xf32>
    %1675 = arith.mulf %1650, %1674 : vector<8x2x32xf32>
    %cst_348 = arith.constant dense<0.000000e+00> : vector<8x2xf32>
    %1676 = vector.multi_reduction <add>, %1675, %cst_348 [2] : vector<8x2x32xf32> to vector<8x2xf32>
    %1677 = arith.addf %1671, %1676 : vector<8x2xf32>
    %1678 = vector.extract_strided_slice %1652 {offsets = [0, 1], sizes = [1, 1], strides = [1, 1]} : vector<1x2xf32> to vector<1x1xf32>
    %1679 = vector.broadcast %1678 : vector<1x1xf32> to vector<8x2xf32>
    %1680 = arith.addf %1677, %1679 : vector<8x2xf32>
    %1681 = tpu.iota {dimensions = array<i32: 1>} : vector<2x8xi32>
    %1682 = vector.broadcast %0 : vector<2x1xi32> to vector<2x8xi32>
    %1683 = arith.cmpi slt, %1681, %1682 : vector<2x8xi32>
    %1684 = tpu.transpose %1666, [1, 0] : vector<8x2xf32> -> vector<2x8xf32>
    %cst_349 = arith.constant -1.000000e+04 : f32
    %1685 = vector.broadcast %cst_349 : f32 to vector<2x8xf32>
    %1686 = arith.select %1683, %1684, %1685 : vector<2x8xi1>, vector<2x8xf32>
    %c0_350 = arith.constant 0 : index
    %c0_351 = arith.constant 0 : index
    %c0_352 = arith.constant 0 : index
    %1687 = vector.load %arg14[%c0_350, %c0_351, %c0_352] : memref<2x2x8xf32, #tpu.memory_space<vmem>>, vector<1x2x8xf32>
    %1688 = vector.shape_cast %1687 : vector<1x2x8xf32> to vector<2x8xf32>
    %1689 = vector.shape_cast %1686 : vector<2x8xf32> to vector<1x2x8xf32>
    tpu.vector_store %arg14[%c0_350, %c0_351, %c0_352], %1689 {strides = array<i32>} : memref<2x2x8xf32, #tpu.memory_space<vmem>>, vector<1x2x8xf32>,
    %1690 = tpu.transpose %1680, [1, 0] : vector<8x2xf32> -> vector<2x8xf32>
    %cst_353 = arith.constant -1.000000e+04 : f32
    %1691 = vector.broadcast %cst_353 : f32 to vector<2x8xf32>
    %1692 = arith.select %1683, %1690, %1691 : vector<2x8xi1>, vector<2x8xf32>
    %c1 = arith.constant 1 : index
    %c0_354 = arith.constant 0 : index
    %c0_355 = arith.constant 0 : index
    %1693 = vector.load %arg14[%c1, %c0_354, %c0_355] : memref<2x2x8xf32, #tpu.memory_space<vmem>>, vector<1x2x8xf32>
    %1694 = vector.shape_cast %1693 : vector<1x2x8xf32> to vector<2x8xf32>
    %1695 = vector.shape_cast %1692 : vector<2x8xf32> to vector<1x2x8xf32>
    tpu.vector_store %arg14[%c1, %c0_354, %c0_355], %1695 {strides = array<i32>} : memref<2x2x8xf32, #tpu.memory_space<vmem>>, vector<1x2x8xf32>,
    return
  }
  func.func @transform_0(%arg0: i32) -> (i32, i32) {
    %c0_i32 = arith.constant 0 : i32
    %c0_i32_0 = arith.constant 0 : i32
    return %arg0, %c0_i32 : i32, i32
  }
  func.func @transform_1(%arg0: i32) -> (i32, i32, i32) {
    %c0_i32 = arith.constant 0 : i32
    %c0_i32_0 = arith.constant 0 : i32
    %c0_i32_1 = arith.constant 0 : i32
    return %c0_i32, %arg0, %c0_i32_0 : i32, i32, i32
  }
  func.func @transform_2(%arg0: i32) -> (i32, i32) {
    %c0_i32 = arith.constant 0 : i32
    %c0_i32_0 = arith.constant 0 : i32
    return %arg0, %c0_i32 : i32, i32
  }
  func.func @transform_3(%arg0: i32) -> (i32, i32) {
    %c0_i32 = arith.constant 0 : i32
    %c0_i32_0 = arith.constant 0 : i32
    %c0_i32_1 = arith.constant 0 : i32
    return %c0_i32, %c0_i32_0 : i32, i32
  }
  func.func @transform_4(%arg0: i32) -> (i32, i32) {
    %c0_i32 = arith.constant 0 : i32
    %c0_i32_0 = arith.constant 0 : i32
    %c0_i32_1 = arith.constant 0 : i32
    return %c0_i32, %c0_i32_0 : i32, i32
  }
  func.func @transform_5(%arg0: i32) -> (i32, i32) {
    %c0_i32 = arith.constant 0 : i32
    %c0_i32_0 = arith.constant 0 : i32
    %c0_i32_1 = arith.constant 0 : i32
    return %c0_i32, %c0_i32_0 : i32, i32
  }
  func.func @transform_6(%arg0: i32) -> (i32, i32) {
    %c0_i32 = arith.constant 0 : i32
    %c0_i32_0 = arith.constant 0 : i32
    %c0_i32_1 = arith.constant 0 : i32
    return %c0_i32, %c0_i32_0 : i32, i32
  }
  func.func @transform_7(%arg0: i32) -> (i32, i32) {
    %c0_i32 = arith.constant 0 : i32
    %c0_i32_0 = arith.constant 0 : i32
    %c0_i32_1 = arith.constant 0 : i32
    return %c0_i32, %c0_i32_0 : i32, i32
  }
  func.func @transform_8(%arg0: i32) -> (i32, i32) {
    %c0_i32 = arith.constant 0 : i32
    %c0_i32_0 = arith.constant 0 : i32
    %c0_i32_1 = arith.constant 0 : i32
    return %c0_i32, %c0_i32_0 : i32, i32
  }
  func.func @transform_9(%arg0: i32) -> (i32, i32) {
    %c0_i32 = arith.constant 0 : i32
    %c0_i32_0 = arith.constant 0 : i32
    %c0_i32_1 = arith.constant 0 : i32
    return %c0_i32, %c0_i32_0 : i32, i32
  }
  func.func @transform_10(%arg0: i32) -> (i32, i32) {
    %c0_i32 = arith.constant 0 : i32
    %c0_i32_0 = arith.constant 0 : i32
    %c0_i32_1 = arith.constant 0 : i32
    return %c0_i32, %c0_i32_0 : i32, i32
  }
  func.func @transform_11(%arg0: i32) -> (i32, i32) {
    %c0_i32 = arith.constant 0 : i32
    %c0_i32_0 = arith.constant 0 : i32
    %c0_i32_1 = arith.constant 0 : i32
    return %c0_i32, %c0_i32_0 : i32, i32
  }
  func.func @transform_12(%arg0: i32) -> (i32, i32) {
    %c0_i32 = arith.constant 0 : i32
    %c0_i32_0 = arith.constant 0 : i32
    %c0_i32_1 = arith.constant 0 : i32
    return %c0_i32, %c0_i32_0 : i32, i32
  }
  func.func @transform_13(%arg0: i32) -> (i32, i32, i32) {
    %c0_i32 = arith.constant 0 : i32
    %c0_i32_0 = arith.constant 0 : i32
    %c0_i32_1 = arith.constant 0 : i32
    return %c0_i32, %arg0, %c0_i32_0 : i32, i32, i32
  }
}

</mosaic_0001>

<bundles_post_ra>
// kernel: tpu_custom_call.1
= control target key start
LH: loop header
LB: loop body
LE: loop exit
PB: predicated region body
PF: predicated region fallthrough
CT: control target
= control target key end

     0   :  { %18 = vsyncpa [#allocation6], 0  ;;  %s7135_s0 = inlined_call_operand.vmem [shape: s32[2,1], index: 0, kind: input, shape index: {}]   ;;  %s7136_s1 = inlined_call_operand.hbm [shape: f32[8,2,32], index: 1, kind: input, shape index: {}]   ;;  %s7137_s2 = inlined_call_operand.vmem [shape: f32[2,32], index: 2, kind: input, shape index: {}]   ;;  %s7138_s3 = inlined_call_operand.hbm [shape: bf16[96,256], index: 3, kind: input, shape index: {}]   ;;  %s7139_s4 = inlined_call_operand.hbm [shape: bf16[32,256], index: 4, kind: input, shape index: {}]   ;;  %s7140_s5 = inlined_call_operand.hbm [shape: f32[1,256], index: 5, kind: input, shape index: {}]   ;;  %s7141_s6 = inlined_call_operand.hbm [shape: bf16[64,256], index: 6, kind: input, shape index: {}]   ;;  %s7142_s7 = inlined_call_operand.hbm [shape: bf16[32,256], index: 7, kind: input, shape index: {}]   ;;  %s7143_s8 = inlined_call_operand.vmem [shape: bf16[32,256], index: 8, kind: input, shape index: {}]   ;;  %s7144_s9 = inlined_call_operand.vmem [shape: f32[1,256], index: 9, kind: input, shape index: {}]   ;;  %s7145_s10 = inlined_call_operand.hbm [shape: bf16[64,256], index: 10, kind: input, shape index: {}]   ;;  %s7146_s11 = inlined_call_operand.vmem [shape: f32[2,64], index: 11, kind: input, shape index: {}]   ;;  %s7147_s12 = inlined_call_operand.vmem [shape: f32[1,2], index: 12, kind: input, shape index: {}]   ;;  %s7148_s13 = inlined_call_operand.hbm [shape: f32[2,2,8], index: 13, kind: output, shape index: {}]  }
   0x1   :  { %19 = vsyncpa [#allocation9], 0 }
   0x2   :  { %20 = vsyncpa [#allocation12], 0 }
   0x3   :  { %21 = vsyncpa [#allocation15], 0 }
   0x4   :  { %22 = vsyncpa [#allocation7], 0  ;;  %s5550_s25 = smov [#allocation8]   ;;  %s5364_s29 = scalar_lea.hbm %s7138_s3, 1536 }
   0x5   :  { %s44_s26 = sshll.u32 %s5550_s25, 4  ;;  %p5365_p0 = scmp.ne.s32.totalorder %s7138_s3, %s5364_s29  ;;  %s45_s26 = int_to_ptr.vmem [resolvable:$true] %s44_s26 }
   0x6   :  { %p5368_p1 = scmp.lt.u32.totalorder %s5364_s29, %s7138_s3 }
   0x8   :  { %p5370_p2 = pnand %p5368_p1, %p5365_p0 }
   0xa   :  { %5373 = shalt.err (!%p5370_p2)
}
   0xb   :  { %s5374_s17 = scalar_lea.vmem %s45_s26, 1536  ;;  %p5379_p4 = scmp.lt.s32.totalorder %s45_s26, %s45_s26 }
   0xc   :  { %p5375_p3 = scmp.ne.s32.totalorder %s45_s26, %s5374_s17  ;;  %p5380_p5 = scmp.lt.s32.totalorder %s5374_s17, %s5374_s17 }
   0xe   :  { %p5381_p6 = por %p5380_p5, %p5379_p4 }
  0x10   :  { %p5382_p7 = pnand %p5381_p6, %p5375_p3 }
  0x12   :  { %5385 = shalt.err (!%p5382_p7)
}
  0x13   :  { %s5551_s18 = smov 128   ;;  %s5552_s19 = smov 8  }
  0x14   :  { %50 = dma.hbm_to_vmem [thread:$0]  %s7138_s3, 1536, %s45_s26, [#allocation9], %s5551_s18, %s5551_s18, %s5552_s19  }
  0x15   :  { %s5553_s22 = smov [#allocation11]   ;;  %s5554_s24 = smov [#allocation14]  }
  0x16   :  { %s69_s23 = sshll.u32 %s5553_s22, 4  ;;  %s90_s25 = sshll.u32 %s5554_s24, 4  ;;  %s70_s23 = int_to_ptr.vmem [resolvable:$true] %s69_s23  ;;  %s91_s25 = int_to_ptr.vmem [resolvable:$true] %s90_s25 }
  0x17   :  { %s5386_s29 = scalar_lea.hbm %s7140_s5, 32 }
  0x18   :  { %p5387_p8 = scmp.ne.s32.totalorder %s7140_s5, %s5386_s29  ;;  %p5390_p9 = scmp.lt.u32.totalorder %s5386_s29, %s7140_s5 }
  0x1a   :  { %p5392_p10 = pnand %p5390_p9, %p5387_p8 }
  0x1c   :  { %5395 = shalt.err (!%p5392_p10)
}
  0x1d   :  { %s5396_s3 = scalar_lea.vmem %s70_s23, 32  ;;  %p5401_p12 = scmp.lt.s32.totalorder %s70_s23, %s70_s23 }
  0x1e   :  { %p5397_p11 = scmp.ne.s32.totalorder %s70_s23, %s5396_s3  ;;  %p5402_p13 = scmp.lt.s32.totalorder %s5396_s3, %s5396_s3 }
  0x20   :  { %p5403_p0 = por %p5402_p13, %p5401_p12 }
  0x22   :  { %p5404_p1 = pnand %p5403_p0, %p5397_p11 }
  0x24   :  { %5407 = shalt.err (!%p5404_p1)
}
  0x25   :  { %72 = dma.hbm_to_vmem [thread:$0]  %s7140_s5, 32, %s70_s23, [#allocation12]  }
  0x26   :  { %s5408_s22 = scalar_lea.hbm %s7142_s7, 512 }
  0x27   :  { %p5409_p2 = scmp.ne.s32.totalorder %s7142_s7, %s5408_s22  ;;  %p5412_p3 = scmp.lt.u32.totalorder %s5408_s22, %s7142_s7 }
  0x29   :  { %p5414_p4 = pnand %p5412_p3, %p5409_p2 }
  0x2b   :  { %5417 = shalt.err (!%p5414_p4)
}
  0x2c   :  { %s5418_s30 = scalar_lea.vmem %s91_s25, 512  ;;  %p5423_p6 = scmp.lt.s32.totalorder %s91_s25, %s91_s25 }
  0x2d   :  { %p5419_p5 = scmp.ne.s32.totalorder %s91_s25, %s5418_s30  ;;  %p5424_p7 = scmp.lt.s32.totalorder %s5418_s30, %s5418_s30 }
  0x2f   :  { %p5425_p8 = por %p5424_p7, %p5423_p6 }
  0x31   :  { %p5426_p9 = pnand %p5425_p8, %p5419_p5 }
  0x33   :  { %5429 = shalt.err (!%p5426_p9)
}
  0x34   :  { %96 = dma.hbm_to_vmem [thread:$0]  %s7142_s7, 512, %s91_s25, [#allocation15], %s5551_s18, %s5551_s18, %s5552_s19  }
  0x35   :  { %s5555_s14 = smov [#allocation5]   ;;  %s5430_s26 = scalar_lea.hbm %s7136_s1, 256 }
  0x36   :  { %s30_s15 = sshll.u32 %s5555_s14, 4  ;;  %p5431_p10 = scmp.ne.s32.totalorder %s7136_s1, %s5430_s26  ;;  %s31_s15 = int_to_ptr.vmem [resolvable:$true] %s30_s15 }
  0x37   :  { %p5434_p11 = scmp.lt.u32.totalorder %s5430_s26, %s7136_s1 }
  0x39   :  { %p5436_p12 = pnand %p5434_p11, %p5431_p10 }
  0x3b   :  { %5439 = shalt.err (!%p5436_p12)
}
  0x3c   :  { %s5440_s24 = scalar_lea.vmem %s31_s15, 256  ;;  %p5445_p0 = scmp.lt.s32.totalorder %s31_s15, %s31_s15 }
  0x3d   :  { %p5441_p13 = scmp.ne.s32.totalorder %s31_s15, %s5440_s24  ;;  %p5446_p1 = scmp.lt.s32.totalorder %s5440_s24, %s5440_s24 }
  0x3f   :  { %p5447_p2 = por %p5446_p1, %p5445_p0 }
  0x41   :  { %p5448_p3 = pnand %p5447_p2, %p5441_p13 }
  0x43   :  { %5451 = shalt.err (!%p5448_p3)
}
  0x44   :  { %s5556_s7 = smov 32   ;;  %s5557_s25 = smov 2  }
  0x45   :  { %36 = dma.hbm_to_vmem [thread:$0]  %s7136_s1, 256, %s31_s15, [#allocation6], %s5556_s7, %s5556_s7, %s5557_s25  }
  0x46   :  { %s5558_s29 = smov [#allocation10]   ;;  %s5559_s5 = smov [#allocation13]  }
  0x47   :  { %s56_s30 = sshll.u32 %s5558_s29, 4  ;;  %s78_s23 = sshll.u32 %s5559_s5, 4  ;;  %s57_s30 = int_to_ptr.vmem [resolvable:$true] %s56_s30  ;;  %s5696_s23 = int_to_ptr.vmem [resolvable:$true] %s78_s23 }
  0x48   :  { %s5452_s3 = scalar_lea.hbm %s7139_s4, 512 }
  0x49   :  { %p5453_p4 = scmp.ne.s32.totalorder %s7139_s4, %s5452_s3  ;;  %p5456_p5 = scmp.lt.u32.totalorder %s5452_s3, %s7139_s4 }
  0x4b   :  { %p5458_p6 = pnand %p5456_p5, %p5453_p4 }
  0x4d   :  { %5461 = shalt.err (!%p5458_p6)
}
  0x4e   :  { %s5462_s1 = scalar_lea.vmem %s57_s30, 512  ;;  %p5467_p8 = scmp.lt.s32.totalorder %s57_s30, %s57_s30 }
  0x4f   :  { %p5463_p7 = scmp.ne.s32.totalorder %s57_s30, %s5462_s1  ;;  %p5468_p9 = scmp.lt.s32.totalorder %s5462_s1, %s5462_s1 }
  0x51   :  { %p5469_p10 = por %p5468_p9, %p5467_p8 }
  0x53   :  { %p5470_p11 = pnand %p5469_p10, %p5463_p7 }
  0x55   :  { %5473 = shalt.err (!%p5470_p11)
}
  0x56   :  { %62 = dma.hbm_to_vmem [thread:$0]  %s7139_s4, 512, %s57_s30, [#allocation9], %s5551_s18, %s5551_s18, %s5552_s19  }
  0x57   :  { %s5474_s28 = scalar_lea.hbm %s7141_s6, 1024 }
  0x58   :  { %p5475_p12 = scmp.ne.s32.totalorder %s7141_s6, %s5474_s28  ;;  %p5478_p13 = scmp.lt.u32.totalorder %s5474_s28, %s7141_s6 }
  0x5a   :  { %p5480_p0 = pnand %p5478_p13, %p5475_p12 }
  0x5c   :  { %5483 = shalt.err (!%p5480_p0)
}
  0x5d   :  { %s5484_s3 = scalar_lea.vmem %s5696_s23, 1024  ;;  %p5489_p2 = scmp.lt.s32.totalorder %s5696_s23, %s5696_s23 }
  0x5e   :  { %p5485_p1 = scmp.ne.s32.totalorder %s5696_s23, %s5484_s3  ;;  %p5490_p3 = scmp.lt.s32.totalorder %s5484_s3, %s5484_s3 }
  0x60   :  { %p5491_p4 = por %p5490_p3, %p5489_p2 }
  0x62   :  { %p5492_p5 = pnand %p5491_p4, %p5485_p1 }
  0x64   :  { %5495 = shalt.err (!%p5492_p5)
}
  0x65   :  { %84 = dma.hbm_to_vmem [thread:$0]  %s7141_s6, 1024, %s5696_s23, [#allocation12], %s5551_s18, %s5551_s18, %s5552_s19  }
  0x66   :  { %s5560_s26 = smov [#allocation16]   ;;  %s5496_s1 = scalar_lea.hbm %s7145_s10, 1024 }
  0x67   :  { %s106_s17 = sshll.u32 %s5560_s26, 4  ;;  %p5497_p6 = scmp.ne.s32.totalorder %s7145_s10, %s5496_s1  ;;  %s107_s17 = int_to_ptr.vmem [resolvable:$true] %s106_s17 }
  0x68   :  { %p5500_p7 = scmp.lt.u32.totalorder %s5496_s1, %s7145_s10 }
  0x6a   :  { %p5502_p8 = pnand %p5500_p7, %p5497_p6 }
  0x6c   :  { %5505 = shalt.err (!%p5502_p8)
}
  0x6d   :  { %s5506_s28 = scalar_lea.vmem %s107_s17, 1024  ;;  %p5511_p10 = scmp.lt.s32.totalorder %s107_s17, %s107_s17 }
  0x6e   :  { %p5507_p9 = scmp.ne.s32.totalorder %s107_s17, %s5506_s28  ;;  %p5512_p11 = scmp.lt.s32.totalorder %s5506_s28, %s5506_s28 }
  0x70   :  { %p5513_p12 = por %p5512_p11, %p5511_p10 }
  0x72   :  { %p5514_p13 = pnand %p5513_p12, %p5507_p9 }
  0x74   :  { %5517 = shalt.err (!%p5514_p13)
}
  0x75   :  { %112 = dma.hbm_to_vmem [thread:$0]  %s7145_s10, 1024, %s107_s17, [#allocation15], %s5551_s18, %s5551_s18, %s5552_s19  }
  0x76   :  { %5540 = dma.done.wait [#allocation6], 256  }
  0x77   :  { %5541 = vsyncadd [#allocation6], 4294967040 }
  0x78   :  { %5542 = dma.done.wait [#allocation9], 2048  }
  0x79   :  { %5543 = vsyncadd [#allocation9], 4294965248 }
  0x7a   :  { %5544 = dma.done.wait [#allocation12], 1056  }
  0x7b   :  { %5545 = vsyncadd [#allocation12], 4294966240 }
  0x7c   :  { %5546 = dma.done.wait [#allocation15], 1536  }
  0x7d   :  { %5547 = vsyncadd [#allocation15], 4294965760  ;;  %v5748_v0 = vld [vmem:[#allocation5 + $0x4] sm:$0x3]  ;;  %v5753_v1 = vld [vmem:[%s7137_s2] sm:$0x3] }
  0x7e   :  { %v5755_v2 = vld [vmem:[#allocation5] sm:$0x3]  ;;  %v151_v3 = vmul.f32 %v5753_v1, %v5748_v0  ;;  %v5761_v5 = vld [vmem:[#allocation5 + $0x6] sm:$0x3]  ;;  %v5763_v6 = vld [vmem:[#allocation5 + $0x2] sm:$0x3]  ;;  %v159_v25 = vsub.f32 %v5748_v0, %v5753_v1  ;;  %v419_v48 = vpack.c.bf16 %v5753_v1, %v5753_v1 }
  0x7f   :  { %v149_v4 = vmul.f32 %v5753_v1, %v5755_v2  ;;  %v152_v7 = vmul.f32 %v5753_v1, %v5761_v5  ;;  %v150_v8 = vmul.f32 %v5753_v1, %v5763_v6  ;;  %v5033_v9 = vld [vmem:[#allocation8 + $0x4] ss:$8 sps:$4 sm:$0xff]   ;;  %v5771_v10 = vld [vmem:[#allocation5 + $0xa] sm:$0x3]  ;;  %v5773_v11 = vld [vmem:[#allocation5 + $0x8] sm:$0x3]  ;;  %v157_v20 = vsub.f32 %v5755_v2, %v5753_v1 }
  0x80   :  { %185 = vrot.lane.b32.xlu1 %v151_v3, %s5556_s7  ;;  %v5035_v12 = vld [vmem:[#allocation8] ss:$8 sps:$4 sm:$0xff]   ;;  %376 = vmatprep.subr.bf16.mxu0 %v5033_v9  ;;  %v5036_v13 = vld [vmem:[#allocation8 + $0x14] ss:$8 sps:$4 sm:$0xff]   ;;  %v154_v14 = vmul.f32 %v5753_v1, %v5771_v10  ;;  %v153_v15 = vmul.f32 %v5753_v1, %v5773_v11  ;;  %v5038_v18 = vld [vmem:[#allocation8 + $0x10] ss:$8 sps:$4 sm:$0xff]   ;;  %v158_v24 = vsub.f32 %v5763_v6, %v5753_v1 }
  0x81   :  { %181 = vrot.lane.b32.xlu0 %v149_v4, %s5556_s7  ;;  %377 = vmatpush1.bf16.msra.mxu0 %v5035_v12  ;;  %v5781_v16 = vld [vmem:[#allocation5 + $0xe] sm:$0x3]  ;;  %v5783_v17 = vld [vmem:[#allocation5 + $0xc] sm:$0x3]  ;;  %v5039_v19 = vld [vmem:[#allocation8 + $0x24] ss:$8 sps:$4 sm:$0xff]   ;;  %v160_v30 = vsub.f32 %v5761_v5, %v5753_v1  ;;  %v162_v32 = vsub.f32 %v5771_v10, %v5753_v1  ;;  %v161_v38 = vsub.f32 %v5773_v11, %v5753_v1 }
  0x82   :  { %378 = vmatprep.subr.bf16.mxu0 %v5036_v13  ;;  %v5041_v21 = vld [vmem:[#allocation8 + $0x20] ss:$8 sps:$4 sm:$0xff]   ;;  %v156_v22 = vmul.f32 %v5753_v1, %v5781_v16  ;;  %v155_v23 = vmul.f32 %v5753_v1, %v5783_v17  ;;  %v5042_v26 = vld [vmem:[#allocation8 + $0x34] ss:$8 sps:$4 sm:$0xff]   ;;  %v165_v27 = vand.u32 2147483647, %v157_v20  ;;  %v164_v42 = vsub.f32 %v5781_v16, %v5753_v1 }
  0x83   :  { %v5044_v28 = vld [vmem:[#allocation8 + $0x30] ss:$8 sps:$4 sm:$0xff]   ;;  %v166_v29 = vand.u32 2147483647, %v158_v24  ;;  %v167_v31 = vand.u32 2147483647, %v159_v25  ;;  %v163_v46 = vsub.f32 %v5783_v17, %v5753_v1 }
  0x84   :  { %187 = vrot.lane.b32.xlu1 %v152_v7, %s5556_s7  ;;  %v5045_v33 = vld [vmem:[#allocation8 + $0x44] ss:$8 sps:$4 sm:$0xff]   ;;  %v5049_v35 = vld [vmem:[#allocation8 + $0x40] ss:$8 sps:$4 sm:$0xff]   ;;  %s5561_s2 = smov 64   ;;  %v5562_v47 = vmov 0  }
  0x85   :  { %183 = vrot.lane.b32.xlu0 %v150_v8, %s5556_s7  ;;  %379 = vmatpush1.bf16.msra.mxu0 %v5038_v18  ;;  %v5047_v34 = vld [vmem:[#allocation10 + $0x4] ss:$8 sps:$4 sm:$0xff]   ;;  %v5050_v36 = vld [vmem:[#allocation10] ss:$8 sps:$4 sm:$0xff]   ;;  %v168_v37 = vand.u32 2147483647, %v160_v30 }
  0x86   :  { %380 = vmatprep.subr.bf16.mxu0 %v5039_v19  ;;  %v170_v39 = vand.u32 2147483647, %v162_v32  ;;  %447 = vmatprep.subr.bf16.mxu1 %v5047_v34  ;;  %v5051_v40 = vld [vmem:[#allocation8 + $0x54] ss:$8 sps:$4 sm:$0xff]   ;;  %v5055_v43 = vld [vmem:[#allocation8 + $0x50] ss:$8 sps:$4 sm:$0xff]  }
  0x87   :  { %448 = vmatpush1.bf16.msra.mxu1 %v5050_v36  ;;  %v5053_v41 = vld [vmem:[#allocation10 + $0x14] ss:$8 sps:$4 sm:$0xff]   ;;  %v5056_v44 = vld [vmem:[#allocation10 + $0x10] ss:$8 sps:$4 sm:$0xff]   ;;  %v169_v45 = vand.u32 2147483647, %v161_v38  ;;  %408 = vmatprep.mubr.bf16.mxu0 %v5562_v47 }
  0x88   :  { %191 = vrot.lane.b32.xlu1 %v154_v14, %s5556_s7  ;;  %449 = vmatprep.subr.bf16.mxu1 %v5053_v41  ;;  %v172_v49 = vand.u32 2147483647, %v164_v42  ;;  %vm237_vm0 = vcmask 261120   ;;  %v171_v50 = vand.u32 2147483647, %v163_v46  ;;  %v5563_v59 = vmov 0.0|0.0  }
  0x89   :  { %189 = vrot.lane.b32.xlu0 %v153_v15, %s5556_s7  ;;  %381 = vmatpush1.bf16.msra.mxu0 %v5041_v21  ;;  %v5819_v51 = vld [vmem:[#allocation13 + $0x4] ss:$8 sps:$4 sm:$0xff]   ;;  %v5821_v52 = vld [vmem:[#allocation13] ss:$8 sps:$4 sm:$0xff]   ;;  %v5824_v53 = vld [vmem:[#allocation13 + $0x14] ss:$8 sps:$4 sm:$0xff]   ;;  %v268_v14 = vlaneseq }
  0x8a   :  { %382 = vmatprep.subr.bf16.mxu0 %v5042_v26  ;;  %479 = vmatprep.mubr.bf16.mxu1 %v5562_v47  ;;  %v5830_v54 = vld [vmem:[#allocation13 + $0x10] ss:$8 sps:$4 sm:$0xff]   ;;  %v5835_v55 = vld [vmem:[#allocation13 + $0x24] ss:$8 sps:$4 sm:$0xff]   ;;  %v5840_v56 = vld [vmem:[#allocation13 + $0x20] ss:$8 sps:$4 sm:$0xff]  }
  0x8b   :  { %450 = vmatpush1.bf16.msra.mxu1 %v5056_v44  ;;  %4955 = vset.pattern.permute.xlu1 %v5562_v47  ;;  %v5843_v57 = vld [vmem:[#allocation13 + $0x34] ss:$8 sps:$4 sm:$0xff]   ;;  %v5846_v58 = vld [vmem:[#allocation13 + $0x30] ss:$8 sps:$4 sm:$0xff]   ;;  %v5564_v12 = vmov 1983009808  }
  0x8c   :  { %195 = vrot.lane.b32.xlu1 %v156_v22, %s5556_s7  ;;  %892 = vmatprep.subr.bf16.mxu1 %v5819_v51  ;;  %v266_v13 = vunpack.c.l.s4 %v5564_v12  ;;  %vm246_vm1 = vcmask 523264   ;;  %v5866_v22 = vshrl.u32 %v268_v14, 7  ;;  %vm372_vm2 = vcmask 785408   ;;  %s5566_s19 = smov 96  }
  0x8d   :  { %193 = vrot.lane.b32.xlu0 %v155_v23, %s5556_s7  ;;  %383 = vmatpush1.bf16.msra.mxu0 %v5044_v28  ;;  %v5565_v12 = vmov 1966171168   ;;  %vm990_vm6 = vcmask 253952  }
  0x8e   :  { %384 = vmatprep.subr.bf16.mxu0 %v5045_v33  ;;  %4825 = vmatmul.mubr.msk.bf16.vlgmr.msra.gmra.mrb[0].mxu1 %vm237_vm0, %v419_v48  ;;  %v267_v21 = vunpack.c.0.s8 %v266_v13  ;;  %v704_v13 = vunpack.c.l.s4 %v5565_v12 }
  0x8f   :  { %924 = vmatprep.mubr.bf16.mxu1 %v5562_v47  ;;  %893 = vmatpush1.bf16.msra.mxu1 %v5821_v52 }
  0x90   :  { %215 = vrot.lane.b32.xlu1 %v166_v29, %s5561_s2  ;;  %4956 = vset.pattern.permute.xlu0 %v5562_v47  ;;  %v5883_v33 = vsub.s32 %v267_v21, %v5866_v22 }
  0x91   :  { %213 = vrot.lane.b32.xlu0 %v165_v27, %s5561_s2  ;;  %385 = vmatpush1.bf16.msra.mxu0 %v5049_v35 }
  0x92   :  { %386 = vmatprep.subr.bf16.mxu0 %v5051_v40  ;;  %894 = vmatprep.subr.bf16.mxu1 %v5824_v53 }
  0x93   :  { %895 = vmatpush1.bf16.msra.mxu1 %v5830_v54 }
  0x94   :  { %219 = vrot.lane.b32.xlu1 %v168_v37, %s5561_s2  ;;  %896 = vmatprep.subr.bf16.mxu1 %v5835_v55 }
  0x95   :  { %217 = vrot.lane.b32.xlu0 %v167_v31, %s5561_s2  ;;  %387 = vmatpush1.bf16.msra.mxu0 %v5055_v43 }
  0x96   :  { %1063 = vmatprep.subr.bf16.mxu0 %v5819_v51 }
  0x97   :  { %897 = vmatpush1.bf16.msra.mxu1 %v5840_v56 }
  0x98   :  { %223 = vrot.lane.b32.xlu1 %v170_v39, %s5561_s2  ;;  %898 = vmatprep.subr.bf16.mxu1 %v5843_v57 }
  0x99   :  { %221 = vrot.lane.b32.xlu0 %v169_v45, %s5561_s2 }
  0x9b   :  { %899 = vmatpush1.bf16.msra.mxu1 %v5846_v58 }
  0x9c   :  { %227 = vrot.lane.b32.xlu1 %v172_v49, %s5561_s2  ;;  %1259 = vmatprep.subr.bf16.mxu1 %v5819_v51 }
  0x9d   :  { %225 = vrot.lane.b32.xlu0 %v171_v50, %s5561_s2 }
  0x9e   :  { %925 = vmatmul.mubr.bf16.vlgmr.msra.gmra.mrb[4].mxu1 %v5563_v59 }
  0x9f   :  { %1260 = vmatpush1.bf16.msra.mxu1 %v5821_v52  ;;  %1291 = vmatprep.mubr.bf16.mxu1 %v5562_v47 }
  0xa0   :  { %1261 = vmatprep.subr.bf16.mxu1 %v5824_v53 }
  0xa3   :  { %1262 = vmatpush1.bf16.msra.mxu1 %v5830_v54 }
  0xa4   :  { %1263 = vmatprep.subr.bf16.mxu1 %v5835_v55 }
  0xa7   :  { %1264 = vmatpush1.bf16.msra.mxu1 %v5840_v56 }
  0xa8   :  { %1265 = vmatprep.subr.bf16.mxu1 %v5843_v57 }
  0xab   :  { %1266 = vmatpush1.bf16.msra.mxu1 %v5846_v58 }
  0xac   :  { %1649 = vmatprep.subr.bf16.mxu1 %v5819_v51 }
  0xf2   :  { %v186_v60 = vpop.permute.xlu1 %185 }
  0xf3   :  { %v182_v61 = vpop.permute.xlu0 %181  ;;  %v240_v19 = vsel %vm237_vm0, %v5748_v0, %v186_v60 }
  0xf4   :  { %v238_v25 = vsel %vm237_vm0, %v5755_v2, %v182_v61 }
  0xf6   :  { %v188_v62 = vpop.permute.xlu1 %187 }
  0xf7   :  { %v184_v63 = vpop.permute.xlu0 %183  ;;  %v241_v20 = vsel %vm237_vm0, %v5761_v5, %v188_v62 }
  0xf8   :  { %v239_v26 = vsel %vm237_vm0, %v5763_v6, %v184_v63 }
  0xfa   :  { %v192_v1 = vpop.permute.xlu1 %191 }
  0xfb   :  { %v190_v3 = vpop.permute.xlu0 %189  ;;  %v243_v0 = vsel %vm237_vm0, %v5771_v10, %v192_v1  ;;  %v5909_v1 = vsub.s32 0, %v5866_v22 }
  0xfc   :  { %v242_v5 = vsel %vm237_vm0, %v5773_v11, %v190_v3  ;;  %v5912_v3 = vsub.s32 1, %v5866_v22 }
  0xfe   :  { %v196_v4 = vpop.permute.xlu1 %195 }
  0xff   :  { %v194_v7 = vpop.permute.xlu0 %193  ;;  %v245_v6 = vsel %vm237_vm0, %v5781_v16, %v196_v4  ;;  %v555_v4 = vld [vmem:[#allocation11] sm:$0x3] }
 0x100   :  { %v244_v10 = vsel %vm237_vm0, %v5783_v17, %v194_v7  ;;  %v560_v7 = vrot.slane %v555_v4, %v5909_v1 }
 0x102   :  { %v216_v8 = vpop.permute.xlu1 %215 }
 0x103   :  { %v214_v9 = vpop.permute.xlu0 %213  ;;  %v248_v29 = vsel %vm246_vm1, %v239_v26, %v216_v8  ;;  %v564_v8 = vrot.slane %v555_v4, %v5912_v3  ;;  %v705_v26 = vunpack.c.0.s8 %v704_v13 }
 0x104   :  { %v247_v30 = vsel %vm246_vm1, %v238_v25, %v214_v9 }
 0x105   :  { %v263_v11 = vcombine.low %v247_v30, %v248_v29  ;;  %v565_v9 = vcombine.low %v560_v7, %v564_v8 }
 0x106   :  { %v220_v15 = vpop.permute.xlu1 %219 }
 0x107   :  { %v218_v18 = vpop.permute.xlu0 %217  ;;  %v250_v23 = vsel %vm246_vm1, %v241_v20, %v220_v15  ;;  %v271_v41 = vrot.slane %v263_v11, %v5883_v33 }
 0x108   :  { %v249_v24 = vsel %vm246_vm1, %v240_v19, %v218_v18 }
 0x109   :  { %v264_v2 = vcombine.low %v249_v24, %v250_v23  ;;  %v572_v24 = vrot.slane %v565_v9, %v5883_v33 }
 0x10a   :  { %v224_v27 = vpop.permute.xlu1 %223 }
 0x10b   :  { %v222_v28 = vpop.permute.xlu0 %221  ;;  %v252_v31 = vsel %vm246_vm1, %v243_v0, %v224_v27  ;;  %v278_v39 = vrot.slane %v264_v2, %v5883_v33 }
 0x10c   :  { %v251_v32 = vsel %vm246_vm1, %v242_v5, %v222_v28 }
 0x10d   :  { %v280_v34 = vcombine.low %v251_v32, %v252_v31  ;;  %v279_v43 = vcombine.low %v271_v41, %v278_v39 }
 0x10e   :  { %v228_v35 = vpop.permute.xlu1 %227 }
 0x10f   :  { %v226_v36 = vpop.permute.xlu0 %225  ;;  %v254_v37 = vsel %vm246_vm1, %v245_v6, %v228_v35  ;;  %v288_v42 = vrot.slane %v280_v34, %v5883_v33 }
 0x110   :  { %v253_v38 = vsel %vm246_vm1, %v244_v10, %v226_v36  ;;  %v5923_v10 = vsub.s32 %v705_v26, %v5866_v22 }
 0x111   :  { %v281_v40 = vcombine.low %v253_v38, %v254_v37 }
 0x113   :  { %v295_v16 = vrot.slane %v281_v40, %v5883_v33 }
 0x115   :  { %v296_v44 = vcombine.low %v288_v42, %v295_v16 }
 0x117   :  { %v299_v17 = vpack.c.bf16 %v296_v44, %v279_v43 }
 0x119   :  { %4820 = vmatmul.mubr.msk.bf16.vlgmr.msra.gmra.mrb[0].mxu0 %vm372_vm2, %v299_v17 }
 0x11a   :  { %1064 = vmatpush1.bf16.msra.mxu0 %v5821_v52  ;;  %1095 = vmatprep.mubr.bf16.mxu0 %v5562_v47 }
 0x11b   :  { %1065 = vmatprep.subr.bf16.mxu0 %v5824_v53 }
 0x11e   :  { %1066 = vmatpush1.bf16.msra.mxu0 %v5830_v54 }
 0x11f   :  { %1067 = vmatprep.subr.bf16.mxu0 %v5835_v55 }
 0x122   :  { %1068 = vmatpush1.bf16.msra.mxu0 %v5840_v56 }
 0x123   :  { %1069 = vmatprep.subr.bf16.mxu0 %v5843_v57 }
 0x126   :  { %1070 = vmatpush1.bf16.msra.mxu0 %v5846_v58 }
 0x127   :  { %1455 = vmatprep.subr.bf16.mxu0 %v5819_v51 }
 0x161   :  { %v481_v45 = vpop.f32.mrb[0].mxu1 }
 0x162   :  { %v483_v46 = vpop.f32.mrb[1].mxu1 }
 0x163   :  { %v538_v48 = vcombine.low %v481_v45, %v483_v46  ;;  %v485_v49 = vpop.f32.mrb[2].mxu1 }
 0x164   :  { %v486_v50 = vpop.f32.mrb[3].mxu1 }
 0x165   :  { %v545_v21 = vrot.slane %v538_v48, %v5883_v33 }
 0x171   :  { %v5904_v60 = vpop.f32.mrb[4].mxu1 }
 0x172   :  { %v5906_v61 = vpop.f32.mrb[5].mxu1 }
 0x173   :  { %v930_v62 = vpop.f32.mrb[6].mxu1 }
 0x174   :  { %v931_v63 = vpop.f32.mrb[7].mxu1 }
 0x1ec   :  { %v410_v15 = vpop.f32.mrb[0].mxu0 }
 0x1ed   :  { %v412_v18 = vpop.f32.mrb[1].mxu0 }
 0x1ee   :  { %v492_v19 = vcombine.low %v410_v15, %v412_v18  ;;  %v493_v20 = vcombine.high %v410_v15, %v412_v18  ;;  %v414_v23 = vpop.f32.mrb[2].mxu0 }
 0x1ef   :  { %v416_v25 = vpop.f32.mrb[3].mxu0 }
 0x1f0   :  { %v500_v0 = vrot.slane %v492_v19, %v5883_v33  ;;  %v507_v5 = vrot.slane %v493_v20, %v5883_v33  ;;  %v510_v27 = vcombine.low %v414_v23, %v416_v25  ;;  %v511_v28 = vcombine.high %v414_v23, %v416_v25 }
 0x1f2   :  { %v508_v29 = vcombine.high %v500_v0, %v500_v0  ;;  %v509_v30 = vcombine.high %v507_v5, %v507_v5  ;;  %v547_v31 = vadd.f32 %v545_v21, %v500_v0  ;;  %v549_v32 = vadd.f32 %v545_v21, %v507_v5 }
 0x1f3   :  { %v518_v2 = vrot.slane %v510_v27, %v5883_v33  ;;  %v525_v6 = vrot.slane %v511_v28, %v5883_v33 }
 0x1f4   :  { %v548_v11 = vadd.f32 %v545_v21, %v508_v29  ;;  %v550_v34 = vadd.f32 %v545_v21, %v509_v30  ;;  %v574_v35 = vadd.f32 %v572_v24, %v547_v31  ;;  %v576_v36 = vadd.f32 %v572_v24, %v549_v32 }
 0x1f5   :  { %v526_v37 = vcombine.high %v518_v2, %v518_v2  ;;  %v527_v38 = vcombine.high %v525_v6, %v525_v6  ;;  %v551_v39 = vadd.f32 %v545_v21, %v518_v2  ;;  %v553_v40 = vadd.f32 %v545_v21, %v525_v6 }
 0x1f6   :  { %v575_v41 = vadd.f32 %v572_v24, %v548_v11  ;;  %v577_v42 = vadd.f32 %v572_v24, %v550_v34  ;;  %v596_v16 = vrot.slane %v574_v35, %v5883_v33  ;;  %v612_v43 = vrot.slane %v576_v36, %v5883_v33 }
 0x1f7   :  { %v552_v44 = vadd.f32 %v545_v21, %v526_v37  ;;  %v554_v17 = vadd.f32 %v545_v21, %v527_v38  ;;  %v578_v45 = vadd.f32 %v572_v24, %v551_v39  ;;  %v580_v46 = vadd.f32 %v572_v24, %v553_v40 }
 0x1f8   :  { %v597_v48 = vcombine.high %v596_v16, %v596_v16  ;;  %v604_v49 = vrot.slane %v575_v41, %v5883_v33  ;;  %v613_v50 = vcombine.high %v612_v43, %v612_v43  ;;  %v620_v62 = vrot.slane %v577_v42, %v5883_v33 }
 0x1f9   :  { %v579_v63 = vadd.f32 %v572_v24, %v552_v44  ;;  %v581_v4 = vadd.f32 %v572_v24, %v554_v17  ;;  %v628_v7 = vrot.slane %v578_v45, %v5883_v33  ;;  %v644_v8 = vrot.slane %v580_v46, %v5883_v33 }
 0x1fa   :  { %v605_v9 = vcombine.high %v604_v49, %v604_v49  ;;  %v621_v12 = vcombine.high %v620_v62, %v620_v62  ;;  %v4826_v13 = vpack.c.bf16 %v597_v48, %v596_v16  ;;  %v4828_v15 = vpack.c.bf16 %v613_v50, %v612_v43 }
 0x1fb   :  { %v629_v18 = vcombine.high %v628_v7, %v628_v7  ;;  %v636_v19 = vrot.slane %v579_v63, %v5883_v33  ;;  %v645_v20 = vcombine.high %v644_v8, %v644_v8  ;;  %v652_v21 = vrot.slane %v581_v4, %v5883_v33  ;;  %v5950_v63 = vld [vmem:[%s7135_s0] sm:$0x3] }
 0x1fc   :  { %v709_v23 = vrot.slane %v4826_v13, %v5923_v10  ;;  %v4827_v25 = vpack.c.bf16 %v605_v9, %v604_v49  ;;  %v739_v26 = vrot.slane %v4828_v15, %v5923_v10  ;;  %v4829_v24 = vpack.c.bf16 %v621_v12, %v620_v62 }
 0x1fd   :  { %v637_v0 = vcombine.high %v636_v19, %v636_v19  ;;  %v653_v5 = vcombine.high %v652_v21, %v652_v21  ;;  %v4830_v27 = vpack.c.bf16 %v629_v18, %v628_v7  ;;  %v4832_v28 = vpack.c.bf16 %v645_v20, %v644_v8 }
 0x1fe   :  { %4834 = vst.sshfl [vmem:[#allocation2] sm:$0x5 pattern:$0x73625140] %v709_v23  ;;  %v724_v29 = vrot.slane %v4827_v25, %v5923_v10  ;;  %v754_v30 = vrot.slane %v4829_v24, %v5923_v10  ;;  %vm847_vm3 = vcmp.gt.s32.totalorder %v5950_v63, 7  ;;  %vm846_vm4 = vcmp.gt.s32.totalorder %v5950_v63, 0 }
 0x1ff   :  { %4836 = vst.sshfl [vmem:[#allocation2 + $0x4] sm:$0x5 pattern:$0x73625140] %v739_v26  ;;  %v769_v31 = vrot.slane %v4830_v27, %v5923_v10  ;;  %v4831_v32 = vpack.c.bf16 %v637_v0, %v636_v19  ;;  %v799_v2 = vrot.slane %v4832_v28, %v5923_v10  ;;  %v4833_v6 = vpack.c.bf16 %v653_v5, %v652_v21 }
 0x200   :  { %4835 = vst.sshfl [vmem:[#allocation2 + $0x2] sm:$0x5 pattern:$0x73625140] %v724_v29  ;;  %v1020_v4 = vsel %vm847_vm3, 1, %v5562_v47  ;;  %v960_v20 = vsel %vm846_vm4, 1, %v5562_v47 }
 0x201   :  { %4837 = vst.sshfl [vmem:[#allocation2 + $0x6] sm:$0x5 pattern:$0x73625140] %v754_v30  ;;  %v784_v11 = vrot.slane %v4831_v32, %v5923_v10  ;;  %v814_v34 = vrot.slane %v4833_v6, %v5923_v10  ;;  %vm1053_vm8 = vcmp.gt.s32.totalorder %v5950_v63, 6  ;;  %vm1052_vm9 = vcmp.gt.s32.totalorder %v5950_v63, 1 }
 0x202   :  { %4838 = vst.sshfl [vmem:[#allocation2 + $0x8] sm:$0x5 pattern:$0x73625140] %v769_v31  ;;  %vm1249_vm12 = vcmp.gt.s32.totalorder %v5950_v63, 5  ;;  %vm1248_vm13 = vcmp.gt.s32.totalorder %v5950_v63, 2 }
 0x203   :  { %4840 = vst.sshfl [vmem:[#allocation2 + $0xc] sm:$0x5 pattern:$0x73625140] %v799_v2  ;;  %vm1445_vm2 = vcmp.gt.s32.totalorder %v5950_v63, 4  ;;  %vm1444_vm3 = vcmp.gt.s32.totalorder %v5950_v63, 3 }
 0x204   :  { %4839 = vst.sshfl [vmem:[#allocation2 + $0xa] sm:$0x5 pattern:$0x73625140] %v784_v11 }
 0x205   :  { %4841 = vst.sshfl [vmem:[#allocation2 + $0xe] sm:$0x5 pattern:$0x73625140] %v814_v34  ;;  %v933_v35 = vld [vmem:[#allocation2] sm:$0x1] }
 0x206   :  { %v934_v36 = vunpack.c.l.bf16 %v933_v35 }
 0x208   :  { %v935_v37 = vadd.f32 %v934_v36, %v5904_v60 }
 0x20a   :  { %5093 = vtanh.f32 %v935_v37  ;;  %v4850_v16 = vmul.f32 -1.442695, %v935_v37 }
 0x20c   :  { %v993_v38 = vld [vmem:[#allocation2 + $0xf] sm:$0x1] }
 0x20d   :  { %v994_v39 = vunpack.c.l.bf16 %v993_v38 }
 0x20f   :  { %v995_v40 = vadd.f32 %v994_v39, %v5906_v61 }
 0x211   :  { %5095 = vtanh.f32 %v995_v40  ;;  %v4851_v43 = vmul.f32 -1.442695, %v995_v40 }
 0x212   :  { %5097 = vpow2.f32 %v4850_v16 }
 0x213   :  { %5099 = vpow2.f32 %v4851_v43 }
 0x214   :  { %v5094_v41 = vpop.eup %5093 }
 0x215   :  { %945 = vrot.lane.b32.xlu1 %v5094_v41, %s5561_s2 }
 0x21b   :  { %v5096_v42 = vpop.eup %5095 }
 0x21c   :  { %1005 = vrot.lane.b32.xlu0 %v5096_v42, %s5561_s2  ;;  %v5098_v44 = vpop.eup %5097 }
 0x21d   :  { %v939_v17 = vadd.f32 1.0, %v5098_v44  ;;  %v5100_v45 = vpop.eup %5099  ;;  %v1177_v44 = vld [vmem:[#allocation2 + $0xd] sm:$0x1] }
 0x21e   :  { %v999_v60 = vadd.f32 1.0, %v5100_v45 }
 0x21f   :  { %5101 = vrcp.f32 %v939_v17  ;;  %v1105_v17 = vld [vmem:[#allocation2 + $0x2] sm:$0x1] }
 0x220   :  { %5103 = vrcp.f32 %v999_v60  ;;  %v1178_v60 = vunpack.c.l.bf16 %v1177_v44 }
 0x229   :  { %v5102_v46 = vpop.eup %5101 }
 0x22a   :  { %v5104_v49 = vpop.eup %5103  ;;  %v943_v12 = vmul.f32 0.0, %v5102_v46 }
 0x22b   :  { %v1003_v7 = vmul.f32 0.0, %v5104_v49 }
 0x287   :  { %v946_v48 = vpop.permute.xlu1 %945 }
 0x288   :  { %v948_v61 = vmul.f32 %v5102_v46, %v946_v48  ;;  %v1106_v48 = vunpack.c.l.bf16 %v1105_v17 }
 0x28a   :  { %950 = vrot.lane.b32.xlu1 %v948_v61, %s5556_s7 }
 0x28e   :  { %v1006_v50 = vpop.permute.xlu0 %1005  ;;  %1022 = vperm.xlu1 %4955, %v1020_v4  }
 0x28f   :  { %v1008_v62 = vmul.f32 %v5104_v49, %v1006_v50 }
 0x291   :  { %1010 = vrot.lane.b32.xlu0 %v1008_v62, %s5556_s7 }
 0x2fc   :  { %v951_v8 = vpop.permute.xlu1 %950 }
 0x2fd   :  { %v953_v15 = vadd.f32 %v951_v8, %v943_v12 }
 0x2ff   :  { %v984_v32 = vrot.slane %v953_v15, %v5883_v33 }
 0x303   :  { %v1011_v9 = vpop.permute.xlu0 %1010 }
 0x304   :  { %v1013_v13 = vadd.f32 %v1011_v9, %v1003_v7 }
 0x306   :  { %5105 = vtanh.f32 %v1013_v13  ;;  %v1044_v31 = vrot.slane %v1013_v13, %v5883_v33 }
 0x307   :  { %5107 = vtanh.f32 %v953_v15 }
 0x30d   :  { %v5960_v24 = vpop.permute.xlu1 %1022 }
 0x30e   :  { %vm1024_vm5 = vcmp.eq.s32.totalorder %v5960_v24, 1 }
 0x310   :  { %v5106_v18 = vpop.eup %5105 }
 0x311   :  { %1016 = vrot.lane.b32.xlu0 %v5106_v18, %s5561_s2  ;;  %v5108_v19 = vpop.eup %5107 }
 0x315   :  { %956 = vrot.lane.b32.xlu0 %v5108_v19, %s5561_s2 }
 0x319   :  { %962 = vperm.xlu0 %4956, %v960_v20  }
 0x383   :  { %v1017_v21 = vpop.permute.xlu0 %1016 }
 0x384   :  { %v1019_v23 = vmul.f32 %v5104_v49, %v1017_v21 }
 0x386   :  { %v1032_v25 = vrot.slane %v1019_v23, %v5883_v33 }
 0x387   :  { %v957_v26 = vpop.permute.xlu0 %956 }
 0x388   :  { %1033 = vrot.lane.b32.xlu1 %v1032_v25, %s5556_s7  ;;  %v959_v0 = vmul.f32 %v5102_v46, %v957_v26 }
 0x38a   :  { %v972_v27 = vrot.slane %v959_v0, %v5883_v33  ;;  %v1215_v0 = vsel %vm1053_vm8, 1, %v5562_v47 }
 0x398   :  { %v5977_v2 = vpop.permute.xlu0 %962 }
 0x399   :  { %vm964_vm7 = vcmp.eq.s32.totalorder %v5977_v2, 1 }
 0x3fa   :  { %v1034_v5 = vpop.permute.xlu1 %1033 }
 0x3fb   :  { %v5966_v28 = vsel %vm1024_vm5, %v1034_v5, 0.0 }
 0x3fc   :  { %v1049_v29 = vpack.c.bf16 %v5966_v28, %v5966_v28  ;;  %v4957_v30 = vpack.i.bf16 %v5966_v28, %v972_v27 }
 0x3fe   :  { %1051 = vst.msk [vmem:[#allocation4 + $0x7] sm:$0x1] %vm990_vm6, %v1049_v29  ;;  %4958 = vrot.lane.b32.xlu1 %v4957_v30, %s5556_s7 }
 0x402   :  { %1045 = vrot.lane.b32.xlu1 %v1044_v31, %s5566_s19 }
 0x406   :  { %985 = vrot.lane.b32.xlu1 %v984_v32, %s5566_s19 }
 0x470   :  { %v4959_v6 = vpop.permute.xlu1 %4958 }
 0x471   :  { %v4961_v11 = vunpack.i.h.bf16 %v4959_v6  ;;  %v4960_v34 = vunpack.i.l.bf16 %v4959_v6 }
 0x473   :  { %v5982_v35 = vsel %vm964_vm7, %v4960_v34, 0.0 }
 0x474   :  { %v989_v36 = vpack.c.bf16 %v5982_v35, %v5982_v35  ;;  %v1046_v37 = vpop.permute.xlu1 %1045  ;;  %v1058_v38 = vsel %vm237_vm0, %v5982_v35, %v4961_v11 }
 0x475   :  { %v5990_v39 = vsel %vm1024_vm5, %v1046_v37, 0.0  ;;  %v1059_v40 = vpack.c.bf16 %v1058_v38, %v1058_v38  ;;  %v1143_v37 = vsel %vm1052_vm9, 1, %v5562_v47  ;;  %vm4417_vm9 = vcmask 254976  }
 0x476   :  { %991 = vst.msk [vmem:[#allocation3] sm:$0x1] %vm990_vm6, %v989_v36  ;;  %v1194_v41 = vrot.slane %v5990_v39, %v5883_v33 }
 0x477   :  { %4852 = vmatmul.mubr.msk.bf16.vlgmr.msra.gmra.mrb[4].mxu0 %vm246_vm1, %v1059_v40 }
 0x478   :  { %1195 = vrot.lane.b32.xlu1 %v1194_v41, %s5556_s7  ;;  %v986_v42 = vpop.permute.xlu1 %985  ;;  %1456 = vmatpush1.bf16.msra.mxu0 %v5821_v52 }
 0x479   :  { %v6000_v16 = vsel %vm964_vm7, %v986_v42, 0.0  ;;  %1457 = vmatprep.subr.bf16.mxu0 %v5824_v53  ;;  %1487 = vmatprep.mubr.bf16.mxu0 %v5562_v47 }
 0x47a   :  { %v1122_v43 = vrot.slane %v6000_v16, %v5883_v33 }
 0x47c   :  { %1123 = vrot.lane.b32.xlu1 %v1122_v43, %s5556_s7  ;;  %1458 = vmatpush1.bf16.msra.mxu0 %v5830_v54 }
 0x47d   :  { %1459 = vmatprep.subr.bf16.mxu0 %v5835_v55 }
 0x480   :  { %1460 = vmatpush1.bf16.msra.mxu0 %v5840_v56 }
 0x481   :  { %1461 = vmatprep.subr.bf16.mxu0 %v5843_v57 }
 0x484   :  { %1462 = vmatpush1.bf16.msra.mxu0 %v5846_v58 }
 0x485   :  { %1831 = vmatprep.subr.bf16.mxu0 %v5819_v51 }
 0x4ea   :  { %v1196_v5 = vpop.permute.xlu1 %1195 }
 0x4ee   :  { %v1124_v31 = vpop.permute.xlu1 %1123 }
 0x54a   :  { %v1097_v45 = vpop.f32.mrb[4].mxu0 }
 0x54b   :  { %v1099_v46 = vpop.f32.mrb[5].mxu0  ;;  %v1107_v62 = vadd.f32 %v1106_v48, %v1097_v45 }
 0x54c   :  { %v1179_v61 = vadd.f32 %v1178_v60, %v1099_v46  ;;  %v1101_v49 = vpop.f32.mrb[6].mxu0 }
 0x54d   :  { %v1102_v50 = vpop.f32.mrb[7].mxu0  ;;  %v4853_v9 = vmul.f32 -1.442695, %v1107_v62 }
 0x54e   :  { %5109 = vtanh.f32 %v1179_v61  ;;  %v4854_v8 = vmul.f32 -1.442695, %v1179_v61 }
 0x54f   :  { %5111 = vtanh.f32 %v1107_v62 }
 0x550   :  { %5113 = vpow2.f32 %v4854_v8 }
 0x551   :  { %5115 = vpow2.f32 %v4853_v9 }
 0x558   :  { %v5110_v4 = vpop.eup %5109 }
 0x559   :  { %1200 = vrot.lane.b32.xlu0 %v5110_v4, %s5561_s2  ;;  %v5112_v7 = vpop.eup %5111 }
 0x55a   :  { %v5114_v12 = vpop.eup %5113 }
 0x55b   :  { %v1183_v13 = vadd.f32 1.0, %v5114_v12  ;;  %v5116_v15 = vpop.eup %5115 }
 0x55c   :  { %v1111_v18 = vadd.f32 1.0, %v5116_v15 }
 0x55d   :  { %1128 = vrot.lane.b32.xlu0 %v5112_v7, %s5561_s2  ;;  %5117 = vrcp.f32 %v1183_v13 }
 0x55e   :  { %5119 = vrcp.f32 %v1111_v18 }
 0x567   :  { %v5118_v19 = vpop.eup %5117 }
 0x568   :  { %v5120_v23 = vpop.eup %5119  ;;  %v1198_v27 = vmul.f32 %v5118_v19, %v1196_v5 }
 0x569   :  { %v1126_v32 = vmul.f32 %v5120_v23, %v1124_v31 }
 0x5cb   :  { %v1201_v20 = vpop.permute.xlu0 %1200 }
 0x5cc   :  { %v1203_v21 = vmul.f32 %v5118_v19, %v1201_v20 }
 0x5ce   :  { %1205 = vrot.lane.b32.xlu0 %v1203_v21, %s5556_s7 }
 0x5cf   :  { %v1129_v25 = vpop.permute.xlu0 %1128 }
 0x5d0   :  { %v1131_v26 = vmul.f32 %v5120_v23, %v1129_v25 }
 0x5d2   :  { %1133 = vrot.lane.b32.xlu0 %v1131_v26, %s5556_s7 }
 0x5d6   :  { %1217 = vperm.xlu0 %4956, %v1215_v0  }
 0x640   :  { %v1206_v29 = vpop.permute.xlu0 %1205 }
 0x641   :  { %v1208_v30 = vadd.f32 %v1206_v29, %v1198_v27 }
 0x643   :  { %5121 = vtanh.f32 %v1208_v30  ;;  %v1239_v38 = vrot.slane %v1208_v30, %v5883_v33 }
 0x644   :  { %v1134_v6 = vpop.permute.xlu0 %1133 }
 0x645   :  { %v1136_v11 = vadd.f32 %v1134_v6, %v1126_v32 }
 0x647   :  { %5123 = vtanh.f32 %v1136_v11  ;;  %v1167_v40 = vrot.slane %v1136_v11, %v5883_v33 }
 0x64d   :  { %v5122_v34 = vpop.eup %5121 }
 0x64e   :  { %1211 = vrot.lane.b32.xlu1 %v5122_v34, %s5561_s2 }
 0x651   :  { %v5124_v36 = vpop.eup %5123 }
 0x652   :  { %1139 = vrot.lane.b32.xlu1 %v5124_v36, %s5561_s2 }
 0x655   :  { %v6031_v45 = vpop.permute.xlu0 %1217 }
 0x656   :  { %1145 = vperm.xlu1 %4955, %v1143_v37   ;;  %vm1219_vm10 = vcmp.eq.s32.totalorder %v6031_v45, 1 }
 0x65a   :  { %1240 = vrot.lane.b32.xlu1 %v1239_v38, %s5566_s19 }
 0x65e   :  { %1168 = vrot.lane.b32.xlu1 %v1167_v40, %s5566_s19 }
 0x6c0   :  { %v1212_v41 = vpop.permute.xlu1 %1211 }
 0x6c1   :  { %v1214_v42 = vmul.f32 %v5118_v19, %v1212_v41 }
 0x6c3   :  { %v1227_v43 = vrot.slane %v1214_v42, %v5883_v33 }
 0x6c4   :  { %v1140_v44 = vpop.permute.xlu1 %1139 }
 0x6c5   :  { %1228 = vrot.lane.b32.xlu0 %v1227_v43, %s5556_s7 }
 0x6d5   :  { %v6029_v17 = vpop.permute.xlu1 %1145 }
 0x6d6   :  { %vm1147_vm11 = vcmp.eq.s32.totalorder %v6029_v17, 1  ;;  %v4403_v17 = vld [vmem:[%s7146_s11] sm:$0x3] }
 0x6d9   :  { %v1241_v60 = vpop.permute.xlu1 %1240 }
 0x6da   :  { %v6037_v46 = vsel %vm1219_vm10, %v1241_v60, %v5990_v39  ;;  %v1142_v39 = vmul.f32 %v5120_v23, %v1140_v44  ;;  %v1301_v23 = vld [vmem:[#allocation2 + $0x4] sm:$0x1] }
 0x6db   :  { %v1390_v48 = vrot.slane %v6037_v46, %v5883_v33  ;;  %v1302_v5 = vunpack.c.l.bf16 %v1301_v23 }
 0x6dc   :  { %v1155_v4 = vrot.slane %v1142_v39, %v5883_v33 }
 0x6dd   :  { %1391 = vrot.lane.b32.xlu1 %v1390_v48, %s5556_s7  ;;  %v1169_v61 = vpop.permute.xlu1 %1168 }
 0x6de   :  { %v6046_v49 = vsel %vm1147_vm11, %v1169_v61, %v6000_v16  ;;  %v1411_v61 = vsel %vm1249_vm12, 1, %v5562_v47  ;;  %vm4703_vm12 = vcmask 58368  }
 0x6df   :  { %v1318_v50 = vrot.slane %v6046_v49, %v5883_v33 }
 0x6e1   :  { %1319 = vrot.lane.b32.xlu1 %v1318_v50, %s5556_s7 }
 0x737   :  { %v1229_v62 = vpop.permute.xlu0 %1228 }
 0x738   :  { %v1244_v7 = vsel %vm1219_vm10, %v1229_v62, 0.0  ;;  %v6057_v8 = vsel %vm1219_vm10, %v1229_v62, %v5966_v28 }
 0x739   :  { %v1245_v9 = vpack.c.bf16 %v1244_v7, %v1244_v7  ;;  %v4962_v16 = vpack.i.bf16 %v6057_v8, %v1155_v4 }
 0x73b   :  { %1247 = vst.msk [vmem:[#allocation4 + $0x6] sm:$0x1] %vm990_vm6, %v1245_v9  ;;  %4963 = vrot.lane.b32.xlu0 %v4962_v16, %s5556_s7 }
 0x74f   :  { %v1392_v50 = vpop.permute.xlu1 %1391 }
 0x753   :  { %v1320_v7 = vpop.permute.xlu1 %1319 }
 0x7ad   :  { %v4964_v12 = vpop.permute.xlu0 %4963 }
 0x7ae   :  { %v4966_v13 = vunpack.i.h.bf16 %v4964_v12  ;;  %v4965_v15 = vunpack.i.l.bf16 %v4964_v12 }
 0x7b0   :  { %v6065_v18 = vsel %vm1147_vm11, %v4965_v15, %v5982_v35  ;;  %v1172_v19 = vsel %vm1147_vm11, %v4965_v15, 0.0  ;;  %v1373_v35 = vld [vmem:[#allocation2 + $0xb] sm:$0x1] }
 0x7b1   :  { %v1173_v28 = vpack.c.bf16 %v1172_v19, %v1172_v19  ;;  %v1254_v20 = vsel %vm237_vm0, %v6065_v18, %v4966_v13  ;;  %v1374_v26 = vunpack.c.l.bf16 %v1373_v35  ;;  %v1339_v19 = vsel %vm1248_vm13, 1, %v5562_v47 }
 0x7b2   :  { %v1255_v21 = vpack.c.bf16 %v1254_v20, %v1254_v20 }
 0x7b3   :  { %1175 = vst.msk [vmem:[#allocation3 + $0x1] sm:$0x1] %vm990_vm6, %v1173_v28 }
 0x7b4   :  { %4855 = vmatmul.mubr.msk.bf16.vlgmr.msra.gmra.mrb[8].mxu1 %vm246_vm1, %v1255_v21 }
 0x7b5   :  { %1650 = vmatpush1.bf16.msra.mxu1 %v5821_v52  ;;  %1681 = vmatprep.mubr.bf16.mxu1 %v5562_v47 }
 0x7b6   :  { %1651 = vmatprep.subr.bf16.mxu1 %v5824_v53 }
 0x7b9   :  { %1652 = vmatpush1.bf16.msra.mxu1 %v5830_v54 }
 0x7ba   :  { %1653 = vmatprep.subr.bf16.mxu1 %v5835_v55 }
 0x7bd   :  { %1654 = vmatpush1.bf16.msra.mxu1 %v5840_v56 }
 0x7be   :  { %1655 = vmatprep.subr.bf16.mxu1 %v5843_v57 }
 0x7c1   :  { %1656 = vmatpush1.bf16.msra.mxu1 %v5846_v58 }
 0x7c2   :  { %2013 = vmatprep.subr.bf16.mxu1 %v5819_v51 }
 0x887   :  { %v1293_v25 = vpop.f32.mrb[8].mxu1 }
 0x888   :  { %v1295_v0 = vpop.f32.mrb[9].mxu1  ;;  %v1303_v31 = vadd.f32 %v1302_v5, %v1293_v25 }
 0x889   :  { %v1375_v27 = vadd.f32 %v1374_v26, %v1295_v0  ;;  %v1297_v29 = vpop.f32.mrb[10].mxu1 }
 0x88a   :  { %v1298_v30 = vpop.f32.mrb[11].mxu1  ;;  %v4856_v34 = vmul.f32 -1.442695, %v1303_v31 }
 0x88b   :  { %5125 = vtanh.f32 %v1375_v27  ;;  %v4857_v11 = vmul.f32 -1.442695, %v1375_v27 }
 0x88c   :  { %5127 = vtanh.f32 %v1303_v31 }
 0x88d   :  { %5129 = vpow2.f32 %v4857_v11 }
 0x88e   :  { %5131 = vpow2.f32 %v4856_v34 }
 0x895   :  { %v5126_v32 = vpop.eup %5125 }
 0x896   :  { %1396 = vrot.lane.b32.xlu0 %v5126_v32, %s5561_s2  ;;  %v5128_v6 = vpop.eup %5127 }
 0x897   :  { %v5130_v36 = vpop.eup %5129 }
 0x898   :  { %v1379_v37 = vadd.f32 1.0, %v5130_v36  ;;  %v5132_v38 = vpop.eup %5131 }
 0x899   :  { %v1307_v40 = vadd.f32 1.0, %v5132_v38 }
 0x89a   :  { %1324 = vrot.lane.b32.xlu0 %v5128_v6, %s5561_s2  ;;  %5133 = vrcp.f32 %v1379_v37 }
 0x89b   :  { %5135 = vrcp.f32 %v1307_v40 }
 0x8a4   :  { %v5134_v41 = vpop.eup %5133 }
 0x8a5   :  { %v5136_v44 = vpop.eup %5135  ;;  %v1394_v39 = vmul.f32 %v5134_v41, %v1392_v50 }
 0x8a6   :  { %v1322_v9 = vmul.f32 %v5136_v44, %v1320_v7 }
 0x908   :  { %v1397_v42 = vpop.permute.xlu0 %1396 }
 0x909   :  { %v1399_v43 = vmul.f32 %v5134_v41, %v1397_v42 }
 0x90b   :  { %1401 = vrot.lane.b32.xlu0 %v1399_v43, %s5556_s7 }
 0x90c   :  { %v1325_v60 = vpop.permute.xlu0 %1324 }
 0x90d   :  { %v1327_v48 = vmul.f32 %v5136_v44, %v1325_v60 }
 0x90f   :  { %1329 = vrot.lane.b32.xlu0 %v1327_v48, %s5556_s7  ;;  %v1497_v48 = vld [vmem:[#allocation2 + $0x6] sm:$0x1] }
 0x913   :  { %1413 = vperm.xlu0 %4956, %v1411_v61  }
 0x97d   :  { %v1402_v62 = vpop.permute.xlu0 %1401 }
 0x97e   :  { %v1404_v4 = vadd.f32 %v1402_v62, %v1394_v39  ;;  %v1498_v39 = vunpack.c.l.bf16 %v1497_v48 }
 0x980   :  { %5137 = vtanh.f32 %v1404_v4  ;;  %v1435_v28 = vrot.slane %v1404_v4, %v5883_v33 }
 0x981   :  { %v1330_v16 = vpop.permute.xlu0 %1329 }
 0x982   :  { %v1332_v12 = vadd.f32 %v1330_v16, %v1322_v9 }
 0x984   :  { %5139 = vtanh.f32 %v1332_v12  ;;  %v1363_v20 = vrot.slane %v1332_v12, %v5883_v33 }
 0x98a   :  { %v5138_v13 = vpop.eup %5137 }
 0x98b   :  { %1407 = vrot.lane.b32.xlu1 %v5138_v13, %s5561_s2 }
 0x98e   :  { %v5140_v15 = vpop.eup %5139 }
 0x98f   :  { %1335 = vrot.lane.b32.xlu1 %v5140_v15, %s5561_s2 }
 0x992   :  { %v6100_v0 = vpop.permute.xlu0 %1413 }
 0x993   :  { %1341 = vperm.xlu1 %4955, %v1339_v19   ;;  %vm1415_vm14 = vcmp.eq.s32.totalorder %v6100_v0, 1 }
 0x997   :  { %1436 = vrot.lane.b32.xlu1 %v1435_v28, %s5566_s19 }
 0x99b   :  { %1364 = vrot.lane.b32.xlu1 %v1363_v20, %s5566_s19 }
 0x9fd   :  { %v1408_v21 = vpop.permute.xlu1 %1407 }
 0x9fe   :  { %v1410_v35 = vmul.f32 %v5134_v41, %v1408_v21  ;;  %v1607_v21 = vsel %vm1445_vm2, 1, %v5562_v47 }
 0xa00   :  { %v1423_v23 = vrot.slane %v1410_v35, %v5883_v33 }
 0xa01   :  { %v1336_v25 = vpop.permute.xlu1 %1335 }
 0xa02   :  { %1424 = vrot.lane.b32.xlu0 %v1423_v23, %s5556_s7 }
 0xa12   :  { %v6098_v26 = vpop.permute.xlu1 %1341 }
 0xa13   :  { %vm1343_vm15 = vcmp.eq.s32.totalorder %v6098_v26, 1 }
 0xa16   :  { %v1437_v5 = vpop.permute.xlu1 %1436 }
 0xa17   :  { %v6106_v27 = vsel %vm1415_vm14, %v1437_v5, %v6037_v46  ;;  %v1338_v46 = vmul.f32 %v5136_v44, %v1336_v25 }
 0xa18   :  { %v1586_v29 = vrot.slane %v6106_v27, %v5883_v33 }
 0xa19   :  { %v1351_v11 = vrot.slane %v1338_v46, %v5883_v33 }
 0xa1a   :  { %1587 = vrot.lane.b32.xlu1 %v1586_v29, %s5556_s7  ;;  %v1365_v30 = vpop.permute.xlu1 %1364 }
 0xa1b   :  { %v6115_v31 = vsel %vm1343_vm15, %v1365_v30, %v6046_v49 }
 0xa1c   :  { %v1514_v32 = vrot.slane %v6115_v31, %v5883_v33 }
 0xa1e   :  { %1515 = vrot.lane.b32.xlu1 %v1514_v32, %s5556_s7 }
 0xa74   :  { %v1425_v6 = vpop.permute.xlu0 %1424 }
 0xa75   :  { %v1440_v34 = vsel %vm1415_vm14, %v1425_v6, 0.0  ;;  %v6126_v36 = vsel %vm1415_vm14, %v1425_v6, %v6057_v8 }
 0xa76   :  { %v1441_v37 = vpack.c.bf16 %v1440_v34, %v1440_v34  ;;  %v4967_v49 = vpack.i.bf16 %v6126_v36, %v1351_v11  ;;  %v1535_v34 = vsel %vm1444_vm3, 1, %v5562_v47 }
 0xa78   :  { %1443 = vst.msk [vmem:[#allocation4 + $0x5] sm:$0x1] %vm990_vm6, %v1441_v37  ;;  %4968 = vrot.lane.b32.xlu0 %v4967_v49, %s5556_s7 }
 0xa8c   :  { %v1588_v35 = vpop.permute.xlu1 %1587 }
 0xa90   :  { %v1516_v29 = vpop.permute.xlu1 %1515 }
 0xaea   :  { %v4969_v38 = vpop.permute.xlu0 %4968 }
 0xaeb   :  { %v4971_v40 = vunpack.i.h.bf16 %v4969_v38  ;;  %v4970_v41 = vunpack.i.l.bf16 %v4969_v38 }
 0xaed   :  { %v6134_v42 = vsel %vm1343_vm15, %v4970_v41, %v6065_v18  ;;  %v1368_v43 = vsel %vm1343_vm15, %v4970_v41, 0.0  ;;  %v1569_v18 = vld [vmem:[#allocation2 + $0x9] sm:$0x1] }
 0xaee   :  { %v1369_v8 = vpack.c.bf16 %v1368_v43, %v1368_v43  ;;  %v1450_v44 = vsel %vm237_vm0, %v6134_v42, %v4971_v40 }
 0xaef   :  { %v1451_v60 = vpack.c.bf16 %v1450_v44, %v1450_v44 }
 0xaf0   :  { %1371 = vst.msk [vmem:[#allocation3 + $0x2] sm:$0x1] %vm990_vm6, %v1369_v8 }
 0xaf1   :  { %4858 = vmatmul.mubr.msk.bf16.vlgmr.msra.gmra.mrb[8].mxu0 %vm246_vm1, %v1451_v60 }
 0xaf2   :  { %1832 = vmatpush1.bf16.msra.mxu0 %v5821_v52  ;;  %1863 = vmatprep.mubr.bf16.mxu0 %v5562_v47  ;;  %v1570_v52 = vunpack.c.l.bf16 %v1569_v18 }
 0xaf3   :  { %1833 = vmatprep.subr.bf16.mxu0 %v5824_v53 }
 0xaf6   :  { %1834 = vmatpush1.bf16.msra.mxu0 %v5830_v54 }
 0xaf7   :  { %1835 = vmatprep.subr.bf16.mxu0 %v5835_v55 }
 0xafa   :  { %1836 = vmatpush1.bf16.msra.mxu0 %v5840_v56 }
 0xafb   :  { %1837 = vmatprep.subr.bf16.mxu0 %v5843_v57 }
 0xafe   :  { %1838 = vmatpush1.bf16.msra.mxu0 %v5846_v58 }
 0xaff   :  { %2195 = vmatprep.subr.bf16.mxu0 %v5819_v51 }
 0xbc4   :  { %v1489_v61 = vpop.f32.mrb[8].mxu0 }
 0xbc5   :  { %v1491_v50 = vpop.f32.mrb[9].mxu0  ;;  %v1499_v54 = vadd.f32 %v1498_v39, %v1489_v61 }
 0xbc6   :  { %v1571_v62 = vadd.f32 %v1570_v52, %v1491_v50  ;;  %v1493_v53 = vpop.f32.mrb[10].mxu0 }
 0xbc7   :  { %v1494_v4 = vpop.f32.mrb[11].mxu0  ;;  %v4859_v51 = vmul.f32 -1.442695, %v1499_v54 }
 0xbc8   :  { %5141 = vtanh.f32 %v1571_v62  ;;  %v4860_v57 = vmul.f32 -1.442695, %v1571_v62 }
 0xbc9   :  { %5143 = vtanh.f32 %v1499_v54 }
 0xbca   :  { %5145 = vpow2.f32 %v4860_v57 }
 0xbcb   :  { %5147 = vpow2.f32 %v4859_v51 }
 0xbd2   :  { %v5142_v55 = vpop.eup %5141 }
 0xbd3   :  { %1592 = vrot.lane.b32.xlu0 %v5142_v55, %s5561_s2  ;;  %v5144_v56 = vpop.eup %5143 }
 0xbd4   :  { %v5146_v58 = vpop.eup %5145 }
 0xbd5   :  { %v1575_v7 = vadd.f32 1.0, %v5146_v58  ;;  %v5148_v9 = vpop.eup %5147 }
 0xbd6   :  { %v1503_v16 = vadd.f32 1.0, %v5148_v9  ;;  %v6211_v9 = vld [vmem:[#allocation13] ss:$8 sps:$4 sm:$0xff]  }
 0xbd7   :  { %1520 = vrot.lane.b32.xlu0 %v5144_v56, %s5561_s2  ;;  %5149 = vrcp.f32 %v1575_v7 }
 0xbd8   :  { %5151 = vrcp.f32 %v1503_v16  ;;  %v6218_v16 = vld [vmem:[#allocation13 + $0x10] ss:$8 sps:$4 sm:$0xff]  }
 0xbe1   :  { %v5150_v12 = vpop.eup %5149 }
 0xbe2   :  { %v5152_v19 = vpop.eup %5151  ;;  %v1590_v23 = vmul.f32 %v5150_v12, %v1588_v35 }
 0xbe3   :  { %v1518_v30 = vmul.f32 %v5152_v19, %v1516_v29 }
 0xc45   :  { %v1593_v13 = vpop.permute.xlu0 %1592 }
 0xc46   :  { %v1595_v15 = vmul.f32 %v5150_v12, %v1593_v13  ;;  %v6224_v13 = vld [vmem:[#allocation13 + $0x20] ss:$8 sps:$4 sm:$0xff]  }
 0xc48   :  { %1597 = vrot.lane.b32.xlu0 %v1595_v15, %s5556_s7  ;;  %v6227_v15 = vld [vmem:[#allocation13 + $0x34] ss:$8 sps:$4 sm:$0xff]  }
 0xc49   :  { %v1521_v28 = vpop.permute.xlu0 %1520 }
 0xc4a   :  { %v1523_v20 = vmul.f32 %v5152_v19, %v1521_v28  ;;  %v1756_v28 = vld [vmem:[#allocation2 + $0x7] sm:$0x1] }
 0xc4b   :  { %v1757_v35 = vunpack.c.l.bf16 %v1756_v28 }
 0xc4c   :  { %1525 = vrot.lane.b32.xlu0 %v1523_v20, %s5556_s7  ;;  %v1690_v20 = vld [vmem:[#allocation2 + $0x8] sm:$0x1] }
 0xc50   :  { %1609 = vperm.xlu0 %4956, %v1607_v21  }
 0xcba   :  { %v1598_v25 = vpop.permute.xlu0 %1597 }
 0xcbb   :  { %v1600_v5 = vadd.f32 %v1598_v25, %v1590_v23  ;;  %v1691_v25 = vunpack.c.l.bf16 %v1690_v20 }
 0xcbd   :  { %5153 = vtanh.f32 %v1600_v5  ;;  %v1631_v37 = vrot.slane %v1600_v5, %v5883_v33 }
 0xcbe   :  { %v1526_v32 = vpop.permute.xlu0 %1525 }
 0xcbf   :  { %v1528_v46 = vadd.f32 %v1526_v32, %v1518_v30 }
 0xcc1   :  { %5155 = vtanh.f32 %v1528_v46  ;;  %v1559_v49 = vrot.slane %v1528_v46, %v5883_v33 }
 0xcc7   :  { %v5154_v6 = vpop.eup %5153 }
 0xcc8   :  { %1603 = vrot.lane.b32.xlu1 %v5154_v6, %s5561_s2 }
 0xccb   :  { %v5156_v11 = vpop.eup %5155 }
 0xccc   :  { %1531 = vrot.lane.b32.xlu1 %v5156_v11, %s5561_s2 }
 0xccf   :  { %v6169_v8 = vpop.permute.xlu0 %1609 }
 0xcd0   :  { %1537 = vperm.xlu1 %4955, %v1535_v34   ;;  %vm1611_vm4 = vcmp.eq.s32.totalorder %v6169_v8, 1 }
 0xcd4   :  { %1632 = vrot.lane.b32.xlu1 %v1631_v37, %s5566_s19 }
 0xcd8   :  { %1560 = vrot.lane.b32.xlu1 %v1559_v49, %s5566_s19 }
 0xd3a   :  { %v1604_v38 = vpop.permute.xlu1 %1603 }
 0xd3b   :  { %v1606_v40 = vmul.f32 %v5150_v12, %v1604_v38  ;;  %v6221_v12 = vld [vmem:[#allocation13 + $0x24] ss:$8 sps:$4 sm:$0xff]  }
 0xd3d   :  { %v1619_v41 = vrot.slane %v1606_v40, %v5883_v33 }
 0xd3e   :  { %v1532_v63 = vpop.permute.xlu1 %1531 }
 0xd3f   :  { %1620 = vrot.lane.b32.xlu0 %v1619_v41, %s5556_s7 }
 0xd4f   :  { %v6167_v43 = vpop.permute.xlu1 %1537 }
 0xd50   :  { %vm1539_vm8 = vcmp.eq.s32.totalorder %v6167_v43, 1 }
 0xd53   :  { %v1633_v44 = vpop.permute.xlu1 %1632 }
 0xd54   :  { %v6175_v60 = vsel %vm1611_vm4, %v1633_v44, %v6106_v27  ;;  %v1534_v27 = vmul.f32 %v5152_v19, %v1532_v63  ;;  %v6230_v19 = vld [vmem:[#allocation13 + $0x30] ss:$8 sps:$4 sm:$0xff]  }
 0xd55   :  { %v1773_v18 = vrot.slane %v6175_v60, %v5883_v33 }
 0xd56   :  { %v1547_v39 = vrot.slane %v1534_v27, %v5883_v33 }
 0xd57   :  { %1774 = vrot.lane.b32.xlu1 %v1773_v18, %s5556_s7  ;;  %v1561_v48 = vpop.permute.xlu1 %1560 }
 0xd58   :  { %v6184_v61 = vsel %vm1539_vm8, %v1561_v48, %v6115_v31 }
 0xd59   :  { %v1707_v52 = vrot.slane %v6184_v61, %v5883_v33 }
 0xd5b   :  { %1708 = vrot.lane.b32.xlu1 %v1707_v52, %s5556_s7 }
 0xdb1   :  { %v1621_v50 = vpop.permute.xlu0 %1620 }
 0xdb2   :  { %v1636_v62 = vsel %vm1611_vm4, %v1621_v50, 0.0  ;;  %v6195_v53 = vsel %vm1611_vm4, %v1621_v50, %v6126_v36 }
 0xdb3   :  { %v1637_v4 = vpack.c.bf16 %v1636_v62, %v1636_v62  ;;  %v4972_v31 = vpack.i.bf16 %v6195_v53, %v1547_v39 }
 0xdb5   :  { %1639 = vst.msk [vmem:[#allocation4 + $0x4] sm:$0x1] %vm990_vm6, %v1637_v4  ;;  %4973 = vrot.lane.b32.xlu0 %v4972_v31, %s5556_s7 }
 0xdc9   :  { %v1775_v27 = vpop.permute.xlu1 %1774 }
 0xdcd   :  { %v1709_v4 = vpop.permute.xlu1 %1708 }
 0xe27   :  { %v4974_v54 = vpop.permute.xlu0 %4973 }
 0xe28   :  { %v4976_v55 = vunpack.i.h.bf16 %v4974_v54  ;;  %v4975_v56 = vunpack.i.l.bf16 %v4974_v54 }
 0xe2a   :  { %v6203_v57 = vsel %vm1539_vm8, %v4975_v56, %v6134_v42  ;;  %v1564_v51 = vsel %vm1539_vm8, %v4975_v56, 0.0  ;;  %v6215_v42 = vld [vmem:[#allocation13 + $0x14] ss:$8 sps:$4 sm:$0xff]  }
 0xe2b   :  { %v1565_v36 = vpack.c.bf16 %v1564_v51, %v1564_v51  ;;  %v1644_v58 = vsel %vm237_vm0, %v6203_v57, %v4976_v55 }
 0xe2c   :  { %v1645_v7 = vpack.c.bf16 %v1644_v58, %v1644_v58 }
 0xe2d   :  { %1567 = vst.msk [vmem:[#allocation3 + $0x3] sm:$0x1] %vm990_vm6, %v1565_v36 }
 0xe2e   :  { %4861 = vmatmul.mubr.msk.bf16.vlgmr.msra.gmra.mrb[12].mxu1 %vm246_vm1, %v1645_v7 }
 0xe2f   :  { %2014 = vmatpush1.bf16.msra.mxu1 %v6211_v9  ;;  %2045 = vmatprep.mubr.bf16.mxu1 %v5562_v47 }
 0xe30   :  { %2015 = vmatprep.subr.bf16.mxu1 %v6215_v42 }
 0xe33   :  { %2016 = vmatpush1.bf16.msra.mxu1 %v6218_v16 }
 0xe34   :  { %2017 = vmatprep.subr.bf16.mxu1 %v6221_v12 }
 0xe37   :  { %2018 = vmatpush1.bf16.msra.mxu1 %v6224_v13 }
 0xe38   :  { %2019 = vmatprep.subr.bf16.mxu1 %v6227_v15 }
 0xe3b   :  { %2020 = vmatpush1.bf16.msra.mxu1 %v6230_v19 }
 0xf01   :  { %v1683_v21 = vpop.f32.mrb[12].mxu1 }
 0xf02   :  { %v1685_v23 = vpop.f32.mrb[13].mxu1  ;;  %v1692_v32 = vadd.f32 %v1691_v25, %v1683_v21 }
 0xf03   :  { %v1758_v5 = vadd.f32 %v1757_v35, %v1685_v23  ;;  %v1687_v29 = vpop.f32.mrb[14].mxu1 }
 0xf04   :  { %v1688_v30 = vpop.f32.mrb[15].mxu1  ;;  %v4862_v34 = vmul.f32 -1.442695, %v1692_v32 }
 0xf05   :  { %5157 = vtanh.f32 %v1758_v5  ;;  %v4863_v11 = vmul.f32 -1.442695, %v1758_v5 }
 0xf06   :  { %5159 = vtanh.f32 %v1692_v32 }
 0xf07   :  { %5161 = vpow2.f32 %v4863_v11 }
 0xf08   :  { %5163 = vpow2.f32 %v4862_v34 }
 0xf0f   :  { %v5158_v46 = vpop.eup %5157 }
 0xf10   :  { %1779 = vrot.lane.b32.xlu0 %v5158_v46, %s5561_s2  ;;  %v5160_v6 = vpop.eup %5159 }
 0xf11   :  { %v5162_v37 = vpop.eup %5161 }
 0xf12   :  { %v1762_v49 = vadd.f32 1.0, %v5162_v37  ;;  %v5164_v38 = vpop.eup %5163 }
 0xf13   :  { %v1696_v40 = vadd.f32 1.0, %v5164_v38 }
 0xf14   :  { %1713 = vrot.lane.b32.xlu0 %v5160_v6, %s5561_s2  ;;  %5165 = vrcp.f32 %v1762_v49 }
 0xf15   :  { %5167 = vrcp.f32 %v1696_v40 }
 0xf1e   :  { %v5166_v41 = vpop.eup %5165 }
 0xf1f   :  { %v5168_v18 = vpop.eup %5167  ;;  %v1777_v50 = vmul.f32 %v5166_v41, %v1775_v27 }
 0xf20   :  { %v1711_v31 = vmul.f32 %v5168_v18, %v1709_v4 }
 0xf82   :  { %v1780_v63 = vpop.permute.xlu0 %1779 }
 0xf83   :  { %v1782_v44 = vmul.f32 %v5166_v41, %v1780_v63 }
 0xf85   :  { %1784 = vrot.lane.b32.xlu0 %v1782_v44, %s5556_s7 }
 0xf86   :  { %v1714_v48 = vpop.permute.xlu0 %1713 }
 0xf87   :  { %v1716_v52 = vmul.f32 %v5168_v18, %v1714_v48 }
 0xf89   :  { %1718 = vrot.lane.b32.xlu0 %v1716_v52, %s5556_s7 }
 0xff7   :  { %v1785_v39 = vpop.permute.xlu0 %1784 }
 0xff8   :  { %v1787_v62 = vadd.f32 %v1785_v39, %v1777_v50 }
 0xffa   :  { %5169 = vtanh.f32 %v1787_v62  ;;  %v1813_v28 = vrot.slane %v1787_v62, %v5883_v33 }
 0xffb   :  { %v1719_v54 = vpop.permute.xlu0 %1718 }
 0xffc   :  { %v1721_v55 = vadd.f32 %v1719_v54, %v1711_v31 }
 0xffe   :  { %5171 = vtanh.f32 %v1721_v55  ;;  %v1747_v20 = vrot.slane %v1721_v55, %v5883_v33 }
0x1004   :  { %v5170_v56 = vpop.eup %5169 }
0x1005   :  { %1790 = vrot.lane.b32.xlu1 %v5170_v56, %s5561_s2 }
0x1008   :  { %v5172_v51 = vpop.eup %5171 }
0x1009   :  { %1724 = vrot.lane.b32.xlu0 %v5172_v51, %s5561_s2 }
0x1077   :  { %v1791_v36 = vpop.permute.xlu1 %1790 }
0x1078   :  { %v1793_v58 = vmul.f32 %v5166_v41, %v1791_v36 }
0x107a   :  { %v1801_v7 = vrot.slane %v1793_v58, %v5883_v33 }
0x107b   :  { %v1725_v21 = vpop.permute.xlu0 %1724 }
0x107c   :  { %1802 = vrot.lane.b32.xlu1 %v1801_v7, %s5556_s7  ;;  %v1727_v35 = vmul.f32 %v5168_v18, %v1725_v21  ;;  %v1872_v18 = vld [vmem:[#allocation2 + $0xa] sm:$0x1] }
0x107e   :  { %v1735_v25 = vrot.slane %v1727_v35, %v5883_v33 }
0x1080   :  { %1814 = vrot.lane.b32.xlu1 %v1813_v28, %s5566_s19 }
0x1084   :  { %1748 = vrot.lane.b32.xlu1 %v1747_v20, %s5566_s19 }
0x10ee   :  { %v1803_v23 = vpop.permute.xlu1 %1802 }
0x10ef   :  { %v1818_v5 = vsel %vm1539_vm8, %v1803_v23, 0.0  ;;  %v6251_v29 = vsel %vm1539_vm8, %v1803_v23, %v6195_v53 }
0x10f0   :  { %v1819_v30 = vpack.c.bf16 %v1818_v5, %v1818_v5  ;;  %v4977_v32 = vpack.i.bf16 %v6251_v29, %v1735_v25 }
0x10f2   :  { %1821 = vst.msk [vmem:[#allocation4 + $0x3] sm:$0x1] %vm990_vm6, %v1819_v30  ;;  %4978 = vrot.lane.b32.xlu0 %v4977_v32, %s5556_s7  ;;  %v1815_v46 = vpop.permute.xlu1 %1814 }
0x10f3   :  { %v6259_v6 = vsel %vm1539_vm8, %v1815_v46, %v6175_v60 }
0x10f4   :  { %v1955_v11 = vrot.slane %v6259_v6, %v5883_v33 }
0x10f6   :  { %1956 = vrot.lane.b32.xlu1 %v1955_v11, %s5556_s7  ;;  %v1749_v53 = vpop.permute.xlu1 %1748 }
0x10f7   :  { %v6267_v34 = vsel %vm1611_vm4, %v1749_v53, %v6184_v61 }
0x10f8   :  { %v1889_v37 = vrot.slane %v6267_v34, %v5883_v33 }
0x10fa   :  { %1890 = vrot.lane.b32.xlu1 %v1889_v37, %s5556_s7 }
0x1164   :  { %v4979_v49 = vpop.permute.xlu0 %4978 }
0x1165   :  { %v4981_v38 = vunpack.i.h.bf16 %v4979_v49  ;;  %v4980_v60 = vunpack.i.l.bf16 %v4979_v49 }
0x1167   :  { %v6275_v40 = vsel %vm1611_vm4, %v4980_v60, %v6203_v57  ;;  %v1752_v41 = vsel %vm1611_vm4, %v4980_v60, 0.0  ;;  %v1938_v57 = vld [vmem:[#allocation2 + $0x5] sm:$0x1] }
0x1168   :  { %v1753_v63 = vpack.c.bf16 %v1752_v41, %v1752_v41  ;;  %v1826_v61 = vsel %vm237_vm0, %v6275_v40, %v4981_v38  ;;  %v1939_v52 = vunpack.c.l.bf16 %v1938_v57  ;;  %v1957_v28 = vpop.permute.xlu1 %1956 }
0x1169   :  { %v1827_v44 = vpack.c.bf16 %v1826_v61, %v1826_v61 }
0x116a   :  { %1755 = vst.msk [vmem:[#allocation3 + $0x4] sm:$0x1] %vm990_vm6, %v1753_v63 }
0x116b   :  { %4864 = vmatmul.mubr.msk.bf16.vlgmr.msra.gmra.mrb[12].mxu0 %vm246_vm1, %v1827_v44 }
0x116c   :  { %2196 = vmatpush1.bf16.msra.mxu0 %v6211_v9  ;;  %2227 = vmatprep.mubr.bf16.mxu0 %v5562_v47  ;;  %v1873_v9 = vunpack.c.l.bf16 %v1872_v18  ;;  %v1891_v23 = vpop.permute.xlu1 %1890 }
0x116d   :  { %2197 = vmatprep.subr.bf16.mxu0 %v6215_v42 }
0x1170   :  { %2198 = vmatpush1.bf16.msra.mxu0 %v6218_v16 }
0x1171   :  { %2199 = vmatprep.subr.bf16.mxu0 %v6221_v12 }
0x1174   :  { %2200 = vmatpush1.bf16.msra.mxu0 %v6224_v13 }
0x1175   :  { %2201 = vmatprep.subr.bf16.mxu0 %v6227_v15 }
0x1178   :  { %2202 = vmatpush1.bf16.msra.mxu0 %v6230_v19 }
0x123e   :  { %v1865_v48 = vpop.f32.mrb[12].mxu0 }
0x123f   :  { %v1867_v27 = vpop.f32.mrb[13].mxu0  ;;  %v1874_v42 = vadd.f32 %v1873_v9, %v1865_v48 }
0x1240   :  { %v1940_v50 = vadd.f32 %v1939_v52, %v1867_v27  ;;  %v1869_v39 = vpop.f32.mrb[14].mxu0 }
0x1241   :  { %v1870_v62 = vpop.f32.mrb[15].mxu0  ;;  %v4865_v15 = vmul.f32 -1.442695, %v1874_v42 }
0x1242   :  { %5173 = vtanh.f32 %v1940_v50  ;;  %v4866_v13 = vmul.f32 -1.442695, %v1940_v50 }
0x1243   :  { %5175 = vtanh.f32 %v1874_v42 }
0x1244   :  { %5177 = vpow2.f32 %v4866_v13 }
0x1245   :  { %5179 = vpow2.f32 %v4865_v15 }
0x124c   :  { %v5174_v16 = vpop.eup %5173 }
0x124d   :  { %1961 = vrot.lane.b32.xlu0 %v5174_v16, %s5561_s2  ;;  %v5176_v12 = vpop.eup %5175 }
0x124e   :  { %v5178_v19 = vpop.eup %5177 }
0x124f   :  { %v1944_v4 = vadd.f32 1.0, %v5178_v19  ;;  %v5180_v31 = vpop.eup %5179  ;;  %v2120_v19 = vld [vmem:[#allocation2 + $0x3] sm:$0x1] }
0x1250   :  { %v1878_v54 = vadd.f32 1.0, %v5180_v31 }
0x1251   :  { %1895 = vrot.lane.b32.xlu0 %v5176_v12, %s5561_s2  ;;  %5181 = vrcp.f32 %v1944_v4  ;;  %v2054_v4 = vld [vmem:[#allocation2 + $0xc] sm:$0x1] }
0x1252   :  { %5183 = vrcp.f32 %v1878_v54  ;;  %v2121_v54 = vunpack.c.l.bf16 %v2120_v19 }
0x125b   :  { %v5182_v55 = vpop.eup %5181 }
0x125c   :  { %v5184_v36 = vpop.eup %5183  ;;  %v1959_v20 = vmul.f32 %v5182_v55, %v1957_v28 }
0x125d   :  { %v1893_v25 = vmul.f32 %v5184_v36, %v1891_v23 }
0x12bf   :  { %v1962_v56 = vpop.permute.xlu0 %1961 }
0x12c0   :  { %v1964_v51 = vmul.f32 %v5182_v55, %v1962_v56 }
0x12c2   :  { %1966 = vrot.lane.b32.xlu0 %v1964_v51, %s5556_s7 }
0x12c3   :  { %v1896_v58 = vpop.permute.xlu0 %1895 }
0x12c4   :  { %v1898_v7 = vmul.f32 %v5184_v36, %v1896_v58 }
0x12c6   :  { %1900 = vrot.lane.b32.xlu0 %v1898_v7, %s5556_s7 }
0x1334   :  { %v1967_v21 = vpop.permute.xlu0 %1966 }
0x1335   :  { %v1969_v35 = vadd.f32 %v1967_v21, %v1959_v20 }
0x1337   :  { %5185 = vtanh.f32 %v1969_v35  ;;  %v1995_v49 = vrot.slane %v1969_v35, %v5883_v33 }
0x1338   :  { %v1901_v5 = vpop.permute.xlu0 %1900 }
0x1339   :  { %v1903_v30 = vadd.f32 %v1901_v5, %v1893_v25 }
0x133b   :  { %5187 = vtanh.f32 %v1903_v30  ;;  %v1929_v38 = vrot.slane %v1903_v30, %v5883_v33 }
0x1341   :  { %v5186_v32 = vpop.eup %5185 }
0x1342   :  { %1972 = vrot.lane.b32.xlu1 %v5186_v32, %s5561_s2 }
0x1345   :  { %v5188_v46 = vpop.eup %5187 }
0x1346   :  { %1906 = vrot.lane.b32.xlu0 %v5188_v46, %s5561_s2 }
0x13b4   :  { %v1973_v11 = vpop.permute.xlu1 %1972 }
0x13b5   :  { %v1975_v53 = vmul.f32 %v5182_v55, %v1973_v11  ;;  %v2055_v55 = vunpack.c.l.bf16 %v2054_v4 }
0x13b7   :  { %v1983_v37 = vrot.slane %v1975_v53, %v5883_v33 }
0x13b8   :  { %v1907_v60 = vpop.permute.xlu0 %1906 }
0x13b9   :  { %1984 = vrot.lane.b32.xlu1 %v1983_v37, %s5556_s7  ;;  %v1909_v41 = vmul.f32 %v5184_v36, %v1907_v60 }
0x13bb   :  { %v1917_v61 = vrot.slane %v1909_v41, %v5883_v33 }
0x13bd   :  { %1996 = vrot.lane.b32.xlu1 %v1995_v49, %s5566_s19 }
0x13c1   :  { %1930 = vrot.lane.b32.xlu1 %v1929_v38, %s5566_s19 }
0x142b   :  { %v1985_v63 = vpop.permute.xlu1 %1984 }
0x142c   :  { %v2000_v44 = vsel %vm1343_vm15, %v1985_v63, 0.0  ;;  %v6309_v57 = vsel %vm1343_vm15, %v1985_v63, %v6251_v29 }
0x142d   :  { %v2001_v18 = vpack.c.bf16 %v2000_v44, %v2000_v44  ;;  %v4982_v48 = vpack.i.bf16 %v6309_v57, %v1917_v61 }
0x142f   :  { %2003 = vst.msk [vmem:[#allocation4 + $0x2] sm:$0x1] %vm990_vm6, %v2001_v18  ;;  %4983 = vrot.lane.b32.xlu0 %v4982_v48, %s5556_s7  ;;  %v1997_v52 = vpop.permute.xlu1 %1996 }
0x1430   :  { %v6317_v27 = vsel %vm1343_vm15, %v1997_v52, %v6259_v6 }
0x1431   :  { %v2137_v9 = vrot.slane %v6317_v27, %v5883_v33 }
0x1433   :  { %2138 = vrot.lane.b32.xlu1 %v2137_v9, %s5556_s7  ;;  %v1931_v29 = vpop.permute.xlu1 %1930 }
0x1434   :  { %v6325_v50 = vsel %vm1415_vm14, %v1931_v29, %v6267_v34 }
0x1435   :  { %v2071_v39 = vrot.slane %v6325_v50, %v5883_v33 }
0x1437   :  { %2072 = vrot.lane.b32.xlu1 %v2071_v39, %s5556_s7 }
0x14a1   :  { %v4984_v62 = vpop.permute.xlu0 %4983 }
0x14a2   :  { %v4986_v42 = vunpack.i.h.bf16 %v4984_v62  ;;  %v4985_v6 = vunpack.i.l.bf16 %v4984_v62 }
0x14a4   :  { %v6333_v16 = vsel %vm1415_vm14, %v4985_v6, %v6275_v40  ;;  %v1934_v12 = vsel %vm1415_vm14, %v4985_v6, 0.0 }
0x14a5   :  { %v1935_v13 = vpack.c.bf16 %v1934_v12, %v1934_v12  ;;  %v2008_v34 = vsel %vm237_vm0, %v6333_v16, %v4986_v42  ;;  %v2139_v49 = vpop.permute.xlu1 %2138 }
0x14a6   :  { %v2009_v15 = vpack.c.bf16 %v2008_v34, %v2008_v34 }
0x14a7   :  { %1937 = vst.msk [vmem:[#allocation3 + $0x5] sm:$0x1] %vm990_vm6, %v1935_v13 }
0x14a8   :  { %4867 = vmatmul.mubr.msk.bf16.vlgmr.msra.gmra.mrb[16].mxu1 %vm246_vm1, %v2009_v15 }
0x14a9   :  { %2477 = vmatprep.mubr.bf16.mxu1 %v5562_v47  ;;  %v2073_v63 = vpop.permute.xlu1 %2072 }
0x157b   :  { %v2047_v31 = vpop.f32.mrb[16].mxu1 }
0x157c   :  { %v2049_v40 = vpop.f32.mrb[17].mxu1  ;;  %v2056_v58 = vadd.f32 %v2055_v55, %v2047_v31 }
0x157d   :  { %v2122_v56 = vadd.f32 %v2121_v54, %v2049_v40  ;;  %v2051_v51 = vpop.f32.mrb[18].mxu1 }
0x157e   :  { %v2052_v36 = vpop.f32.mrb[19].mxu1  ;;  %v4868_v21 = vmul.f32 -1.442695, %v2056_v58 }
0x157f   :  { %5189 = vtanh.f32 %v2122_v56  ;;  %v4869_v20 = vmul.f32 -1.442695, %v2122_v56 }
0x1580   :  { %5191 = vtanh.f32 %v2056_v58 }
0x1581   :  { %5193 = vpow2.f32 %v4869_v20 }
0x1582   :  { %5195 = vpow2.f32 %v4868_v21 }
0x1589   :  { %v5190_v7 = vpop.eup %5189 }
0x158a   :  { %2143 = vrot.lane.b32.xlu0 %v5190_v7, %s5561_s2  ;;  %v5192_v28 = vpop.eup %5191 }
0x158b   :  { %v5194_v35 = vpop.eup %5193 }
0x158c   :  { %v2126_v23 = vadd.f32 1.0, %v5194_v35  ;;  %v5196_v25 = vpop.eup %5195 }
0x158d   :  { %v2060_v5 = vadd.f32 1.0, %v5196_v25 }
0x158e   :  { %2077 = vrot.lane.b32.xlu0 %v5192_v28, %s5561_s2  ;;  %5197 = vrcp.f32 %v2126_v23  ;;  %v2236_v23 = vld [vmem:[#allocation2 + $0xe] sm:$0x1] }
0x158f   :  { %5199 = vrcp.f32 %v2060_v5 }
0x1598   :  { %v5198_v30 = vpop.eup %5197 }
0x1599   :  { %v5200_v11 = vpop.eup %5199  ;;  %v2141_v38 = vmul.f32 %v5198_v30, %v2139_v49 }
0x159a   :  { %v2075_v61 = vmul.f32 %v5200_v11, %v2073_v63 }
0x15fc   :  { %v2144_v32 = vpop.permute.xlu0 %2143 }
0x15fd   :  { %v2146_v46 = vmul.f32 %v5198_v30, %v2144_v32  ;;  %v2237_v32 = vunpack.c.l.bf16 %v2236_v23  ;;  %v6414_v23 = vld [vmem:[#allocation16 + $0x24] ss:$8 sps:$4 sm:$0xff]  }
0x15ff   :  { %2148 = vrot.lane.b32.xlu0 %v2146_v46, %s5556_s7 }
0x1600   :  { %v2078_v53 = vpop.permute.xlu0 %2077 }
0x1601   :  { %v2080_v37 = vmul.f32 %v5200_v11, %v2078_v53 }
0x1603   :  { %2082 = vrot.lane.b32.xlu0 %v2080_v37, %s5556_s7 }
0x1671   :  { %v2149_v60 = vpop.permute.xlu0 %2148 }
0x1672   :  { %v2151_v41 = vadd.f32 %v2149_v60, %v2141_v38 }
0x1674   :  { %5201 = vtanh.f32 %v2151_v41  ;;  %v2177_v62 = vrot.slane %v2151_v41, %v5883_v33 }
0x1675   :  { %v2083_v44 = vpop.permute.xlu0 %2082 }
0x1676   :  { %v2085_v18 = vadd.f32 %v2083_v44, %v2075_v61 }
0x1678   :  { %5203 = vtanh.f32 %v2085_v18  ;;  %v2111_v42 = vrot.slane %v2085_v18, %v5883_v33 }
0x167e   :  { %v5202_v48 = vpop.eup %5201 }
0x167f   :  { %2154 = vrot.lane.b32.xlu1 %v5202_v48, %s5561_s2 }
0x1682   :  { %v5204_v52 = vpop.eup %5203 }
0x1683   :  { %2088 = vrot.lane.b32.xlu0 %v5204_v52, %s5561_s2 }
0x16f1   :  { %v2155_v9 = vpop.permute.xlu1 %2154 }
0x16f2   :  { %v2157_v29 = vmul.f32 %v5198_v30, %v2155_v9 }
0x16f4   :  { %v2165_v39 = vrot.slane %v2157_v29, %v5883_v33 }
0x16f5   :  { %v2089_v6 = vpop.permute.xlu0 %2088 }
0x16f6   :  { %2166 = vrot.lane.b32.xlu1 %v2165_v39, %s5556_s7  ;;  %v2091_v12 = vmul.f32 %v5200_v11, %v2089_v6 }
0x16f8   :  { %v2099_v13 = vrot.slane %v2091_v12, %v5883_v33 }
0x16fa   :  { %2178 = vrot.lane.b32.xlu1 %v2177_v62, %s5566_s19 }
0x16fe   :  { %2112 = vrot.lane.b32.xlu1 %v2111_v42, %s5566_s19 }
0x1768   :  { %v2167_v34 = vpop.permute.xlu1 %2166 }
0x1769   :  { %v2169_v15 = vsel %vm1147_vm11, %v2167_v34, %v6309_v57  ;;  %v2182_v19 = vsel %vm1147_vm11, %v2167_v34, 0.0 }
0x176a   :  { %v2183_v4 = vpack.c.bf16 %v2182_v19, %v2182_v19  ;;  %v4987_v31 = vpack.i.bf16 %v2169_v15, %v2099_v13 }
0x176c   :  { %2185 = vst.msk [vmem:[#allocation4 + $0x1] sm:$0x1] %vm990_vm6, %v2183_v4  ;;  %4988 = vrot.lane.b32.xlu0 %v4987_v31, %s5556_s7  ;;  %v2179_v54 = vpop.permute.xlu1 %2178 }
0x176d   :  { %v2181_v40 = vsel %vm1147_vm11, %v2179_v54, %v6317_v27  ;;  %v5069_v54 = vld [vmem:[%s7143_s8] ss:$8 sps:$4 sm:$0xff]  }
0x176e   :  { %v2306_v55 = vrot.slane %v2181_v40, %v5883_v33  ;;  %v5071_v40 = vld [vmem:[%s7143_s8 + $0x4] ss:$8 sps:$4 sm:$0xff]  }
0x176f   :  { %2445 = vmatprep.subr.bf16.mxu1 %v5071_v40  ;;  %v2345_v40 = vld [vmem:[#allocation3 + $0x4] sm:$0x1] }
0x1770   :  { %2307 = vrot.lane.b32.xlu1 %v2306_v55, %s5556_s7  ;;  %v2113_v56 = vpop.permute.xlu1 %2112  ;;  %2446 = vmatpush1.bf16.msra.mxu1 %v5069_v54  ;;  %v2343_v54 = vld [vmem:[#allocation3 + $0x2] sm:$0x1] }
0x1771   :  { %v2115_v57 = vsel %vm1219_vm10, %v2113_v56, %v6325_v50  ;;  %v2289_v50 = vld [vmem:[#allocation2 + $0x1] sm:$0x1]  ;;  %v5074_v56 = vld [vmem:[%s7143_s8 + $0x14] ss:$8 sps:$4 sm:$0xff]  }
0x1772   :  { %v2253_v51 = vrot.slane %v2115_v57, %v5883_v33  ;;  %v2290_v5 = vunpack.c.l.bf16 %v2289_v50  ;;  %2447 = vmatprep.subr.bf16.mxu1 %v5074_v56  ;;  %v6411_v50 = vld [vmem:[#allocation16 + $0x10] ss:$8 sps:$4 sm:$0xff]  }
0x1774   :  { %2254 = vrot.lane.b32.xlu1 %v2253_v51, %s5556_s7  ;;  %v5072_v51 = vld [vmem:[%s7143_s8 + $0x10] ss:$8 sps:$4 sm:$0xff]  }
0x1775   :  { %2448 = vmatpush1.bf16.msra.mxu1 %v5072_v51 }
0x17de   :  { %v4989_v36 = vpop.permute.xlu0 %4988 }
0x17df   :  { %v4991_v58 = vunpack.i.h.bf16 %v4989_v36  ;;  %v4990_v7 = vunpack.i.l.bf16 %v4989_v36 }
0x17e1   :  { %v2103_v27 = vsel %vm1219_vm10, %v4990_v7, %v6333_v16  ;;  %v2116_v28 = vsel %vm1219_vm10, %v4990_v7, 0.0 }
0x17e2   :  { %v2117_v20 = vpack.c.bf16 %v2116_v28, %v2116_v28  ;;  %v2190_v21 = vsel %vm237_vm0, %v2103_v27, %v4991_v58  ;;  %v2308_v62 = vpop.permute.xlu1 %2307  ;;  %v5077_v58 = vld [vmem:[#allocation14 + $0x4] ss:$8 sps:$4 sm:$0xff]  }
0x17e3   :  { %v2191_v35 = vpack.c.bf16 %v2190_v21, %v2190_v21  ;;  %2568 = vmatprep.subr.bf16.mxu1 %v5077_v58  ;;  %v6405_v21 = vld [vmem:[#allocation16] ss:$8 sps:$4 sm:$0xff]   ;;  %v2341_v58 = vld [vmem:[#allocation3] sm:$0x1] }
0x17e4   :  { %2119 = vst.msk [vmem:[#allocation3 + $0x6] sm:$0x1] %vm990_vm6, %v2117_v20  ;;  %v6403_v20 = vld [vmem:[#allocation16 + $0x4] ss:$8 sps:$4 sm:$0xff]  }
0x17e5   :  { %4870 = vmatmul.mubr.msk.bf16.vlgmr.msra.gmra.mrb[16].mxu0 %vm246_vm1, %v2191_v35  ;;  %v6407_v35 = vld [vmem:[#allocation16 + $0x14] ss:$8 sps:$4 sm:$0xff]   ;;  %2990 = vmatprep.subr.bf16.mxu0 %v6403_v20 }
0x17e6   :  { %3022 = vmatprep.mubr.bf16.mxu0 %v5562_v47  ;;  %v2255_v13 = vpop.permute.xlu1 %2254  ;;  %2991 = vmatpush1.bf16.msra.mxu0 %v6405_v21 }
0x17e7   :  { %2992 = vmatprep.subr.bf16.mxu0 %v6407_v35 }
0x17ea   :  { %2993 = vmatpush1.bf16.msra.mxu0 %v6411_v50 }
0x17eb   :  { %2994 = vmatprep.subr.bf16.mxu0 %v6414_v23 }
0x18b8   :  { %v2229_v25 = vpop.f32.mrb[16].mxu0 }
0x18b9   :  { %v2231_v30 = vpop.f32.mrb[17].mxu0  ;;  %v2238_v53 = vadd.f32 %v2237_v32, %v2229_v25  ;;  %v6417_v25 = vld [vmem:[#allocation16 + $0x20] ss:$8 sps:$4 sm:$0xff]  }
0x18ba   :  { %v2291_v16 = vadd.f32 %v2290_v5, %v2231_v30  ;;  %v2233_v46 = vpop.f32.mrb[18].mxu0  ;;  %v6420_v5 = vld [vmem:[#allocation16 + $0x34] ss:$8 sps:$4 sm:$0xff]   ;;  %2995 = vmatpush1.bf16.msra.mxu0 %v6417_v25  ;;  %v6423_v30 = vld [vmem:[#allocation16 + $0x30] ss:$8 sps:$4 sm:$0xff]  }
0x18bb   :  { %v2234_v11 = vpop.f32.mrb[19].mxu0  ;;  %v4871_v60 = vmul.f32 -1.442695, %v2238_v53  ;;  %2996 = vmatprep.subr.bf16.mxu0 %v6420_v5  ;;  %v2353_v46 = vld [vmem:[#allocation4 + $0x4] sm:$0x1] }
0x18bc   :  { %5205 = vtanh.f32 %v2291_v16  ;;  %v4872_v38 = vmul.f32 -1.442695, %v2291_v16 }
0x18bd   :  { %5207 = vtanh.f32 %v2238_v53 }
0x18be   :  { %5209 = vpow2.f32 %v4872_v38  ;;  %2997 = vmatpush1.bf16.msra.mxu0 %v6423_v30 }
0x18bf   :  { %5211 = vpow2.f32 %v4871_v60  ;;  %3326 = vmatprep.subr.bf16.mxu0 %v6403_v20 }
0x18c1   :  { %3023 = vmatmul.mubr.bf16.vlgmr.msra.gmra.mrb[20].mxu0 %v5563_v59 }
0x18c2   :  { %3327 = vmatpush1.bf16.msra.mxu0 %v6405_v21  ;;  %3358 = vmatprep.mubr.bf16.mxu0 %v5562_v47 }
0x18c3   :  { %3328 = vmatprep.subr.bf16.mxu0 %v6407_v35 }
0x18c6   :  { %v5206_v37 = vpop.eup %5205  ;;  %3329 = vmatpush1.bf16.msra.mxu0 %v6411_v50 }
0x18c7   :  { %2312 = vrot.lane.b32.xlu0 %v5206_v37, %s5561_s2  ;;  %v5208_v49 = vpop.eup %5207  ;;  %3330 = vmatprep.subr.bf16.mxu0 %v6414_v23  ;;  %v2354_v37 = vld [vmem:[#allocation4 + $0x5] sm:$0x1] }
0x18c8   :  { %v5210_v41 = vpop.eup %5209  ;;  %v2375_v60 = vcombine.low %v2353_v46, %v2354_v37  ;;  %v5078_v46 = vld [vmem:[#allocation14 + $0x10] ss:$8 sps:$4 sm:$0xff]  }
0x18c9   :  { %v2295_v63 = vadd.f32 1.0, %v5210_v41  ;;  %v5212_v61 = vpop.eup %5211  ;;  %v2351_v41 = vld [vmem:[#allocation4 + $0x2] sm:$0x1] }
0x18ca   :  { %v2242_v44 = vadd.f32 1.0, %v5212_v61  ;;  %3331 = vmatpush1.bf16.msra.mxu0 %v6417_v25 }
0x18cb   :  { %2259 = vrot.lane.b32.xlu0 %v5208_v49, %s5561_s2  ;;  %5213 = vrcp.f32 %v2295_v63  ;;  %3332 = vmatprep.subr.bf16.mxu0 %v6420_v5  ;;  %v2355_v49 = vld [vmem:[#allocation4 + $0x6] sm:$0x1]  ;;  %v2356_v63 = vld [vmem:[#allocation4 + $0x7] sm:$0x1] }
0x18cc   :  { %5215 = vrcp.f32 %v2242_v44  ;;  %v2376_v61 = vcombine.low %v2355_v49, %v2356_v63  ;;  %v2352_v44 = vld [vmem:[#allocation4 + $0x3] sm:$0x1] }
0x18ce   :  { %3333 = vmatpush1.bf16.msra.mxu0 %v6423_v30 }
0x18cf   :  { %3686 = vmatprep.subr.bf16.mxu0 %v6403_v20 }
0x18d5   :  { %v5214_v18 = vpop.eup %5213 }
0x18d6   :  { %v5216_v9 = vpop.eup %5215  ;;  %v2310_v42 = vmul.f32 %v5214_v18, %v2308_v62 }
0x18d7   :  { %v2257_v34 = vmul.f32 %v5216_v9, %v2255_v13  ;;  %v2346_v13 = vld [vmem:[#allocation3 + $0x5] sm:$0x1] }
0x18d8   :  { %v2498_v51 = vcombine.low %v2345_v40, %v2346_v13 }
0x1939   :  { %v2313_v48 = vpop.permute.xlu0 %2312 }
0x193a   :  { %v2315_v52 = vmul.f32 %v5214_v18, %v2313_v48  ;;  %v2397_v48 = vrot.slane %v2375_v60, %v5923_v10 }
0x193c   :  { %2317 = vrot.lane.b32.xlu0 %v2315_v52, %s5556_s7 }
0x193d   :  { %v2260_v29 = vpop.permute.xlu0 %2259 }
0x193e   :  { %v2262_v39 = vmul.f32 %v5216_v9, %v2260_v29 }
0x1940   :  { %2264 = vrot.lane.b32.xlu0 %v2262_v39, %s5556_s7  ;;  %v2404_v39 = vrot.slane %v2376_v61, %v5923_v10 }
0x19ae   :  { %v2318_v6 = vpop.permute.xlu0 %2317 }
0x19af   :  { %v2320_v12 = vadd.f32 %v2318_v6, %v2310_v42  ;;  %v2406_v6 = vcombine.low %v2397_v48, %v2404_v39 }
0x19b1   :  { %5217 = vtanh.f32 %v2320_v12  ;;  %v2344_v12 = vld [vmem:[#allocation3 + $0x3] sm:$0x1]  ;;  %v2420_v56 = vrot.slane %v2406_v6, %v5923_v10 }
0x19b2   :  { %v2265_v15 = vpop.permute.xlu0 %2264 }
0x19b3   :  { %v2267_v19 = vadd.f32 %v2265_v15, %v2257_v34  ;;  %v2347_v34 = vld [vmem:[#allocation3 + $0x6] sm:$0x1] }
0x19b5   :  { %5219 = vtanh.f32 %v2267_v19 }
0x19bb   :  { %v5218_v4 = vpop.eup %5217 }
0x19bc   :  { %2323 = vrot.lane.b32.xlu1 %v5218_v4, %s5561_s2 }
0x19bf   :  { %v5220_v31 = vpop.eup %5219 }
0x19c0   :  { %2270 = vrot.lane.b32.xlu0 %v5220_v31, %s5561_s2  ;;  %v2342_v31 = vld [vmem:[#allocation3 + $0x1] sm:$0x1] }
0x1a2e   :  { %v2324_v55 = vpop.permute.xlu1 %2323 }
0x1a2f   :  { %v2326_v57 = vmul.f32 %v5214_v18, %v2324_v55  ;;  %v2374_v18 = vcombine.low %v2351_v41, %v2352_v44  ;;  %v6469_v41 = vpop.f32.mrb[20].mxu0 }
0x1a30   :  { %v6471_v63 = vpop.f32.mrb[21].mxu0 }
0x1a31   :  { %v2334_v36 = vrot.slane %v2326_v57, %v5883_v33  ;;  %v2390_v42 = vrot.slane %v2374_v18, %v5923_v10  ;;  %v2497_v57 = vcombine.low %v2343_v54, %v2344_v12  ;;  %v3028_v61 = vpop.f32.mrb[22].mxu0  ;;  %v2659_v18 = vld [vmem:[%s7144_s9] sm:$0x3] }
0x1a32   :  { %v2271_v7 = vpop.permute.xlu0 %2270  ;;  %v3029_v44 = vpop.f32.mrb[23].mxu0  ;;  %v2664_v48 = vrot.slane %v2659_v18, %v5909_v1 }
0x1a33   :  { %v2273_v27 = vmul.f32 %v5216_v9, %v2271_v7  ;;  %2335 = vrot.lane.b32.xlu1 %v2334_v36, %s5556_s7  ;;  %v2350_v9 = vld [vmem:[#allocation4 + $0x1] sm:$0x1]  ;;  %v5075_v36 = vld [vmem:[#allocation14] ss:$8 sps:$4 sm:$0xff]  }
0x1a35   :  { %v2281_v28 = vrot.slane %v2273_v27, %v5883_v33  ;;  %v5080_v27 = vld [vmem:[#allocation14 + $0x14] ss:$8 sps:$4 sm:$0xff]  }
0x1a37   :  { %2282 = vrot.lane.b32.xlu0 %v2281_v28, %s5556_s7  ;;  %v2496_v28 = vcombine.low %v2341_v58, %v2342_v31 }
0x1aa5   :  { %v2336_v32 = vpop.permute.xlu1 %2335 }
0x1aa6   :  { %v2338_v59 = vsel %vm964_vm7, %v2336_v32, 0.0 }
0x1aa7   :  { %v2339_v16 = vpack.c.bf16 %v2338_v59, %v2338_v59  ;;  %v2513_v59 = vrot.slane %v2497_v57, %v5923_v10 }
0x1aa9   :  { %2340 = vst.msk [vmem:[#allocation4] sm:$0x1] %vm990_vm6, %v2339_v16  ;;  %v2283_v11 = vpop.permute.xlu0 %2282  ;;  %v2520_v16 = vrot.slane %v2498_v51, %v5923_v10 }
0x1aaa   :  { %v2285_v53 = vsel %vm1024_vm5, %v2283_v11, 0.0  ;;  %v2506_v11 = vrot.slane %v2496_v28, %v5923_v10 }
0x1aab   :  { %v2286_v38 = vpack.c.bf16 %v2285_v53, %v2285_v53 }
0x1aac   :  { %v2528_v37 = vcombine.low %v2506_v11, %v2513_v59 }
0x1aad   :  { %2288 = vst.msk [vmem:[#allocation3 + $0x7] sm:$0x1] %vm990_vm6, %v2286_v38 }
0x1aae   :  { %v2536_v38 = vrot.slane %v2528_v37, %v5923_v10 }
0x1ab0   :  { %v2349_v52 = vld [vmem:[#allocation4] sm:$0x1] }
0x1ab1   :  { %v2373_v29 = vcombine.low %v2349_v52, %v2350_v9  ;;  %v2668_v52 = vrot.slane %v2659_v18, %v5912_v3 }
0x1ab3   :  { %v2383_v62 = vrot.slane %v2373_v29, %v5923_v10  ;;  %v2669_v9 = vcombine.low %v2664_v48, %v2668_v52 }
0x1ab4   :  { %v2348_v15 = vld [vmem:[#allocation3 + $0x7] sm:$0x1] }
0x1ab5   :  { %v2405_v19 = vcombine.low %v2383_v62, %v2390_v42  ;;  %v2499_v4 = vcombine.low %v2347_v34, %v2348_v15  ;;  %v2676_v6 = vrot.slane %v2669_v9, %v5883_v33 }
0x1ab7   :  { %v2413_v55 = vrot.slane %v2405_v19, %v5923_v10  ;;  %v2527_v32 = vrot.slane %v2499_v4, %v5923_v10 }
0x1ab9   :  { %v2421_v7 = vcombine.low %v2413_v55, %v2420_v56  ;;  %v2529_v53 = vcombine.low %v2520_v16, %v2527_v32 }
0x1abb   :  { %4877 = vmatmul.mubr.msk.bf16.vlgmr.msra.gmra.mrb[20].mxu1 %vm237_vm0, %v2421_v7  ;;  %v2543_v49 = vrot.slane %v2529_v53, %v5923_v10 }
0x1abc   :  { %2569 = vmatpush1.bf16.msra.mxu1 %v5075_v36  ;;  %2600 = vmatprep.mubr.bf16.mxu1 %v5562_v47 }
0x1abd   :  { %2570 = vmatprep.subr.bf16.mxu1 %v5080_v27  ;;  %v2544_v60 = vcombine.low %v2536_v38, %v2543_v49 }
0x1ac0   :  { %2571 = vmatpush1.bf16.msra.mxu1 %v5078_v46 }
0x1ac1   :  { %3146 = vmatprep.subr.bf16.mxu1 %v6403_v20 }
0x1ac7   :  { %4882 = vmatmul.mubr.msk.bf16.vlgmr.msra.gmra.mrb[20].mxu1 %vm237_vm0, %v2544_v60 }
0x1ac8   :  { %3147 = vmatpush1.bf16.msra.mxu1 %v6405_v21  ;;  %3178 = vmatprep.mubr.bf16.mxu1 %v5562_v47 }
0x1ac9   :  { %3148 = vmatprep.subr.bf16.mxu1 %v6407_v35 }
0x1acc   :  { %3149 = vmatpush1.bf16.msra.mxu1 %v6411_v50 }
0x1acd   :  { %3150 = vmatprep.subr.bf16.mxu1 %v6414_v23 }
0x1ad0   :  { %3151 = vmatpush1.bf16.msra.mxu1 %v6417_v25 }
0x1ad1   :  { %3152 = vmatprep.subr.bf16.mxu1 %v6420_v5 }
0x1ad4   :  { %3153 = vmatpush1.bf16.msra.mxu1 %v6423_v30 }
0x1ad5   :  { %3506 = vmatprep.subr.bf16.mxu1 %v6403_v20 }
0x1b9a   :  { %v2602_v29 = vpop.f32.mrb[20].mxu1 }
0x1b9b   :  { %v2604_v39 = vpop.f32.mrb[21].mxu1 }
0x1b9c   :  { %v2615_v62 = vcombine.low %v2602_v29, %v2604_v39  ;;  %v2616_v42 = vcombine.high %v2602_v29, %v2604_v39  ;;  %v2606_v12 = vpop.f32.mrb[22].mxu1 }
0x1b9d   :  { %v2608_v13 = vpop.f32.mrb[23].mxu1 }
0x1b9e   :  { %v2623_v34 = vrot.slane %v2615_v62, %v5883_v33  ;;  %v2630_v15 = vrot.slane %v2616_v42, %v5883_v33  ;;  %v2633_v19 = vcombine.low %v2606_v12, %v2608_v13  ;;  %v2634_v4 = vcombine.high %v2606_v12, %v2608_v13 }
0x1ba0   :  { %v2631_v31 = vcombine.high %v2623_v34, %v2623_v34  ;;  %v2632_v54 = vcombine.high %v2630_v15, %v2630_v15  ;;  %v2678_v40 = vadd.f32 %v2676_v6, %v2623_v34  ;;  %v2680_v55 = vadd.f32 %v2676_v6, %v2630_v15 }
0x1ba1   :  { %v2641_v56 = vrot.slane %v2633_v19, %v5883_v33  ;;  %v2648_v57 = vrot.slane %v2634_v4, %v5883_v33 }
0x1ba2   :  { %v2679_v51 = vadd.f32 %v2676_v6, %v2631_v31  ;;  %v2681_v36 = vadd.f32 %v2676_v6, %v2632_v54  ;;  %v2700_v58 = vrot.slane %v2678_v40, %v5883_v33  ;;  %v2716_v7 = vrot.slane %v2680_v55, %v5883_v33 }
0x1ba3   :  { %v2649_v27 = vcombine.high %v2641_v56, %v2641_v56  ;;  %v2650_v28 = vcombine.high %v2648_v57, %v2648_v57  ;;  %v2682_v32 = vadd.f32 %v2676_v6, %v2641_v56  ;;  %v2684_v59 = vadd.f32 %v2676_v6, %v2648_v57 }
0x1ba4   :  { %v2701_v16 = vcombine.high %v2700_v58, %v2700_v58  ;;  %v2708_v46 = vrot.slane %v2679_v51, %v5883_v33  ;;  %v2717_v11 = vcombine.high %v2716_v7, %v2716_v7  ;;  %v2724_v53 = vrot.slane %v2681_v36, %v5883_v33 }
0x1ba5   :  { %v2683_v37 = vadd.f32 %v2676_v6, %v2649_v27  ;;  %v2685_v49 = vadd.f32 %v2676_v6, %v2650_v28  ;;  %v2732_v38 = vrot.slane %v2682_v32, %v5883_v33  ;;  %v2748_v60 = vrot.slane %v2684_v59, %v5883_v33 }
0x1ba6   :  { %v2709_v61 = vcombine.high %v2708_v46, %v2708_v46  ;;  %v2725_v44 = vcombine.high %v2724_v53, %v2724_v53  ;;  %v4883_v18 = vpack.c.bf16 %v2701_v16, %v2700_v58  ;;  %v4885_v48 = vpack.c.bf16 %v2717_v11, %v2716_v7 }
0x1ba7   :  { %v2733_v52 = vcombine.high %v2732_v38, %v2732_v38  ;;  %v2740_v9 = vrot.slane %v2683_v37, %v5883_v33  ;;  %v2749_v29 = vcombine.high %v2748_v60, %v2748_v60  ;;  %v2756_v39 = vrot.slane %v2685_v49, %v5883_v33 }
0x1ba8   :  { %v2813_v62 = vrot.slane %v4883_v18, %v5923_v10  ;;  %v4884_v42 = vpack.c.bf16 %v2709_v61, %v2708_v46  ;;  %v2843_v12 = vrot.slane %v4885_v48, %v5923_v10  ;;  %v4886_v6 = vpack.c.bf16 %v2725_v44, %v2724_v53 }
0x1ba9   :  { %v2741_v13 = vcombine.high %v2740_v9, %v2740_v9  ;;  %v2757_v34 = vcombine.high %v2756_v39, %v2756_v39  ;;  %v4887_v15 = vpack.c.bf16 %v2733_v52, %v2732_v38  ;;  %v4889_v19 = vpack.c.bf16 %v2749_v29, %v2748_v60 }
0x1baa   :  { %v2828_v4 = vrot.slane %v4884_v42, %v5923_v10  ;;  %v2858_v31 = vrot.slane %v4886_v6, %v5923_v10  ;;  %4891 = vst.sshfl [vmem:[#allocation2] sm:$0x5 pattern:$0x73625140] %v2813_v62 }
0x1bab   :  { %4893 = vst.sshfl [vmem:[#allocation2 + $0x4] sm:$0x5 pattern:$0x73625140] %v2843_v12  ;;  %v2873_v54 = vrot.slane %v4887_v15, %v5923_v10  ;;  %v4888_v40 = vpack.c.bf16 %v2741_v13, %v2740_v9  ;;  %v2903_v55 = vrot.slane %v4889_v19, %v5923_v10  ;;  %v4890_v56 = vpack.c.bf16 %v2757_v34, %v2756_v39 }
0x1bac   :  { %4892 = vst.sshfl [vmem:[#allocation2 + $0x2] sm:$0x5 pattern:$0x73625140] %v2828_v4 }
0x1bad   :  { %4894 = vst.sshfl [vmem:[#allocation2 + $0x6] sm:$0x5 pattern:$0x73625140] %v2858_v31  ;;  %v2888_v57 = vrot.slane %v4888_v40, %v5923_v10  ;;  %v2918_v51 = vrot.slane %v4890_v56, %v5923_v10 }
0x1bae   :  { %4895 = vst.sshfl [vmem:[#allocation2 + $0x8] sm:$0x5 pattern:$0x73625140] %v2873_v54 }
0x1baf   :  { %4897 = vst.sshfl [vmem:[#allocation2 + $0xc] sm:$0x5 pattern:$0x73625140] %v2903_v55 }
0x1bb0   :  { %4896 = vst.sshfl [vmem:[#allocation2 + $0xa] sm:$0x5 pattern:$0x73625140] %v2888_v57 }
0x1bb1   :  { %4898 = vst.sshfl [vmem:[#allocation2 + $0xe] sm:$0x5 pattern:$0x73625140] %v2918_v51  ;;  %v3031_v36 = vld [vmem:[#allocation2] sm:$0x1] }
0x1bb2   :  { %v3032_v58 = vunpack.c.l.bf16 %v3031_v36  ;;  %v3972_v8 = vld [vmem:[#allocation2 + $0x5] sm:$0x1] }
0x1bb4   :  { %v3033_v7 = vadd.f32 %v3032_v58, %v6469_v41 }
0x1bb6   :  { %5221 = vtanh.f32 %v3033_v7  ;;  %v4907_v10 = vmul.f32 -1.442695, %v3033_v7 }
0x1bb8   :  { %v3084_v27 = vld [vmem:[#allocation2 + $0xf] sm:$0x1] }
0x1bb9   :  { %v3085_v28 = vunpack.c.l.bf16 %v3084_v27 }
0x1bbb   :  { %v3086_v32 = vadd.f32 %v3085_v28, %v6471_v63 }
0x1bbd   :  { %5223 = vtanh.f32 %v3086_v32  ;;  %v4908_v46 = vmul.f32 -1.442695, %v3086_v32 }
0x1bbe   :  { %5225 = vpow2.f32 %v4907_v10 }
0x1bbf   :  { %5227 = vpow2.f32 %v4908_v46 }
0x1bc0   :  { %v5222_v59 = vpop.eup %5221 }
0x1bc1   :  { %3043 = vrot.lane.b32.xlu0 %v5222_v59, %s5561_s2 }
0x1bc7   :  { %v5224_v16 = vpop.eup %5223 }
0x1bc8   :  { %3096 = vrot.lane.b32.xlu1 %v5224_v16, %s5561_s2  ;;  %v5226_v11 = vpop.eup %5225 }
0x1bc9   :  { %v3037_v53 = vadd.f32 1.0, %v5226_v11  ;;  %v5228_v37 = vpop.eup %5227 }
0x1bca   :  { %v3090_v41 = vadd.f32 1.0, %v5228_v37  ;;  %v3187_v37 = vld [vmem:[#allocation2 + $0x2] sm:$0x1] }
0x1bcb   :  { %5229 = vrcp.f32 %v3037_v53  ;;  %v3252_v53 = vld [vmem:[#allocation2 + $0xd] sm:$0x1] }
0x1bcc   :  { %5231 = vrcp.f32 %v3090_v41 }
0x1bd5   :  { %v5230_v49 = vpop.eup %5229 }
0x1bd6   :  { %v5232_v60 = vpop.eup %5231  ;;  %v3041_v18 = vmul.f32 0.0, %v5230_v49 }
0x1bd7   :  { %v3094_v9 = vmul.f32 0.0, %v5232_v60 }
0x1c33   :  { %v3044_v38 = vpop.permute.xlu0 %3043 }
0x1c34   :  { %v3046_v63 = vmul.f32 %v5230_v49, %v3044_v38 }
0x1c36   :  { %3048 = vrot.lane.b32.xlu0 %v3046_v63, %s5556_s7  ;;  %v3188_v63 = vunpack.c.l.bf16 %v3187_v37 }
0x1c3a   :  { %v3097_v61 = vpop.permute.xlu1 %3096 }
0x1c3b   :  { %v3099_v44 = vmul.f32 %v5232_v60, %v3097_v61 }
0x1c3d   :  { %3101 = vrot.lane.b32.xlu1 %v3099_v44, %s5556_s7 }
0x1ca8   :  { %v3049_v48 = vpop.permute.xlu0 %3048 }
0x1ca9   :  { %v3051_v52 = vadd.f32 %v3049_v48, %v3041_v18 }
0x1cab   :  { %5233 = vtanh.f32 %v3051_v52  ;;  %v3077_v15 = vrot.slane %v3051_v52, %v5883_v33 }
0x1caf   :  { %v3102_v29 = vpop.permute.xlu1 %3101 }
0x1cb0   :  { %v3104_v39 = vadd.f32 %v3102_v29, %v3094_v9 }
0x1cb2   :  { %5235 = vtanh.f32 %v3104_v39  ;;  %v3130_v34 = vrot.slane %v3104_v39, %v5883_v33 }
0x1cb5   :  { %v5234_v62 = vpop.eup %5233 }
0x1cb6   :  { %3054 = vrot.lane.b32.xlu0 %v5234_v62, %s5561_s2 }
0x1cbc   :  { %v5236_v42 = vpop.eup %5235 }
0x1cbd   :  { %3107 = vrot.lane.b32.xlu1 %v5236_v42, %s5561_s2 }
0x1d28   :  { %v3055_v19 = vpop.permute.xlu0 %3054 }
0x1d29   :  { %v3057_v4 = vmul.f32 %v5230_v49, %v3055_v19  ;;  %v3253_v49 = vunpack.c.l.bf16 %v3252_v53 }
0x1d2b   :  { %v3065_v31 = vrot.slane %v3057_v4, %v5883_v33 }
0x1d2f   :  { %v3108_v12 = vpop.permute.xlu1 %3107 }
0x1d30   :  { %v3110_v6 = vmul.f32 %v5232_v60, %v3108_v12 }
0x1d32   :  { %v3118_v13 = vrot.slane %v3110_v6, %v5883_v33 }
0x1d34   :  { %3119 = vrot.lane.b32.xlu1 %v3118_v13, %s5556_s7 }
0x1d38   :  { %3131 = vrot.lane.b32.xlu1 %v3130_v34, %s5566_s19 }
0x1d3c   :  { %3078 = vrot.lane.b32.xlu1 %v3077_v15, %s5566_s19 }
0x1da6   :  { %v3120_v54 = vpop.permute.xlu1 %3119 }
0x1da7   :  { %v6516_v40 = vsel %vm1024_vm5, %v3120_v54, 0.0 }
0x1da8   :  { %v3135_v55 = vpack.c.bf16 %v6516_v40, %v6516_v40  ;;  %v4992_v56 = vpack.i.bf16 %v6516_v40, %v3065_v31 }
0x1daa   :  { %3136 = vst.msk [vmem:[#allocation4 + $0x7] sm:$0x1] %vm990_vm6, %v3135_v55  ;;  %4993 = vrot.lane.b32.xlu0 %v4992_v56, %s5556_s7  ;;  %v3132_v57 = vpop.permute.xlu1 %3131 }
0x1dab   :  { %v6525_v51 = vsel %vm1024_vm5, %v3132_v57, 0.0 }
0x1dac   :  { %v3269_v36 = vrot.slane %v6525_v51, %v5883_v33 }
0x1dae   :  { %3270 = vrot.lane.b32.xlu1 %v3269_v36, %s5556_s7  ;;  %v3079_v58 = vpop.permute.xlu1 %3078 }
0x1daf   :  { %v6532_v7 = vsel %vm964_vm7, %v3079_v58, 0.0 }
0x1db0   :  { %v3204_v27 = vrot.slane %v6532_v7, %v5883_v33 }
0x1db2   :  { %3205 = vrot.lane.b32.xlu1 %v3204_v27, %s5556_s7 }
0x1e1c   :  { %v4994_v28 = vpop.permute.xlu0 %4993 }
0x1e1d   :  { %v4996_v32 = vunpack.i.h.bf16 %v4994_v28  ;;  %v4995_v59 = vunpack.i.l.bf16 %v4994_v28 }
0x1e1f   :  { %v6539_v16 = vsel %vm964_vm7, %v4995_v59, 0.0 }
0x1e20   :  { %v3082_v10 = vpack.c.bf16 %v6539_v16, %v6539_v16  ;;  %v3141_v46 = vsel %vm237_vm0, %v6539_v16, %v4996_v32  ;;  %v3271_v31 = vpop.permute.xlu1 %3270 }
0x1e21   :  { %v3142_v11 = vpack.c.bf16 %v3141_v46, %v3141_v46 }
0x1e22   :  { %3083 = vst.msk [vmem:[#allocation3] sm:$0x1] %vm990_vm6, %v3082_v10 }
0x1e23   :  { %4909 = vmatmul.mubr.msk.bf16.vlgmr.msra.gmra.mrb[24].mxu1 %vm246_vm1, %v3142_v11 }
0x1e24   :  { %3507 = vmatpush1.bf16.msra.mxu1 %v6405_v21  ;;  %3538 = vmatprep.mubr.bf16.mxu1 %v5562_v47  ;;  %v3206_v57 = vpop.permute.xlu1 %3205 }
0x1e25   :  { %3508 = vmatprep.subr.bf16.mxu1 %v6407_v35 }
0x1e28   :  { %3509 = vmatpush1.bf16.msra.mxu1 %v6411_v50 }
0x1e29   :  { %3510 = vmatprep.subr.bf16.mxu1 %v6414_v23 }
0x1e2c   :  { %3511 = vmatpush1.bf16.msra.mxu1 %v6417_v25 }
0x1e2d   :  { %3512 = vmatprep.subr.bf16.mxu1 %v6420_v5 }
0x1e30   :  { %3513 = vmatpush1.bf16.msra.mxu1 %v6423_v30 }
0x1e31   :  { %3866 = vmatprep.subr.bf16.mxu1 %v6403_v20 }
0x1ef6   :  { %v3180_v41 = vpop.f32.mrb[24].mxu1 }
0x1ef7   :  { %v3182_v38 = vpop.f32.mrb[25].mxu1  ;;  %v3189_v18 = vadd.f32 %v3188_v63, %v3180_v41 }
0x1ef8   :  { %v3254_v60 = vadd.f32 %v3253_v49, %v3182_v38  ;;  %v3184_v61 = vpop.f32.mrb[26].mxu1 }
0x1ef9   :  { %v3185_v44 = vpop.f32.mrb[27].mxu1  ;;  %v4910_v29 = vmul.f32 -1.442695, %v3189_v18 }
0x1efa   :  { %5237 = vtanh.f32 %v3254_v60  ;;  %v4911_v9 = vmul.f32 -1.442695, %v3254_v60 }
0x1efb   :  { %5239 = vtanh.f32 %v3189_v18 }
0x1efc   :  { %5241 = vpow2.f32 %v4911_v9 }
0x1efd   :  { %5243 = vpow2.f32 %v4910_v29 }
0x1f04   :  { %v5238_v48 = vpop.eup %5237 }
0x1f05   :  { %3275 = vrot.lane.b32.xlu0 %v5238_v48, %s5561_s2  ;;  %v5240_v52 = vpop.eup %5239 }
0x1f06   :  { %v5242_v39 = vpop.eup %5241 }
0x1f07   :  { %v3258_v62 = vadd.f32 1.0, %v5242_v39  ;;  %v5244_v42 = vpop.eup %5243 }
0x1f08   :  { %v3193_v12 = vadd.f32 1.0, %v5244_v42 }
0x1f09   :  { %3210 = vrot.lane.b32.xlu0 %v5240_v52, %s5561_s2  ;;  %5245 = vrcp.f32 %v3258_v62 }
0x1f0a   :  { %5247 = vrcp.f32 %v3193_v12 }
0x1f13   :  { %v5246_v6 = vpop.eup %5245 }
0x1f14   :  { %v5248_v15 = vpop.eup %5247  ;;  %v3273_v54 = vmul.f32 %v5246_v6, %v3271_v31 }
0x1f15   :  { %v3208_v36 = vmul.f32 %v5248_v15, %v3206_v57 }
0x1f77   :  { %v3276_v13 = vpop.permute.xlu0 %3275 }
0x1f78   :  { %v3278_v34 = vmul.f32 %v5246_v6, %v3276_v13 }
0x1f7a   :  { %3280 = vrot.lane.b32.xlu0 %v3278_v34, %s5556_s7  ;;  %v3367_v34 = vld [vmem:[#allocation2 + $0x4] sm:$0x1] }
0x1f7b   :  { %v3211_v19 = vpop.permute.xlu0 %3210  ;;  %v3368_v31 = vunpack.c.l.bf16 %v3367_v34 }
0x1f7c   :  { %v3213_v4 = vmul.f32 %v5248_v15, %v3211_v19 }
0x1f7e   :  { %3215 = vrot.lane.b32.xlu0 %v3213_v4, %s5556_s7 }
0x1fec   :  { %v3281_v55 = vpop.permute.xlu0 %3280 }
0x1fed   :  { %v3283_v56 = vadd.f32 %v3281_v55, %v3273_v54 }
0x1fef   :  { %5249 = vtanh.f32 %v3283_v56  ;;  %v3309_v11 = vrot.slane %v3283_v56, %v5883_v33 }
0x1ff0   :  { %v3216_v58 = vpop.permute.xlu0 %3215 }
0x1ff1   :  { %v3218_v27 = vadd.f32 %v3216_v58, %v3208_v36 }
0x1ff3   :  { %5251 = vtanh.f32 %v3218_v27  ;;  %v3244_v53 = vrot.slane %v3218_v27, %v5883_v33 }
0x1ff9   :  { %v5250_v28 = vpop.eup %5249 }
0x1ffa   :  { %3286 = vrot.lane.b32.xlu1 %v5250_v28, %s5561_s2 }
0x1ffd   :  { %v5252_v32 = vpop.eup %5251 }
0x1ffe   :  { %3221 = vrot.lane.b32.xlu0 %v5252_v32, %s5561_s2 }
0x206c   :  { %v3287_v59 = vpop.permute.xlu1 %3286 }
0x206d   :  { %v3289_v10 = vmul.f32 %v5246_v6, %v3287_v59 }
0x206f   :  { %v3297_v46 = vrot.slane %v3289_v10, %v5883_v33 }
0x2070   :  { %v3222_v37 = vpop.permute.xlu0 %3221 }
0x2071   :  { %3298 = vrot.lane.b32.xlu1 %v3297_v46, %s5556_s7  ;;  %v3224_v41 = vmul.f32 %v5248_v15, %v3222_v37 }
0x2073   :  { %v3232_v49 = vrot.slane %v3224_v41, %v5883_v33 }
0x2075   :  { %3310 = vrot.lane.b32.xlu1 %v3309_v11, %s5566_s19 }
0x2079   :  { %3245 = vrot.lane.b32.xlu1 %v3244_v53, %s5566_s19 }
0x20e3   :  { %v3299_v38 = vpop.permute.xlu1 %3298 }
0x20e4   :  { %v6572_v63 = vsel %vm1219_vm10, %v3299_v38, %v6516_v40  ;;  %v3314_v60 = vsel %vm1219_vm10, %v3299_v38, 0.0 }
0x20e5   :  { %v3315_v61 = vpack.c.bf16 %v3314_v60, %v3314_v60  ;;  %v4997_v44 = vpack.i.bf16 %v6572_v63, %v3232_v49 }
0x20e7   :  { %3316 = vst.msk [vmem:[#allocation4 + $0x6] sm:$0x1] %vm990_vm6, %v3315_v61  ;;  %4998 = vrot.lane.b32.xlu0 %v4997_v44, %s5556_s7  ;;  %v3311_v18 = vpop.permute.xlu1 %3310 }
0x20e8   :  { %v6582_v48 = vsel %vm1219_vm10, %v3311_v18, %v6525_v51 }
0x20e9   :  { %v3449_v40 = vrot.slane %v6582_v48, %v5883_v33 }
0x20eb   :  { %3450 = vrot.lane.b32.xlu1 %v3449_v40, %s5556_s7  ;;  %v3246_v52 = vpop.permute.xlu1 %3245 }
0x20ec   :  { %v6590_v9 = vsel %vm1147_vm11, %v3246_v52, %v6532_v7 }
0x20ed   :  { %v3384_v29 = vrot.slane %v6590_v9, %v5883_v33 }
0x20ef   :  { %3385 = vrot.lane.b32.xlu1 %v3384_v29, %s5556_s7 }
0x2159   :  { %v4999_v39 = vpop.permute.xlu0 %4998 }
0x215a   :  { %v5001_v62 = vunpack.i.h.bf16 %v4999_v39  ;;  %v5000_v51 = vunpack.i.l.bf16 %v4999_v39 }
0x215c   :  { %v6598_v42 = vsel %vm1147_vm11, %v5000_v51, %v6539_v16  ;;  %v3249_v12 = vsel %vm1147_vm11, %v5000_v51, 0.0  ;;  %v3432_v16 = vld [vmem:[#allocation2 + $0xb] sm:$0x1] }
0x215d   :  { %v3250_v6 = vpack.c.bf16 %v3249_v12, %v3249_v12  ;;  %v3321_v7 = vsel %vm237_vm0, %v6598_v42, %v5001_v62  ;;  %v3433_v19 = vunpack.c.l.bf16 %v3432_v16  ;;  %v3451_v60 = vpop.permute.xlu1 %3450 }
0x215e   :  { %v3322_v13 = vpack.c.bf16 %v3321_v7, %v3321_v7 }
0x215f   :  { %3251 = vst.msk [vmem:[#allocation3 + $0x1] sm:$0x1] %vm990_vm6, %v3250_v6 }
0x2160   :  { %4912 = vmatmul.mubr.msk.bf16.vlgmr.msra.gmra.mrb[24].mxu0 %vm246_vm1, %v3322_v13 }
0x2161   :  { %3687 = vmatpush1.bf16.msra.mxu0 %v6405_v21  ;;  %3718 = vmatprep.mubr.bf16.mxu0 %v5562_v47  ;;  %v3386_v40 = vpop.permute.xlu1 %3385 }
0x2162   :  { %3688 = vmatprep.subr.bf16.mxu0 %v6407_v35 }
0x2165   :  { %3689 = vmatpush1.bf16.msra.mxu0 %v6411_v50 }
0x2166   :  { %3690 = vmatprep.subr.bf16.mxu0 %v6414_v23 }
0x2169   :  { %3691 = vmatpush1.bf16.msra.mxu0 %v6417_v25 }
0x216a   :  { %3692 = vmatprep.subr.bf16.mxu0 %v6420_v5 }
0x216d   :  { %3693 = vmatpush1.bf16.msra.mxu0 %v6423_v30 }
0x216e   :  { %4046 = vmatprep.subr.bf16.mxu0 %v6403_v20 }
0x2233   :  { %v3360_v15 = vpop.f32.mrb[24].mxu0 }
0x2234   :  { %v3362_v4 = vpop.f32.mrb[25].mxu0  ;;  %v3369_v57 = vadd.f32 %v3368_v31, %v3360_v15 }
0x2235   :  { %v3434_v54 = vadd.f32 %v3433_v19, %v3362_v4  ;;  %v3364_v55 = vpop.f32.mrb[26].mxu0 }
0x2236   :  { %v3365_v56 = vpop.f32.mrb[27].mxu0  ;;  %v4913_v28 = vmul.f32 -1.442695, %v3369_v57 }
0x2237   :  { %5253 = vtanh.f32 %v3434_v54  ;;  %v4914_v27 = vmul.f32 -1.442695, %v3434_v54 }
0x2238   :  { %5255 = vtanh.f32 %v3369_v57 }
0x2239   :  { %5257 = vpow2.f32 %v4914_v27 }
0x223a   :  { %5259 = vpow2.f32 %v4913_v28 }
0x2241   :  { %v5254_v36 = vpop.eup %5253 }
0x2242   :  { %3455 = vrot.lane.b32.xlu0 %v5254_v36, %s5561_s2  ;;  %v5256_v58 = vpop.eup %5255 }
0x2243   :  { %v5258_v32 = vpop.eup %5257 }
0x2244   :  { %v3438_v59 = vadd.f32 1.0, %v5258_v32  ;;  %v5260_v10 = vpop.eup %5259 }
0x2245   :  { %v3373_v46 = vadd.f32 1.0, %v5260_v10 }
0x2246   :  { %3390 = vrot.lane.b32.xlu0 %v5256_v58, %s5561_s2  ;;  %5261 = vrcp.f32 %v3438_v59 }
0x2247   :  { %5263 = vrcp.f32 %v3373_v46 }
0x2250   :  { %v5262_v11 = vpop.eup %5261 }
0x2251   :  { %v5264_v41 = vpop.eup %5263  ;;  %v3453_v61 = vmul.f32 %v5262_v11, %v3451_v60 }
0x2252   :  { %v3388_v52 = vmul.f32 %v5264_v41, %v3386_v40 }
0x22b4   :  { %v3456_v53 = vpop.permute.xlu0 %3455 }
0x22b5   :  { %v3458_v37 = vmul.f32 %v5262_v11, %v3456_v53 }
0x22b7   :  { %3460 = vrot.lane.b32.xlu0 %v3458_v37, %s5556_s7  ;;  %v3547_v37 = vld [vmem:[#allocation2 + $0x6] sm:$0x1] }
0x22b8   :  { %v3391_v49 = vpop.permute.xlu0 %3390 }
0x22b9   :  { %v3393_v38 = vmul.f32 %v5264_v41, %v3391_v49 }
0x22bb   :  { %3395 = vrot.lane.b32.xlu0 %v3393_v38, %s5556_s7  ;;  %v3548_v38 = vunpack.c.l.bf16 %v3547_v37 }
0x2329   :  { %v3461_v44 = vpop.permute.xlu0 %3460 }
0x232a   :  { %v3463_v18 = vadd.f32 %v3461_v44, %v3453_v61 }
0x232c   :  { %5265 = vtanh.f32 %v3463_v18  ;;  %v3489_v13 = vrot.slane %v3463_v18, %v5883_v33 }
0x232d   :  { %v3396_v29 = vpop.permute.xlu0 %3395 }
0x232e   :  { %v3398_v39 = vadd.f32 %v3396_v29, %v3388_v52 }
0x2330   :  { %5267 = vtanh.f32 %v3398_v39  ;;  %v3424_v16 = vrot.slane %v3398_v39, %v5883_v33 }
0x2336   :  { %v5266_v62 = vpop.eup %5265 }
0x2337   :  { %3466 = vrot.lane.b32.xlu1 %v5266_v62, %s5561_s2 }
0x233a   :  { %v5268_v51 = vpop.eup %5267 }
0x233b   :  { %3401 = vrot.lane.b32.xlu0 %v5268_v51, %s5561_s2 }
0x23a9   :  { %v3467_v12 = vpop.permute.xlu1 %3466 }
0x23aa   :  { %v3469_v6 = vmul.f32 %v5262_v11, %v3467_v12 }
0x23ac   :  { %v3477_v7 = vrot.slane %v3469_v6, %v5883_v33 }
0x23ad   :  { %v3402_v34 = vpop.permute.xlu0 %3401 }
0x23ae   :  { %3478 = vrot.lane.b32.xlu1 %v3477_v7, %s5556_s7  ;;  %v3404_v15 = vmul.f32 %v5264_v41, %v3402_v34 }
0x23b0   :  { %v3412_v19 = vrot.slane %v3404_v15, %v5883_v33 }
0x23b2   :  { %3490 = vrot.lane.b32.xlu1 %v3489_v13, %s5566_s19 }
0x23b6   :  { %3425 = vrot.lane.b32.xlu1 %v3424_v16, %s5566_s19 }
0x2420   :  { %v3479_v4 = vpop.permute.xlu1 %3478 }
0x2421   :  { %v6631_v31 = vsel %vm1415_vm14, %v3479_v4, %v6572_v63  ;;  %v3494_v54 = vsel %vm1415_vm14, %v3479_v4, 0.0 }
0x2422   :  { %v3495_v55 = vpack.c.bf16 %v3494_v54, %v3494_v54  ;;  %v5002_v56 = vpack.i.bf16 %v6631_v31, %v3412_v19 }
0x2424   :  { %3496 = vst.msk [vmem:[#allocation4 + $0x5] sm:$0x1] %vm990_vm6, %v3495_v55  ;;  %5003 = vrot.lane.b32.xlu0 %v5002_v56, %s5556_s7  ;;  %v3491_v57 = vpop.permute.xlu1 %3490 }
0x2425   :  { %v6641_v36 = vsel %vm1415_vm14, %v3491_v57, %v6582_v48 }
0x2426   :  { %v3629_v63 = vrot.slane %v6641_v36, %v5883_v33 }
0x2428   :  { %3630 = vrot.lane.b32.xlu1 %v3629_v63, %s5556_s7  ;;  %v3426_v58 = vpop.permute.xlu1 %3425 }
0x2429   :  { %v6649_v27 = vsel %vm1343_vm15, %v3426_v58, %v6590_v9 }
0x242a   :  { %v3564_v28 = vrot.slane %v6649_v27, %v5883_v33 }
0x242c   :  { %3565 = vrot.lane.b32.xlu1 %v3564_v28, %s5556_s7 }
0x2496   :  { %v5004_v32 = vpop.permute.xlu0 %5003 }
0x2497   :  { %v5006_v59 = vunpack.i.h.bf16 %v5004_v32  ;;  %v5005_v48 = vunpack.i.l.bf16 %v5004_v32 }
0x2499   :  { %v6657_v10 = vsel %vm1343_vm15, %v5005_v48, %v6598_v42  ;;  %v3429_v46 = vsel %vm1343_vm15, %v5005_v48, 0.0  ;;  %v3612_v42 = vld [vmem:[#allocation2 + $0x9] sm:$0x1] }
0x249a   :  { %v3430_v11 = vpack.c.bf16 %v3429_v46, %v3429_v46  ;;  %v3501_v9 = vsel %vm237_vm0, %v6657_v10, %v5006_v59  ;;  %v3631_v6 = vpop.permute.xlu1 %3630 }
0x249b   :  { %v3502_v53 = vpack.c.bf16 %v3501_v9, %v3501_v9 }
0x249c   :  { %3431 = vst.msk [vmem:[#allocation3 + $0x2] sm:$0x1] %vm990_vm6, %v3430_v11 }
0x249d   :  { %4915 = vmatmul.mubr.msk.bf16.vlgmr.msra.gmra.mrb[28].mxu1 %vm246_vm1, %v3502_v53 }
0x249e   :  { %3867 = vmatpush1.bf16.msra.mxu1 %v6405_v21  ;;  %3898 = vmatprep.mubr.bf16.mxu1 %v5562_v47  ;;  %v3613_v21 = vunpack.c.l.bf16 %v3612_v42  ;;  %v3566_v34 = vpop.permute.xlu1 %3565 }
0x249f   :  { %3868 = vmatprep.subr.bf16.mxu1 %v6407_v35 }
0x24a2   :  { %3869 = vmatpush1.bf16.msra.mxu1 %v6411_v50 }
0x24a3   :  { %3870 = vmatprep.subr.bf16.mxu1 %v6414_v23 }
0x24a6   :  { %3871 = vmatpush1.bf16.msra.mxu1 %v6417_v25 }
0x24a7   :  { %3872 = vmatprep.subr.bf16.mxu1 %v6420_v5 }
0x24aa   :  { %3873 = vmatpush1.bf16.msra.mxu1 %v6423_v30 }
0x24ab   :  { %4226 = vmatprep.subr.bf16.mxu1 %v6403_v20 }
0x2570   :  { %v3540_v41 = vpop.f32.mrb[28].mxu1 }
0x2571   :  { %v3542_v49 = vpop.f32.mrb[29].mxu1  ;;  %v3549_v50 = vadd.f32 %v3548_v38, %v3540_v41 }
0x2572   :  { %v3614_v60 = vadd.f32 %v3613_v21, %v3542_v49  ;;  %v3544_v35 = vpop.f32.mrb[30].mxu1 }
0x2573   :  { %v3545_v61 = vpop.f32.mrb[31].mxu1  ;;  %v4916_v20 = vmul.f32 -1.442695, %v3549_v50 }
0x2574   :  { %5269 = vtanh.f32 %v3614_v60  ;;  %v4917_v5 = vmul.f32 -1.442695, %v3614_v60 }
0x2575   :  { %5271 = vtanh.f32 %v3549_v50 }
0x2576   :  { %5273 = vpow2.f32 %v4917_v5  ;;  %v6724_v5 = vld [vmem:[#allocation16] ss:$8 sps:$4 sm:$0xff]  }
0x2577   :  { %5275 = vpow2.f32 %v4916_v20  ;;  %v6731_v20 = vld [vmem:[#allocation16 + $0x10] ss:$8 sps:$4 sm:$0xff]  }
0x257e   :  { %v5270_v23 = vpop.eup %5269 }
0x257f   :  { %3635 = vrot.lane.b32.xlu0 %v5270_v23, %s5561_s2  ;;  %v5272_v25 = vpop.eup %5271 }
0x2580   :  { %v5274_v30 = vpop.eup %5273 }
0x2581   :  { %v3618_v44 = vadd.f32 1.0, %v5274_v30  ;;  %v5276_v18 = vpop.eup %5275  ;;  %v6734_v30 = vld [vmem:[#allocation16 + $0x24] ss:$8 sps:$4 sm:$0xff]  }
0x2582   :  { %v3553_v40 = vadd.f32 1.0, %v5276_v18  ;;  %v6740_v18 = vld [vmem:[#allocation16 + $0x34] ss:$8 sps:$4 sm:$0xff]  }
0x2583   :  { %3570 = vrot.lane.b32.xlu0 %v5272_v25, %s5561_s2  ;;  %5277 = vrcp.f32 %v3618_v44  ;;  %v6737_v44 = vld [vmem:[#allocation16 + $0x20] ss:$8 sps:$4 sm:$0xff]  }
0x2584   :  { %5279 = vrcp.f32 %v3553_v40  ;;  %v6743_v40 = vld [vmem:[#allocation16 + $0x30] ss:$8 sps:$4 sm:$0xff]  }
0x258d   :  { %v5278_v52 = vpop.eup %5277 }
0x258e   :  { %v5280_v62 = vpop.eup %5279  ;;  %v3633_v7 = vmul.f32 %v5278_v52, %v3631_v6 }
0x258f   :  { %v3568_v15 = vmul.f32 %v5280_v62, %v3566_v34 }
0x25f1   :  { %v3636_v29 = vpop.permute.xlu0 %3635 }
0x25f2   :  { %v3638_v39 = vmul.f32 %v5278_v52, %v3636_v29  ;;  %v3727_v29 = vld [vmem:[#allocation2 + $0x8] sm:$0x1] }
0x25f4   :  { %3640 = vrot.lane.b32.xlu0 %v3638_v39, %s5556_s7 }
0x25f5   :  { %v3571_v51 = vpop.permute.xlu0 %3570 }
0x25f6   :  { %v3573_v12 = vmul.f32 %v5280_v62, %v3571_v51 }
0x25f8   :  { %3575 = vrot.lane.b32.xlu0 %v3573_v12, %s5556_s7  ;;  %v3728_v12 = vunpack.c.l.bf16 %v3727_v29 }
0x2666   :  { %v3641_v13 = vpop.permute.xlu0 %3640 }
0x2667   :  { %v3643_v16 = vadd.f32 %v3641_v13, %v3633_v7 }
0x2669   :  { %5281 = vtanh.f32 %v3643_v16  ;;  %v3669_v58 = vrot.slane %v3643_v16, %v5883_v33 }
0x266a   :  { %v3576_v19 = vpop.permute.xlu0 %3575 }
0x266b   :  { %v3578_v4 = vadd.f32 %v3576_v19, %v3568_v15 }
0x266d   :  { %5283 = vtanh.f32 %v3578_v4  ;;  %v3604_v28 = vrot.slane %v3578_v4, %v5883_v33 }
0x2673   :  { %v5282_v54 = vpop.eup %5281 }
0x2674   :  { %3646 = vrot.lane.b32.xlu1 %v5282_v54, %s5561_s2 }
0x2677   :  { %v5284_v55 = vpop.eup %5283 }
0x2678   :  { %3581 = vrot.lane.b32.xlu0 %v5284_v55, %s5561_s2 }
0x26e6   :  { %v3647_v56 = vpop.permute.xlu1 %3646 }
0x26e7   :  { %v3649_v57 = vmul.f32 %v5278_v52, %v3647_v56  ;;  %v3792_v52 = vld [vmem:[#allocation2 + $0x7] sm:$0x1] }
0x26e9   :  { %v3657_v63 = vrot.slane %v3649_v57, %v5883_v33 }
0x26ea   :  { %v3582_v32 = vpop.permute.xlu0 %3581 }
0x26eb   :  { %3658 = vrot.lane.b32.xlu1 %v3657_v63, %s5556_s7  ;;  %v3584_v59 = vmul.f32 %v5280_v62, %v3582_v32  ;;  %v3793_v62 = vunpack.c.l.bf16 %v3792_v52 }
0x26ed   :  { %v3592_v48 = vrot.slane %v3584_v59, %v5883_v33 }
0x26ef   :  { %3670 = vrot.lane.b32.xlu1 %v3669_v58, %s5566_s19 }
0x26f3   :  { %3605 = vrot.lane.b32.xlu1 %v3604_v28, %s5566_s19 }
0x275d   :  { %v3659_v46 = vpop.permute.xlu1 %3658 }
0x275e   :  { %v6690_v11 = vsel %vm1611_vm4, %v3659_v46, %v6631_v31  ;;  %v3674_v9 = vsel %vm1611_vm4, %v3659_v46, 0.0 }
0x275f   :  { %v3675_v53 = vpack.c.bf16 %v3674_v9, %v3674_v9  ;;  %v5007_v42 = vpack.i.bf16 %v6690_v11, %v3592_v48 }
0x2761   :  { %3676 = vst.msk [vmem:[#allocation4 + $0x4] sm:$0x1] %vm990_vm6, %v3675_v53  ;;  %5008 = vrot.lane.b32.xlu0 %v5007_v42, %s5556_s7  ;;  %v3671_v37 = vpop.permute.xlu1 %3670 }
0x2762   :  { %v6700_v41 = vsel %vm1611_vm4, %v3671_v37, %v6641_v36 }
0x2763   :  { %v3809_v31 = vrot.slane %v6700_v41, %v5883_v33 }
0x2765   :  { %3810 = vrot.lane.b32.xlu1 %v3809_v31, %s5556_s7  ;;  %v3606_v21 = vpop.permute.xlu1 %3605 }
0x2766   :  { %v6708_v49 = vsel %vm1539_vm8, %v3606_v21, %v6649_v27 }
0x2767   :  { %v3744_v38 = vrot.slane %v6708_v49, %v5883_v33 }
0x2769   :  { %3745 = vrot.lane.b32.xlu1 %v3744_v38, %s5556_s7 }
0x27d3   :  { %v5009_v60 = vpop.permute.xlu0 %5008 }
0x27d4   :  { %v5011_v35 = vunpack.i.h.bf16 %v5009_v60  ;;  %v5010_v36 = vunpack.i.l.bf16 %v5009_v60 }
0x27d6   :  { %v6716_v61 = vsel %vm1539_vm8, %v5010_v36, %v6657_v10  ;;  %v3609_v50 = vsel %vm1539_vm8, %v5010_v36, 0.0  ;;  %v6728_v10 = vld [vmem:[#allocation16 + $0x14] ss:$8 sps:$4 sm:$0xff]  }
0x27d7   :  { %v3610_v23 = vpack.c.bf16 %v3609_v50, %v3609_v50  ;;  %v3681_v27 = vsel %vm237_vm0, %v6716_v61, %v5011_v35  ;;  %v3811_v46 = vpop.permute.xlu1 %3810 }
0x27d8   :  { %v3682_v25 = vpack.c.bf16 %v3681_v27, %v3681_v27 }
0x27d9   :  { %3611 = vst.msk [vmem:[#allocation3 + $0x3] sm:$0x1] %vm990_vm6, %v3610_v23 }
0x27da   :  { %4918 = vmatmul.mubr.msk.bf16.vlgmr.msra.gmra.mrb[28].mxu0 %vm246_vm1, %v3682_v25 }
0x27db   :  { %4047 = vmatpush1.bf16.msra.mxu0 %v6724_v5  ;;  %4078 = vmatprep.mubr.bf16.mxu0 %v5562_v47  ;;  %v3746_v37 = vpop.permute.xlu1 %3745 }
0x27dc   :  { %4048 = vmatprep.subr.bf16.mxu0 %v6728_v10 }
0x27df   :  { %4049 = vmatpush1.bf16.msra.mxu0 %v6731_v20 }
0x27e0   :  { %4050 = vmatprep.subr.bf16.mxu0 %v6734_v30 }
0x27e3   :  { %4051 = vmatpush1.bf16.msra.mxu0 %v6737_v44 }
0x27e4   :  { %4052 = vmatprep.subr.bf16.mxu0 %v6740_v18 }
0x27e7   :  { %4053 = vmatpush1.bf16.msra.mxu0 %v6743_v40 }
0x28ad   :  { %v3720_v39 = vpop.f32.mrb[28].mxu0 }
0x28ae   :  { %v3722_v51 = vpop.f32.mrb[29].mxu0  ;;  %v3729_v16 = vadd.f32 %v3728_v12, %v3720_v39 }
0x28af   :  { %v3794_v6 = vadd.f32 %v3793_v62, %v3722_v51  ;;  %v3724_v7 = vpop.f32.mrb[30].mxu0 }
0x28b0   :  { %v3725_v13 = vpop.f32.mrb[31].mxu0  ;;  %v4919_v4 = vmul.f32 -1.442695, %v3729_v16 }
0x28b1   :  { %5285 = vtanh.f32 %v3794_v6  ;;  %v4920_v19 = vmul.f32 -1.442695, %v3794_v6 }
0x28b2   :  { %5287 = vtanh.f32 %v3729_v16 }
0x28b3   :  { %5289 = vpow2.f32 %v4920_v19 }
0x28b4   :  { %5291 = vpow2.f32 %v4919_v4 }
0x28bb   :  { %v5286_v34 = vpop.eup %5285 }
0x28bc   :  { %3815 = vrot.lane.b32.xlu0 %v5286_v34, %s5561_s2  ;;  %v5288_v15 = vpop.eup %5287 }
0x28bd   :  { %v5290_v54 = vpop.eup %5289 }
0x28be   :  { %v3798_v55 = vadd.f32 1.0, %v5290_v54  ;;  %v5292_v56 = vpop.eup %5291 }
0x28bf   :  { %v3733_v57 = vadd.f32 1.0, %v5292_v56 }
0x28c0   :  { %3750 = vrot.lane.b32.xlu0 %v5288_v15, %s5561_s2  ;;  %5293 = vrcp.f32 %v3798_v55 }
0x28c1   :  { %5295 = vrcp.f32 %v3733_v57 }
0x28ca   :  { %v5294_v63 = vpop.eup %5293 }
0x28cb   :  { %v5296_v32 = vpop.eup %5295  ;;  %v3813_v9 = vmul.f32 %v5294_v63, %v3811_v46 }
0x28cc   :  { %v3748_v31 = vmul.f32 %v5296_v32, %v3746_v37 }
0x292e   :  { %v3816_v58 = vpop.permute.xlu0 %3815 }
0x292f   :  { %v3818_v28 = vmul.f32 %v5294_v63, %v3816_v58  ;;  %v3973_v58 = vunpack.c.l.bf16 %v3972_v8 }
0x2931   :  { %3820 = vrot.lane.b32.xlu0 %v3818_v28, %s5556_s7 }
0x2932   :  { %v3751_v59 = vpop.permute.xlu0 %3750 }
0x2933   :  { %v3753_v48 = vmul.f32 %v5296_v32, %v3751_v59 }
0x2935   :  { %3755 = vrot.lane.b32.xlu0 %v3753_v48, %s5556_s7 }
0x29a3   :  { %v3821_v53 = vpop.permute.xlu0 %3820 }
0x29a4   :  { %v3823_v42 = vadd.f32 %v3821_v53, %v3813_v9 }
0x29a6   :  { %5297 = vtanh.f32 %v3823_v42  ;;  %v3849_v27 = vrot.slane %v3823_v42, %v5883_v33 }
0x29a7   :  { %v3756_v21 = vpop.permute.xlu0 %3755 }
0x29a8   :  { %v3758_v38 = vadd.f32 %v3756_v21, %v3748_v31 }
0x29aa   :  { %5299 = vtanh.f32 %v3758_v38  ;;  %v3784_v25 = vrot.slane %v3758_v38, %v5883_v33 }
0x29b0   :  { %v5298_v60 = vpop.eup %5297 }
0x29b1   :  { %3826 = vrot.lane.b32.xlu1 %v5298_v60, %s5561_s2 }
0x29b4   :  { %v5300_v35 = vpop.eup %5299 }
0x29b5   :  { %3761 = vrot.lane.b32.xlu0 %v5300_v35, %s5561_s2 }
0x2a23   :  { %v3827_v36 = vpop.permute.xlu1 %3826 }
0x2a24   :  { %v3829_v50 = vmul.f32 %v5294_v63, %v3827_v36 }
0x2a26   :  { %v3837_v23 = vrot.slane %v3829_v50, %v5883_v33 }
0x2a27   :  { %v3762_v52 = vpop.permute.xlu0 %3761 }
0x2a28   :  { %3838 = vrot.lane.b32.xlu1 %v3837_v23, %s5556_s7  ;;  %v3764_v29 = vmul.f32 %v5296_v32, %v3762_v52 }
0x2a2a   :  { %v3772_v39 = vrot.slane %v3764_v29, %v5883_v33 }
0x2a2c   :  { %3850 = vrot.lane.b32.xlu1 %v3849_v27, %s5566_s19 }
0x2a30   :  { %3785 = vrot.lane.b32.xlu1 %v3784_v25, %s5566_s19 }
0x2a9a   :  { %v3839_v62 = vpop.permute.xlu1 %3838 }
0x2a9b   :  { %v6762_v51 = vsel %vm1539_vm8, %v3839_v62, %v6690_v11  ;;  %v3854_v12 = vsel %vm1539_vm8, %v3839_v62, 0.0 }
0x2a9c   :  { %v3855_v6 = vpack.c.bf16 %v3854_v12, %v3854_v12  ;;  %v5012_v7 = vpack.i.bf16 %v6762_v51, %v3772_v39 }
0x2a9e   :  { %3856 = vst.msk [vmem:[#allocation4 + $0x3] sm:$0x1] %vm990_vm6, %v3855_v6  ;;  %5013 = vrot.lane.b32.xlu0 %v5012_v7, %s5556_s7  ;;  %v3851_v13 = vpop.permute.xlu1 %3850 }
0x2a9f   :  { %v6772_v16 = vsel %vm1539_vm8, %v3851_v13, %v6700_v41 }
0x2aa0   :  { %v3989_v11 = vrot.slane %v6772_v16, %v5883_v33 }
0x2aa2   :  { %3990 = vrot.lane.b32.xlu1 %v3989_v11, %s5556_s7  ;;  %v3786_v34 = vpop.permute.xlu1 %3785 }
0x2aa3   :  { %v6780_v15 = vsel %vm1611_vm4, %v3786_v34, %v6708_v49 }
0x2aa4   :  { %v3924_v19 = vrot.slane %v6780_v15, %v5883_v33 }
0x2aa6   :  { %3925 = vrot.lane.b32.xlu1 %v3924_v19, %s5556_s7 }
0x2b10   :  { %v5014_v4 = vpop.permute.xlu0 %5013 }
0x2b11   :  { %v5016_v43 = vunpack.i.h.bf16 %v5014_v4  ;;  %v5015_v41 = vunpack.i.l.bf16 %v5014_v4 }
0x2b13   :  { %v6788_v54 = vsel %vm1611_vm4, %v5015_v41, %v6716_v61  ;;  %v3789_v55 = vsel %vm1611_vm4, %v5015_v41, 0.0  ;;  %v3907_v61 = vld [vmem:[#allocation2 + $0xa] sm:$0x1] }
0x2b14   :  { %v3790_v56 = vpack.c.bf16 %v3789_v55, %v3789_v55  ;;  %v3861_v49 = vsel %vm237_vm0, %v6788_v54, %v5016_v43  ;;  %v3991_v60 = vpop.permute.xlu1 %3990 }
0x2b15   :  { %v3862_v57 = vpack.c.bf16 %v3861_v49, %v3861_v49 }
0x2b16   :  { %3791 = vst.msk [vmem:[#allocation3 + $0x4] sm:$0x1] %vm990_vm6, %v3790_v56 }
0x2b17   :  { %4921 = vmatmul.mubr.msk.bf16.vlgmr.msra.gmra.mrb[32].mxu1 %vm246_vm1, %v3862_v57 }
0x2b18   :  { %4227 = vmatpush1.bf16.msra.mxu1 %v6724_v5  ;;  %4258 = vmatprep.mubr.bf16.mxu1 %v5562_v47  ;;  %v3908_v5 = vunpack.c.l.bf16 %v3907_v61  ;;  %v3926_v23 = vpop.permute.xlu1 %3925 }
0x2b19   :  { %4228 = vmatprep.subr.bf16.mxu1 %v6728_v10 }
0x2b1c   :  { %4229 = vmatpush1.bf16.msra.mxu1 %v6731_v20 }
0x2b1d   :  { %4230 = vmatprep.subr.bf16.mxu1 %v6734_v30 }
0x2b20   :  { %4231 = vmatpush1.bf16.msra.mxu1 %v6737_v44 }
0x2b21   :  { %4232 = vmatprep.subr.bf16.mxu1 %v6740_v18 }
0x2b24   :  { %4233 = vmatpush1.bf16.msra.mxu1 %v6743_v40 }
0x2bea   :  { %v3900_v63 = vpop.f32.mrb[32].mxu1 }
0x2beb   :  { %v3902_v28 = vpop.f32.mrb[33].mxu1  ;;  %v3909_v10 = vadd.f32 %v3908_v5, %v3900_v63 }
0x2bec   :  { %v3974_v32 = vadd.f32 %v3973_v58, %v3902_v28  ;;  %v3904_v47 = vpop.f32.mrb[34].mxu1 }
0x2bed   :  { %v3905_v59 = vpop.f32.mrb[35].mxu1  ;;  %v4922_v18 = vmul.f32 -1.442695, %v3909_v10 }
0x2bee   :  { %5301 = vtanh.f32 %v3974_v32  ;;  %v4923_v44 = vmul.f32 -1.442695, %v3974_v32  ;;  %v4152_v59 = vld [vmem:[#allocation2 + $0x3] sm:$0x1] }
0x2bef   :  { %5303 = vtanh.f32 %v3909_v10  ;;  %v4087_v10 = vld [vmem:[#allocation2 + $0xc] sm:$0x1] }
0x2bf0   :  { %5305 = vpow2.f32 %v4923_v44 }
0x2bf1   :  { %5307 = vpow2.f32 %v4922_v18  ;;  %v4088_v18 = vunpack.c.l.bf16 %v4087_v10  ;;  %v6884_v10 = vld [vmem:[#allocation3 + $0x1] sm:$0x1] }
0x2bf8   :  { %v5302_v20 = vpop.eup %5301 }
0x2bf9   :  { %3995 = vrot.lane.b32.xlu0 %v5302_v20, %s5561_s2  ;;  %v5304_v30 = vpop.eup %5303 }
0x2bfa   :  { %v5306_v40 = vpop.eup %5305 }
0x2bfb   :  { %v3978_v48 = vadd.f32 1.0, %v5306_v40  ;;  %v5308_v46 = vpop.eup %5307 }
0x2bfc   :  { %v3913_v9 = vadd.f32 1.0, %v5308_v46 }
0x2bfd   :  { %3930 = vrot.lane.b32.xlu0 %v5304_v30, %s5561_s2  ;;  %5309 = vrcp.f32 %v3978_v48  ;;  %v4153_v30 = vunpack.c.l.bf16 %v4152_v59 }
0x2bfe   :  { %5311 = vrcp.f32 %v3913_v9 }
0x2c07   :  { %v5310_v53 = vpop.eup %5309 }
0x2c08   :  { %v5312_v31 = vpop.eup %5311  ;;  %v3993_v35 = vmul.f32 %v5310_v53, %v3991_v60 }
0x2c09   :  { %v3928_v27 = vmul.f32 %v5312_v31, %v3926_v23 }
0x2c6b   :  { %v3996_v42 = vpop.permute.xlu0 %3995 }
0x2c6c   :  { %v3998_v37 = vmul.f32 %v5310_v53, %v3996_v42 }
0x2c6e   :  { %4000 = vrot.lane.b32.xlu0 %v3998_v37, %s5556_s7 }
0x2c6f   :  { %v3931_v21 = vpop.permute.xlu0 %3930 }
0x2c70   :  { %v3933_v38 = vmul.f32 %v5312_v31, %v3931_v21 }
0x2c72   :  { %3935 = vrot.lane.b32.xlu0 %v3933_v38, %s5556_s7 }
0x2ce0   :  { %v4001_v36 = vpop.permute.xlu0 %4000 }
0x2ce1   :  { %v4003_v50 = vadd.f32 %v4001_v36, %v3993_v35 }
0x2ce3   :  { %5313 = vtanh.f32 %v4003_v50  ;;  %v4029_v7 = vrot.slane %v4003_v50, %v5883_v33 }
0x2ce4   :  { %v3936_v25 = vpop.permute.xlu0 %3935 }
0x2ce5   :  { %v3938_v52 = vadd.f32 %v3936_v25, %v3928_v27 }
0x2ce7   :  { %5315 = vtanh.f32 %v3938_v52  ;;  %v3964_v13 = vrot.slane %v3938_v52, %v5883_v33 }
0x2ced   :  { %v5314_v29 = vpop.eup %5313 }
0x2cee   :  { %4006 = vrot.lane.b32.xlu1 %v5314_v29, %s5561_s2 }
0x2cf1   :  { %v5316_v39 = vpop.eup %5315 }
0x2cf2   :  { %3941 = vrot.lane.b32.xlu0 %v5316_v39, %s5561_s2 }
0x2d60   :  { %v4007_v62 = vpop.permute.xlu1 %4006 }
0x2d61   :  { %v4009_v12 = vmul.f32 %v5310_v53, %v4007_v62 }
0x2d63   :  { %v4017_v6 = vrot.slane %v4009_v12, %v5883_v33 }
0x2d64   :  { %v3942_v11 = vpop.permute.xlu0 %3941 }
0x2d65   :  { %4018 = vrot.lane.b32.xlu1 %v4017_v6, %s5556_s7  ;;  %v3944_v34 = vmul.f32 %v5312_v31, %v3942_v11 }
0x2d67   :  { %v3952_v19 = vrot.slane %v3944_v34, %v5883_v33 }
0x2d69   :  { %4030 = vrot.lane.b32.xlu1 %v4029_v7, %s5566_s19 }
0x2d6d   :  { %3965 = vrot.lane.b32.xlu1 %v3964_v13, %s5566_s19 }
0x2dd7   :  { %v4019_v4 = vpop.permute.xlu1 %4018 }
0x2dd8   :  { %v6820_v43 = vsel %vm1343_vm15, %v4019_v4, %v6762_v51  ;;  %v4034_v41 = vsel %vm1343_vm15, %v4019_v4, 0.0 }
0x2dd9   :  { %v4035_v55 = vpack.c.bf16 %v4034_v41, %v4034_v41  ;;  %v5017_v56 = vpack.i.bf16 %v6820_v43, %v3952_v19 }
0x2ddb   :  { %4036 = vst.msk [vmem:[#allocation4 + $0x2] sm:$0x1] %vm990_vm6, %v4035_v55  ;;  %5018 = vrot.lane.b32.xlu0 %v5017_v56, %s5556_s7  ;;  %v4031_v49 = vpop.permute.xlu1 %4030 }
0x2ddc   :  { %v6830_v57 = vsel %vm1343_vm15, %v4031_v49, %v6772_v16 }
0x2ddd   :  { %v4169_v51 = vrot.slane %v6830_v57, %v5883_v33 }
0x2ddf   :  { %4170 = vrot.lane.b32.xlu1 %v4169_v51, %s5556_s7  ;;  %v3966_v8 = vpop.permute.xlu1 %3965 }
0x2de0   :  { %v6838_v61 = vsel %vm1415_vm14, %v3966_v8, %v6780_v15 }
0x2de1   :  { %v4104_v63 = vrot.slane %v6838_v61, %v5883_v33 }
0x2de3   :  { %4105 = vrot.lane.b32.xlu1 %v4104_v63, %s5556_s7 }
0x2e4d   :  { %v5019_v58 = vpop.permute.xlu0 %5018 }
0x2e4e   :  { %v5021_v26 = vunpack.i.h.bf16 %v5019_v58  ;;  %v5020_v16 = vunpack.i.l.bf16 %v5019_v58 }
0x2e50   :  { %v6846_v28 = vsel %vm1415_vm14, %v5020_v16, %v6788_v54  ;;  %v3969_v5 = vsel %vm1415_vm14, %v5020_v16, 0.0 }
0x2e51   :  { %v3970_v32 = vpack.c.bf16 %v3969_v5, %v3969_v5  ;;  %v4041_v15 = vsel %vm237_vm0, %v6846_v28, %v5021_v26  ;;  %v4171_v25 = vpop.permute.xlu1 %4170 }
0x2e52   :  { %v4042_v47 = vpack.c.bf16 %v4041_v15, %v4041_v15 }
0x2e53   :  { %3971 = vst.msk [vmem:[#allocation3 + $0x5] sm:$0x1] %vm990_vm6, %v3970_v32 }
0x2e54   :  { %4924 = vmatmul.mubr.msk.bf16.vlgmr.msra.gmra.mrb[32].mxu0 %vm246_vm1, %v4042_v47 }
0x2e55   :  { %v4106_v62 = vpop.permute.xlu1 %4105 }
0x2f27   :  { %v4080_v20 = vpop.f32.mrb[32].mxu0 }
0x2f28   :  { %v4082_v44 = vpop.f32.mrb[33].mxu0  ;;  %v4089_v0 = vadd.f32 %v4088_v18, %v4080_v20  ;;  %v6890_v20 = vld [vmem:[#allocation3 + $0x4] sm:$0x1] }
0x2f29   :  { %v4154_v54 = vadd.f32 %v4153_v30, %v4082_v44  ;;  %v4084_v40 = vpop.f32.mrb[34].mxu0  ;;  %v6893_v30 = vrot.slane %v4403_v17, %v5909_v1  ;;  %v4383_v44 = vunpack.c.l.bf16 %v6890_v20  ;;  %v6905_v1 = vrot.slane %v4403_v17, %v5912_v3 }
0x2f2a   :  { %v4085_v48 = vpop.f32.mrb[35].mxu0  ;;  %v4925_v42 = vmul.f32 -1.442695, %v4089_v0 }
0x2f2b   :  { %5317 = vtanh.f32 %v4154_v54  ;;  %v4926_v53 = vmul.f32 -1.442695, %v4154_v54  ;;  %v4413_v54 = vmul.f32 %v6893_v30, %v4383_v44  ;;  %v4553_v48 = vrot.slane %v6905_v1, %v5883_v33 }
0x2f2c   :  { %5319 = vtanh.f32 %v4089_v0  ;;  %v6910_v0 = vld [vmem:[#allocation3 + $0x5] sm:$0x1] }
0x2f2d   :  { %5321 = vpow2.f32 %v4926_v53  ;;  %v4430_v40 = vsel %vm4417_vm9, %v4413_v54, 0.0 }
0x2f2e   :  { %5323 = vpow2.f32 %v4925_v42 }
0x2f35   :  { %v5318_v46 = vpop.eup %5317 }
0x2f36   :  { %4175 = vrot.lane.b32.xlu0 %v5318_v46, %s5561_s2  ;;  %v5320_v9 = vpop.eup %5319  ;;  %v4384_v46 = vunpack.c.l.bf16 %v6910_v0 }
0x2f37   :  { %v5322_v37 = vpop.eup %5321 }
0x2f38   :  { %v4158_v31 = vadd.f32 1.0, %v5322_v37  ;;  %v5324_v21 = vpop.eup %5323 }
0x2f39   :  { %v4093_v38 = vadd.f32 1.0, %v5324_v21 }
0x2f3a   :  { %4110 = vrot.lane.b32.xlu0 %v5320_v9, %s5561_s2  ;;  %5325 = vrcp.f32 %v4158_v31  ;;  %v4414_v9 = vmul.f32 %v6893_v30, %v4384_v46 }
0x2f3b   :  { %5327 = vrcp.f32 %v4093_v38 }
0x2f3c   :  { %v4433_v53 = vsel %vm4417_vm9, %v4414_v9, 0.0 }
0x2f44   :  { %v5326_v60 = vpop.eup %5325 }
0x2f45   :  { %v5328_v50 = vpop.eup %5327  ;;  %v4173_v52 = vmul.f32 %v5326_v60, %v4171_v25 }
0x2f46   :  { %v4108_v12 = vmul.f32 %v5328_v50, %v4106_v62 }
0x2fa8   :  { %v4176_v35 = vpop.permute.xlu0 %4175 }
0x2fa9   :  { %v4178_v36 = vmul.f32 %v5326_v60, %v4176_v35 }
0x2fab   :  { %4180 = vrot.lane.b32.xlu0 %v4178_v36, %s5556_s7  ;;  %v4319_v36 = vld [vmem:[#allocation2 + $0x1] sm:$0x1] }
0x2fac   :  { %v4111_v23 = vpop.permute.xlu0 %4110 }
0x2fad   :  { %v4113_v27 = vmul.f32 %v5328_v50, %v4111_v23 }
0x2faf   :  { %4115 = vrot.lane.b32.xlu0 %v4113_v27, %s5556_s7  ;;  %v4320_v27 = vunpack.c.l.bf16 %v4319_v36 }
0x301d   :  { %v4181_v29 = vpop.permute.xlu0 %4180 }
0x301e   :  { %v4183_v39 = vadd.f32 %v4181_v29, %v4173_v52 }
0x3020   :  { %5329 = vtanh.f32 %v4183_v39  ;;  %v4209_v41 = vrot.slane %v4183_v39, %v5883_v33 }
0x3021   :  { %v4116_v6 = vpop.permute.xlu0 %4115 }
0x3022   :  { %v4118_v7 = vadd.f32 %v4116_v6, %v4108_v12 }
0x3024   :  { %5331 = vtanh.f32 %v4118_v7  ;;  %v4144_v55 = vrot.slane %v4118_v7, %v5883_v33 }
0x302a   :  { %v5330_v13 = vpop.eup %5329 }
0x302b   :  { %4186 = vrot.lane.b32.xlu1 %v5330_v13, %s5561_s2 }
0x302e   :  { %v5332_v11 = vpop.eup %5331 }
0x302f   :  { %4121 = vrot.lane.b32.xlu0 %v5332_v11, %s5561_s2 }
0x309d   :  { %v4187_v34 = vpop.permute.xlu1 %4186 }
0x309e   :  { %v4189_v19 = vmul.f32 %v5326_v60, %v4187_v34 }
0x30a0   :  { %v4197_v4 = vrot.slane %v4189_v19, %v5883_v33 }
0x30a1   :  { %v4122_v56 = vpop.permute.xlu0 %4121 }
0x30a2   :  { %4198 = vrot.lane.b32.xlu1 %v4197_v4, %s5556_s7  ;;  %v4124_v49 = vmul.f32 %v5328_v50, %v4122_v56  ;;  %v4267_v50 = vld [vmem:[#allocation2 + $0xe] sm:$0x1] }
0x30a3   :  { %v4268_v52 = vunpack.c.l.bf16 %v4267_v50  ;;  %v4389_v50 = vld [vmem:[#allocation4 + $0x2] sm:$0x1] }
0x30a4   :  { %v4132_v51 = vrot.slane %v4124_v49, %v5883_v33 }
0x30a6   :  { %4210 = vrot.lane.b32.xlu1 %v4209_v41, %s5566_s19 }
0x30aa   :  { %4145 = vrot.lane.b32.xlu1 %v4144_v55, %s5566_s19 }
0x3114   :  { %v4199_v8 = vpop.permute.xlu1 %4198 }
0x3115   :  { %v4201_v63 = vsel %vm1147_vm11, %v4199_v8, %v6820_v43  ;;  %v4214_v58 = vsel %vm1147_vm11, %v4199_v8, 0.0  ;;  %v6935_v8 = vld [vmem:[#allocation3] sm:$0x1] }
0x3116   :  { %v4215_v26 = vpack.c.bf16 %v4214_v58, %v4214_v58  ;;  %v5022_v16 = vpack.i.bf16 %v4201_v63, %v4132_v51  ;;  %v4379_v63 = vunpack.c.l.bf16 %v6935_v8  ;;  %v6938_v58 = vld [vmem:[#allocation3 + $0x2] sm:$0x1] }
0x3118   :  { %4216 = vst.msk [vmem:[#allocation4 + $0x1] sm:$0x1] %vm990_vm6, %v4215_v26  ;;  %5023 = vrot.lane.b32.xlu0 %v5022_v16, %s5556_s7  ;;  %v4211_v5 = vpop.permute.xlu1 %4210  ;;  %v4409_v26 = vmul.f32 %v6893_v30, %v4379_v63  ;;  %v4381_v16 = vunpack.c.l.bf16 %v6938_v58 }
0x3119   :  { %v4213_v32 = vsel %vm1147_vm11, %v4211_v5, %v6830_v57  ;;  %v4380_v57 = vunpack.c.l.bf16 %v6884_v10  ;;  %vm4667_vm11 = vcmask 1047559  }
0x311a   :  { %v4336_v15 = vrot.slane %v4213_v32, %v5883_v33  ;;  %v4418_v5 = vsel %vm4417_vm9, %v4409_v26, 0.0  ;;  %v4411_v32 = vmul.f32 %v6893_v30, %v4381_v16 }
0x311c   :  { %4337 = vrot.lane.b32.xlu1 %v4336_v15, %s5556_s7  ;;  %v4146_v47 = vpop.permute.xlu1 %4145  ;;  %v4424_v15 = vsel %vm4417_vm9, %v4411_v32, 0.0 }
0x311d   :  { %v4148_v43 = vsel %vm1219_vm10, %v4146_v47, %v6838_v61  ;;  %v4410_v61 = vmul.f32 %v6893_v30, %v4380_v57 }
0x311e   :  { %v4284_v59 = vrot.slane %v4148_v43, %v5883_v33 }
0x311f   :  { %v4421_v18 = vsel %vm4417_vm9, %v4410_v61, 0.0 }
0x3120   :  { %4285 = vrot.lane.b32.xlu1 %v4284_v59, %s5556_s7 }
0x3144   :  { %4422 = vadd.xlane.f32.xlu1 %v4421_v18 }
0x3148   :  { %4431 = vadd.xlane.f32.xlu1 %v4430_v40  ;;  %v4374_v40 = vld [vmem:[#allocation3 + $0x3] sm:$0x1] }
0x3159   :  { %4554 = vrot.lane.b32.xlu1 %v4553_v48, %s5566_s19  ;;  %v4382_v48 = vunpack.c.l.bf16 %v4374_v40 }
0x315b   :  { %v4412_v9 = vmul.f32 %v6893_v30, %v4382_v48 }
0x317d   :  { %4434 = vadd.xlane.f32.xlu1 %v4433_v53  ;;  %v4427_v53 = vsel %vm4417_vm9, %v4412_v9, 0.0 }
0x318a   :  { %v5024_v42 = vpop.permute.xlu0 %5023 }
0x318b   :  { %v5026_v37 = vunpack.i.h.bf16 %v5024_v42  ;;  %v5025_v3 = vunpack.i.l.bf16 %v5024_v42  ;;  %v4449_v42 = vrot.slane %v6893_v30, %v5883_v33 }
0x318d   :  { %v4136_v31 = vsel %vm1219_vm10, %v5025_v3, %v6846_v28  ;;  %v4149_v21 = vsel %vm1219_vm10, %v5025_v3, 0.0  ;;  %vm4665_vm10 = vcmask 1046534  }
0x318e   :  { %v4150_v38 = vpack.c.bf16 %v4149_v21, %v4149_v21  ;;  %v4221_v60 = vsel %vm237_vm0, %v4136_v31, %v5026_v37  ;;  %v4338_v47 = vpop.permute.xlu1 %4337  ;;  %vm4655_vm0 = vcmask 1041409  }
0x318f   :  { %v4222_v35 = vpack.c.bf16 %v4221_v60, %v4221_v60 }
0x3190   :  { %4151 = vst.msk [vmem:[#allocation3 + $0x6] sm:$0x1] %vm990_vm6, %v4150_v38 }
0x3191   :  { %4927 = vmatmul.mubr.msk.bf16.vlgmr.msra.gmra.mrb[36].mxu1 %vm246_vm1, %v4222_v35  ;;  %vm4657_vm1 = vcmask 1042434  }
0x3192   :  { %v4286_v59 = vpop.permute.xlu1 %4285 }
0x3197   :  { %v6956_v37 = vld [vmem:[#allocation3 + $0x6] sm:$0x1] }
0x3198   :  { %v4385_v3 = vunpack.c.l.bf16 %v6956_v37 }
0x319a   :  { %v4415_v31 = vmul.f32 %v6893_v30, %v4385_v3 }
0x319c   :  { %v4436_v21 = vsel %vm4417_vm9, %v4415_v31, 0.0  ;;  %v4518_v31 = vmul.f32 %v6905_v1, %v4383_v44 }
0x3264   :  { %v4260_v23 = vpop.f32.mrb[36].mxu1 }
0x3265   :  { %v4262_v25 = vpop.f32.mrb[37].mxu1  ;;  %v4269_v62 = vadd.f32 %v4268_v52, %v4260_v23  ;;  %v4388_v23 = vld [vmem:[#allocation4 + $0x1] sm:$0x1] }
0x3266   :  { %v4321_v29 = vadd.f32 %v4320_v27, %v4262_v25  ;;  %v4264_v39 = vpop.f32.mrb[38].mxu1  ;;  %v4390_v27 = vld [vmem:[#allocation4 + $0x3] sm:$0x1]  ;;  %v4397_v25 = vunpack.c.l.bf16 %v4389_v50  ;;  %v4396_v52 = vunpack.c.l.bf16 %v4388_v23  ;;  %v4534_v50 = vsel %vm4417_vm9, %v4518_v31, 0.0 }
0x3267   :  { %v4265_v28 = vpop.f32.mrb[39].mxu1  ;;  %v4928_v7 = vmul.f32 -1.442695, %v4269_v62 }
0x3268   :  { %5333 = vtanh.f32 %v4321_v29  ;;  %v4929_v6 = vmul.f32 -1.442695, %v4321_v29 }
0x3269   :  { %5335 = vtanh.f32 %v4269_v62  ;;  %v4398_v62 = vunpack.c.l.bf16 %v4390_v27  ;;  %v4519_v27 = vmul.f32 %v6905_v1, %v4384_v46 }
0x326a   :  { %5337 = vpow2.f32 %v4929_v6 }
0x326b   :  { %5339 = vpow2.f32 %v4928_v7 }
0x3272   :  { %v5334_v45 = vpop.eup %5333 }
0x3273   :  { %4342 = vrot.lane.b32.xlu0 %v5334_v45, %s5561_s2  ;;  %v5336_v12 = vpop.eup %5335  ;;  %v4392_v45 = vld [vmem:[#allocation4 + $0x5] sm:$0x1] }
0x3274   :  { %v5338_v13 = vpop.eup %5337 }
0x3275   :  { %v4325_v11 = vadd.f32 1.0, %v5338_v13  ;;  %v5340_v34 = vpop.eup %5339 }
0x3276   :  { %v4273_v19 = vadd.f32 1.0, %v5340_v34 }
0x3277   :  { %4290 = vrot.lane.b32.xlu0 %v5336_v12, %s5561_s2  ;;  %5341 = vrcp.f32 %v4325_v11  ;;  %v4400_v11 = vunpack.c.l.bf16 %v4392_v45 }
0x3278   :  { %5343 = vrcp.f32 %v4273_v19  ;;  %v6979_v19 = vld [vmem:[#allocation4 + $0x7] sm:$0x1] }
0x3281   :  { %v6927_v4 = vpop.eup %5341 }
0x3282   :  { %v6931_v56 = vpop.eup %5343  ;;  %v4340_v13 = vmul.f32 %v6927_v4, %v4338_v47  ;;  %v4514_v47 = vmul.f32 %v6905_v1, %v4379_v63 }
0x3283   :  { %v4288_v17 = vmul.f32 %v6931_v56, %v4286_v59  ;;  %v4515_v59 = vmul.f32 %v6905_v1, %v4380_v57  ;;  %v4517_v57 = vmul.f32 %v6905_v1, %v4382_v48 }
0x3285   :  { %v4531_v40 = vsel %vm4417_vm9, %v4517_v57, 0.0 }
0x32e5   :  { %v4343_v41 = vpop.permute.xlu0 %4342 }
0x32e6   :  { %v4345_v55 = vmul.f32 %v6927_v4, %v4343_v41 }
0x32e8   :  { %4347 = vrot.lane.b32.xlu0 %v4345_v55, %s5556_s7 }
0x32e9   :  { %v4291_v49 = vpop.permute.xlu0 %4290 }
0x32ea   :  { %v4293_v51 = vmul.f32 %v6931_v56, %v4291_v49  ;;  %v6983_v49 = vpop.xlane.xlu1 %4422 }
0x32ec   :  { %4295 = vrot.lane.b32.xlu0 %v4293_v51, %s5556_s7  ;;  %v4402_v51 = vunpack.c.l.bf16 %v6979_v19 }
0x32ee   :  { %v6990_v32 = vpop.xlane.xlu1 %4431 }
0x330b   :  { %4419 = vadd.xlane.f32.xlu0 %v4418_v5 }
0x330f   :  { %4425 = vadd.xlane.f32.xlu0 %v4424_v15 }
0x335a   :  { %v4348_v43 = vpop.permute.xlu0 %4347 }
0x335b   :  { %v4350_v34 = vadd.f32 %v4348_v43, %v4340_v13  ;;  %v4522_v43 = vsel %vm4417_vm9, %v4514_v47, 0.0  ;;  %v4393_v13 = vld [vmem:[#allocation4 + $0x6] sm:$0x1] }
0x335e   :  { %v4296_v61 = vpop.permute.xlu0 %4295 }
0x335f   :  { %v4298_v18 = vadd.f32 %v4296_v61, %v4288_v17  ;;  %v7000_v61 = vpop.permute.xlu1 %4554 }
0x3360   :  { %v4559_v63 = vmul.f32 %v7000_v61, %v4397_v25  ;;  %v4560_v9 = vmul.f32 %v7000_v61, %v4398_v62  ;;  %v4562_v20 = vmul.f32 %v7000_v61, %v4400_v11 }
0x3361   :  { %5345 = vtanh.f32 %v4298_v18  ;;  %v4525_v18 = vsel %vm4417_vm9, %v4515_v59, 0.0 }
0x3362   :  { %5347 = vtanh.f32 %v4350_v34  ;;  %v4571_v10 = vsel %vm4417_vm9, %v4559_v63, 0.0 }
0x3363   :  { %v7030_v46 = vpop.xlane.xlu1 %4434 }
0x336b   :  { %v5346_v54 = vpop.eup %5345 }
0x336c   :  { %4301 = vrot.lane.b32.xlu0 %v5346_v54, %s5561_s2  ;;  %v5348_v17 = vpop.eup %5347  ;;  %v4558_v54 = vmul.f32 %v7000_v61, %v4396_v52 }
0x336e   :  { %v4568_v8 = vsel %vm4417_vm9, %v4558_v54, 0.0 }
0x338b   :  { %4428 = vadd.xlane.f32.xlu0 %v4427_v53  ;;  %v4391_v53 = vld [vmem:[#allocation4 + $0x4] sm:$0x1] }
0x3398   :  { %v6963_v38 = vpop.xlane.xlu0 %4419 }
0x339c   :  { %v6965_v60 = vpop.xlane.xlu0 %4425 }
0x33a1   :  { %4450 = vrot.lane.b32.xlu0 %v4449_v42, %s5566_s19  ;;  %v4574_v42 = vsel %vm4417_vm9, %v4560_v9, 0.0 }
0x33c0   :  { %4437 = vadd.xlane.f32.xlu0 %v4436_v21  ;;  %v4399_v21 = vunpack.c.l.bf16 %v4391_v53 }
0x33c2   :  { %v4561_v23 = vmul.f32 %v7000_v61, %v4399_v21 }
0x33c4   :  { %v4577_v48 = vsel %vm4417_vm9, %v4561_v23, 0.0 }
0x33de   :  { %v6967_v35 = vpop.permute.xlu0 %4301 }
0x33df   :  { %v4304_v45 = vmul.f32 %v6931_v56, %v6967_v35  ;;  %v4930_v56 = vld [vmem:[%s7147_s12] ss:$0 sm:$0xff] }
0x33e1   :  { %v4312_v37 = vrot.slane %v4304_v45, %v5883_v33 }
0x3418   :  { %v6969_v36 = vpop.xlane.xlu0 %4428 }
0x341c   :  { %v6971_v29 = vpop.permute.xlu0 %4450 }
0x341d   :  { %v4455_v39 = vmul.f32 %v6971_v29, %v4397_v25  ;;  %v4454_v28 = vmul.f32 %v6971_v29, %v4396_v52  ;;  %v4456_v7 = vmul.f32 %v6971_v29, %v4398_v62  ;;  %v4458_v55 = vmul.f32 %v6971_v29, %v4400_v11 }
0x341e   :  { %v4460_v5 = vmul.f32 %v6971_v29, %v4402_v51  ;;  %v4537_v25 = vsel %vm4417_vm9, %v4519_v27, 0.0  ;;  %v4457_v44 = vmul.f32 %v6971_v29, %v4399_v21  ;;  %v4580_v52 = vsel %vm4417_vm9, %v4562_v20, 0.0 }
0x341f   :  { %v4467_v12 = vsel %vm4417_vm9, %v4455_v39, 0.0  ;;  %v4464_v6 = vsel %vm4417_vm9, %v4454_v28, 0.0  ;;  %v4470_v41 = vsel %vm4417_vm9, %v4456_v7, 0.0  ;;  %v4476_v26 = vsel %vm4417_vm9, %v4458_v55, 0.0 }
0x3420   :  { %4468 = vadd.xlane.f32.xlu1 %v4467_v12  ;;  %4465 = vadd.xlane.f32.xlu0 %v4464_v6  ;;  %v4482_v15 = vsel %vm4417_vm9, %v4460_v5, 0.0  ;;  %v4520_v39 = vmul.f32 %v6905_v1, %v4385_v3  ;;  %v4473_v28 = vsel %vm4417_vm9, %v4457_v44, 0.0  ;;  %v4401_v11 = vunpack.c.l.bf16 %v4393_v13 }
0x3422   :  { %v4540_v0 = vsel %vm4417_vm9, %v4520_v39, 0.0  ;;  %v4459_v34 = vmul.f32 %v6971_v29, %v4401_v11  ;;  %v4563_v53 = vmul.f32 %v7000_v61, %v4401_v11 }
0x3424   :  { %4471 = vadd.xlane.f32.xlu0 %v4470_v41  ;;  %v4479_v41 = vsel %vm4417_vm9, %v4459_v34, 0.0 }
0x3428   :  { %4477 = vadd.xlane.f32.xlu0 %v4476_v26 }
0x342c   :  { %4483 = vadd.xlane.f32.xlu0 %v4482_v15 }
0x3430   :  { %4523 = vadd.xlane.f32.xlu0 %v4522_v43 }
0x3431   :  { %4353 = vrot.lane.b32.xlu1 %v5348_v17, %s5561_s2 }
0x3434   :  { %4526 = vadd.xlane.f32.xlu0 %v4525_v18 }
0x3438   :  { %4569 = vadd.xlane.f32.xlu0 %v4568_v8 }
0x343c   :  { %4572 = vadd.xlane.f32.xlu0 %v4571_v10 }
0x3440   :  { %4532 = vadd.xlane.f32.xlu0 %v4531_v40 }
0x3444   :  { %4575 = vadd.xlane.f32.xlu0 %v4574_v42  ;;  %v5363_v42 = vld [vmem:[%s7135_s0] sm:$0x3]  ;;  %s5568_s0 = smov [#allocation17]  }
0x3445   :  { %s4793_s24 = sshll.u32 %s5568_s0, 4  ;;  %s4794_s24 = int_to_ptr.vmem [resolvable:$true] %s4793_s24 }
0x3446   :  { %s5518_s27 = scalar_lea.vmem %s4794_s24, 64  ;;  %p5523_p1 = scmp.lt.s32.totalorder %s4794_s24, %s4794_s24 }
0x3447   :  { %p5519_p0 = scmp.ne.s32.totalorder %s4794_s24, %s5518_s27  ;;  %p5524_p2 = scmp.lt.s32.totalorder %s5518_s27, %s5518_s27 }
0x3448   :  { %4535 = vadd.xlane.f32.xlu0 %v4534_v50 }
0x3449   :  { %p5525_p3 = por %p5524_p2, %p5523_p1 }
0x344b   :  { %p5526_p4 = pnand %p5525_p3, %p5519_p0 }
0x344c   :  { %4578 = vadd.xlane.f32.xlu0 %v4577_v48 }
0x344d   :  { %v4438_v31 = vpop.xlane.xlu0 %4437 }
0x3450   :  { %4538 = vadd.xlane.f32.xlu0 %v4537_v25 }
0x3454   :  { %4581 = vadd.xlane.f32.xlu0 %v4580_v52 }
0x3455   :  { %4474 = vadd.xlane.f32.xlu1 %v4473_v28 }
0x3458   :  { %4541 = vadd.xlane.f32.xlu0 %v4540_v0 }
0x34ad   :  { %v7032_v62 = vpop.xlane.xlu1 %4468  ;;  %v4466_v21 = vpop.xlane.xlu0 %4465 }
0x34b1   :  { %v4354_v12 = vpop.permute.xlu1 %4353  ;;  %v4472_v50 = vpop.xlane.xlu0 %4471 }
0x34b2   :  { %v4356_v6 = vmul.f32 %v6927_v4, %v4354_v12  ;;  %v5567_v4 = vmov 1   ;;  %v4488_v13 = vadd.f32 %v4472_v50, %v6969_v36 }
0x34b4   :  { %v4364_v3 = vrot.slane %v4356_v6, %v5883_v33  ;;  %v4516_v33 = vmul.f32 %v6905_v1, %v4381_v16 }
0x34b5   :  { %v4478_v23 = vpop.xlane.xlu0 %4477 }
0x34b6   :  { %v5027_v7 = vpack.i.bf16 %v4364_v3, %v4312_v37  ;;  %v4528_v35 = vsel %vm4417_vm9, %v4516_v33, 0.0  ;;  %v7075_v37 = vand.u32 127, %v268_v14  ;;  %v4486_v3 = vadd.f32 %v4466_v21, %v6983_v49 }
0x34b7   :  { %v4490_v11 = vadd.f32 %v4478_v23, %v7030_v46 }
0x34b8   :  { %5028 = vrot.lane.b32.xlu1 %v5027_v7, %s5556_s7  ;;  %v4487_v7 = vadd.f32 %v7032_v62, %v6965_v60 }
0x34b9   :  { %v4484_v48 = vpop.xlane.xlu0 %4483 }
0x34bd   :  { %v4524_v27 = vpop.xlane.xlu0 %4523 }
0x34c1   :  { %v4527_v25 = vpop.xlane.xlu0 %4526 }
0x34c5   :  { %v4570_v19 = vpop.xlane.xlu0 %4569 }
0x34c6   :  { %v4590_v34 = vadd.f32 %v4570_v19, %v4527_v25 }
0x34c9   :  { %v4573_v20 = vpop.xlane.xlu0 %4572 }
0x34dc   :  { %4480 = vadd.xlane.f32.xlu1 %v4479_v41 }
0x34e2   :  { %v7049_v55 = vpop.xlane.xlu1 %4474 }
0x34e3   :  { %v4489_v60 = vadd.f32 %v7049_v55, %v6990_v32 }
0x34ed   :  { %4499 = vperm.xlu1 %4955, %v4930_v56  }
0x34f1   :  { %5032 = vset.pattern.permute.xlu1 %v5567_v4 }
0x3511   :  { %4529 = vadd.xlane.f32.xlu1 %v4528_v35  ;;  %v7084_v35 = vsub.s32 %v7075_v37, %v5866_v22 }
0x352a   :  { %v5029_v26 = vpop.permute.xlu1 %5028 }
0x352b   :  { %v5031_v5 = vunpack.i.h.bf16 %v5029_v26  ;;  %v5030_v15 = vunpack.i.l.bf16 %v5029_v26 }
0x352d   :  { %v4368_v47 = vsel %vm964_vm7, %v5031_v5, 0.0  ;;  %v4316_v43 = vsel %vm1024_vm5, %v5030_v15, 0.0  ;;  %vm4659_vm5 = vcmask 1043459   ;;  %vm4663_vm7 = vcmask 1045509  }
0x352e   :  { %v4369_v59 = vpack.c.bf16 %v4368_v47, %v4368_v47  ;;  %v4317_v17 = vpack.c.bf16 %v4316_v43, %v4316_v43 }
0x3530   :  { %4370 = vst.msk [vmem:[#allocation4] sm:$0x1] %vm990_vm6, %v4369_v59  ;;  %4318 = vst.msk [vmem:[#allocation3 + $0x7] sm:$0x1] %vm990_vm6, %v4317_v17  ;;  %vm4661_vm6 = vcmask 1044484  }
0x3537   :  { %v4387_v58 = vld [vmem:[#allocation4] sm:$0x1]  ;;  %v4378_v16 = vld [vmem:[#allocation3 + $0x7] sm:$0x1] }
0x3538   :  { %v4395_v18 = vunpack.c.l.bf16 %v4387_v58  ;;  %v4386_v54 = vunpack.c.l.bf16 %v4378_v16 }
0x353a   :  { %v4453_v8 = vmul.f32 %v6971_v29, %v4395_v18  ;;  %v4416_v63 = vmul.f32 %v6893_v30, %v4386_v54  ;;  %v4521_v24 = vmul.f32 %v6905_v1, %v4386_v54  ;;  %v4557_v57 = vmul.f32 %v7000_v61, %v4395_v18 }
0x353b   :  { %v4583_v30 = vsel %vm4417_vm9, %v4563_v53, 0.0  ;;  %v4564_v29 = vmul.f32 %v7000_v61, %v4402_v51  ;;  %v4533_v51 = vpop.xlane.xlu0 %4532 }
0x353c   :  { %v4461_v2 = vsel %vm4417_vm9, %v4453_v8, 0.0  ;;  %v4439_v10 = vsel %vm4417_vm9, %v4416_v63, 0.0  ;;  %v4543_v40 = vsel %vm4417_vm9, %v4521_v24, 0.0  ;;  %v4565_v9 = vsel %vm4417_vm9, %v4557_v57, 0.0 }
0x353d   :  { %4462 = vadd.xlane.f32.xlu1 %v4461_v2  ;;  %4440 = vadd.xlane.f32.xlu0 %v4439_v10  ;;  %v4586_v1 = vsel %vm4417_vm9, %v4564_v29, 0.0 }
0x353f   :  { %v4576_v61 = vpop.xlane.xlu0 %4575 }
0x3540   :  { %v4592_v4 = vadd.f32 %v4576_v61, %v4533_v51 }
0x3541   :  { %4544 = vadd.xlane.f32.xlu1 %v4543_v40  ;;  %4566 = vadd.xlane.f32.xlu0 %v4565_v9 }
0x3543   :  { %v4536_v44 = vpop.xlane.xlu0 %4535 }
0x3545   :  { %4584 = vadd.xlane.f32.xlu0 %v4583_v30 }
0x3547   :  { %v4579_v52 = vpop.xlane.xlu0 %4578 }
0x3548   :  { %v4593_v26 = vadd.f32 %v4579_v52, %v4536_v44 }
0x3549   :  { %4587 = vadd.xlane.f32.xlu0 %v4586_v1 }
0x354b   :  { %v4539_v39 = vpop.xlane.xlu0 %4538 }
0x354f   :  { %v4582_v0 = vpop.xlane.xlu0 %4581 }
0x3550   :  { %v4594_v49 = vadd.f32 %v4582_v0, %v4539_v39 }
0x3552   :  { %4598 = vperm.xlu1 %5032, %v4930_v56  }
0x3553   :  { %v4542_v12 = vpop.xlane.xlu0 %4541 }
0x355f   :  { %4612 = vperm.xlu0 %4956, %v5363_v42  }
0x3569   :  { %v4481_v28 = vpop.xlane.xlu1 %4480 }
0x356a   :  { %v4491_v46 = vadd.f32 %v4481_v28, %v4438_v31 }
0x356d   :  { %v4500_v45 = vpop.permute.xlu1 %4499 }
0x356e   :  { %v4503_v33 = vadd.f32 %v4500_v45, %v4486_v3  ;;  %v4504_v62 = vadd.f32 %v4500_v45, %v4487_v7  ;;  %v4505_v43 = vadd.f32 %v4500_v45, %v4488_v13  ;;  %v4506_v59 = vadd.f32 %v4500_v45, %v4489_v60 }
0x356f   :  { %v4507_v32 = vadd.f32 %v4500_v45, %v4490_v11  ;;  %v4508_v55 = vadd.f32 %v4500_v45, %v4491_v46 }
0x3570   :  { %v4630_v22 = vrot.slane %v4503_v33, %v7084_v35  ;;  %v4634_v17 = vrot.slane %v4504_v62, %v7084_v35  ;;  %v4638_v10 = vrot.slane %v4505_v43, %v7084_v35  ;;  %v4642_v24 = vrot.slane %v4506_v59, %v7084_v35 }
0x3571   :  { %v4646_v30 = vrot.slane %v4507_v32, %v7084_v35  ;;  %v4650_v29 = vrot.slane %v4508_v55, %v7084_v35 }
0x359e   :  { %v4530_v6 = vpop.xlane.xlu1 %4529 }
0x359f   :  { %v4591_v58 = vadd.f32 %v4573_v20, %v4530_v6 }
0x35ca   :  { %v4463_v41 = vpop.xlane.xlu1 %4462  ;;  %v4441_v56 = vpop.xlane.xlu0 %4440 }
0x35cb   :  { %v4485_v14 = vadd.f32 %v4463_v41, %v6963_v38  ;;  %v4492_v5 = vadd.f32 %v4484_v48, %v4441_v56 }
0x35cd   :  { %v4502_v36 = vadd.f32 %v4500_v45, %v4485_v14  ;;  %v4509_v8 = vadd.f32 %v4500_v45, %v4492_v5 }
0x35ce   :  { %v4545_v15 = vpop.xlane.xlu1 %4544  ;;  %v4567_v47 = vpop.xlane.xlu0 %4566 }
0x35cf   :  { %v4626_v38 = vrot.slane %v4502_v36, %v7084_v35  ;;  %v4589_v18 = vadd.f32 %v4567_v47, %v4524_v27  ;;  %v4654_v48 = vrot.slane %v4509_v8, %v7084_v35 }
0x35d1   :  { %v4656_v16 = vsel %vm4655_vm0, %v4630_v22, %v4626_v38 }
0x35d2   :  { %v4658_v54 = vsel %vm4657_vm1, %v4634_v17, %v4656_v16  ;;  %v4599_v63 = vpop.permute.xlu1 %4598  ;;  %v4585_v2 = vpop.xlane.xlu0 %4584 }
0x35d3   :  { %v4601_v57 = vadd.f32 %v4599_v63, %v4589_v18  ;;  %v4602_v40 = vadd.f32 %v4599_v63, %v4590_v34  ;;  %v4603_v9 = vadd.f32 %v4599_v63, %v4591_v58  ;;  %v4595_v53 = vadd.f32 %v4585_v2, %v4542_v12 }
0x35d4   :  { %v4660_v1 = vsel %vm4659_vm5, %v4638_v10, %v4658_v54  ;;  %v4604_v42 = vadd.f32 %v4599_v63, %v4592_v4  ;;  %v4605_v21 = vadd.f32 %v4599_v63, %v4593_v26  ;;  %v4606_v19 = vadd.f32 %v4599_v63, %v4594_v49 }
0x35d5   :  { %v4662_v31 = vsel %vm4661_vm6, %v4642_v24, %v4660_v1  ;;  %v4716_v50 = vrot.slane %v4601_v57, %v7084_v35  ;;  %v4720_v23 = vrot.slane %v4602_v40, %v7084_v35  ;;  %v4724_v20 = vrot.slane %v4603_v9, %v7084_v35 }
0x35d6   :  { %v4588_v27 = vpop.xlane.xlu0 %4587  ;;  %v4664_v25 = vsel %vm4663_vm7, %v4646_v30, %v4662_v31  ;;  %v4607_v51 = vadd.f32 %v4599_v63, %v4595_v53  ;;  %v4728_v39 = vrot.slane %v4604_v42, %v7084_v35  ;;  %v4732_v45 = vrot.slane %v4605_v21, %v7084_v35 }
0x35d7   :  { %v4596_v61 = vadd.f32 %v4588_v27, %v4545_v15  ;;  %v4666_v44 = vsel %vm4665_vm10, %v4650_v29, %v4664_v25  ;;  %v4745_v28 = vsel %vm4655_vm0, %v4720_v23, %v4716_v50  ;;  %v4736_v6 = vrot.slane %v4606_v19, %v7084_v35 }
0x35d8   :  { %v4668_v52 = vsel %vm4667_vm11, %v4654_v48, %v4666_v44  ;;  %v4746_v12 = vsel %vm4657_vm1, %v4724_v20, %v4745_v28  ;;  %v4740_v7 = vrot.slane %v4607_v51, %v7084_v35 }
0x35d9   :  { %v4608_v0 = vadd.f32 %v4599_v63, %v4596_v61  ;;  %4670 = vxpose.xlu1.b32.start.end [1/1] (short) (narrow) %v4668_v52, 8  ;;  %v4747_v3 = vsel %vm4659_vm5, %v4728_v39, %v4746_v12 }
0x35da   :  { %v4748_v11 = vsel %vm4661_vm6, %v4732_v45, %v4747_v3 }
0x35db   :  { %v4744_v13 = vrot.slane %v4608_v0, %v7084_v35  ;;  %v4749_v34 = vsel %vm4663_vm7, %v4736_v6, %v4748_v11 }
0x35dc   :  { %v4750_v41 = vsel %vm4665_vm10, %v4740_v7, %v4749_v34 }
0x35dd   :  { %v4751_v56 = vsel %vm4667_vm11, %v4744_v13, %v4750_v41 }
0x35de   :  { %4753 = vxpose.xlu0.b32.start.end [1/1] (short) (narrow) %v4751_v56, 8  ;;  %v4613_v4 = vpop.permute.xlu0 %4612 }
0x35df   :  { %vm4614_vm13 = vcmp.lt.s32.totalorder %v7075_v37, %v4613_v4 }
0x3659   :  { %v4686_v33 = vpop.trf.xlu1 }
0x365a   :  { %v4702_v14 = vsel %vm4614_vm13, %v4686_v33, -10000.0 }
0x365b   :  { %4704 = vst.msk [vmem:[#allocation17] sm:$0x3] %vm4703_vm12, %v4702_v14 }
0x365e   :  { %v4769_v26 = vpop.trf.xlu0 }
0x365f   :  { %v4785_v35 = vsel %vm4614_vm13, %v4769_v26, -10000.0 }
0x3660   :  { %4787 = vst.msk [vmem:[#allocation17 + $0x2] sm:$0x3] %vm4703_vm12, %v4785_v35 }
0x3661   :  { %5529 = shalt.err (!%p5526_p4)
}
0x3662   :  { %s5530_s23 = scalar_lea.hbm %s7148_s13, 64 }
0x3663   :  { %p5531_p5 = scmp.ne.s32.totalorder %s7148_s13, %s5530_s23  ;;  %p5534_p6 = scmp.lt.u32.totalorder %s5530_s23, %s7148_s13 }
0x3665   :  { %p5536_p7 = pnand %p5534_p6, %p5531_p5 }
0x3667   :  { %5539 = shalt.err (!%p5536_p7)
}
0x3668   :  { %4799 = dma.vmem_to_hbm [thread:$0]  %s4794_s24, 64, %s7148_s13, [#allocation7], %s5556_s7, %s5556_s7, %s5557_s25  }
0x3669   :  { %5548 = dma.done.wait [#allocation7], 64  }
0x366a   :  { %5549 = vsyncadd [#allocation7], 4294967232 }
0x366b   :  { %4803 = vsyncpa [#allocation6], 1 }
0x366c   :  { %4804 = vsyncpa [#allocation9], 1 }
0x366d   :  { %4805 = vsyncpa [#allocation12], 1 }
0x366e   :  { %4806 = vsyncpa [#allocation15], 1 }
0x366f   :  { %4807 = vsyncpa [#allocation7], 1 }

</bundles_post_ra>
